<compile_context>
chip_gen: v7x
topology: tpu7x:2x2x1
jax: 0.10.0
libtpu: 0.0.40
codegen_flags: <defaults>
</compile_context>

<pallas_src>
import functools

import numpy as np
import jax
import jax.numpy as jnp
from jax.experimental import pallas as pl
from jax.experimental.pallas import tpu as pltpu

# ---------------- model constants (from GAT1NN2(6, 20, 16, 32, 3, 0.4, B)) ----
N_NODES = 6
NFEAT = 20
NHID = 16
NHEADS = 3
HH = NHEADS * NHID           # 48 useful lanes per node block
NODE_PAD = 64                # node block padded to 64 lanes -> lane-dense math
FULL = N_NODES * NODE_PAD    # 384 = 3 full vregs
L1_OUT = 32                  # linear1: Linear(6*3*16=288, 32)
L2_OUT = 64                  # linear2: Linear(6*20=120, 64)
L3_OUT = 32                  # linear3: Linear(32+64=96, 32)
LEAKY_SLOPE = 0.2            # pyGAT default alpha

FLAT_IN = N_NODES * NFEAT    # 120

# fused (120, 1280) weight column layout (all slab starts are 128-aligned)
F1_OFF = FULL                # 384 : per-(node,head) a1-scores, hid-replicated
F2_OFF = 2 * FULL            # 768 : per-(node,head) a2-scores, hid-replicated
W2_OFF = 3 * FULL            # 1152: linear2
WBIG_COLS = W2_OFF + 128     # 1280: linear2's 64 cols + 64 zero pad (lane mult of 128)


def _leaky_relu(x):
    # slope < 1  =>  leaky_relu(x) == max(x, slope * x)  (1 mul + 1 max, no select)
    return jnp.maximum(x, x * LEAKY_SLOPE)


def _elu(x):
    return jnp.where(x > 0, x, jnp.exp(x) - 1.0)


def _relu(x):
    return jnp.maximum(x, 0.0)


def _round_up(x, m):
    return (x + m - 1) // m * m


# --------------------------------- Pallas kernel ------------------------------
def gat_audio_kernel(x_ref, wbig_ref, w1_ref, b1_ref, b2_ref,
                     w3x_ref, w3y_ref, b3_ref, w4_ref, b4_ref,
                     out_ref, *, attn_dtype):
    # One wide MXU matmul per tile produces, per batch row (f32 accumulate):
    #   lanes [0,384)     : Wh projections, node-major / head / hid (pad lanes = 0)
    #   lanes [384,768)   : f1[n,h] = x_n . (W_h a1_h), replicated over 16 hid lanes
    #   lanes [768,1152)  : f2[n,h] = x_n . (W_h a2_h), replicated over 16 hid lanes
    #   lanes [1152,1216) : linear2 pre-activation
    ybig = jnp.dot(x_ref[...], wbig_ref[...], preferred_element_type=jnp.float32)

    # Full-width, 128-aligned slabs (clean vreg slices, no relayout copies).
    wh = ybig[:, :FULL].astype(attn_dtype)
    f1 = ybig[:, F1_OFF:F1_OFF + FULL].astype(attn_dtype)
    f2 = ybig[:, F2_OFF:F2_OFF + FULL].astype(attn_dtype)
    y_pre = ybig[:, W2_OFF:W2_OFF + L2_OUT]

    # ---- 3-head GAT over the fully connected 6-node graph, lane-dense -------
    # Node m's data is brought to node n's 64-lane block with an XLU lane roll
    # by 64*s; the score/value pairing is shift-consistent, so the softmax sum
    # over all 6 shifts is independent of the roll direction.
    #
    # Pass 1: softmax max.  leaky_relu is monotone, so
    #   max_m leaky(f1 + f2[m]) == leaky(f1 + max_m f2[m]).
    f2m = f2
    for s in range(1, N_NODES):
        f2m = jnp.maximum(f2m, pltpu.roll(f2, shift=s * NODE_PAD, axis=1))
    emax = _leaky_relu(f1 + f2m)

    # Pass 2: fold each shifted score straight into denom / acc (rolls are
    # recomputed instead of keeping 6 full-width slabs alive -> small live set).
    p = jnp.exp(_leaky_relu(f1 + f2) - emax)
    denom = p
    acc = p * wh
    for s in range(1, N_NODES):
        p = jnp.exp(_leaky_relu(f1 + pltpu.roll(f2, shift=s * NODE_PAD, axis=1)) - emax)
        denom = denom + p
        acc = acc + p * pltpu.roll(wh, shift=s * NODE_PAD, axis=1)

    # Normalize + ELU in f32; pad lanes stay exactly 0 (wh pad lanes are 0 and
    # W1 pad rows are 0, so they never contribute).
    feat = _elu(acc.astype(jnp.float32) *
                pl.reciprocal(denom.astype(jnp.float32), approx=True))   # (TB, 384)

    # ---- MLP head of GAT1NN2 (dropouts are identity in eval mode) -----------
    x1 = _relu(jnp.dot(feat, w1_ref[...], preferred_element_type=jnp.float32) + b1_ref[...])
    y = _relu(y_pre + b2_ref[...])
    # linear3 on cat([x1, y]) without a lane concat: W3 split into row blocks.
    xy = _relu(jnp.dot(x1, w3x_ref[...], preferred_element_type=jnp.float32)
               + jnp.dot(y, w3y_ref[...], preferred_element_type=jnp.float32)
               + b3_ref[...])

    # audio_out: Linear(32, 1) as a VPU multiply + lane reduce (avoid N=1 MXU pass).
    out_ref[...] = jnp.sum(xy * w4_ref[...], axis=-1, keepdims=True) + b4_ref[...]


# ------------------------- host-side one-time param fusion --------------------
def fuse_params(params):
    """Fold the per-node/per-head GAT projections, the a1/a2 score vectors
    (replicated over the 16 hid lanes) and linear2 into one (120, 1280) weight
    with 64-lane-padded node blocks; re-lay W1 rows to the padded feat layout
    and split W3 so no lane concatenation is needed in the kernel."""
    Wh = np.asarray(params["Wh"], np.float32)   # (3, 20, 16)
    a1 = np.asarray(params["a1"], np.float32)   # (3, 1, 16)
    a2 = np.asarray(params["a2"], np.float32)   # (3, 1, 16)
    W1 = np.asarray(params["W1"], np.float32)   # (288, 32)
    W2 = np.asarray(params["W2"], np.float32)   # (120, 64)
    W3 = np.asarray(params["W3"], np.float32)   # (96, 32)

    wbig = np.zeros((FLAT_IN, WBIG_COLS), np.float32)
    w1p = np.zeros((FULL, L1_OUT), np.float32)
    for n in range(N_NODES):
        rows = slice(n * NFEAT, (n + 1) * NFEAT)
        base = n * NODE_PAD
        for h in range(NHEADS):
            c = base + h * NHID           # node-major / head / hid (matches flatten)
            wbig[rows, c:c + NHID] = Wh[h]
            v1 = Wh[h] @ a1[h, 0]         # (20,)
            v2 = Wh[h] @ a2[h, 0]
            wbig[rows, F1_OFF + c:F1_OFF + c + NHID] = v1[:, None]
            wbig[rows, F2_OFF + c:F2_OFF + c + NHID] = v2[:, None]
        # W1 rows re-laid out to the padded (node-major, 64-lane-block) feat layout
        w1p[base:base + HH, :] = W1[n * HH:(n + 1) * HH, :]
    wbig[:, W2_OFF:W2_OFF + L2_OUT] = W2

    return {
        "Wbig": jnp.asarray(wbig),
        "W1": jnp.asarray(w1p),                 # (384, 32), zero pad rows
        "b1": jnp.asarray(params["b1"]),
        "b2": jnp.asarray(params["b2"]),
        "W3x": jnp.asarray(W3[:L1_OUT]),        # rows for x1
        "W3y": jnp.asarray(W3[L1_OUT:]),        # rows for y
        "b3": jnp.asarray(params["b3"]),
        "w4": jnp.asarray(np.asarray(params["W4"], np.float32).T),   # (1, 32)
        "b4": jnp.asarray(params["b4"]),
    }


# ------------------------------ device heuristics -----------------------------
def _device_kind():
    try:
        return jax.devices()[0].device_kind.lower()
    except Exception:
        return ""


def _default_attn_dtype():
    # v6e / v7x have bf16 VPU + EUP: run the VALU-bound attention elementwise
    # math in bf16 there.  v5e (and older / unknown chips) stays f32.
    kind = _device_kind()
    if ("v6" in kind) or ("v7" in kind) or ("7x" in kind):
        return jnp.bfloat16
    return jnp.float32


def _pick_tile_b(B):
    # VMEM is not the limiter (a few MB per tile); size the tile to amortize the
    # ~0.35us/grid-step overhead while keeping vreg/stream pressure sane, and
    # give v7x's two TensorCores an even grid.  Larger tiles are fine too —
    # just pass vmem_limit_bytes if you go past ~512 rows.
    kind = _device_kind()
    if ("v7" in kind) or ("7x" in kind):
        t = _round_up((B + 1) // 2, 8)   # grid of (at least) 2 equal tiles
    else:
        t = _round_up(B, 8)              # single TC: fewest grid steps
    return int(max(8, min(256, t)))


# ------------------------------------ wrapper ---------------------------------
def tdcnn_gat1nn2_audio(x_flat, fused, *, tile_b=None, mxu_dtype=jnp.bfloat16,
                        attn_dtype=None, vmem_limit_bytes=None):
    """x_flat: (B, 120) f32 flattened loop_feat_tensor. Returns (B, 1) f32."""
    B = x_flat.shape[0]
    if tile_b is None:
        tile_b = _pick_tile_b(B)
    tile_b = max(8, (int(tile_b) // 8) * 8)
    if attn_dtype is None:
        attn_dtype = _default_attn_dtype()

    Bp = _round_up(B, tile_b)
    if Bp != B:
        x_flat = jnp.pad(x_flat, ((0, Bp - B), (0, 0)))

    wbig = fused["Wbig"]
    if mxu_dtype is not None:
        # bf16 operands on the MXU (full rate on all generations; f32 accumulate
        # via preferred_element_type).  Also halves x / Wbig DMA bytes.
        x_flat = x_flat.astype(mxu_dtype)
        wbig = wbig.astype(mxu_dtype)

    def full(shape):
        nd = len(shape)
        return pl.BlockSpec(shape, lambda i, _nd=nd: (0,) * _nd)

    in_specs = [
        pl.BlockSpec((tile_b, FLAT_IN), lambda i: (i, 0)),
        # Constant block indices => weights/biases are fetched once and stay
        # resident in VMEM across grid steps.
        full(wbig.shape),
        full(fused["W1"].shape), full(fused["b1"].shape),
        full(fused["b2"].shape),
        full(fused["W3x"].shape), full(fused["W3y"].shape), full(fused["b3"].shape),
        full(fused["w4"].shape), full(fused["b4"].shape),
    ]

    kernel = functools.partial(gat_audio_kernel, attn_dtype=attn_dtype)
    out = pl.pallas_call(
        kernel,
        out_shape=jax.ShapeDtypeStruct((Bp, 1), jnp.float32),
        grid_spec=pltpu.PrefetchScalarGridSpec(
            num_scalar_prefetch=0,
            grid=(Bp // tile_b,),
            in_specs=in_specs,
            out_specs=pl.BlockSpec((tile_b, 1), lambda i: (i, 0)),
        ),
        compiler_params=pltpu.CompilerParams(
            dimension_semantics=("parallel",),
            vmem_limit_bytes=vmem_limit_bytes),
    )(x_flat, wbig, fused["W1"], fused["b1"], fused["b2"],
      fused["W3x"], fused["W3y"], fused["b3"], fused["w4"], fused["b4"])
    return out[:B]


# -------------------------- pure-JAX reference (for checking) -----------------
def reference(x_flat, params):
    B = x_flat.shape[0]
    x3 = x_flat.reshape(B, N_NODES, NFEAT)
    heads = []
    for h in range(NHEADS):
        Wh = jnp.einsum("bnf,fo->bno", x3, params["Wh"][h])
        f1 = jnp.einsum("bno,o->bn", Wh, params["a1"][h, 0])
        f2 = jnp.einsum("bno,o->bn", Wh, params["a2"][h, 0])
        e = _leaky_relu(f1[:, :, None] + f2[:, None, :])
        att = jax.nn.softmax(e, axis=-1)
        hp = jnp.einsum("bnm,bmo->bno", att, Wh)
        heads.append(_elu(hp))
    xc = jnp.concatenate(heads, axis=2).reshape(B, -1)            # (B, 288)
    x1 = _relu(xc @ params["W1"] + params["b1"])
    y = _relu(x_flat @ params["W2"] + params["b2"])
    xy = _relu(jnp.concatenate([x1, y], axis=1) @ params["W3"] + params["b3"])
    return xy @ params["W4"] + params["b4"]


# ---------------------------------- params ------------------------------------
def init_params(key):
    ks = jax.random.split(key, 12)

    def lin(k, fan_in, shape):
        # matches _initialize_weights_randomly: normal(0, sqrt(2/fan_in))
        return jax.random.normal(k, shape, jnp.float32) * np.sqrt(2.0 / fan_in)

    return {
        "Wh": lin(ks[0], NFEAT, (NHEADS, NFEAT, NHID)),
        "a1": jax.random.normal(ks[1], (NHEADS, 1, NHID), jnp.float32) * 0.1,
        "a2": jax.random.normal(ks[2], (NHEADS, 1, NHID), jnp.float32) * 0.1,
        "W1": lin(ks[3], N_NODES * HH, (N_NODES * HH, L1_OUT)),
        "b1": jax.random.normal(ks[4], (1, L1_OUT), jnp.float32) * 0.01,
        "W2": lin(ks[5], FLAT_IN, (FLAT_IN, L2_OUT)),
        "b2": jax.random.normal(ks[6], (1, L2_OUT), jnp.float32) * 0.01,
        "W3": lin(ks[7], L1_OUT + L2_OUT, (L1_OUT + L2_OUT, L3_OUT)),
        "b3": jax.random.normal(ks[8], (1, L3_OUT), jnp.float32) * 0.01,
        "W4": lin(ks[9], L3_OUT, (L3_OUT, 1)),
        "b4": jax.random.normal(ks[10], (1, 1), jnp.float32) * 0.01,
    }


if __name__ == "__main__":
    key = jax.random.PRNGKey(0)
    k_param, k_data = jax.random.split(key)

    params = init_params(k_param)
    fused = fuse_params(params)

    B = 128
    # loop_feat_tensor: (B, num_nodes=6, nfeat=20)
    loop_feat = jax.random.normal(k_data, (B, N_NODES, NFEAT), jnp.float32)
    x_flat = loop_feat.reshape(B, FLAT_IN)   # row-major == torch.flatten(input, 1)

    out = jax.block_until_ready(tdcnn_gat1nn2_audio(x_flat, fused))
    assert out.shape == (B, 1)

    ref = jax.block_until_ready(reference(x_flat, params))
    # bf16 MXU operands (default) and bf16 attention elementwise on v6e/v7x
    # => compare against the f32 reference at a bf16-appropriate tolerance.
    np.testing.assert_allclose(np.asarray(out), np.asarray(ref), rtol=5e-2, atol=5e-2)

    print("KERNEL_OK")
</pallas_src>

<mosaic_0001>
module attributes {stable_mosaic.version = 11 : i64} {
  func.func @gat_audio_kernel(%arg0: i32, %arg1: memref<128x120xbf16, #tpu.memory_space<vmem>>, %arg2: memref<120x1280xbf16, #tpu.memory_space<vmem>>, %arg3: memref<384x32xf32, #tpu.memory_space<vmem>>, %arg4: memref<1x32xf32, #tpu.memory_space<vmem>>, %arg5: memref<1x64xf32, #tpu.memory_space<vmem>>, %arg6: memref<32x32xf32, #tpu.memory_space<vmem>>, %arg7: memref<64x32xf32, #tpu.memory_space<vmem>>, %arg8: memref<1x32xf32, #tpu.memory_space<vmem>>, %arg9: memref<1x32xf32, #tpu.memory_space<vmem>>, %arg10: memref<1x1xf32, #tpu.memory_space<vmem>>, %arg11: memref<128x1xf32, #tpu.memory_space<vmem>>) attributes {dimension_semantics = [#tpu.dimension_semantics<parallel>], iteration_bounds = array<i64: 1>, scalar_prefetch = 0 : i64, scratch_operands = 0 : i64, tpu.core_type = #tpu.core_type<tc>, window_params = [{transform_indices = @transform_0, window_bounds = array<i64: 128, 120>}, {pipeline_mode = #tpu.pipeline_mode<synchronous>, transform_indices = @transform_1, window_bounds = array<i64: 120, 1280>}, {pipeline_mode = #tpu.pipeline_mode<synchronous>, transform_indices = @transform_2, window_bounds = array<i64: 384, 32>}, {pipeline_mode = #tpu.pipeline_mode<synchronous>, transform_indices = @transform_3, window_bounds = array<i64: 1, 32>}, {pipeline_mode = #tpu.pipeline_mode<synchronous>, transform_indices = @transform_4, window_bounds = array<i64: 1, 64>}, {pipeline_mode = #tpu.pipeline_mode<synchronous>, transform_indices = @transform_5, window_bounds = array<i64: 32, 32>}, {pipeline_mode = #tpu.pipeline_mode<synchronous>, transform_indices = @transform_6, window_bounds = array<i64: 64, 32>}, {pipeline_mode = #tpu.pipeline_mode<synchronous>, transform_indices = @transform_7, window_bounds = array<i64: 1, 32>}, {pipeline_mode = #tpu.pipeline_mode<synchronous>, transform_indices = @transform_8, window_bounds = array<i64: 1, 32>}, {pipeline_mode = #tpu.pipeline_mode<synchronous>, transform_indices = @transform_9, window_bounds = array<i64: 1, 1>}, {transform_indices = @transform_10, window_bounds = array<i64: 128, 1>}]} {
    %c0 = arith.constant 0 : index
    %c0_0 = arith.constant 0 : index
    %0 = vector.load %arg1[%c0, %c0_0] : memref<128x120xbf16, #tpu.memory_space<vmem>>, vector<128x120xbf16>
    %c0_1 = arith.constant 0 : index
    %c0_2 = arith.constant 0 : index
    %1 = vector.load %arg2[%c0_1, %c0_2] : memref<120x1280xbf16, #tpu.memory_space<vmem>>, vector<120x1280xbf16>
    %cst = arith.constant dense<0.000000e+00> : vector<128x1280xf32>
    %2 = tpu.matmul %0, %1, %cst {dimension_numbers = #tpu.dot_dimension_numbers<[1], [0], [0], [1], [0, 0, 1, 1], [], []>} : vector<128x120xbf16>, vector<120x1280xbf16>, vector<128x1280xf32> -> vector<128x1280xf32>
    %3 = vector.extract_strided_slice %2 {offsets = [0, 0], sizes = [128, 384], strides = [1, 1]} : vector<128x1280xf32> to vector<128x384xf32>
    %4 = vector.extract_strided_slice %2 {offsets = [0, 384], sizes = [128, 384], strides = [1, 1]} : vector<128x1280xf32> to vector<128x384xf32>
    %5 = vector.extract_strided_slice %2 {offsets = [0, 768], sizes = [128, 384], strides = [1, 1]} : vector<128x1280xf32> to vector<128x384xf32>
    %6 = vector.extract_strided_slice %2 {offsets = [0, 1152], sizes = [128, 64], strides = [1, 1]} : vector<128x1280xf32> to vector<128x64xf32>
    %c64_i32 = arith.constant 64 : i32
    %7 = tpu.dynamic_rotate %5 by %c64_i32 dim 1 : vector<128x384xf32>, i32 -> vector<128x384xf32>
    %8 = arith.maximumf %5, %7 : vector<128x384xf32>
    %c128_i32 = arith.constant 128 : i32
    %9 = tpu.dynamic_rotate %5 by %c128_i32 dim 1 : vector<128x384xf32>, i32 -> vector<128x384xf32>
    %10 = arith.maximumf %8, %9 : vector<128x384xf32>
    %c192_i32 = arith.constant 192 : i32
    %11 = tpu.dynamic_rotate %5 by %c192_i32 dim 1 : vector<128x384xf32>, i32 -> vector<128x384xf32>
    %12 = arith.maximumf %10, %11 : vector<128x384xf32>
    %c256_i32 = arith.constant 256 : i32
    %13 = tpu.dynamic_rotate %5 by %c256_i32 dim 1 : vector<128x384xf32>, i32 -> vector<128x384xf32>
    %14 = arith.maximumf %12, %13 : vector<128x384xf32>
    %c320_i32 = arith.constant 320 : i32
    %15 = tpu.dynamic_rotate %5 by %c320_i32 dim 1 : vector<128x384xf32>, i32 -> vector<128x384xf32>
    %16 = arith.maximumf %14, %15 : vector<128x384xf32>
    %17 = arith.addf %4, %16 : vector<128x384xf32>
    %cst_3 = arith.constant 2.000000e-01 : f32
    %18 = vector.broadcast %cst_3 : f32 to vector<128x384xf32>
    %19 = arith.mulf %17, %18 : vector<128x384xf32>
    %20 = arith.maximumf %17, %19 : vector<128x384xf32>
    %21 = arith.addf %4, %5 : vector<128x384xf32>
    %cst_4 = arith.constant 2.000000e-01 : f32
    %22 = vector.broadcast %cst_4 : f32 to vector<128x384xf32>
    %23 = arith.mulf %21, %22 : vector<128x384xf32>
    %24 = arith.maximumf %21, %23 : vector<128x384xf32>
    %25 = arith.subf %24, %20 : vector<128x384xf32>
    %26 = math.exp %25 : vector<128x384xf32>
    %27 = arith.mulf %26, %3 : vector<128x384xf32>
    %c64_i32_5 = arith.constant 64 : i32
    %28 = tpu.dynamic_rotate %5 by %c64_i32_5 dim 1 : vector<128x384xf32>, i32 -> vector<128x384xf32>
    %29 = arith.addf %4, %28 : vector<128x384xf32>
    %cst_6 = arith.constant 2.000000e-01 : f32
    %30 = vector.broadcast %cst_6 : f32 to vector<128x384xf32>
    %31 = arith.mulf %29, %30 : vector<128x384xf32>
    %32 = arith.maximumf %29, %31 : vector<128x384xf32>
    %33 = arith.subf %32, %20 : vector<128x384xf32>
    %34 = math.exp %33 : vector<128x384xf32>
    %35 = arith.addf %26, %34 : vector<128x384xf32>
    %c64_i32_7 = arith.constant 64 : i32
    %36 = tpu.dynamic_rotate %3 by %c64_i32_7 dim 1 : vector<128x384xf32>, i32 -> vector<128x384xf32>
    %37 = arith.mulf %34, %36 : vector<128x384xf32>
    %38 = arith.addf %27, %37 : vector<128x384xf32>
    %c128_i32_8 = arith.constant 128 : i32
    %39 = tpu.dynamic_rotate %5 by %c128_i32_8 dim 1 : vector<128x384xf32>, i32 -> vector<128x384xf32>
    %40 = arith.addf %4, %39 : vector<128x384xf32>
    %cst_9 = arith.constant 2.000000e-01 : f32
    %41 = vector.broadcast %cst_9 : f32 to vector<128x384xf32>
    %42 = arith.mulf %40, %41 : vector<128x384xf32>
    %43 = arith.maximumf %40, %42 : vector<128x384xf32>
    %44 = arith.subf %43, %20 : vector<128x384xf32>
    %45 = math.exp %44 : vector<128x384xf32>
    %46 = arith.addf %35, %45 : vector<128x384xf32>
    %c128_i32_10 = arith.constant 128 : i32
    %47 = tpu.dynamic_rotate %3 by %c128_i32_10 dim 1 : vector<128x384xf32>, i32 -> vector<128x384xf32>
    %48 = arith.mulf %45, %47 : vector<128x384xf32>
    %49 = arith.addf %38, %48 : vector<128x384xf32>
    %c192_i32_11 = arith.constant 192 : i32
    %50 = tpu.dynamic_rotate %5 by %c192_i32_11 dim 1 : vector<128x384xf32>, i32 -> vector<128x384xf32>
    %51 = arith.addf %4, %50 : vector<128x384xf32>
    %cst_12 = arith.constant 2.000000e-01 : f32
    %52 = vector.broadcast %cst_12 : f32 to vector<128x384xf32>
    %53 = arith.mulf %51, %52 : vector<128x384xf32>
    %54 = arith.maximumf %51, %53 : vector<128x384xf32>
    %55 = arith.subf %54, %20 : vector<128x384xf32>
    %56 = math.exp %55 : vector<128x384xf32>
    %57 = arith.addf %46, %56 : vector<128x384xf32>
    %c192_i32_13 = arith.constant 192 : i32
    %58 = tpu.dynamic_rotate %3 by %c192_i32_13 dim 1 : vector<128x384xf32>, i32 -> vector<128x384xf32>
    %59 = arith.mulf %56, %58 : vector<128x384xf32>
    %60 = arith.addf %49, %59 : vector<128x384xf32>
    %c256_i32_14 = arith.constant 256 : i32
    %61 = tpu.dynamic_rotate %5 by %c256_i32_14 dim 1 : vector<128x384xf32>, i32 -> vector<128x384xf32>
    %62 = arith.addf %4, %61 : vector<128x384xf32>
    %cst_15 = arith.constant 2.000000e-01 : f32
    %63 = vector.broadcast %cst_15 : f32 to vector<128x384xf32>
    %64 = arith.mulf %62, %63 : vector<128x384xf32>
    %65 = arith.maximumf %62, %64 : vector<128x384xf32>
    %66 = arith.subf %65, %20 : vector<128x384xf32>
    %67 = math.exp %66 : vector<128x384xf32>
    %68 = arith.addf %57, %67 : vector<128x384xf32>
    %c256_i32_16 = arith.constant 256 : i32
    %69 = tpu.dynamic_rotate %3 by %c256_i32_16 dim 1 : vector<128x384xf32>, i32 -> vector<128x384xf32>
    %70 = arith.mulf %67, %69 : vector<128x384xf32>
    %71 = arith.addf %60, %70 : vector<128x384xf32>
    %c320_i32_17 = arith.constant 320 : i32
    %72 = tpu.dynamic_rotate %5 by %c320_i32_17 dim 1 : vector<128x384xf32>, i32 -> vector<128x384xf32>
    %73 = arith.addf %4, %72 : vector<128x384xf32>
    %cst_18 = arith.constant 2.000000e-01 : f32
    %74 = vector.broadcast %cst_18 : f32 to vector<128x384xf32>
    %75 = arith.mulf %73, %74 : vector<128x384xf32>
    %76 = arith.maximumf %73, %75 : vector<128x384xf32>
    %77 = arith.subf %76, %20 : vector<128x384xf32>
    %78 = math.exp %77 : vector<128x384xf32>
    %79 = arith.addf %68, %78 : vector<128x384xf32>
    %c320_i32_19 = arith.constant 320 : i32
    %80 = tpu.dynamic_rotate %3 by %c320_i32_19 dim 1 : vector<128x384xf32>, i32 -> vector<128x384xf32>
    %81 = arith.mulf %78, %80 : vector<128x384xf32>
    %82 = arith.addf %71, %81 : vector<128x384xf32>
    %83 = tpu.reciprocal %79 {approx = true} : vector<128x384xf32> -> vector<128x384xf32>
    %84 = arith.mulf %82, %83 : vector<128x384xf32>
    %cst_20 = arith.constant 0.000000e+00 : f32
    %85 = vector.broadcast %cst_20 : f32 to vector<128x384xf32>
    %86 = arith.cmpf ogt, %84, %85 : vector<128x384xf32>
    %87 = math.exp %84 : vector<128x384xf32>
    %cst_21 = arith.constant 1.000000e+00 : f32
    %88 = vector.broadcast %cst_21 : f32 to vector<128x384xf32>
    %89 = arith.subf %87, %88 : vector<128x384xf32>
    %90 = arith.select %86, %84, %89 : vector<128x384xi1>, vector<128x384xf32>
    %c0_22 = arith.constant 0 : index
    %c0_23 = arith.constant 0 : index
    %91 = vector.load %arg3[%c0_22, %c0_23] : memref<384x32xf32, #tpu.memory_space<vmem>>, vector<384x32xf32>
    %cst_24 = arith.constant dense<0.000000e+00> : vector<128x32xf32>
    %92 = tpu.matmul %90, %91, %cst_24 {dimension_numbers = #tpu.dot_dimension_numbers<[1], [0], [0], [1], [0, 0, 1, 1], [], []>} : vector<128x384xf32>, vector<384x32xf32>, vector<128x32xf32> -> vector<128x32xf32>
    %c0_25 = arith.constant 0 : index
    %c0_26 = arith.constant 0 : index
    %93 = vector.load %arg4[%c0_25, %c0_26] : memref<1x32xf32, #tpu.memory_space<vmem>>, vector<1x32xf32>
    %94 = vector.broadcast %93 : vector<1x32xf32> to vector<128x32xf32>
    %95 = arith.addf %92, %94 : vector<128x32xf32>
    %cst_27 = arith.constant 0.000000e+00 : f32
    %96 = vector.broadcast %cst_27 : f32 to vector<128x32xf32>
    %97 = arith.maximumf %95, %96 : vector<128x32xf32>
    %c0_28 = arith.constant 0 : index
    %c0_29 = arith.constant 0 : index
    %98 = vector.load %arg5[%c0_28, %c0_29] : memref<1x64xf32, #tpu.memory_space<vmem>>, vector<1x64xf32>
    %99 = vector.broadcast %98 : vector<1x64xf32> to vector<128x64xf32>
    %100 = arith.addf %6, %99 : vector<128x64xf32>
    %cst_30 = arith.constant 0.000000e+00 : f32
    %101 = vector.broadcast %cst_30 : f32 to vector<128x64xf32>
    %102 = arith.maximumf %100, %101 : vector<128x64xf32>
    %c0_31 = arith.constant 0 : index
    %c0_32 = arith.constant 0 : index
    %103 = vector.load %arg6[%c0_31, %c0_32] : memref<32x32xf32, #tpu.memory_space<vmem>>, vector<32x32xf32>
    %cst_33 = arith.constant dense<0.000000e+00> : vector<128x32xf32>
    %104 = tpu.matmul %97, %103, %cst_33 {dimension_numbers = #tpu.dot_dimension_numbers<[1], [0], [0], [1], [0, 0, 1, 1], [], []>} : vector<128x32xf32>, vector<32x32xf32>, vector<128x32xf32> -> vector<128x32xf32>
    %c0_34 = arith.constant 0 : index
    %c0_35 = arith.constant 0 : index
    %105 = vector.load %arg7[%c0_34, %c0_35] : memref<64x32xf32, #tpu.memory_space<vmem>>, vector<64x32xf32>
    %cst_36 = arith.constant dense<0.000000e+00> : vector<128x32xf32>
    %106 = tpu.matmul %102, %105, %cst_36 {dimension_numbers = #tpu.dot_dimension_numbers<[1], [0], [0], [1], [0, 0, 1, 1], [], []>} : vector<128x64xf32>, vector<64x32xf32>, vector<128x32xf32> -> vector<128x32xf32>
    %107 = arith.addf %104, %106 : vector<128x32xf32>
    %c0_37 = arith.constant 0 : index
    %c0_38 = arith.constant 0 : index
    %108 = vector.load %arg8[%c0_37, %c0_38] : memref<1x32xf32, #tpu.memory_space<vmem>>, vector<1x32xf32>
    %109 = vector.broadcast %108 : vector<1x32xf32> to vector<128x32xf32>
    %110 = arith.addf %107, %109 : vector<128x32xf32>
    %cst_39 = arith.constant 0.000000e+00 : f32
    %111 = vector.broadcast %cst_39 : f32 to vector<128x32xf32>
    %112 = arith.maximumf %110, %111 : vector<128x32xf32>
    %c0_40 = arith.constant 0 : index
    %c0_41 = arith.constant 0 : index
    %113 = vector.load %arg9[%c0_40, %c0_41] : memref<1x32xf32, #tpu.memory_space<vmem>>, vector<1x32xf32>
    %114 = vector.broadcast %113 : vector<1x32xf32> to vector<128x32xf32>
    %115 = arith.mulf %112, %114 : vector<128x32xf32>
    %cst_42 = arith.constant dense<0.000000e+00> : vector<128xf32>
    %116 = vector.multi_reduction <add>, %115, %cst_42 [1] : vector<128x32xf32> to vector<128xf32>
    %117 = vector.shape_cast %116 : vector<128xf32> to vector<128x1xf32>
    %c0_43 = arith.constant 0 : index
    %c0_44 = arith.constant 0 : index
    %118 = vector.load %arg10[%c0_43, %c0_44] : memref<1x1xf32, #tpu.memory_space<vmem>>, vector<1x1xf32>
    %119 = vector.broadcast %118 : vector<1x1xf32> to vector<128x1xf32>
    %120 = arith.addf %117, %119 : vector<128x1xf32>
    %c0_45 = arith.constant 0 : index
    %c0_46 = arith.constant 0 : index
    %121 = vector.load %arg11[%c0_45, %c0_46] : memref<128x1xf32, #tpu.memory_space<vmem>>, vector<128x1xf32>
    tpu.vector_store %arg11[%c0_45, %c0_46], %120 {strides = array<i32>} : memref<128x1xf32, #tpu.memory_space<vmem>>, vector<128x1xf32>,
    return
  }
  func.func @transform_0(%arg0: i32) -> (i32, i32) {
    %c0_i32 = arith.constant 0 : i32
    %c0_i32_0 = arith.constant 0 : i32
    return %arg0, %c0_i32 : i32, i32
  }
  func.func @transform_1(%arg0: i32) -> (i32, i32) {
    %c0_i32 = arith.constant 0 : i32
    %c0_i32_0 = arith.constant 0 : i32
    %c0_i32_1 = arith.constant 0 : i32
    return %c0_i32, %c0_i32_0 : i32, i32
  }
  func.func @transform_2(%arg0: i32) -> (i32, i32) {
    %c0_i32 = arith.constant 0 : i32
    %c0_i32_0 = arith.constant 0 : i32
    %c0_i32_1 = arith.constant 0 : i32
    return %c0_i32, %c0_i32_0 : i32, i32
  }
  func.func @transform_3(%arg0: i32) -> (i32, i32) {
    %c0_i32 = arith.constant 0 : i32
    %c0_i32_0 = arith.constant 0 : i32
    %c0_i32_1 = arith.constant 0 : i32
    return %c0_i32, %c0_i32_0 : i32, i32
  }
  func.func @transform_4(%arg0: i32) -> (i32, i32) {
    %c0_i32 = arith.constant 0 : i32
    %c0_i32_0 = arith.constant 0 : i32
    %c0_i32_1 = arith.constant 0 : i32
    return %c0_i32, %c0_i32_0 : i32, i32
  }
  func.func @transform_5(%arg0: i32) -> (i32, i32) {
    %c0_i32 = arith.constant 0 : i32
    %c0_i32_0 = arith.constant 0 : i32
    %c0_i32_1 = arith.constant 0 : i32
    return %c0_i32, %c0_i32_0 : i32, i32
  }
  func.func @transform_6(%arg0: i32) -> (i32, i32) {
    %c0_i32 = arith.constant 0 : i32
    %c0_i32_0 = arith.constant 0 : i32
    %c0_i32_1 = arith.constant 0 : i32
    return %c0_i32, %c0_i32_0 : i32, i32
  }
  func.func @transform_7(%arg0: i32) -> (i32, i32) {
    %c0_i32 = arith.constant 0 : i32
    %c0_i32_0 = arith.constant 0 : i32
    %c0_i32_1 = arith.constant 0 : i32
    return %c0_i32, %c0_i32_0 : i32, i32
  }
  func.func @transform_8(%arg0: i32) -> (i32, i32) {
    %c0_i32 = arith.constant 0 : i32
    %c0_i32_0 = arith.constant 0 : i32
    %c0_i32_1 = arith.constant 0 : i32
    return %c0_i32, %c0_i32_0 : i32, i32
  }
  func.func @transform_9(%arg0: i32) -> (i32, i32) {
    %c0_i32 = arith.constant 0 : i32
    %c0_i32_0 = arith.constant 0 : i32
    %c0_i32_1 = arith.constant 0 : i32
    return %c0_i32, %c0_i32_0 : i32, i32
  }
  func.func @transform_10(%arg0: i32) -> (i32, i32) {
    %c0_i32 = arith.constant 0 : i32
    %c0_i32_0 = arith.constant 0 : i32
    return %arg0, %c0_i32 : i32, i32
  }
}

</mosaic_0001>

<bundles_post_ra>
// kernel: tpu_custom_call.1
= control target key start
LH: loop header
LB: loop body
LE: loop exit
PB: predicated region body
PF: predicated region fallthrough
CT: control target
= control target key end

     0   :  { %s14662_s0 = inlined_call_operand.vmem [shape: bf16[128,120], index: 0, kind: input, shape index: {}]   ;;  %s14663_s1 = inlined_call_operand.vmem [shape: bf16[120,1280], index: 1, kind: input, shape index: {}]   ;;  %s14664_s2 = inlined_call_operand.vmem [shape: f32[384,32], index: 2, kind: input, shape index: {}]   ;;  %s14665_s3 = inlined_call_operand.vmem [shape: f32[1,32], index: 3, kind: input, shape index: {}]   ;;  %s14666_s4 = inlined_call_operand.vmem [shape: f32[1,64], index: 4, kind: input, shape index: {}]   ;;  %s14667_s5 = inlined_call_operand.hbm [shape: f32[32,32], index: 5, kind: input, shape index: {}]   ;;  %s14668_s6 = inlined_call_operand.vmem [shape: f32[64,32], index: 6, kind: input, shape index: {}]   ;;  %s14669_s7 = inlined_call_operand.vmem [shape: f32[1,32], index: 7, kind: input, shape index: {}]   ;;  %s14670_s8 = inlined_call_operand.vmem [shape: f32[1,32], index: 8, kind: input, shape index: {}]   ;;  %s14671_s9 = inlined_call_operand.<no memory space> [shape: f32[1,1], index: 9, kind: input, shape index: {}]   ;;  %s14672_s10 = inlined_call_operand.vmem [shape: f32[128,1], index: 10, kind: output, shape index: {}]  }
   0x1   :  { %v15_v0 = vstv %s14671_s9 }
   0x2   :  { %16 = vst [vmem:[#allocation2] sm:$0x1] %v15_v0 }
   0x3   :  { %17 = vsyncpa [#allocation4], 0  ;;  %s7175_s15 = smov [#allocation3]   ;;  %s7151_s19 = scalar_lea.hbm %s14667_s5, 512 }
   0x4   :  { %s33_s16 = sshll.u32 %s7175_s15, 4  ;;  %p7152_p0 = scmp.ne.s32.totalorder %s14667_s5, %s7151_s19  ;;  %s34_s16 = int_to_ptr.vmem [resolvable:$true] %s33_s16 }
   0x5   :  { %p7155_p1 = scmp.lt.u32.totalorder %s7151_s19, %s14667_s5 }
   0x7   :  { %p7157_p2 = pnand %p7155_p1, %p7152_p0 }
   0x9   :  { %7160 = shalt.err (!%p7157_p2)
}
   0xa   :  { %s7161_s9 = scalar_lea.vmem %s34_s16, 512  ;;  %p7166_p4 = scmp.lt.s32.totalorder %s34_s16, %s34_s16 }
   0xb   :  { %p7162_p3 = scmp.ne.s32.totalorder %s34_s16, %s7161_s9  ;;  %p7167_p5 = scmp.lt.s32.totalorder %s7161_s9, %s7161_s9 }
   0xd   :  { %p7168_p6 = por %p7167_p5, %p7166_p4 }
   0xf   :  { %p7169_p7 = pnand %p7168_p6, %p7162_p3 }
  0x11   :  { %7172 = shalt.err (!%p7169_p7)
}
  0x12   :  { %s7176_s24 = smov 128   ;;  %s7177_s25 = smov 8  }
  0x13   :  { %39 = dma.hbm_to_vmem [thread:$0]  %s14667_s5, 512, %s34_s16, [#allocation4], %s7176_s24, %s7176_s24, %s7177_s25  }
  0x14   :  { %7173 = dma.done.wait [#allocation4], 512  }
  0x15   :  { %7174 = vsyncadd [#allocation4], 4294966784  ;;  %v7178_v1 = vmov 0   ;;  %v6260_v2 = vld [vmem:[%s14663_s1 + $0x4] ss:$40 sps:$4 sm:$0xff]   ;;  %v138_v28 = vld [vmem:[%s14663_s1 + $0x230] sm:$0xff] }
  0x16   :  { %646 = vmatprep.mubr.bf16.mxu0 %v7178_v1  ;;  %759 = vmatprep.mubr.bf16.mxu1 %v7178_v1  ;;  %v6262_v3 = vld [vmem:[%s14663_s1 + $0xc] ss:$40 sps:$4 sm:$0xff]   ;;  %v6264_v4 = vld [vmem:[%s14663_s1] ss:$40 sps:$4 sm:$0xff]   ;;  %v6268_v7 = vld [vmem:[%s14663_s1 + $0x5c] ss:$40 sps:$4 sm:$0xff]   ;;  %v5719_v32 = vcombine.low %v138_v28, %v138_v28  ;;  %v5720_v34 = vcombine.high %v138_v28, %v138_v28 }
  0x17   :  { %614 = vmatprep.subr.bf16.mxu0 %v6260_v2  ;;  %v6265_v5 = vld [vmem:[%s14663_s1 + $0x8] ss:$40 sps:$4 sm:$0xff]   ;;  %727 = vmatprep.subr.bf16.mxu1 %v6262_v3  ;;  %v6266_v6 = vld [vmem:[%s14663_s1 + $0x54] ss:$40 sps:$4 sm:$0xff]   ;;  %v6271_v9 = vld [vmem:[%s14663_s1 + $0x58] ss:$40 sps:$4 sm:$0xff]  }
  0x18   :  { %615 = vmatpush1.bf16.msra.mxu0 %v6264_v4  ;;  %728 = vmatpush1.bf16.msra.mxu1 %v6265_v5  ;;  %v6270_v8 = vld [vmem:[%s14663_s1 + $0x50] ss:$40 sps:$4 sm:$0xff]   ;;  %v6272_v10 = vld [vmem:[%s14663_s1 + $0xa4] ss:$40 sps:$4 sm:$0xff]   ;;  %v6276_v12 = vld [vmem:[%s14663_s1 + $0xa0] ss:$40 sps:$4 sm:$0xff]  }
  0x19   :  { %616 = vmatprep.subr.bf16.mxu0 %v6266_v6  ;;  %729 = vmatprep.subr.bf16.mxu1 %v6268_v7  ;;  %v6274_v11 = vld [vmem:[%s14663_s1 + $0xac] ss:$40 sps:$4 sm:$0xff]   ;;  %v6277_v13 = vld [vmem:[%s14663_s1 + $0xa8] ss:$40 sps:$4 sm:$0xff]   ;;  %v6280_v15 = vld [vmem:[%s14663_s1 + $0xfc] ss:$40 sps:$4 sm:$0xff]  }
  0x1a   :  { %v6278_v14 = vld [vmem:[%s14663_s1 + $0xf4] ss:$40 sps:$4 sm:$0xff]   ;;  %v6282_v16 = vld [vmem:[%s14663_s1 + $0xf0] ss:$40 sps:$4 sm:$0xff]   ;;  %v6284_v18 = vld [vmem:[%s14663_s1 + $0x144] ss:$40 sps:$4 sm:$0xff]  }
  0x1b   :  { %v6283_v17 = vld [vmem:[%s14663_s1 + $0xf8] ss:$40 sps:$4 sm:$0xff]   ;;  %v6286_v19 = vld [vmem:[%s14663_s1 + $0x14c] ss:$40 sps:$4 sm:$0xff]   ;;  %v6289_v21 = vld [vmem:[%s14663_s1 + $0x148] ss:$40 sps:$4 sm:$0xff]  }
  0x1c   :  { %617 = vmatpush1.bf16.msra.mxu0 %v6270_v8  ;;  %730 = vmatpush1.bf16.msra.mxu1 %v6271_v9  ;;  %v6288_v20 = vld [vmem:[%s14663_s1 + $0x140] ss:$40 sps:$4 sm:$0xff]   ;;  %v6290_v22 = vld [vmem:[%s14663_s1 + $0x194] ss:$40 sps:$4 sm:$0xff]   ;;  %v6294_v24 = vld [vmem:[%s14663_s1 + $0x190] ss:$40 sps:$4 sm:$0xff]  }
  0x1d   :  { %618 = vmatprep.subr.bf16.mxu0 %v6272_v10  ;;  %731 = vmatprep.subr.bf16.mxu1 %v6274_v11  ;;  %v6292_v23 = vld [vmem:[%s14663_s1 + $0x19c] ss:$40 sps:$4 sm:$0xff]   ;;  %v6295_v25 = vld [vmem:[%s14663_s1 + $0x198] ss:$40 sps:$4 sm:$0xff]   ;;  %v6298_v27 = vld [vmem:[%s14663_s1 + $0x1ec] ss:$40 sps:$4 sm:$0xff]  }
  0x1e   :  { %v6296_v26 = vld [vmem:[%s14663_s1 + $0x1e4] ss:$40 sps:$4 sm:$0xff]   ;;  %v139_v29 = vld [vmem:[%s14663_s1 + $0x238] sm:$0xff]  ;;  %v6300_v30 = vld [vmem:[%s14663_s1 + $0x1e0] ss:$40 sps:$4 sm:$0xff]   ;;  %vm583_vm0 = vcmask 1043456  }
  0x1f   :  { %v6301_v31 = vld [vmem:[%s14663_s1 + $0x1e8] ss:$40 sps:$4 sm:$0xff]   ;;  %v5721_v33 = vcombine.low %v139_v29, %v139_v29  ;;  %v5722_v35 = vcombine.high %v139_v29, %v139_v29  ;;  %v585_v36 = vsel %vm583_vm0, %v5719_v32, 0  ;;  %v6309_v38 = vld [vmem:[%s14663_s1 + $0x14] ss:$40 sps:$4 sm:$0xff]   ;;  %v7355_v40 = vld [vmem:[%s14662_s0] sm:$0xff]  }
  0x20   :  { %619 = vmatpush1.bf16.msra.mxu0 %v6276_v12  ;;  %732 = vmatpush1.bf16.msra.mxu1 %v6277_v13  ;;  %v6316_v39 = vld [vmem:[%s14663_s1 + $0x1c] ss:$40 sps:$4 sm:$0xff]   ;;  %vm558_vm1 = vcmask 982016   ;;  %v6307_v41 = vld [vmem:[%s14663_s1 + $0x10] ss:$40 sps:$4 sm:$0xff]   ;;  %v7387_v48 = vld [vmem:[%s14662_s0 + $0x8] sm:$0xff]  }
  0x21   :  { %620 = vmatprep.subr.bf16.mxu0 %v6278_v14  ;;  %733 = vmatprep.subr.bf16.mxu1 %v6280_v15  ;;  %v591_v37 = vsel %vm583_vm0, %v5721_v33, 0  ;;  %v6313_v42 = vld [vmem:[%s14663_s1 + $0x64] ss:$40 sps:$4 sm:$0xff]   ;;  %v6314_v43 = vld [vmem:[%s14663_s1 + $0x18] ss:$40 sps:$4 sm:$0xff]   ;;  %v7422_v57 = vld [vmem:[%s14662_s0 + $0x10] sm:$0xff]  }
  0x22   :  { %v6323_v44 = vld [vmem:[%s14663_s1 + $0x6c] ss:$40 sps:$4 sm:$0xff]   ;;  %v6311_v45 = vld [vmem:[%s14663_s1 + $0x60] ss:$40 sps:$4 sm:$0xff]   ;;  %v6318_v49 = vld [vmem:[%s14663_s1 + $0xb0] ss:$40 sps:$4 sm:$0xff]  }
  0x23   :  { %v6320_v46 = vld [vmem:[%s14663_s1 + $0xb4] ss:$40 sps:$4 sm:$0xff]   ;;  %v6321_v47 = vld [vmem:[%s14663_s1 + $0x68] ss:$40 sps:$4 sm:$0xff]   ;;  %v6327_v50 = vld [vmem:[%s14663_s1 + $0x104] ss:$40 sps:$4 sm:$0xff]  }
  0x24   :  { %621 = vmatpush1.bf16.msra.mxu0 %v6282_v16  ;;  %734 = vmatpush1.bf16.msra.mxu1 %v6283_v17  ;;  %v6330_v51 = vld [vmem:[%s14663_s1 + $0xbc] ss:$40 sps:$4 sm:$0xff]   ;;  %v6328_v52 = vld [vmem:[%s14663_s1 + $0xb8] ss:$40 sps:$4 sm:$0xff]   ;;  %v6337_v53 = vld [vmem:[%s14663_s1 + $0x10c] ss:$40 sps:$4 sm:$0xff]  }
  0x25   :  { %622 = vmatprep.subr.bf16.mxu0 %v6284_v18  ;;  %735 = vmatprep.subr.bf16.mxu1 %v6286_v19  ;;  %v6325_v54 = vld [vmem:[%s14663_s1 + $0x100] ss:$40 sps:$4 sm:$0xff]   ;;  %v6334_v55 = vld [vmem:[%s14663_s1 + $0x154] ss:$40 sps:$4 sm:$0xff]   ;;  %v6332_v58 = vld [vmem:[%s14663_s1 + $0x150] ss:$40 sps:$4 sm:$0xff]  }
  0x26   :  { %v6335_v56 = vld [vmem:[%s14663_s1 + $0x108] ss:$40 sps:$4 sm:$0xff]   ;;  %v6344_v59 = vld [vmem:[%s14663_s1 + $0x15c] ss:$40 sps:$4 sm:$0xff]   ;;  %v6342_v61 = vld [vmem:[%s14663_s1 + $0x158] ss:$40 sps:$4 sm:$0xff]  }
  0x27   :  { %v6341_v60 = vld [vmem:[%s14663_s1 + $0x1a4] ss:$40 sps:$4 sm:$0xff]   ;;  %v6339_v63 = vld [vmem:[%s14663_s1 + $0x1a0] ss:$40 sps:$4 sm:$0xff]   ;;  %v6348_v0 = vld [vmem:[%s14663_s1 + $0x1f4] ss:$40 sps:$4 sm:$0xff]  }
  0x28   :  { %623 = vmatpush1.bf16.msra.mxu0 %v6288_v20  ;;  %736 = vmatpush1.bf16.msra.mxu1 %v6289_v21  ;;  %v6351_v62 = vld [vmem:[%s14663_s1 + $0x1ac] ss:$40 sps:$4 sm:$0xff]   ;;  %v6349_v2 = vld [vmem:[%s14663_s1 + $0x1a8] ss:$40 sps:$4 sm:$0xff]   ;;  %v7457_v3 = vld [vmem:[%s14662_s0 + $0x18] sm:$0xff]  }
  0x29   :  { %624 = vmatprep.subr.bf16.mxu0 %v6290_v22  ;;  %737 = vmatprep.subr.bf16.mxu1 %v6292_v23  ;;  %v140_v4 = vld [vmem:[%s14663_s1 + $0x240] sm:$0xff]  ;;  %v141_v5 = vld [vmem:[%s14663_s1 + $0x248] sm:$0xff]  ;;  %v6346_v6 = vld [vmem:[%s14663_s1 + $0x1f0] ss:$40 sps:$4 sm:$0xff]  }
  0x2a   :  { %v6356_v7 = vld [vmem:[%s14663_s1 + $0x1fc] ss:$40 sps:$4 sm:$0xff]   ;;  %v5724_v8 = vcombine.high %v140_v4, %v140_v4  ;;  %v6354_v9 = vld [vmem:[%s14663_s1 + $0x1f8] ss:$40 sps:$4 sm:$0xff]   ;;  %v5723_v10 = vcombine.low %v140_v4, %v140_v4  ;;  %v5726_v11 = vcombine.high %v141_v5, %v141_v5  ;;  %v5725_v12 = vcombine.low %v141_v5, %v141_v5  ;;  %v7501_v17 = vld [vmem:[%s14662_s0 + $0x28] sm:$0xff]  }
  0x2b   :  { %v6362_v14 = vld [vmem:[%s14663_s1 + $0x24] ss:$40 sps:$4 sm:$0xff]   ;;  %v7512_v18 = vld [vmem:[%s14662_s0 + $0x30] sm:$0xff]   ;;  %v7523_v19 = vld [vmem:[%s14662_s0 + $0x38] sm:$0xff]  }
  0x2c   :  { %625 = vmatpush1.bf16.msra.mxu0 %v6294_v24  ;;  %738 = vmatpush1.bf16.msra.mxu1 %v6295_v25  ;;  %v597_v13 = vsel %vm583_vm0, %v5723_v10, 0  ;;  %v7488_v15 = vld [vmem:[%s14662_s0 + $0x20] sm:$0xff]   ;;  %v603_v16 = vsel %vm583_vm0, %v5725_v12, 0  ;;  %v6365_v21 = vld [vmem:[%s14663_s1 + $0x74] ss:$40 sps:$4 sm:$0xff]  }
  0x2d   :  { %626 = vmatprep.subr.bf16.mxu0 %v6296_v26  ;;  %739 = vmatprep.subr.bf16.mxu1 %v6298_v27  ;;  %v6360_v20 = vld [vmem:[%s14663_s1 + $0x20] ss:$40 sps:$4 sm:$0xff]   ;;  %v6363_v22 = vld [vmem:[%s14663_s1 + $0x70] ss:$40 sps:$4 sm:$0xff]   ;;  %v6368_v23 = vld [vmem:[%s14663_s1 + $0xc4] ss:$40 sps:$4 sm:$0xff]  }
  0x2e   :  { %v6366_v24 = vld [vmem:[%s14663_s1 + $0xc0] ss:$40 sps:$4 sm:$0xff]   ;;  %v6371_v25 = vld [vmem:[%s14663_s1 + $0x114] ss:$40 sps:$4 sm:$0xff]   ;;  %v6369_v26 = vld [vmem:[%s14663_s1 + $0x110] ss:$40 sps:$4 sm:$0xff]  }
  0x2f   :  { %v6374_v27 = vld [vmem:[%s14663_s1 + $0x164] ss:$40 sps:$4 sm:$0xff]   ;;  %v6372_v28 = vld [vmem:[%s14663_s1 + $0x160] ss:$40 sps:$4 sm:$0xff]   ;;  %v6377_v29 = vld [vmem:[%s14663_s1 + $0x1b4] ss:$40 sps:$4 sm:$0xff]  }
  0x30   :  { %627 = vmatpush1.bf16.msra.mxu0 %v6300_v30  ;;  %740 = vmatpush1.bf16.msra.mxu1 %v6301_v31  ;;  %v6375_v30 = vld [vmem:[%s14663_s1 + $0x1b0] ss:$40 sps:$4 sm:$0xff]   ;;  %v6380_v31 = vld [vmem:[%s14663_s1 + $0x204] ss:$40 sps:$4 sm:$0xff]   ;;  %v6378_v33 = vld [vmem:[%s14663_s1 + $0x200] ss:$40 sps:$4 sm:$0xff]  }
  0x31   :  { %5729 = vmatprep.subr.msk.bf16.mxu0 %vm583_vm0, %v5720_v34  ;;  %5738 = vmatprep.subr.msk.bf16.mxu1 %vm583_vm0, %v5722_v35  ;;  %v142_v32 = vld [vmem:[%s14663_s1 + $0x250] sm:$0xff]  ;;  %s7179_s1 = smov 64  }
  0x32   :  { %v5728_v34 = vcombine.high %v142_v32, %v142_v32  ;;  %v5727_v35 = vcombine.low %v142_v32, %v142_v32 }
  0x34   :  { %629 = vmatpush1.bf16.msra.mxu0 %v585_v36  ;;  %742 = vmatpush1.bf16.msra.mxu1 %v591_v37  ;;  %v609_v36 = vsel %vm583_vm0, %v5727_v35, 0 }
  0x35   :  { %840 = vmatprep.subr.bf16.mxu0 %v6309_v38  ;;  %953 = vmatprep.subr.bf16.mxu1 %v6316_v39 }
  0x37   :  { %5730 = vmatmul.mubr.msk.bf16.vlgmr.msra.gmra.mrb[0].mxu0 %vm558_vm1, %v7355_v40  ;;  %5739 = vmatmul.mubr.msk.bf16.vlgmr.msra.gmra.mrb[0].mxu1 %vm558_vm1, %v7355_v40 }
  0x38   :  { %841 = vmatpush1.bf16.msra.mxu0 %v6307_v41  ;;  %656 = vmatprep.mubr.bf16.mxu0 %v7178_v1 }
  0x39   :  { %769 = vmatprep.mubr.bf16.mxu1 %v7178_v1  ;;  %842 = vmatprep.subr.bf16.mxu0 %v6313_v42 }
  0x3a   :  { %954 = vmatpush1.bf16.msra.mxu1 %v6314_v43 }
  0x3b   :  { %955 = vmatprep.subr.bf16.mxu1 %v6323_v44 }
  0x3c   :  { %843 = vmatpush1.bf16.msra.mxu0 %v6311_v45 }
  0x3d   :  { %844 = vmatprep.subr.bf16.mxu0 %v6320_v46 }
  0x3e   :  { %956 = vmatpush1.bf16.msra.mxu1 %v6321_v47 }
  0x3f   :  { %5731 = vmatmul.mubr.msk.bf16.gmra.mrb[4].mxu0 %vm558_vm1, %v7387_v48  ;;  %5740 = vmatmul.mubr.msk.bf16.gmra.mrb[4].mxu1 %vm558_vm1, %v7387_v48 }
  0x40   :  { %666 = vmatprep.mubr.bf16.mxu0 %v7178_v1  ;;  %779 = vmatprep.mubr.bf16.mxu1 %v7178_v1 }
  0x41   :  { %845 = vmatpush1.bf16.msra.mxu0 %v6318_v49  ;;  %957 = vmatprep.subr.bf16.mxu1 %v6330_v51 }
  0x42   :  { %846 = vmatprep.subr.bf16.mxu0 %v6327_v50  ;;  %958 = vmatpush1.bf16.msra.mxu1 %v6328_v52 }
  0x43   :  { %959 = vmatprep.subr.bf16.mxu1 %v6337_v53 }
  0x45   :  { %847 = vmatpush1.bf16.msra.mxu0 %v6325_v54 }
  0x46   :  { %848 = vmatprep.subr.bf16.mxu0 %v6334_v55  ;;  %960 = vmatpush1.bf16.msra.mxu1 %v6335_v56 }
  0x47   :  { %5732 = vmatmul.mubr.msk.bf16.gmra.mrb[8].mxu0 %vm558_vm1, %v7422_v57  ;;  %5741 = vmatmul.mubr.msk.bf16.gmra.mrb[8].mxu1 %vm558_vm1, %v7422_v57 }
  0x48   :  { %676 = vmatprep.mubr.bf16.mxu0 %v7178_v1  ;;  %789 = vmatprep.mubr.bf16.mxu1 %v7178_v1 }
  0x49   :  { %849 = vmatpush1.bf16.msra.mxu0 %v6332_v58  ;;  %961 = vmatprep.subr.bf16.mxu1 %v6344_v59 }
  0x4a   :  { %850 = vmatprep.subr.bf16.mxu0 %v6341_v60  ;;  %962 = vmatpush1.bf16.msra.mxu1 %v6342_v61 }
  0x4b   :  { %963 = vmatprep.subr.bf16.mxu1 %v6351_v62 }
  0x4d   :  { %851 = vmatpush1.bf16.msra.mxu0 %v6339_v63 }
  0x4e   :  { %852 = vmatprep.subr.bf16.mxu0 %v6348_v0  ;;  %964 = vmatpush1.bf16.msra.mxu1 %v6349_v2 }
  0x4f   :  { %5733 = vmatmul.mubr.msk.bf16.gmra.mrb[12].mxu0 %vm558_vm1, %v7457_v3  ;;  %5742 = vmatmul.mubr.msk.bf16.gmra.mrb[12].mxu1 %vm558_vm1, %v7457_v3 }
  0x50   :  { %686 = vmatprep.mubr.bf16.mxu0 %v7178_v1  ;;  %799 = vmatprep.mubr.bf16.mxu1 %v7178_v1 }
  0x51   :  { %853 = vmatpush1.bf16.msra.mxu0 %v6346_v6  ;;  %965 = vmatprep.subr.bf16.mxu1 %v6356_v7 }
  0x52   :  { %5747 = vmatprep.subr.msk.bf16.mxu0 %vm583_vm0, %v5724_v8  ;;  %966 = vmatpush1.bf16.msra.mxu1 %v6354_v9 }
  0x53   :  { %5756 = vmatprep.subr.msk.bf16.mxu1 %vm583_vm0, %v5726_v11 }
  0x55   :  { %855 = vmatpush1.bf16.msra.mxu0 %v597_v13 }
  0x56   :  { %968 = vmatpush1.bf16.msra.mxu1 %v603_v16  ;;  %1066 = vmatprep.subr.bf16.mxu0 %v6362_v14 }
  0x57   :  { %5734 = vmatmul.mubr.msk.bf16.gmra.mrb[16].mxu0 %vm558_vm1, %v7488_v15  ;;  %5743 = vmatmul.mubr.msk.bf16.gmra.mrb[16].mxu1 %vm558_vm1, %v7488_v15 }
  0x58   :  { %696 = vmatprep.mubr.bf16.mxu0 %v7178_v1  ;;  %809 = vmatprep.mubr.bf16.mxu1 %v7178_v1 }
  0x5f   :  { %5735 = vmatmul.mubr.msk.bf16.gmra.mrb[20].mxu0 %vm558_vm1, %v7501_v17  ;;  %5744 = vmatmul.mubr.msk.bf16.gmra.mrb[20].mxu1 %vm558_vm1, %v7501_v17 }
  0x60   :  { %706 = vmatprep.mubr.bf16.mxu0 %v7178_v1  ;;  %819 = vmatprep.mubr.bf16.mxu1 %v7178_v1 }
  0x67   :  { %5736 = vmatmul.mubr.msk.bf16.gmra.mrb[24].mxu0 %vm558_vm1, %v7512_v18  ;;  %5745 = vmatmul.mubr.msk.bf16.gmra.mrb[24].mxu1 %vm558_vm1, %v7512_v18 }
  0x68   :  { %716 = vmatprep.mubr.bf16.mxu0 %v7178_v1  ;;  %829 = vmatprep.mubr.bf16.mxu1 %v7178_v1 }
  0x6f   :  { %5737 = vmatmul.mubr.msk.bf16.gmra.mrb[28].mxu0 %vm558_vm1, %v7523_v19  ;;  %5746 = vmatmul.mubr.msk.bf16.gmra.mrb[28].mxu1 %vm558_vm1, %v7523_v19 }
  0x70   :  { %872 = vmatprep.mubr.bf16.mxu0 %v7178_v1  ;;  %985 = vmatprep.mubr.bf16.mxu1 %v7178_v1 }
  0x77   :  { %5748 = vmatmul.mubr.msk.bf16.vlgmr.msra.gmra.mrb[32].mxu0 %vm558_vm1, %v7355_v40  ;;  %5757 = vmatmul.mubr.msk.bf16.vlgmr.msra.gmra.mrb[32].mxu1 %vm558_vm1, %v7355_v40 }
  0x78   :  { %1067 = vmatpush1.bf16.msra.mxu0 %v6360_v20  ;;  %882 = vmatprep.mubr.bf16.mxu0 %v7178_v1 }
  0x79   :  { %995 = vmatprep.mubr.bf16.mxu1 %v7178_v1  ;;  %1068 = vmatprep.subr.bf16.mxu0 %v6365_v21 }
  0x7c   :  { %1069 = vmatpush1.bf16.msra.mxu0 %v6363_v22 }
  0x7d   :  { %1070 = vmatprep.subr.bf16.mxu0 %v6368_v23 }
  0x7f   :  { %5749 = vmatmul.mubr.msk.bf16.gmra.mrb[36].mxu0 %vm558_vm1, %v7387_v48  ;;  %5758 = vmatmul.mubr.msk.bf16.gmra.mrb[36].mxu1 %vm558_vm1, %v7387_v48 }
  0x80   :  { %892 = vmatprep.mubr.bf16.mxu0 %v7178_v1  ;;  %1005 = vmatprep.mubr.bf16.mxu1 %v7178_v1 }
  0x81   :  { %1071 = vmatpush1.bf16.msra.mxu0 %v6366_v24 }
  0x82   :  { %1072 = vmatprep.subr.bf16.mxu0 %v6371_v25 }
  0x85   :  { %1073 = vmatpush1.bf16.msra.mxu0 %v6369_v26 }
  0x86   :  { %1074 = vmatprep.subr.bf16.mxu0 %v6374_v27 }
  0x87   :  { %5750 = vmatmul.mubr.msk.bf16.gmra.mrb[40].mxu0 %vm558_vm1, %v7422_v57  ;;  %5759 = vmatmul.mubr.msk.bf16.gmra.mrb[40].mxu1 %vm558_vm1, %v7422_v57 }
  0x88   :  { %902 = vmatprep.mubr.bf16.mxu0 %v7178_v1  ;;  %1015 = vmatprep.mubr.bf16.mxu1 %v7178_v1 }
  0x89   :  { %1075 = vmatpush1.bf16.msra.mxu0 %v6372_v28 }
  0x8a   :  { %1076 = vmatprep.subr.bf16.mxu0 %v6377_v29 }
  0x8d   :  { %1077 = vmatpush1.bf16.msra.mxu0 %v6375_v30 }
  0x8e   :  { %1078 = vmatprep.subr.bf16.mxu0 %v6380_v31 }
  0x8f   :  { %5751 = vmatmul.mubr.msk.bf16.gmra.mrb[44].mxu0 %vm558_vm1, %v7457_v3  ;;  %5760 = vmatmul.mubr.msk.bf16.gmra.mrb[44].mxu1 %vm558_vm1, %v7457_v3 }
  0x90   :  { %912 = vmatprep.mubr.bf16.mxu0 %v7178_v1  ;;  %1025 = vmatprep.mubr.bf16.mxu1 %v7178_v1 }
  0x91   :  { %1079 = vmatpush1.bf16.msra.mxu0 %v6378_v33 }
  0x92   :  { %5765 = vmatprep.subr.msk.bf16.mxu0 %vm583_vm0, %v5728_v34 }
  0x95   :  { %1081 = vmatpush1.bf16.msra.mxu0 %v609_v36 }
  0x97   :  { %5752 = vmatmul.mubr.msk.bf16.gmra.mrb[48].mxu0 %vm558_vm1, %v7488_v15  ;;  %5761 = vmatmul.mubr.msk.bf16.gmra.mrb[48].mxu1 %vm558_vm1, %v7488_v15 }
  0x98   :  { %922 = vmatprep.mubr.bf16.mxu0 %v7178_v1  ;;  %1035 = vmatprep.mubr.bf16.mxu1 %v7178_v1 }
  0x9f   :  { %5753 = vmatmul.mubr.msk.bf16.gmra.mrb[52].mxu0 %vm558_vm1, %v7501_v17  ;;  %5762 = vmatmul.mubr.msk.bf16.gmra.mrb[52].mxu1 %vm558_vm1, %v7501_v17 }
  0xa0   :  { %932 = vmatprep.mubr.bf16.mxu0 %v7178_v1  ;;  %1045 = vmatprep.mubr.bf16.mxu1 %v7178_v1 }
  0xa7   :  { %5754 = vmatmul.mubr.msk.bf16.gmra.mrb[56].mxu0 %vm558_vm1, %v7512_v18  ;;  %5763 = vmatmul.mubr.msk.bf16.gmra.mrb[56].mxu1 %vm558_vm1, %v7512_v18 }
  0xa8   :  { %942 = vmatprep.mubr.bf16.mxu0 %v7178_v1  ;;  %1055 = vmatprep.mubr.bf16.mxu1 %v7178_v1 }
  0xaf   :  { %5755 = vmatmul.mubr.msk.bf16.gmra.mrb[60].mxu0 %vm558_vm1, %v7523_v19  ;;  %5764 = vmatmul.mubr.msk.bf16.gmra.mrb[60].mxu1 %vm558_vm1, %v7523_v19 }
  0xb0   :  { %1098 = vmatprep.mubr.bf16.mxu0 %v7178_v1 }
  0xb7   :  { %5766 = vmatmul.mubr.msk.bf16.vlgmr.msra.gmra.mrb[64].mxu0 %vm558_vm1, %v7355_v40 }
  0xb8   :  { %1108 = vmatprep.mubr.bf16.mxu0 %v7178_v1 }
  0xbf   :  { %5767 = vmatmul.mubr.msk.bf16.gmra.mrb[68].mxu0 %vm558_vm1, %v7387_v48 }
  0xc0   :  { %1118 = vmatprep.mubr.bf16.mxu0 %v7178_v1 }
  0xc7   :  { %5768 = vmatmul.mubr.msk.bf16.gmra.mrb[72].mxu0 %vm558_vm1, %v7422_v57 }
  0xc8   :  { %1128 = vmatprep.mubr.bf16.mxu0 %v7178_v1 }
  0xcf   :  { %5769 = vmatmul.mubr.msk.bf16.gmra.mrb[76].mxu0 %vm558_vm1, %v7457_v3 }
  0xd0   :  { %1138 = vmatprep.mubr.bf16.mxu0 %v7178_v1 }
  0xd7   :  { %5770 = vmatmul.mubr.msk.bf16.gmra.mrb[80].mxu0 %vm558_vm1, %v7488_v15 }
  0xd8   :  { %1148 = vmatprep.mubr.bf16.mxu0 %v7178_v1 }
  0xdf   :  { %5771 = vmatmul.mubr.msk.bf16.gmra.mrb[84].mxu0 %vm558_vm1, %v7501_v17 }
  0xe0   :  { %1158 = vmatprep.mubr.bf16.mxu0 %v7178_v1 }
  0xe7   :  { %5772 = vmatmul.mubr.msk.bf16.gmra.mrb[88].mxu0 %vm558_vm1, %v7512_v18 }
  0xe8   :  { %1168 = vmatprep.mubr.bf16.mxu0 %v7178_v1 }
  0xef   :  { %5773 = vmatmul.mubr.msk.bf16.gmra.mrb[92].mxu0 %vm558_vm1, %v7523_v19 }
 0x10a   :  { %v7645_v37 = vpop.f32.mrb[0].mxu0  ;;  %v7647_v38 = vpop.f32.mrb[0].mxu1 }
 0x10b   :  { %15729 = vst [vmem:[#allocation6_spill] sm:$0xff] %v7645_v37  ;;  %15730 = vst [vmem:[#allocation7_spill] sm:$0xff] %v7647_v38  ;;  %2446 = vrot.lane.b32.xlu1 %v7647_v38, %s7179_s1  ;;  %2382 = vrot.lane.b32.xlu0 %v7645_v37, %s7179_s1  ;;  %v7653_v39 = vpop.f32.mrb[1].mxu0  ;;  %v7655_v40 = vpop.f32.mrb[1].mxu1 }
 0x10c   :  { %15731 = vst [vmem:[#allocation8_spill] sm:$0xff] %v7653_v39  ;;  %15732 = vst [vmem:[#allocation9_spill] sm:$0xff] %v7655_v40  ;;  %v7657_v41 = vpop.f32.mrb[2].mxu0  ;;  %v7659_v1 = vpop.f32.mrb[2].mxu1 }
 0x10d   :  { %15733 = vst [vmem:[#allocation10_spill] sm:$0xff] %v7657_v41  ;;  %15734 = vst [vmem:[#allocation11_spill] sm:$0xff] %v7659_v1  ;;  %v7661_v42 = vpop.f32.mrb[3].mxu0  ;;  %v7663_v43 = vpop.f32.mrb[3].mxu1 }
 0x10e   :  { %15735 = vst [vmem:[#allocation12_spill] sm:$0xff] %v7661_v42  ;;  %15736 = vst [vmem:[#allocation13_spill] sm:$0xff] %v7663_v43 }
 0x10f   :  { %2414 = vrot.lane.b32.xlu1 %v7653_v39, %s7179_s1  ;;  %2384 = vrot.lane.b32.xlu0 %v7657_v41, %s7179_s1 }
 0x112   :  { %v7669_v44 = vpop.f32.mrb[4].mxu0  ;;  %v7671_v45 = vpop.f32.mrb[4].mxu1 }
 0x113   :  { %15737 = vst [vmem:[#allocation14_spill] sm:$0xff] %v7669_v44  ;;  %15738 = vst [vmem:[#allocation15_spill] sm:$0xff] %v7671_v45  ;;  %2448 = vrot.lane.b32.xlu1 %v7659_v1, %s7179_s1  ;;  %2386 = vrot.lane.b32.xlu0 %v7669_v44, %s7179_s1  ;;  %v7677_v46 = vpop.f32.mrb[5].mxu0  ;;  %v7679_v47 = vpop.f32.mrb[5].mxu1 }
 0x114   :  { %15739 = vst [vmem:[#allocation16_spill] sm:$0xff] %v7677_v46  ;;  %15740 = vst [vmem:[#allocation17_spill] sm:$0xff] %v7679_v47  ;;  %v7681_v48 = vpop.f32.mrb[6].mxu0  ;;  %v7683_v49 = vpop.f32.mrb[6].mxu1 }
 0x115   :  { %15741 = vst [vmem:[#allocation18_spill] sm:$0xff] %v7681_v48  ;;  %15742 = vst [vmem:[#allocation19_spill] sm:$0xff] %v7683_v49  ;;  %v7685_v50 = vpop.f32.mrb[7].mxu0  ;;  %v7687_v51 = vpop.f32.mrb[7].mxu1 }
 0x116   :  { %15743 = vst [vmem:[#allocation20_spill] sm:$0xff] %v7685_v50  ;;  %15744 = vst [vmem:[#allocation21_spill] sm:$0xff] %v7687_v51 }
 0x117   :  { %2416 = vrot.lane.b32.xlu1 %v7661_v42, %s7179_s1  ;;  %2388 = vrot.lane.b32.xlu0 %v7681_v48, %s7179_s1 }
 0x11a   :  { %v7693_v52 = vpop.f32.mrb[8].mxu0  ;;  %v7695_v53 = vpop.f32.mrb[8].mxu1 }
 0x11b   :  { %15745 = vst [vmem:[#allocation22_spill] sm:$0xff] %v7693_v52  ;;  %15746 = vst [vmem:[#allocation23_spill] sm:$0xff] %v7695_v53  ;;  %2450 = vrot.lane.b32.xlu1 %v7671_v45, %s7179_s1  ;;  %v7699_v54 = vpop.f32.mrb[9].mxu0  ;;  %2390 = vrot.lane.b32.xlu0 %v7693_v52, %s7179_s1  ;;  %v7703_v55 = vpop.f32.mrb[9].mxu1 }
 0x11c   :  { %15747 = vst [vmem:[#allocation24_spill] sm:$0xff] %v7699_v54  ;;  %15748 = vst [vmem:[#allocation25_spill] sm:$0xff] %v7703_v55  ;;  %v7705_v56 = vpop.f32.mrb[10].mxu0  ;;  %v7707_v57 = vpop.f32.mrb[10].mxu1 }
 0x11d   :  { %15749 = vst [vmem:[#allocation26_spill] sm:$0xff] %v7705_v56  ;;  %15750 = vst [vmem:[#allocation27_spill] sm:$0xff] %v7707_v57  ;;  %v7709_v58 = vpop.f32.mrb[11].mxu0  ;;  %v7711_v59 = vpop.f32.mrb[11].mxu1 }
 0x11e   :  { %15751 = vst [vmem:[#allocation28_spill] sm:$0xff] %v7709_v58  ;;  %15752 = vst [vmem:[#allocation29_spill] sm:$0xff] %v7711_v59 }
 0x11f   :  { %2418 = vrot.lane.b32.xlu1 %v7677_v46, %s7179_s1 }
 0x122   :  { %v7715_v60 = vpop.f32.mrb[12].mxu0  ;;  %v7717_v61 = vpop.f32.mrb[12].mxu1 }
 0x123   :  { %15753 = vst [vmem:[#allocation30_spill] sm:$0xff] %v7715_v60  ;;  %15754 = vst [vmem:[#allocation31_spill] sm:$0xff] %v7717_v61  ;;  %2452 = vrot.lane.b32.xlu1 %v7683_v49, %s7179_s1  ;;  %v7721_v62 = vpop.f32.mrb[13].mxu0  ;;  %v7723_v63 = vpop.f32.mrb[13].mxu1 }
 0x124   :  { %15755 = vst [vmem:[#allocation32_spill] sm:$0xff] %v7721_v62  ;;  %15756 = vst [vmem:[#allocation33_spill] sm:$0xff] %v7723_v63  ;;  %v7725_v0 = vpop.f32.mrb[14].mxu0  ;;  %v7727_v2 = vpop.f32.mrb[14].mxu1 }
 0x125   :  { %15757 = vst [vmem:[#allocation34_spill] sm:$0xff] %v7725_v0  ;;  %15758 = vst [vmem:[#allocation35_spill] sm:$0xff] %v7727_v2  ;;  %v7729_v3 = vpop.f32.mrb[15].mxu0  ;;  %v7731_v4 = vpop.f32.mrb[15].mxu1 }
 0x126   :  { %15759 = vst [vmem:[#allocation36_spill] sm:$0xff] %v7729_v3  ;;  %15760 = vst [vmem:[#allocation37_spill] sm:$0xff] %v7731_v4 }
 0x127   :  { %2420 = vrot.lane.b32.xlu1 %v7685_v50, %s7179_s1 }
 0x12a   :  { %v7735_v5 = vpop.f32.mrb[16].mxu0  ;;  %v7737_v6 = vpop.f32.mrb[16].mxu1 }
 0x12b   :  { %15761 = vst [vmem:[#allocation38_spill] sm:$0xff] %v7735_v5  ;;  %15762 = vst [vmem:[#allocation39_spill] sm:$0xff] %v7737_v6  ;;  %v7739_v7 = vpop.f32.mrb[17].mxu0  ;;  %v7741_v8 = vpop.f32.mrb[17].mxu1 }
 0x12c   :  { %15763 = vst [vmem:[#allocation40_spill] sm:$0xff] %v7739_v7  ;;  %15764 = vst [vmem:[#allocation41_spill] sm:$0xff] %v7741_v8  ;;  %v7743_v9 = vpop.f32.mrb[18].mxu0  ;;  %v7745_v10 = vpop.f32.mrb[18].mxu1 }
 0x12d   :  { %15765 = vst [vmem:[#allocation42_spill] sm:$0xff] %v7743_v9  ;;  %15766 = vst [vmem:[#allocation43_spill] sm:$0xff] %v7745_v10  ;;  %v7747_v11 = vpop.f32.mrb[19].mxu0  ;;  %v7749_v12 = vpop.f32.mrb[19].mxu1 }
 0x12e   :  { %15767 = vst [vmem:[#allocation44_spill] sm:$0xff] %v7747_v11  ;;  %15768 = vst [vmem:[#allocation45_spill] sm:$0xff] %v7749_v12 }
 0x132   :  { %v7751_v13 = vpop.f32.mrb[20].mxu0  ;;  %v7753_v14 = vpop.f32.mrb[20].mxu1 }
 0x133   :  { %15769 = vst [vmem:[#allocation46_spill] sm:$0xff] %v7751_v13  ;;  %15770 = vst [vmem:[#allocation47_spill] sm:$0xff] %v7753_v14  ;;  %v7755_v15 = vpop.f32.mrb[21].mxu0  ;;  %v7757_v16 = vpop.f32.mrb[21].mxu1 }
 0x134   :  { %15771 = vst [vmem:[#allocation48_spill] sm:$0xff] %v7755_v15  ;;  %15772 = vst [vmem:[#allocation49_spill] sm:$0xff] %v7757_v16  ;;  %v7759_v17 = vpop.f32.mrb[22].mxu0  ;;  %v7761_v18 = vpop.f32.mrb[22].mxu1 }
 0x135   :  { %15773 = vst [vmem:[#allocation50_spill] sm:$0xff] %v7759_v17  ;;  %15774 = vst [vmem:[#allocation51_spill] sm:$0xff] %v7761_v18  ;;  %v7763_v19 = vpop.f32.mrb[23].mxu0  ;;  %v7765_v20 = vpop.f32.mrb[23].mxu1 }
 0x136   :  { %15775 = vst [vmem:[#allocation52_spill] sm:$0xff] %v7763_v19  ;;  %15776 = vst [vmem:[#allocation53_spill] sm:$0xff] %v7765_v20 }
 0x13a   :  { %v7767_v21 = vpop.f32.mrb[24].mxu0  ;;  %v7769_v22 = vpop.f32.mrb[24].mxu1 }
 0x13b   :  { %15777 = vst [vmem:[#allocation54_spill] sm:$0xff] %v7767_v21  ;;  %15778 = vst [vmem:[#allocation55_spill] sm:$0xff] %v7769_v22  ;;  %v7771_v23 = vpop.f32.mrb[25].mxu0  ;;  %v7773_v24 = vpop.f32.mrb[25].mxu1 }
 0x13c   :  { %15779 = vst [vmem:[#allocation56_spill] sm:$0xff] %v7771_v23  ;;  %15780 = vst [vmem:[#allocation57_spill] sm:$0xff] %v7773_v24  ;;  %v7775_v25 = vpop.f32.mrb[26].mxu0  ;;  %v7777_v26 = vpop.f32.mrb[26].mxu1 }
 0x13d   :  { %15781 = vst [vmem:[#allocation58_spill] sm:$0xff] %v7775_v25  ;;  %15782 = vst [vmem:[#allocation59_spill] sm:$0xff] %v7777_v26  ;;  %v7779_v27 = vpop.f32.mrb[27].mxu0  ;;  %v7781_v28 = vpop.f32.mrb[27].mxu1 }
 0x13e   :  { %15783 = vst [vmem:[#allocation60_spill] sm:$0xff] %v7779_v27  ;;  %15784 = vst [vmem:[#allocation61_spill] sm:$0xff] %v7781_v28 }
 0x142   :  { %v7783_v29 = vpop.f32.mrb[28].mxu0  ;;  %v7785_v30 = vpop.f32.mrb[28].mxu1 }
 0x143   :  { %15785 = vst [vmem:[#allocation62_spill] sm:$0xff] %v7783_v29  ;;  %15786 = vst [vmem:[#allocation63_spill] sm:$0xff] %v7785_v30  ;;  %v7787_v31 = vpop.f32.mrb[29].mxu0  ;;  %v7789_v32 = vpop.f32.mrb[29].mxu1 }
 0x144   :  { %15787 = vst [vmem:[#allocation64_spill] sm:$0xff] %v7787_v31  ;;  %15788 = vst [vmem:[#allocation65_spill] sm:$0xff] %v7789_v32  ;;  %v7791_v33 = vpop.f32.mrb[30].mxu0  ;;  %v7793_v34 = vpop.f32.mrb[30].mxu1 }
 0x145   :  { %15789 = vst [vmem:[#allocation66_spill] sm:$0xff] %v7791_v33  ;;  %15790 = vst [vmem:[#allocation67_spill] sm:$0xff] %v7793_v34  ;;  %v7795_v35 = vpop.f32.mrb[31].mxu0  ;;  %v7797_v36 = vpop.f32.mrb[31].mxu1 }
 0x146   :  { %15791 = vst [vmem:[#allocation68_spill] sm:$0xff] %v7795_v35  ;;  %15792 = vst [vmem:[#allocation69_spill] sm:$0xff] %v7797_v36 }
 0x14a   :  { %v7799_v52 = vpop.f32.mrb[32].mxu0  ;;  %v7801_v49 = vpop.f32.mrb[32].mxu1 }
 0x14b   :  { %15793 = vst [vmem:[#allocation70_spill] sm:$0xff] %v7799_v52  ;;  %15794 = vst [vmem:[#allocation71_spill] sm:$0xff] %v7801_v49  ;;  %v7805_v48 = vadd.f32 %v7801_v49, %v7655_v40  ;;  %v7809_v50 = vadd.f32 %v7801_v49, %v7799_v52  ;;  %v7811_v45 = vpop.f32.mrb[33].mxu1  ;;  %1179 = vrot.lane.b32.xlu0 %v7801_v49, %s7179_s1  ;;  %v7815_v44 = vpop.f32.mrb[33].mxu0 }
 0x14c   :  { %15797 = vst [vmem:[#allocation74_spill] sm:$0xff] %v7811_v45  ;;  %15798 = vst [vmem:[#allocation75_spill] sm:$0xff] %v7815_v44  ;;  %v7819_v46 = vadd.f32 %v7811_v45, %v7799_v52  ;;  %v7823_v41 = vadd.f32 %v7811_v45, %v7655_v40  ;;  %v7827_v42 = vadd.f32 %v7811_v45, %v7815_v44  ;;  %v7833_v38 = vpop.f32.mrb[34].mxu0  ;;  %v7835_v39 = vpop.f32.mrb[34].mxu1 }
 0x14d   :  { %15795 = vst [vmem:[#allocation72_spill] sm:$0xff] %v7805_v48  ;;  %15796 = vst [vmem:[#allocation73_spill] sm:$0xff] %v7809_v50  ;;  %v7831_v1 = vadd.f32 %v7801_v49, %v7815_v44  ;;  %v7839_v37 = vadd.f32 %v7835_v39, %v7663_v43  ;;  %v7843_v35 = vadd.f32 %v7835_v39, %v7833_v38  ;;  %v7845_v30 = vpop.f32.mrb[35].mxu0  ;;  %v7847_v29 = vpop.f32.mrb[35].mxu1  ;;  %1181 = vrot.lane.b32.xlu1 %v7835_v39, %s7179_s1 }
 0x14e   :  { %15799 = vst [vmem:[#allocation76_spill] sm:$0xff] %v7819_v46  ;;  %15800 = vst [vmem:[#allocation77_spill] sm:$0xff] %v7823_v41  ;;  %v7853_v27 = vadd.f32 %v7835_v39, %v7845_v30  ;;  %v7859_v34 = vadd.f32 %v7847_v29, %v7833_v38  ;;  %v7863_v22 = vadd.f32 %v7847_v29, %v7845_v30  ;;  %v8181_v54 = vmul.f32 0.2, %v7809_v50 }
 0x14f   :  { %15801 = vst [vmem:[#allocation78_spill] sm:$0xff] %v7827_v42  ;;  %15802 = vst [vmem:[#allocation79_spill] sm:$0xff] %v7831_v1  ;;  %1211 = vrot.lane.b32.xlu0 %v7811_v45, %s7179_s1  ;;  %v7867_v33 = vadd.f32 %v7847_v29, %v7663_v43 }
 0x150   :  { %15803 = vst [vmem:[#allocation80_spill] sm:$0xff] %v7833_v38  ;;  %15804 = vst [vmem:[#allocation81_spill] sm:$0xff] %v7835_v39 }
 0x151   :  { %15805 = vst [vmem:[#allocation82_spill] sm:$0xff] %v7839_v37  ;;  %15806 = vst [vmem:[#allocation83_spill] sm:$0xff] %v7843_v35 }
 0x152   :  { %15807 = vst [vmem:[#allocation84_spill] sm:$0xff] %v7845_v30  ;;  %15808 = vst [vmem:[#allocation85_spill] sm:$0xff] %v7847_v29  ;;  %v7869_v21 = vpop.f32.mrb[36].mxu0  ;;  %v7871_v31 = vpop.f32.mrb[36].mxu1 }
 0x153   :  { %15809 = vst [vmem:[#allocation86_spill] sm:$0xff] %v7853_v27  ;;  %15810 = vst [vmem:[#allocation87_spill] sm:$0xff] %v7859_v34  ;;  %v7875_v19 = vadd.f32 %v7871_v31, %v7679_v47  ;;  %v7879_v26 = vadd.f32 %v7871_v31, %v7869_v21  ;;  %v7881_v14 = vpop.f32.mrb[37].mxu1  ;;  %1213 = vrot.lane.b32.xlu0 %v7847_v29, %s7179_s1  ;;  %v7885_v25 = vpop.f32.mrb[37].mxu0 }
 0x154   :  { %15811 = vst [vmem:[#allocation88_spill] sm:$0xff] %v7863_v22  ;;  %15812 = vst [vmem:[#allocation89_spill] sm:$0xff] %v7867_v33  ;;  %v7889_v13 = vadd.f32 %v7881_v14, %v7869_v21  ;;  %v7893_v23 = vadd.f32 %v7881_v14, %v7679_v47  ;;  %v7895_v11 = vpop.f32.mrb[38].mxu0  ;;  %v7897_v18 = vpop.f32.mrb[38].mxu1  ;;  %1215 = vrot.lane.b32.xlu1 %v7881_v14, %s7179_s1  ;;  %v7903_v39 = vadd.f32 %v7881_v14, %v7885_v25 }
 0x155   :  { %15813 = vst [vmem:[#allocation90_spill] sm:$0xff] %v7869_v21  ;;  %15814 = vst [vmem:[#allocation91_spill] sm:$0xff] %v7871_v31  ;;  %v7905_v17 = vpop.f32.mrb[39].mxu0  ;;  %v7907_v49 = vpop.f32.mrb[39].mxu1  ;;  %v7911_v15 = vadd.f32 %v7871_v31, %v7885_v25  ;;  %v7917_v29 = vadd.f32 %v7897_v18, %v7687_v51  ;;  %v7921_v45 = vadd.f32 %v7897_v18, %v7895_v11 }
 0x156   :  { %15815 = vst [vmem:[#allocation92_spill] sm:$0xff] %v7875_v19  ;;  %15816 = vst [vmem:[#allocation93_spill] sm:$0xff] %v7879_v26  ;;  %v7931_v10 = vadd.f32 %v7907_v49, %v7895_v11  ;;  %v7939_v9 = vadd.f32 %v7907_v49, %v7687_v51 }
 0x157   :  { %15817 = vst [vmem:[#allocation94_spill] sm:$0xff] %v7881_v14  ;;  %15818 = vst [vmem:[#allocation95_spill] sm:$0xff] %v7885_v25  ;;  %1183 = vrot.lane.b32.xlu0 %v7871_v31, %s7179_s1  ;;  %v7927_v14 = vadd.f32 %v7897_v18, %v7905_v17  ;;  %v7935_v31 = vadd.f32 %v7907_v49, %v7905_v17 }
 0x158   :  { %15819 = vst [vmem:[#allocation96_spill] sm:$0xff] %v7889_v13  ;;  %15820 = vst [vmem:[#allocation97_spill] sm:$0xff] %v7893_v23  ;;  %1185 = vrot.lane.b32.xlu1 %v7897_v18, %s7179_s1 }
 0x159   :  { %15821 = vst [vmem:[#allocation98_spill] sm:$0xff] %v7895_v11  ;;  %15822 = vst [vmem:[#allocation99_spill] sm:$0xff] %v7897_v18 }
 0x15a   :  { %15823 = vst [vmem:[#allocation100_spill] sm:$0xff] %v7903_v39  ;;  %15824 = vst [vmem:[#allocation101_spill] sm:$0xff] %v7905_v17  ;;  %v7941_v7 = vpop.f32.mrb[40].mxu0  ;;  %v7943_v2 = vpop.f32.mrb[40].mxu1 }
 0x15b   :  { %15825 = vst [vmem:[#allocation102_spill] sm:$0xff] %v7907_v49  ;;  %15826 = vst [vmem:[#allocation103_spill] sm:$0xff] %v7911_v15  ;;  %v7947_v18 = vadd.f32 %v7943_v2, %v7703_v55  ;;  %v7949_v6 = vpop.f32.mrb[41].mxu1  ;;  %1217 = vrot.lane.b32.xlu0 %v7907_v49, %s7179_s1  ;;  %v7953_v0 = vpop.f32.mrb[41].mxu0  ;;  %v7963_v3 = vadd.f32 %v7943_v2, %v7941_v7 }
 0x15c   :  { %15827 = vst [vmem:[#allocation104_spill] sm:$0xff] %v7917_v29  ;;  %15828 = vst [vmem:[#allocation105_spill] sm:$0xff] %v7921_v45  ;;  %v7955_v5 = vpop.f32.mrb[42].mxu0  ;;  %v7957_v62 = vpop.f32.mrb[42].mxu1  ;;  %1219 = vrot.lane.b32.xlu1 %v7949_v6, %s7179_s1  ;;  %v7971_v49 = vadd.f32 %v7949_v6, %v7941_v7  ;;  %v7975_v60 = vadd.f32 %v7949_v6, %v7703_v55  ;;  %v7979_v58 = vadd.f32 %v7949_v6, %v7953_v0 }
 0x15d   :  { %15829 = vst [vmem:[#allocation106_spill] sm:$0xff] %v7927_v14  ;;  %15830 = vst [vmem:[#allocation107_spill] sm:$0xff] %v7931_v10  ;;  %v7965_v57 = vpop.f32.mrb[43].mxu0  ;;  %v7967_v61 = vpop.f32.mrb[43].mxu1  ;;  %v7983_v56 = vadd.f32 %v7943_v2, %v7953_v0  ;;  %v7989_v11 = vadd.f32 %v7957_v62, %v7711_v59 }
 0x15e   :  { %15831 = vst [vmem:[#allocation108_spill] sm:$0xff] %v7935_v31  ;;  %15832 = vst [vmem:[#allocation109_spill] sm:$0xff] %v7939_v9  ;;  %v8017_v21 = vadd.f32 %v7967_v61, %v7965_v57 }
 0x15f   :  { %15833 = vst [vmem:[#allocation110_spill] sm:$0xff] %v7941_v7  ;;  %15834 = vst [vmem:[#allocation111_spill] sm:$0xff] %v7943_v2  ;;  %1187 = vrot.lane.b32.xlu0 %v7943_v2, %s7179_s1  ;;  %v7993_v7 = vadd.f32 %v7957_v62, %v7955_v5  ;;  %v8007_v2 = vadd.f32 %v7967_v61, %v7955_v5 }
 0x160   :  { %15835 = vst [vmem:[#allocation112_spill] sm:$0xff] %v7947_v18  ;;  %15836 = vst [vmem:[#allocation113_spill] sm:$0xff] %v7949_v6  ;;  %1189 = vrot.lane.b32.xlu1 %v7957_v62, %s7179_s1  ;;  %v7999_v6 = vadd.f32 %v7957_v62, %v7965_v57 }
 0x161   :  { %15837 = vst [vmem:[#allocation114_spill] sm:$0xff] %v7953_v0  ;;  %15838 = vst [vmem:[#allocation115_spill] sm:$0xff] %v7955_v5 }
 0x162   :  { %15839 = vst [vmem:[#allocation116_spill] sm:$0xff] %v7957_v62  ;;  %15840 = vst [vmem:[#allocation117_spill] sm:$0xff] %v7963_v3  ;;  %v8001_v55 = vpop.f32.mrb[44].mxu0  ;;  %v8003_v0 = vpop.f32.mrb[44].mxu1  ;;  %v8021_v62 = vadd.f32 %v7967_v61, %v7711_v59 }
 0x163   :  { %15841 = vst [vmem:[#allocation118_spill] sm:$0xff] %v7965_v57  ;;  %15842 = vst [vmem:[#allocation119_spill] sm:$0xff] %v7967_v61  ;;  %v8009_v51 = vpop.f32.mrb[45].mxu1  ;;  %1221 = vrot.lane.b32.xlu0 %v7967_v61, %s7179_s1  ;;  %v8013_v17 = vpop.f32.mrb[45].mxu0  ;;  %v8031_v5 = vadd.f32 %v8003_v0, %v7723_v63  ;;  %v8035_v25 = vadd.f32 %v8003_v0, %v8001_v55 }
 0x164   :  { %15843 = vst [vmem:[#allocation120_spill] sm:$0xff] %v7971_v49  ;;  %15844 = vst [vmem:[#allocation121_spill] sm:$0xff] %v7975_v60  ;;  %v8023_v53 = vpop.f32.mrb[46].mxu0  ;;  %v8025_v47 = vpop.f32.mrb[46].mxu1  ;;  %1223 = vrot.lane.b32.xlu1 %v8009_v51, %s7179_s1  ;;  %v8043_v61 = vadd.f32 %v8009_v51, %v8001_v55  ;;  %v8047_v59 = vadd.f32 %v8009_v51, %v7723_v63  ;;  %v8051_v43 = vadd.f32 %v8009_v51, %v8013_v17 }
 0x165   :  { %15845 = vst [vmem:[#allocation122_spill] sm:$0xff] %v7979_v58  ;;  %15846 = vst [vmem:[#allocation123_spill] sm:$0xff] %v7983_v56  ;;  %v8037_v57 = vpop.f32.mrb[47].mxu0  ;;  %v8039_v38 = vpop.f32.mrb[47].mxu1  ;;  %v8059_v30 = vadd.f32 %v8003_v0, %v8013_v17  ;;  %v8067_v63 = vadd.f32 %v8025_v47, %v8023_v53 }
 0x166   :  { %15847 = vst [vmem:[#allocation124_spill] sm:$0xff] %v7989_v11  ;;  %15848 = vst [vmem:[#allocation125_spill] sm:$0xff] %v7993_v7  ;;  %v8075_v40 = vadd.f32 %v8025_v47, %v8037_v57 }
 0x167   :  { %15849 = vst [vmem:[#allocation126_spill] sm:$0xff] %v7999_v6  ;;  %15850 = vst [vmem:[#allocation127_spill] sm:$0xff] %v8001_v55  ;;  %1191 = vrot.lane.b32.xlu0 %v8003_v0, %s7179_s1  ;;  %v8063_v55 = vadd.f32 %v8025_v47, %v7731_v4 }
 0x168   :  { %15851 = vst [vmem:[#allocation128_spill] sm:$0xff] %v8003_v0  ;;  %15852 = vst [vmem:[#allocation129_spill] sm:$0xff] %v8007_v2  ;;  %1193 = vrot.lane.b32.xlu1 %v8025_v47, %s7179_s1  ;;  %v8079_v0 = vadd.f32 %v8039_v38, %v8023_v53 }
 0x169   :  { %15853 = vst [vmem:[#allocation130_spill] sm:$0xff] %v8009_v51  ;;  %15854 = vst [vmem:[#allocation131_spill] sm:$0xff] %v8013_v17 }
 0x16a   :  { %15855 = vst [vmem:[#allocation132_spill] sm:$0xff] %v8017_v21  ;;  %15856 = vst [vmem:[#allocation133_spill] sm:$0xff] %v8021_v62  ;;  %v8069_v51 = vpop.f32.mrb[48].mxu0  ;;  %v8071_v52 = vpop.f32.mrb[48].mxu1 }
 0x16b   :  { %15857 = vst [vmem:[#allocation134_spill] sm:$0xff] %v8023_v53  ;;  %15858 = vst [vmem:[#allocation135_spill] sm:$0xff] %v8025_v47  ;;  %v8081_v17 = vpop.f32.mrb[49].mxu1  ;;  %1225 = vrot.lane.b32.xlu0 %v8039_v38, %s7179_s1  ;;  %v8103_v53 = vadd.f32 %v8071_v52, %v7741_v8 }
 0x16c   :  { %15859 = vst [vmem:[#allocation136_spill] sm:$0xff] %v8031_v5  ;;  %15860 = vst [vmem:[#allocation137_spill] sm:$0xff] %v8035_v25  ;;  %1227 = vrot.lane.b32.xlu1 %v8081_v17, %s7179_s1 }
 0x16d   :  { %15861 = vst [vmem:[#allocation138_spill] sm:$0xff] %v8037_v57  ;;  %15862 = vst [vmem:[#allocation139_spill] sm:$0xff] %v8039_v38 }
 0x16e   :  { %15863 = vst [vmem:[#allocation140_spill] sm:$0xff] %v8043_v61  ;;  %15864 = vst [vmem:[#allocation141_spill] sm:$0xff] %v8047_v59 }
 0x16f   :  { %15865 = vst [vmem:[#allocation142_spill] sm:$0xff] %v8051_v43  ;;  %15866 = vst [vmem:[#allocation143_spill] sm:$0xff] %v8059_v30  ;;  %v8093_v30 = vadd.f32 %v8039_v38, %v7731_v4  ;;  %1195 = vrot.lane.b32.xlu0 %v8071_v52, %s7179_s1  ;;  %v8121_v4 = vadd.f32 %v8081_v17, %v7741_v8 }
 0x170   :  { %15867 = vst [vmem:[#allocation144_spill] sm:$0xff] %v8063_v55  ;;  %15868 = vst [vmem:[#allocation145_spill] sm:$0xff] %v8067_v63  ;;  %v8085_v55 = vpop.f32.mrb[49].mxu0  ;;  %v8089_v63 = vadd.f32 %v8039_v38, %v8037_v57  ;;  %v8111_v57 = vadd.f32 %v8071_v52, %v8069_v51  ;;  %v8117_v38 = vadd.f32 %v8081_v17, %v8069_v51 }
 0x171   :  { %15869 = vst [vmem:[#allocation146_spill] sm:$0xff] %v8069_v51  ;;  %15870 = vst [vmem:[#allocation147_spill] sm:$0xff] %v8071_v52  ;;  %v8095_v47 = vpop.f32.mrb[50].mxu0 }
 0x172   :  { %15871 = vst [vmem:[#allocation148_spill] sm:$0xff] %v8075_v40  ;;  %15872 = vst [vmem:[#allocation149_spill] sm:$0xff] %v8079_v0  ;;  %v8097_v40 = vpop.f32.mrb[50].mxu1  ;;  %v8105_v0 = vpop.f32.mrb[51].mxu0 }
 0x173   :  { %15873 = vst [vmem:[#allocation150_spill] sm:$0xff] %v8081_v17  ;;  %15874 = vst [vmem:[#allocation151_spill] sm:$0xff] %v8085_v55  ;;  %v8107_v44 = vpop.f32.mrb[51].mxu1  ;;  %1197 = vrot.lane.b32.xlu1 %v8097_v40, %s7179_s1  ;;  %v8139_v51 = vadd.f32 %v8097_v40, %v8095_v47  ;;  %v8141_v8 = vpop.f32.mrb[52].mxu0 }
 0x174   :  { %15875 = vst [vmem:[#allocation152_spill] sm:$0xff] %v8089_v63  ;;  %15876 = vst [vmem:[#allocation153_spill] sm:$0xff] %v8093_v30  ;;  %v8135_v30 = vadd.f32 %v8097_v40, %v7749_v12  ;;  %1229 = vrot.lane.b32.xlu0 %v8107_v44, %s7179_s1  ;;  %v8174_v63 = vadd.f32 %v8107_v44, %v8105_v0  ;;  %v8178_v43 = vadd.f32 %v8107_v44, %v7749_v12 }
 0x175   :  { %15877 = vst [vmem:[#allocation154_spill] sm:$0xff] %v8095_v47  ;;  %15878 = vst [vmem:[#allocation155_spill] sm:$0xff] %v8097_v40  ;;  %v8204_v12 = vmul.f32 0.2, %v7819_v46 }
 0x176   :  { %15879 = vst [vmem:[#allocation156_spill] sm:$0xff] %v8103_v53  ;;  %15880 = vst [vmem:[#allocation157_spill] sm:$0xff] %v8105_v0  ;;  %v8127_v53 = vadd.f32 %v8081_v17, %v8085_v55  ;;  %v8147_v17 = vadd.f32 %v8097_v40, %v8105_v0 }
 0x177   :  { %15881 = vst [vmem:[#allocation158_spill] sm:$0xff] %v8107_v44  ;;  %15882 = vst [vmem:[#allocation159_spill] sm:$0xff] %v8111_v57  ;;  %v8131_v57 = vadd.f32 %v8071_v52, %v8085_v55  ;;  %v8153_v52 = vpop.f32.mrb[53].mxu0 }
 0x178   :  { %15883 = vst [vmem:[#allocation160_spill] sm:$0xff] %v8117_v38  ;;  %15884 = vst [vmem:[#allocation161_spill] sm:$0xff] %v8121_v4  ;;  %v8143_v4 = vpop.f32.mrb[52].mxu1  ;;  %v8155_v55 = vpop.f32.mrb[54].mxu0  ;;  %v8170_v38 = vmul.f32 0.2, %v7805_v48 }
 0x179   :  { %15885 = vst [vmem:[#allocation162_spill] sm:$0xff] %v8127_v53  ;;  %15886 = vst [vmem:[#allocation163_spill] sm:$0xff] %v8131_v57  ;;  %v8149_v53 = vpop.f32.mrb[53].mxu1  ;;  %v8165_v40 = vpop.f32.mrb[55].mxu0  ;;  %v1275_v57 = vlaneseq  ;;  %1199 = vrot.lane.b32.xlu0 %v8143_v4, %s7179_s1 }
 0x17a   :  { %15887 = vst [vmem:[#allocation164_spill] sm:$0xff] %v8135_v30  ;;  %15888 = vst [vmem:[#allocation165_spill] sm:$0xff] %v8139_v51  ;;  %v8157_v30 = vpop.f32.mrb[54].mxu1  ;;  %1231 = vrot.lane.b32.xlu1 %v8149_v53, %s7179_s1  ;;  %v8163_v51 = vadd.f32 %v8107_v44, %v8095_v47  ;;  %v8185_v47 = vadd.f32 %v8143_v4, %v7757_v16  ;;  %v8195_v0 = vadd.f32 %v8149_v53, %v8141_v8 }
 0x17b   :  { %15889 = vst [vmem:[#allocation166_spill] sm:$0xff] %v8141_v8  ;;  %15890 = vst [vmem:[#allocation167_spill] sm:$0xff] %v8143_v4  ;;  %v8199_v44 = vadd.f32 %v8149_v53, %v7757_v16  ;;  %v8218_v16 = vmul.f32 0.2, %v7827_v42  ;;  %v8254_v50 = vadd.f32 %v8157_v30, %v8155_v55 }
 0x17c   :  { %15891 = vst [vmem:[#allocation168_spill] sm:$0xff] %v8147_v17  ;;  %15892 = vst [vmem:[#allocation169_spill] sm:$0xff] %v8149_v53  ;;  %v8167_v17 = vpop.f32.mrb[55].mxu1 }
 0x17d   :  { %15893 = vst [vmem:[#allocation170_spill] sm:$0xff] %v8153_v52  ;;  %15894 = vst [vmem:[#allocation171_spill] sm:$0xff] %v8155_v55  ;;  %1201 = vrot.lane.b32.xlu0 %v8157_v30, %s7179_s1  ;;  %v8276_v59 = vpop.permute.xlu1 %2446  ;;  %v8286_v62 = vadd.f32 %v8167_v17, %v8165_v40 }
 0x17e   :  { %15895 = vst [vmem:[#allocation172_spill] sm:$0xff] %v8157_v30  ;;  %15896 = vst [vmem:[#allocation173_spill] sm:$0xff] %v8163_v51  ;;  %v8189_v51 = vadd.f32 %v8143_v4, %v8141_v8  ;;  %1233 = vrot.lane.b32.xlu1 %v8167_v17, %s7179_s1  ;;  %v8234_v8 = vadd.f32 %v8143_v4, %v8153_v52 }
 0x17f   :  { %15897 = vst [vmem:[#allocation174_spill] sm:$0xff] %v8165_v40  ;;  %15898 = vst [vmem:[#allocation175_spill] sm:$0xff] %v8167_v17 }
 0x180   :  { %15899 = vst [vmem:[#allocation176_spill] sm:$0xff] %v8170_v38  ;;  %15900 = vst [vmem:[#allocation177_spill] sm:$0xff] %v8174_v63  ;;  %v8246_v63 = vmul.f32 0.2, %v7853_v27  ;;  %v8332_v27 = vmul.f32 0.2, %v7889_v13 }
 0x181   :  { %15901 = vst [vmem:[#allocation178_spill] sm:$0xff] %v8178_v43  ;;  %15902 = vst [vmem:[#allocation179_spill] sm:$0xff] %v8181_v54  ;;  %v8222_v43 = vpop.f32.mrb[56].mxu1  ;;  %v8250_v54 = vadd.f32 %v8157_v30, %v7765_v20 }
 0x182   :  { %15903 = vst [vmem:[#allocation180_spill] sm:$0xff] %v8185_v47  ;;  %15904 = vst [vmem:[#allocation181_spill] sm:$0xff] %v8189_v51  ;;  %v8208_v51 = vadd.f32 %v8149_v53, %v8153_v52  ;;  %v8210_v47 = vand.u32 127, %v1275_v57  ;;  %v8227_v53 = vmul.f32 0.2, %v7831_v1  ;;  %v8236_v38 = vpop.f32.mrb[57].mxu1  ;;  %v8302_v5 = vadd.f32 %v8222_v43, %v7773_v24  ;;  %1203 = vrot.lane.b32.xlu0 %v8222_v43, %s7179_s1 }
 0x183   :  { %15905 = vst [vmem:[#allocation182_spill] sm:$0xff] %v8195_v0  ;;  %15906 = vst [vmem:[#allocation183_spill] sm:$0xff] %v8199_v44  ;;  %v8215_v0 = vmul.f32 0.2, %v7823_v41  ;;  %v8220_v44 = vpop.f32.mrb[56].mxu0  ;;  %v8258_v52 = vpop.f32.mrb[58].mxu1  ;;  %1235 = vrot.lane.b32.xlu1 %v8236_v38, %s7179_s1 }
 0x184   :  { %15907 = vst [vmem:[#allocation184_spill] sm:$0xff] %v8204_v12  ;;  %15908 = vst [vmem:[#allocation185_spill] sm:$0xff] %v8208_v51  ;;  %v8230_v57 = vmul.f32 0.2, %v7839_v37  ;;  %v8240_v48 = vpop.f32.mrb[57].mxu0  ;;  %v8278_v61 = vpop.f32.mrb[59].mxu1  ;;  %v8327_v41 = vadd.f32 %v8222_v43, %v8220_v44  ;;  %v8339_v25 = vadd.f32 %v8236_v38, %v8220_v44  ;;  %v8373_v42 = vadd.f32 %v8258_v52, %v7781_v28 }
 0x185   :  { %15909 = vst [vmem:[#allocation186_spill] sm:$0xff] %v8210_v47  ;;  %15910 = vst [vmem:[#allocation187_spill] sm:$0xff] %v8215_v0  ;;  %v8243_v51 = vmul.f32 0.2, %v7843_v35  ;;  %v8256_v4 = vpop.f32.mrb[58].mxu0  ;;  %v8355_v35 = vadd.f32 %v8236_v38, %v8240_v48 }
 0x186   :  { %15911 = vst [vmem:[#allocation188_spill] sm:$0xff] %v8218_v16  ;;  %15912 = vst [vmem:[#allocation189_spill] sm:$0xff] %v8220_v44  ;;  %v8266_v47 = vmul.f32 0.2, %v7863_v22  ;;  %v8323_v0 = vmul.f32 0.2, %v7879_v26  ;;  %1205 = vrot.lane.b32.xlu0 %v8258_v52, %s7179_s1  ;;  %v8377_v12 = vadd.f32 %v8258_v52, %v8256_v4 }
 0x187   :  { %15913 = vst [vmem:[#allocation190_spill] sm:$0xff] %v8222_v43  ;;  %15914 = vst [vmem:[#allocation191_spill] sm:$0xff] %v8227_v53  ;;  %1237 = vrot.lane.b32.xlu1 %v8278_v61, %s7179_s1  ;;  %v8335_v37 = vmul.f32 0.2, %v7893_v23  ;;  %v8348_v22 = vmul.f32 0.2, %v7903_v39 }
 0x188   :  { %15915 = vst [vmem:[#allocation192_spill] sm:$0xff] %v8230_v57  ;;  %15916 = vst [vmem:[#allocation193_spill] sm:$0xff] %v8234_v8  ;;  %v8263_v8 = vmul.f32 0.2, %v7859_v34  ;;  %v8343_v57 = vadd.f32 %v8236_v38, %v7773_v24  ;;  %v8361_v34 = vpop.f32.mrb[60].mxu1 }
 0x189   :  { %15917 = vst [vmem:[#allocation194_spill] sm:$0xff] %v8236_v38  ;;  %15918 = vst [vmem:[#allocation195_spill] sm:$0xff] %v8240_v48  ;;  %v8379_v46 = vpop.f32.mrb[61].mxu1  ;;  %v8386_v1 = vmul.f32 0.2, %v7917_v29 }
 0x18a   :  { %15919 = vst [vmem:[#allocation196_spill] sm:$0xff] %v8243_v51  ;;  %15920 = vst [vmem:[#allocation197_spill] sm:$0xff] %v8246_v63  ;;  %v8329_v63 = vpop.permute.xlu1 %2414  ;;  %v8351_v51 = vmul.f32 0.2, %v7911_v15  ;;  %v8389_v16 = vmul.f32 0.2, %v7921_v45  ;;  %1207 = vrot.lane.b32.xlu0 %v8361_v34, %s7179_s1  ;;  %v8460_v15 = vadd.f32 %v8361_v34, %v7789_v32 }
 0x18b   :  { %15921 = vst [vmem:[#allocation198_spill] sm:$0xff] %v8250_v54  ;;  %15922 = vst [vmem:[#allocation199_spill] sm:$0xff] %v8254_v50  ;;  %v8270_v54 = vadd.f32 %v8157_v30, %v8165_v40  ;;  %v8274_v50 = vadd.f32 %v8167_v17, %v8155_v55  ;;  %v8290_v30 = vadd.f32 %v8167_v17, %v7765_v20  ;;  %v8292_v55 = vpop.f32.mrb[59].mxu0  ;;  %1239 = vrot.lane.b32.xlu1 %v8379_v46, %s7179_s1 }
 0x18c   :  { %15923 = vst [vmem:[#allocation200_spill] sm:$0xff] %v8256_v4  ;;  %15924 = vst [vmem:[#allocation201_spill] sm:$0xff] %v8258_v52  ;;  %v8406_v26 = vmul.f32 0.2, %v7927_v14  ;;  %v8418_v24 = vmul.f32 0.2, %v7935_v31  ;;  %v8450_v23 = vadd.f32 %v8258_v52, %v8292_v55 }
 0x18d   :  { %15925 = vst [vmem:[#allocation202_spill] sm:$0xff] %v8263_v8  ;;  %15926 = vst [vmem:[#allocation203_spill] sm:$0xff] %v8266_v47  ;;  %v8345_v47 = vpop.f32.mrb[60].mxu0  ;;  %v8359_v8 = vadd.f32 %v8222_v43, %v8240_v48  ;;  %v8435_v44 = vmul.f32 0.2, %v7963_v3  ;;  %v16050_v48 = vld [vmem:[#allocation162_spill] sm:$0xff] }
 0x18e   :  { %15927 = vst [vmem:[#allocation204_spill] sm:$0xff] %v8270_v54  ;;  %15928 = vst [vmem:[#allocation205_spill] sm:$0xff] %v8274_v50  ;;  %v8314_v50 = vmul.f32 0.2, %v7875_v19  ;;  %v8365_v53 = vpop.f32.mrb[61].mxu0  ;;  %v8395_v19 = vpop.f32.mrb[62].mxu1  ;;  %v8475_v13 = vadd.f32 %v8379_v46, %v8345_v47 }
 0x18f   :  { %15929 = vst [vmem:[#allocation206_spill] sm:$0xff] %v8276_v59  ;;  %15930 = vst [vmem:[#allocation207_spill] sm:$0xff] %v8278_v61  ;;  %v8311_v59 = vmul.f32 0.2, %v7867_v33  ;;  %v8381_v43 = vpop.f32.mrb[62].mxu0  ;;  %v8411_v17 = vpop.f32.mrb[63].mxu1  ;;  %v8493_v31 = vadd.f32 %v8379_v46, %v8365_v53  ;;  %v8507_v29 = vadd.f32 %v8361_v34, %v8365_v53  ;;  %v8524_v3 = vadd.f32 %v8395_v19, %v7797_v36 }
 0x190   :  { %15931 = vst [vmem:[#allocation208_spill] sm:$0xff] %v8286_v62  ;;  %15932 = vst [vmem:[#allocation209_spill] sm:$0xff] %v8290_v30  ;;  %v8409_v33 = vmul.f32 0.2, %v7931_v10  ;;  %v8424_v38 = vpop.f32.mrb[63].mxu0 }
 0x191   :  { %15933 = vst [vmem:[#allocation210_spill] sm:$0xff] %v8292_v55  ;;  %15934 = vst [vmem:[#allocation211_spill] sm:$0xff] %v8302_v5  ;;  %v8446_v39 = vmul.f32 0.2, %v7971_v49  ;;  %v8503_v14 = vmul.f32 0.2, %v7983_v56 }
 0x192   :  { %15935 = vst [vmem:[#allocation212_spill] sm:$0xff] %v8311_v59  ;;  %15936 = vst [vmem:[#allocation213_spill] sm:$0xff] %v8314_v50  ;;  %v8393_v50 = vadd.f32 %v8278_v61, %v8256_v4  ;;  %v8397_v59 = vpop.permute.xlu1 %2448  ;;  %v8432_v4 = vmul.f32 0.2, %v7947_v18  ;;  %v8514_v18 = vmul.f32 0.2, %v7989_v11 }
 0x193   :  { %15937 = vst [vmem:[#allocation214_spill] sm:$0xff] %v8323_v0  ;;  %15938 = vst [vmem:[#allocation215_spill] sm:$0xff] %v8327_v41  ;;  %v8422_v0 = vadd.f32 %v8278_v61, %v7781_v28  ;;  %v8529_v49 = vmul.f32 0.2, %v8007_v2  ;;  %v16016_v11 = vld [vmem:[#allocation143_spill] sm:$0xff]  ;;  %v16025_v2 = vld [vmem:[#allocation145_spill] sm:$0xff] }
 0x194   :  { %15939 = vst [vmem:[#allocation216_spill] sm:$0xff] %v8332_v27  ;;  %15940 = vst [vmem:[#allocation217_spill] sm:$0xff] %v8335_v37  ;;  %v8429_v37 = vmul.f32 0.2, %v7939_v9  ;;  %v15993_v9 = vld [vmem:[#allocation133_spill] sm:$0xff]  ;;  %v16034_v28 = vld [vmem:[#allocation80_spill] sm:$0xff] }
 0x195   :  { %15941 = vst [vmem:[#allocation218_spill] sm:$0xff] %v8339_v25  ;;  %15942 = vst [vmem:[#allocation219_spill] sm:$0xff] %v8343_v57  ;;  %v8541_v10 = vmul.f32 0.2, %v15993_v9 }
 0x196   :  { %15943 = vst [vmem:[#allocation220_spill] sm:$0xff] %v8345_v47  ;;  %15944 = vst [vmem:[#allocation221_spill] sm:$0xff] %v8348_v22  ;;  %v8452_v27 = vpop.permute.xlu1 %2416  ;;  %v8464_v22 = vadd.f32 %v8361_v34, %v8345_v47  ;;  %v15999_v47 = vld [vmem:[#allocation137_spill] sm:$0xff] }
 0x197   :  { %15945 = vst [vmem:[#allocation222_spill] sm:$0xff] %v8351_v51  ;;  %15946 = vst [vmem:[#allocation223_spill] sm:$0xff] %v8355_v35  ;;  %v8439_v51 = vadd.f32 %v8278_v61, %v8292_v55  ;;  %v8479_v61 = vadd.f32 %v8379_v46, %v7789_v32  ;;  %v8559_v32 = vmul.f32 0.2, %v15999_v47  ;;  %v16029_v47 = vld [vmem:[#allocation13_spill] sm:$0xff] }
 0x198   :  { %15947 = vst [vmem:[#allocation224_spill] sm:$0xff] %v8359_v8  ;;  %15948 = vst [vmem:[#allocation225_spill] sm:$0xff] %v8361_v34  ;;  %v15995_v34 = vld [vmem:[#allocation136_spill] sm:$0xff] }
 0x199   :  { %15949 = vst [vmem:[#allocation226_spill] sm:$0xff] %v8365_v53  ;;  %15950 = vst [vmem:[#allocation227_spill] sm:$0xff] %v8373_v42  ;;  %v8544_v52 = vmul.f32 0.2, %v15995_v34  ;;  %v8563_v53 = vadd.f32 %v8411_v17, %v8424_v38 }
 0x19a   :  { %15951 = vst [vmem:[#allocation228_spill] sm:$0xff] %v8377_v12  ;;  %15952 = vst [vmem:[#allocation229_spill] sm:$0xff] %v8379_v46  ;;  %v8575_v46 = vadd.f32 %v8395_v19, %v8424_v38 }
 0x19b   :  { %15953 = vst [vmem:[#allocation230_spill] sm:$0xff] %v8381_v43  ;;  %15954 = vst [vmem:[#allocation231_spill] sm:$0xff] %v8386_v1  ;;  %v8466_v1 = vpop.f32.mrb[64].mxu0 }
 0x19c   :  { %15955 = vst [vmem:[#allocation232_spill] sm:$0xff] %v8389_v16  ;;  %15956 = vst [vmem:[#allocation233_spill] sm:$0xff] %v8393_v50  ;;  %v8471_v16 = vmul.f32 0.2, %v7975_v60  ;;  %1243 = vrot.lane.b32.xlu1 %v8466_v1, %s7179_s1  ;;  %v16009_v60 = vld [vmem:[#allocation24_spill] sm:$0xff] }
 0x19d   :  { %15957 = vst [vmem:[#allocation234_spill] sm:$0xff] %v8395_v19  ;;  %15958 = vst [vmem:[#allocation235_spill] sm:$0xff] %v8397_v59 }
 0x19e   :  { %15959 = vst [vmem:[#allocation236_spill] sm:$0xff] %v8406_v26  ;;  %15960 = vst [vmem:[#allocation237_spill] sm:$0xff] %v8409_v33  ;;  %v8483_v26 = vpop.f32.mrb[65].mxu0  ;;  %v8520_v33 = vmul.f32 0.2, %v7999_v6  ;;  %v16011_v6 = vld [vmem:[#allocation142_spill] sm:$0xff] }
 0x19f   :  { %15961 = vst [vmem:[#allocation238_spill] sm:$0xff] %v8411_v17  ;;  %15962 = vst [vmem:[#allocation239_spill] sm:$0xff] %v8418_v24  ;;  %v8495_v45 = vpop.f32.mrb[66].mxu0  ;;  %v8509_v24 = vpop.permute.xlu1 %2450 }
 0x1a0   :  { %15963 = vst [vmem:[#allocation240_spill] sm:$0xff] %v8422_v0  ;;  %15964 = vst [vmem:[#allocation241_spill] sm:$0xff] %v8424_v38  ;;  %1245 = vrot.lane.b32.xlu1 %v8495_v45, %s7179_s1  ;;  %v8647_v55 = vadd.f32 %v8495_v45, %v16034_v28  ;;  %v16042_v28 = vld [vmem:[#allocation156_spill] sm:$0xff] }
 0x1a1   :  { %15965 = vst [vmem:[#allocation242_spill] sm:$0xff] %v8429_v37  ;;  %15966 = vst [vmem:[#allocation243_spill] sm:$0xff] %v8432_v4  ;;  %v8511_v4 = vpop.f32.mrb[67].mxu0  ;;  %v8536_v37 = vadd.f32 %v8395_v19, %v8381_v43 }
 0x1a2   :  { %15967 = vst [vmem:[#allocation244_spill] sm:$0xff] %v8435_v44  ;;  %15968 = vst [vmem:[#allocation245_spill] sm:$0xff] %v8439_v51  ;;  %v8517_v44 = vmul.f32 0.2, %v7993_v7 }
 0x1a3   :  { %15969 = vst [vmem:[#allocation246_spill] sm:$0xff] %v8446_v39  ;;  %15970 = vst [vmem:[#allocation247_spill] sm:$0xff] %v8450_v23  ;;  %v8548_v39 = vadd.f32 %v8411_v17, %v8381_v43 }
 0x1a4   :  { %15971 = vst [vmem:[#allocation248_spill] sm:$0xff] %v8452_v27  ;;  %15972 = vst [vmem:[#allocation249_spill] sm:$0xff] %v8460_v15  ;;  %2422 = vrot.lane.b32.xlu1 %v16009_v60, %s7179_s1  ;;  %v16027_v60 = vld [vmem:[#allocation84_spill] sm:$0xff] }
 0x1a5   :  { %15973 = vst [vmem:[#allocation250_spill] sm:$0xff] %v8464_v22  ;;  %15974 = vst [vmem:[#allocation251_spill] sm:$0xff] %v8466_v1 }
 0x1a6   :  { %15975 = vst [vmem:[#allocation252_spill] sm:$0xff] %v8471_v16  ;;  %15976 = vst [vmem:[#allocation253_spill] sm:$0xff] %v8475_v13  ;;  %v8552_v16 = vadd.f32 %v8411_v17, %v7797_v36 }
 0x1a7   :  { %15977 = vst [vmem:[#allocation254_spill] sm:$0xff] %v8479_v61  ;;  %15978 = vst [vmem:[#allocation255_spill] sm:$0xff] %v8483_v26  ;;  %v8500_v26 = vmul.f32 0.2, %v7979_v58  ;;  %v16005_v58 = vld [vmem:[#allocation140_spill] sm:$0xff] }
 0x1a8   :  { %15979 = vst [vmem:[#allocation256_spill] sm:$0xff] %v8493_v31  ;;  %15980 = vst [vmem:[#allocation257_spill] sm:$0xff] %v8495_v45  ;;  %v8584_v43 = vmul.f32 0.2, %v16005_v58  ;;  %v16040_v58 = vld [vmem:[#allocation153_spill] sm:$0xff] }
 0x1a9   :  { %15981 = vst [vmem:[#allocation258_spill] sm:$0xff] %v8500_v26  ;;  %15982 = vst [vmem:[#allocation259_spill] sm:$0xff] %v8503_v14  ;;  %v8577_v14 = vpop.f32.mrb[68].mxu0  ;;  %v16020_v26 = vld [vmem:[#allocation70_spill] sm:$0xff] }
 0x1aa   :  { %15983 = vst [vmem:[#allocation260_spill] sm:$0xff] %v8507_v29  ;;  %15984 = vst [vmem:[#allocation261_spill] sm:$0xff] %v8509_v24  ;;  %v8565_v24 = vpop.permute.xlu1 %2418  ;;  %1247 = vrot.lane.b32.xlu0 %v8577_v14, %s7179_s1 }
 0x1ab   :  { %15985 = vst [vmem:[#allocation262_spill] sm:$0xff] %v8511_v4  ;;  %15986 = vst [vmem:[#allocation263_spill] sm:$0xff] %v8514_v18  ;;  %v8532_v4 = vmul.f32 0.2, %v8017_v21  ;;  %v16007_v18 = vld [vmem:[#allocation141_spill] sm:$0xff]  ;;  %v16013_v21 = vld [vmem:[#allocation75_spill] sm:$0xff] }
 0x1ac   :  { %15987 = vst [vmem:[#allocation264_spill] sm:$0xff] %v8517_v44  ;;  %15988 = vst [vmem:[#allocation265_spill] sm:$0xff] %v8520_v33  ;;  %v8587_v36 = vmul.f32 0.2, %v16007_v18  ;;  %v8593_v33 = vpop.f32.mrb[69].mxu0  ;;  %v8604_v44 = vadd.f32 %v8466_v1, %v16013_v21  ;;  %v16038_v18 = vld [vmem:[#allocation152_spill] sm:$0xff] }
 0x1ad   :  { %15989 = vst [vmem:[#allocation266_spill] sm:$0xff] %v8524_v3  ;;  %15990 = vst [vmem:[#allocation267_spill] sm:$0xff] %v8529_v49  ;;  %v8606_v7 = vpop.f32.mrb[70].mxu0  ;;  %v16018_v49 = vld [vmem:[#allocation9_spill] sm:$0xff]  ;;  %v8627_v21 = vmul.f32 0.2, %v16025_v2 }
 0x1ae   :  { %15991 = vst [vmem:[#allocation268_spill] sm:$0xff] %v8532_v4  ;;  %15992 = vst [vmem:[#allocation269_spill] sm:$0xff] %v8536_v37  ;;  %v8600_v4 = vmul.f32 0.2, %v16011_v6  ;;  %v8615_v56 = vadd.f32 %v8466_v1, %v16018_v49  ;;  %v8621_v9 = vpop.f32.mrb[71].mxu0  ;;  %v8635_v49 = vadd.f32 %v8495_v45, %v16029_v47  ;;  %1209 = vrot.lane.b32.xlu0 %v8395_v19, %s7179_s1  ;;  %1249 = vrot.lane.b32.xlu1 %v8606_v7, %s7179_s1 }
 0x1af   :  { %15994 = vst [vmem:[#allocation270_spill] sm:$0xff] %v8541_v10  ;;  %15996 = vst [vmem:[#allocation271_spill] sm:$0xff] %v8544_v52  ;;  %v8619_v10 = vadd.f32 %v8466_v1, %v16020_v26  ;;  %v16023_v52 = vld [vmem:[#allocation144_spill] sm:$0xff]  ;;  %v16036_v1 = vld [vmem:[#allocation149_spill] sm:$0xff]  ;;  %v8669_v19 = vmul.f32 0.2, %v16042_v28 }
 0x1b0   :  { %15997 = vst [vmem:[#allocation272_spill] sm:$0xff] %v8548_v39  ;;  %15998 = vst [vmem:[#allocation273_spill] sm:$0xff] %v8552_v16  ;;  %v8624_v34 = vmul.f32 0.2, %v16023_v52  ;;  %v16031_v26 = vld [vmem:[#allocation148_spill] sm:$0xff]  ;;  %v16063_v52 = vld [vmem:[#allocation165_spill] sm:$0xff] }
 0x1b1   :  { %16000 = vst [vmem:[#allocation274_spill] sm:$0xff] %v8559_v32  ;;  %16001 = vst [vmem:[#allocation275_spill] sm:$0xff] %v8563_v53  ;;  %v8631_v32 = vadd.f32 %v8495_v45, %v16027_v60  ;;  %v8642_v38 = vmul.f32 0.2, %v16031_v26  ;;  %v8649_v60 = vpop.permute.xlu1 %2452  ;;  %v8664_v45 = vmul.f32 0.2, %v16040_v58 }
 0x1b2   :  { %16002 = vst [vmem:[#allocation276_spill] sm:$0xff] %v8565_v24  ;;  %16003 = vst [vmem:[#allocation277_spill] sm:$0xff] %v8575_v46  ;;  %v16033_v24 = vld [vmem:[#allocation186_spill] sm:$0xff]  ;;  %v8685_v47 = vmul.f32 0.2, %v16050_v48  ;;  %v16057_v53 = vld [vmem:[#allocation95_spill] sm:$0xff] }
 0x1b3   :  { %16004 = vst [vmem:[#allocation278_spill] sm:$0xff] %v8577_v14  ;;  %16006 = vst [vmem:[#allocation279_spill] sm:$0xff] %v8584_v43  ;;  %vm1277_vm2 = vcmp.lt.s32.totalorder %v16033_v24, 64  ;;  %v8661_v43 = vmul.f32 0.2, %v16038_v18  ;;  %v16065_v16 = vld [vmem:[#allocation90_spill] sm:$0xff] }
 0x1b4   :  { %16008 = vst [vmem:[#allocation280_spill] sm:$0xff] %v8587_v36  ;;  %16010 = vst [vmem:[#allocation281_spill] sm:$0xff] %v8593_v33  ;;  %v8611_v33 = vmul.f32 0.2, %v16016_v11  ;;  %v8658_v36 = vmul.f32 0.2, %v16036_v1  ;;  %v8714_v39 = vadd.f32 %v8577_v14, %v16065_v16 }
 0x1b5   :  { %16012 = vst [vmem:[#allocation282_spill] sm:$0xff] %v8600_v4  ;;  %16014 = vst [vmem:[#allocation283_spill] sm:$0xff] %v8604_v44  ;;  %v16053_v11 = vld [vmem:[#allocation163_spill] sm:$0xff]  ;;  %v16055_v44 = vld [vmem:[#allocation164_spill] sm:$0xff]  ;;  %v8697_v4 = vadd.f32 %v8577_v14, %v16057_v53  ;;  %v8710_v59 = vmul.f32 0.2, %v16063_v52 }
 0x1b6   :  { %16015 = vst [vmem:[#allocation284_spill] sm:$0xff] %v8606_v7  ;;  %16017 = vst [vmem:[#allocation285_spill] sm:$0xff] %v8611_v33  ;;  %v8687_v33 = vpop.f32.mrb[72].mxu0  ;;  %v8693_v46 = vmul.f32 0.2, %v16055_v44  ;;  %v16067_v53 = vld [vmem:[#allocation101_spill] sm:$0xff] }
 0x1b7   :  { %16019 = vst [vmem:[#allocation286_spill] sm:$0xff] %v8615_v56  ;;  %16021 = vst [vmem:[#allocation287_spill] sm:$0xff] %v8619_v10  ;;  %v16048_v10 = vld [vmem:[#allocation161_spill] sm:$0xff]  ;;  %v8690_v56 = vmul.f32 0.2, %v16053_v11  ;;  %1251 = vrot.lane.b32.xlu0 %v8687_v33, %s7179_s1  ;;  %v8707_v2 = vpop.f32.mrb[73].mxu0 }
 0x1b8   :  { %16022 = vst [vmem:[#allocation288_spill] sm:$0xff] %v8621_v9  ;;  %16024 = vst [vmem:[#allocation289_spill] sm:$0xff] %v8624_v34  ;;  %v8682_v27 = vmul.f32 0.2, %v16048_v10  ;;  %v16059_v34 = vld [vmem:[#allocation17_spill] sm:$0xff]  ;;  %v16072_v16 = vld [vmem:[#allocation98_spill] sm:$0xff] }
 0x1b9   :  { %16026 = vst [vmem:[#allocation290_spill] sm:$0xff] %v8627_v21  ;;  %16028 = vst [vmem:[#allocation291_spill] sm:$0xff] %v8631_v32  ;;  %v16046_v32 = vld [vmem:[#allocation160_spill] sm:$0xff]  ;;  %v8701_v6 = vadd.f32 %v8577_v14, %v16059_v34  ;;  %v16061_v21 = vld [vmem:[#allocation23_spill] sm:$0xff] }
 0x1ba   :  { %16030 = vst [vmem:[#allocation292_spill] sm:$0xff] %v8635_v49  ;;  %16032 = vst [vmem:[#allocation293_spill] sm:$0xff] %v8642_v38  ;;  %v8675_v9 = vmul.f32 0.2, %v16046_v32  ;;  %2454 = vrot.lane.b32.xlu1 %v16061_v21, %s7179_s1  ;;  %v16069_v34 = vld [vmem:[#allocation21_spill] sm:$0xff]  ;;  %v8724_v21 = vpop.f32.mrb[74].mxu0 }
 0x1bb   :  { %16035 = vst [vmem:[#allocation186_spill] sm:$0xff] %v8647_v55  ;;  %16037 = vst [vmem:[#allocation294_spill] sm:$0xff] %v8658_v36  ;;  %v16044_v55 = vld [vmem:[#allocation159_spill] sm:$0xff]  ;;  %v16079_v14 = vld [vmem:[#allocation173_spill] sm:$0xff] }
 0x1bc   :  { %16039 = vst [vmem:[#allocation295_spill] sm:$0xff] %v8661_v43  ;;  %16041 = vst [vmem:[#allocation296_spill] sm:$0xff] %v8664_v45  ;;  %v8672_v49 = vmul.f32 0.2, %v16044_v55  ;;  %v16076_v43 = vld [vmem:[#allocation168_spill] sm:$0xff]  ;;  %v16088_v38 = vld [vmem:[#allocation114_spill] sm:$0xff] }
 0x1bd   :  { %16043 = vst [vmem:[#allocation297_spill] sm:$0xff] %v8669_v19  ;;  %16047 = vst [vmem:[#allocation299_spill] sm:$0xff] %v8675_v9  ;;  %v8766_v26 = vmul.f32 0.2, %v16079_v14  ;;  %v16090_v52 = vld [vmem:[#allocation181_spill] sm:$0xff]  ;;  %v16096_v9 = vld [vmem:[#allocation118_spill] sm:$0xff] }
 0x1be   :  { %16045 = vst [vmem:[#allocation298_spill] sm:$0xff] %v8672_v49  ;;  %16049 = vst [vmem:[#allocation300_spill] sm:$0xff] %v8682_v27  ;;  %1253 = vrot.lane.b32.xlu1 %v8724_v21, %s7179_s1  ;;  %v16084_v27 = vld [vmem:[#allocation178_spill] sm:$0xff]  ;;  %v8790_v44 = vmul.f32 0.2, %v16090_v52  ;;  %v16092_v48 = vld [vmem:[#allocation25_spill] sm:$0xff]  ;;  %v8802_v32 = vadd.f32 %v8724_v21, %v16096_v9 }
 0x1bf   :  { %16051 = vst [vmem:[#allocation301_spill] sm:$0xff] %v8685_v47  ;;  %16052 = vst [vmem:[#allocation302_spill] sm:$0xff] %v8687_v33  ;;  %v8778_v10 = vmul.f32 0.2, %v16084_v27  ;;  %v16086_v47 = vld [vmem:[#allocation180_spill] sm:$0xff]  ;;  %v16094_v49 = vld [vmem:[#allocation110_spill] sm:$0xff] }
 0x1c0   :  { %16054 = vst [vmem:[#allocation303_spill] sm:$0xff] %v8690_v56  ;;  %16056 = vst [vmem:[#allocation304_spill] sm:$0xff] %v8693_v46  ;;  %v16082_v56 = vld [vmem:[#allocation177_spill] sm:$0xff]  ;;  %v8781_v20 = vmul.f32 0.2, %v16086_v47  ;;  %v8783_v46 = vpop.permute.xlu0 %2382  ;;  %v8798_v55 = vadd.f32 %v8687_v33, %v16094_v49  ;;  %v16099_v18 = vld [vmem:[#allocation182_spill] sm:$0xff] }
 0x1c1   :  { %16058 = vst [vmem:[#allocation305_spill] sm:$0xff] %v8697_v4  ;;  %16060 = vst [vmem:[#allocation306_spill] sm:$0xff] %v8701_v6  ;;  %v8718_v4 = vadd.f32 %v8606_v7, %v16067_v53  ;;  %v8722_v6 = vadd.f32 %v8606_v7, %v16069_v34  ;;  %v8736_v53 = vpop.permute.xlu1 %2420  ;;  %v8755_v34 = vmul.f32 0.2, %v16076_v43  ;;  %v8775_v11 = vmul.f32 0.2, %v16082_v56 }
 0x1c2   :  { %16062 = vst [vmem:[#allocation307_spill] sm:$0xff] %v8707_v2  ;;  %16064 = vst [vmem:[#allocation308_spill] sm:$0xff] %v8710_v59  ;;  %v16078_v2 = vld [vmem:[#allocation26_spill] sm:$0xff]  ;;  %v8787_v59 = vadd.f32 %v8687_v33, %v16088_v38  ;;  %v8809_v19 = vmul.f32 0.2, %v16099_v18  ;;  %v16101_v28 = vld [vmem:[#allocation29_spill] sm:$0xff]  ;;  %1241 = vrot.lane.b32.xlu1 %v8411_v17, %s7179_s1 }
 0x1c3   :  { %16066 = vst [vmem:[#allocation309_spill] sm:$0xff] %v8714_v39  ;;  %16068 = vst [vmem:[#allocation310_spill] sm:$0xff] %v8718_v4  ;;  %v8734_v39 = vadd.f32 %v8606_v7, %v16072_v16  ;;  %v8738_v4 = vpop.f32.mrb[75].mxu0  ;;  %2392 = vrot.lane.b32.xlu0 %v16078_v2, %s7179_s1  ;;  %v8813_v36 = vadd.f32 %v8724_v21, %v16101_v28  ;;  %v16103_v1 = vld [vmem:[#allocation115_spill] sm:$0xff]  ;;  %v16108_v7 = vld [vmem:[#allocation185_spill] sm:$0xff] }
 0x1c4   :  { %16070 = vst [vmem:[#allocation311_spill] sm:$0xff] %v8722_v6  ;;  %16071 = vst [vmem:[#allocation312_spill] sm:$0xff] %v8724_v21  ;;  %v8804_v45 = vpop.f32.mrb[76].mxu0  ;;  %v8817_v2 = vadd.f32 %v8724_v21, %v16103_v1  ;;  %v8831_v28 = vmul.f32 0.2, %v16108_v7  ;;  %v16110_v9 = vld [vmem:[#allocation131_spill] sm:$0xff]  ;;  %v8869_v38 = vpop.permute.xlu0 %2384 }
 0x1c5   :  { %16073 = vst [vmem:[#allocation313_spill] sm:$0xff] %v8734_v39  ;;  %16074 = vst [vmem:[#allocation314_spill] sm:$0xff] %v8736_v53  ;;  %v8835_v21 = vadd.f32 %v8804_v45, %v16110_v9  ;;  %v16117_v49 = vld [vmem:[#allocation199_spill] sm:$0xff]  ;;  %v8857_v17 = vmul.f32 0.2, %v8270_v54  ;;  %v16124_v9 = vld [vmem:[#allocation33_spill] sm:$0xff] }
 0x1c6   :  { %16075 = vst [vmem:[#allocation315_spill] sm:$0xff] %v8738_v4  ;;  %16077 = vst [vmem:[#allocation316_spill] sm:$0xff] %v8755_v34  ;;  %v8772_v4 = vsel %vm1277_vm2, %v8736_v53, %v8649_v60  ;;  %v16106_v34 = vld [vmem:[#allocation183_spill] sm:$0xff]  ;;  %v8854_v16 = vmul.f32 0.2, %v16117_v49  ;;  %v16128_v47 = vld [vmem:[#allocation138_spill] sm:$0xff] }
 0x1c7   :  { %16080 = vst [vmem:[#allocation317_spill] sm:$0xff] %v8766_v26  ;;  %16081 = vst [vmem:[#allocation318_spill] sm:$0xff] %v8772_v4  ;;  %v8794_v4 = vadd.f32 %v8687_v33, %v16092_v48  ;;  %1255 = vrot.lane.b32.xlu0 %v8804_v45, %s7179_s1  ;;  %v8823_v33 = vpop.f32.mrb[77].mxu0  ;;  %v8828_v43 = vmul.f32 0.2, %v16106_v34  ;;  %v16113_v48 = vld [vmem:[#allocation193_spill] sm:$0xff] }
 0x1c8   :  { %16083 = vst [vmem:[#allocation319_spill] sm:$0xff] %v8775_v11  ;;  %16085 = vst [vmem:[#allocation320_spill] sm:$0xff] %v8778_v10  ;;  %v8837_v1 = vpop.f32.mrb[78].mxu0  ;;  %v8844_v58 = vmul.f32 0.2, %v16113_v48  ;;  %v16115_v26 = vld [vmem:[#allocation198_spill] sm:$0xff] }
 0x1c9   :  { %16087 = vst [vmem:[#allocation321_spill] sm:$0xff] %v8781_v20  ;;  %16089 = vst [vmem:[#allocation322_spill] sm:$0xff] %v8787_v59  ;;  %v8847_v14 = vmul.f32 0.2, %v16115_v26  ;;  %v8859_v11 = vpop.f32.mrb[79].mxu0  ;;  %v16121_v10 = vld [vmem:[#allocation205_spill] sm:$0xff]  ;;  %1257 = vrot.lane.b32.xlu1 %v8837_v1, %s7179_s1 }
 0x1ca   :  { %16091 = vst [vmem:[#allocation323_spill] sm:$0xff] %v8790_v44  ;;  %16093 = vst [vmem:[#allocation324_spill] sm:$0xff] %v8794_v4  ;;  %v8864_v27 = vmul.f32 0.2, %v16121_v10  ;;  %v8867_v56 = vmul.f32 0.2, %v8286_v62  ;;  %v8873_v44 = vadd.f32 %v8804_v45, %v16124_v9 }
 0x1cb   :  { %16095 = vst [vmem:[#allocation325_spill] sm:$0xff] %v8798_v55  ;;  %16097 = vst [vmem:[#allocation326_spill] sm:$0xff] %v8802_v32  ;;  %v16126_v52 = vld [vmem:[#allocation127_spill] sm:$0xff]  ;;  %v8890_v18 = vmul.f32 0.2, %v8290_v30  ;;  %v16132_v53 = vld [vmem:[#allocation37_spill] sm:$0xff] }
 0x1cc   :  { %16098 = vst [vmem:[#allocation327_spill] sm:$0xff] %v8804_v45  ;;  %16100 = vst [vmem:[#allocation328_spill] sm:$0xff] %v8809_v19  ;;  %v8883_v20 = vadd.f32 %v8804_v45, %v16126_v52  ;;  %v8887_v19 = vadd.f32 %v8837_v1, %v16128_v47  ;;  %v8893_v9 = vmul.f32 0.2, %v8302_v5  ;;  %v8911_v47 = vpop.f32.mrb[80].mxu0  ;;  %v16145_v54 = vld [vmem:[#allocation41_spill] sm:$0xff] }
 0x1cd   :  { %16102 = vst [vmem:[#allocation329_spill] sm:$0xff] %v8813_v36  ;;  %16104 = vst [vmem:[#allocation330_spill] sm:$0xff] %v8817_v2  ;;  %v8921_v34 = vmul.f32 0.2, %v8339_v25  ;;  %1259 = vrot.lane.b32.xlu0 %v8911_v47, %s7179_s1  ;;  %v8927_v45 = vpop.f32.mrb[81].mxu0  ;;  %v16149_v10 = vld [vmem:[#allocation146_spill] sm:$0xff] }
 0x1ce   :  { %16105 = vst [vmem:[#allocation331_spill] sm:$0xff] %v8823_v33  ;;  %16107 = vst [vmem:[#allocation332_spill] sm:$0xff] %v8828_v43  ;;  %v16134_v43 = vld [vmem:[#allocation134_spill] sm:$0xff]  ;;  %v8930_v7 = vmul.f32 0.2, %v8343_v57  ;;  %v8943_v62 = vpop.f32.mrb[82].mxu0 }
 0x1cf   :  { %16109 = vst [vmem:[#allocation333_spill] sm:$0xff] %v8831_v28  ;;  %16111 = vst [vmem:[#allocation334_spill] sm:$0xff] %v8835_v21  ;;  %v8901_v33 = vadd.f32 %v8837_v1, %v16134_v43  ;;  %v8918_v43 = vmul.f32 0.2, %v8327_v41  ;;  %v16139_v28 = vld [vmem:[#allocation28_spill] sm:$0xff]  ;;  %v8958_v48 = vpop.f32.mrb[83].mxu0 }
 0x1d0   :  { %16112 = vst [vmem:[#allocation335_spill] sm:$0xff] %v8837_v1  ;;  %16114 = vst [vmem:[#allocation336_spill] sm:$0xff] %v8844_v58  ;;  %2424 = vrot.lane.b32.xlu1 %v16139_v28, %s7179_s1  ;;  %v8950_v49 = vmul.f32 0.2, %v8359_v8  ;;  %v8956_v58 = vadd.f32 %v8911_v47, %v16149_v10  ;;  %v8964_v26 = vmul.f32 0.2, %v8377_v12 }
 0x1d1   :  { %16116 = vst [vmem:[#allocation337_spill] sm:$0xff] %v8847_v14  ;;  %16118 = vst [vmem:[#allocation338_spill] sm:$0xff] %v8854_v16  ;;  %v8961_v14 = vmul.f32 0.2, %v8373_v42  ;;  %v16154_v16 = vld [vmem:[#allocation157_spill] sm:$0xff]  ;;  %v16158_v30 = vld [vmem:[#allocation154_spill] sm:$0xff] }
 0x1d2   :  { %16119 = vst [vmem:[#allocation339_spill] sm:$0xff] %v8857_v17  ;;  %16120 = vst [vmem:[#allocation340_spill] sm:$0xff] %v8859_v11  ;;  %v8897_v11 = vadd.f32 %v8837_v1, %v16132_v53  ;;  %v8933_v53 = vmul.f32 0.2, %v8355_v35  ;;  %v16143_v1 = vld [vmem:[#allocation151_spill] sm:$0xff]  ;;  %v8980_v28 = vadd.f32 %v8943_v62, %v16158_v30  ;;  %v16170_v35 = vld [vmem:[#allocation170_spill] sm:$0xff] }
 0x1d3   :  { %16122 = vst [vmem:[#allocation341_spill] sm:$0xff] %v8864_v27  ;;  %16123 = vst [vmem:[#allocation342_spill] sm:$0xff] %v8867_v56  ;;  %v8937_v17 = vadd.f32 %v8911_v47, %v16143_v1  ;;  %v8941_v56 = vadd.f32 %v8911_v47, %v16145_v54  ;;  %v8952_v27 = vpop.permute.xlu0 %2386  ;;  %v8999_v41 = vmul.f32 0.2, %v8439_v51  ;;  %v9012_v57 = vmul.f32 0.2, %v8464_v22 }
 0x1d4   :  { %16125 = vst [vmem:[#allocation343_spill] sm:$0xff] %v8873_v44  ;;  %16127 = vst [vmem:[#allocation344_spill] sm:$0xff] %v8883_v20  ;;  %1261 = vrot.lane.b32.xlu1 %v8943_v62, %s7179_s1  ;;  %v9020_v8 = vmul.f32 0.2, %v8479_v61  ;;  %v16182_v30 = vld [vmem:[#allocation27_spill] sm:$0xff]  ;;  %v16214_v51 = vld [vmem:[#allocation57_spill] sm:$0xff] }
 0x1d5   :  { %16129 = vst [vmem:[#allocation345_spill] sm:$0xff] %v8887_v19  ;;  %16130 = vst [vmem:[#allocation346_spill] sm:$0xff] %v8890_v18  ;;  %v8991_v18 = vmul.f32 0.2, %v8393_v50  ;;  %v16233_v1 = vld [vmem:[#allocation186_spill] sm:$0xff]  ;;  %v16235_v52 = vld [vmem:[#allocation61_spill] sm:$0xff] }
 0x1d6   :  { %16131 = vst [vmem:[#allocation347_spill] sm:$0xff] %v8893_v9  ;;  %16133 = vst [vmem:[#allocation348_spill] sm:$0xff] %v8897_v11  ;;  %v16156_v9 = vld [vmem:[#allocation45_spill] sm:$0xff]  ;;  %v9198_v10 = vmul.f32 0.2, %v16233_v1 }
 0x1d7   :  { %16135 = vst [vmem:[#allocation349_spill] sm:$0xff] %v8901_v33  ;;  %16136 = vst [vmem:[#allocation350_spill] sm:$0xff] %v8911_v47  ;;  %v8972_v5 = vadd.f32 %v8943_v62, %v16156_v9  ;;  %v16160_v47 = vld [vmem:[#allocation30_spill] sm:$0xff]  ;;  %v9005_v9 = vmul.f32 0.2, %v8460_v15 }
 0x1d8   :  { %16137 = vst [vmem:[#allocation351_spill] sm:$0xff] %v8918_v43  ;;  %16138 = vst [vmem:[#allocation352_spill] sm:$0xff] %v8921_v34  ;;  %2394 = vrot.lane.b32.xlu0 %v16160_v47, %s7179_s1  ;;  %v9002_v34 = vmul.f32 0.2, %v8450_v23  ;;  %v9015_v43 = vmul.f32 0.2, %v8475_v13  ;;  %2456 = vrot.lane.b32.xlu1 %v16182_v30, %s7179_s1 }
 0x1d9   :  { %16140 = vst [vmem:[#allocation353_spill] sm:$0xff] %v8927_v45  ;;  %16141 = vst [vmem:[#allocation354_spill] sm:$0xff] %v8930_v7  ;;  %v8968_v45 = vadd.f32 %v8943_v62, %v16154_v16  ;;  %v16172_v16 = vld [vmem:[#allocation49_spill] sm:$0xff]  ;;  %v9080_v47 = vmul.f32 0.2, %v8536_v37  ;;  %v16195_v30 = vld [vmem:[#allocation32_spill] sm:$0xff] }
 0x1da   :  { %16142 = vst [vmem:[#allocation355_spill] sm:$0xff] %v8933_v53  ;;  %16144 = vst [vmem:[#allocation356_spill] sm:$0xff] %v8937_v17  ;;  %v9022_v53 = vpop.permute.xlu0 %2388  ;;  %v16210_v13 = vld [vmem:[#allocation286_spill] sm:$0xff]  ;;  %v16212_v23 = vld [vmem:[#allocation195_spill] sm:$0xff] }
 0x1db   :  { %16146 = vst [vmem:[#allocation357_spill] sm:$0xff] %v8941_v56  ;;  %16147 = vst [vmem:[#allocation358_spill] sm:$0xff] %v8943_v62  ;;  %v16178_v62 = vld [vmem:[#allocation206_spill] sm:$0xff] }
 0x1dc   :  { %16148 = vst [vmem:[#allocation359_spill] sm:$0xff] %v8950_v49  ;;  %16150 = vst [vmem:[#allocation360_spill] sm:$0xff] %v8956_v58  ;;  %v9017_v49 = vpop.f32.mrb[84].mxu0  ;;  %2426 = vrot.lane.b32.xlu1 %v16195_v30, %s7179_s1  ;;  %v16218_v37 = vld [vmem:[#allocation38_spill] sm:$0xff]  ;;  %v16223_v30 = vld [vmem:[#allocation287_spill] sm:$0xff] }
 0x1dd   :  { %16151 = vst [vmem:[#allocation361_spill] sm:$0xff] %v8958_v48  ;;  %16152 = vst [vmem:[#allocation362_spill] sm:$0xff] %v8961_v14  ;;  %v8994_v48 = vmul.f32 0.2, %v8422_v0  ;;  %v9026_v25 = vadd.f32 %v9017_v49, %v16170_v35  ;;  %v9030_v7 = vadd.f32 %v9017_v49, %v16172_v16  ;;  %v16176_v14 = vld [vmem:[#allocation31_spill] sm:$0xff]  ;;  %v9038_v42 = vpop.f32.mrb[85].mxu0  ;;  %v9046_v35 = vsel %vm1277_vm2, %v16178_v62, %v8783_v46 }
 0x1de   :  { %16153 = vst [vmem:[#allocation363_spill] sm:$0xff] %v8964_v26  ;;  %16155 = vst [vmem:[#allocation364_spill] sm:$0xff] %v8968_v45  ;;  %v16174_v26 = vld [vmem:[#allocation166_spill] sm:$0xff]  ;;  %2458 = vrot.lane.b32.xlu0 %v16176_v14, %s7179_s1  ;;  %v9049_v16 = vmul.f32 0.2, %v8493_v31  ;;  %v9056_v14 = vpop.f32.mrb[86].mxu0  ;;  %v9127_v61 = vpop.permute.xlu0 %2390 }
 0x1df   :  { %16157 = vst [vmem:[#allocation365_spill] sm:$0xff] %v8972_v5  ;;  %16159 = vst [vmem:[#allocation366_spill] sm:$0xff] %v8980_v28  ;;  %v9034_v12 = vadd.f32 %v9017_v49, %v16174_v26  ;;  %v9052_v26 = vmul.f32 0.2, %v8507_v29  ;;  %v9074_v50 = vadd.f32 %v9056_v14, %v8165_v40  ;;  %v16191_v0 = vld [vmem:[#allocation171_spill] sm:$0xff]  ;;  %v16205_v29 = vld [vmem:[#allocation277_spill] sm:$0xff] }
 0x1e0   :  { %16161 = vst [vmem:[#allocation367_spill] sm:$0xff] %v8991_v18  ;;  %16162 = vst [vmem:[#allocation368_spill] sm:$0xff] %v8994_v48  ;;  %v9070_v18 = vsel %vm1277_vm2, %v8783_v46, %v8329_v63  ;;  %v16189_v48 = vld [vmem:[#allocation53_spill] sm:$0xff]  ;;  %v9090_v46 = vpop.f32.mrb[87].mxu0  ;;  %v16207_v31 = vld [vmem:[#allocation283_spill] sm:$0xff] }
 0x1e1   :  { %16163 = vst [vmem:[#allocation369_spill] sm:$0xff] %v8999_v41  ;;  %16164 = vst [vmem:[#allocation370_spill] sm:$0xff] %v9002_v34  ;;  %v9137_v15 = vmul.f32 0.2, %v16207_v31  ;;  %v9142_v34 = vmul.f32 0.2, %v16210_v13 }
 0x1e2   :  { %16165 = vst [vmem:[#allocation371_spill] sm:$0xff] %v9005_v9  ;;  %16166 = vst [vmem:[#allocation372_spill] sm:$0xff] %v9012_v57  ;;  %v16196_v9 = vld [vmem:[#allocation272_spill] sm:$0xff]  ;;  %v16198_v57 = vld [vmem:[#allocation273_spill] sm:$0xff]  ;;  %v9193_v54 = vpop.permute.xlu0 %1179 }
 0x1e3   :  { %16167 = vst [vmem:[#allocation373_spill] sm:$0xff] %v9015_v43  ;;  %16168 = vst [vmem:[#allocation374_spill] sm:$0xff] %v9017_v49  ;;  %v9113_v40 = vmul.f32 0.2, %v16196_v9  ;;  %v9116_v22 = vmul.f32 0.2, %v16198_v57 }
 0x1e4   :  { %16169 = vst [vmem:[#allocation375_spill] sm:$0xff] %v9020_v8  ;;  %16171 = vst [vmem:[#allocation376_spill] sm:$0xff] %v9026_v25  ;;  %v16202_v8 = vld [vmem:[#allocation275_spill] sm:$0xff]  ;;  %v9139_v43 = vpop.f32.mrb[88].mxu0  ;;  %v16245_v9 = vld [vmem:[#allocation261_spill] sm:$0xff] }
 0x1e5   :  { %16173 = vst [vmem:[#allocation377_spill] sm:$0xff] %v9030_v7  ;;  %16175 = vst [vmem:[#allocation378_spill] sm:$0xff] %v9034_v12  ;;  %v9146_v41 = vadd.f32 %v9139_v43, %v16212_v23  ;;  %v16248_v31 = vld [vmem:[#allocation276_spill] sm:$0xff] }
 0x1e6   :  { %16177 = vst [vmem:[#allocation379_spill] sm:$0xff] %v9038_v42  ;;  %16179 = vst [vmem:[#allocation206_spill] sm:$0xff] %v9046_v35  ;;  %v9064_v42 = vsel %vm1277_vm2, %v8329_v63, %v16178_v62  ;;  %v9077_v35 = vmul.f32 0.2, %v8524_v3  ;;  %v9084_v62 = vadd.f32 %v9056_v14, %v16189_v48  ;;  %v16194_v48 = vld [vmem:[#allocation36_spill] sm:$0xff]  ;;  %v9255_v13 = vpop.permute.xlu0 %1211 }
 0x1e7   :  { %16180 = vst [vmem:[#allocation380_spill] sm:$0xff] %v9049_v16  ;;  %16181 = vst [vmem:[#allocation381_spill] sm:$0xff] %v9052_v26  ;;  %2428 = vrot.lane.b32.xlu0 %v16194_v48, %s7179_s1  ;;  %v9125_v63 = vmul.f32 0.2, %v16202_v8  ;;  %v9134_v16 = vmul.f32 0.2, %v16205_v29 }
 0x1e8   :  { %16183 = vst [vmem:[#allocation382_spill] sm:$0xff] %v9056_v14  ;;  %16184 = vst [vmem:[#allocation383_spill] sm:$0xff] %v9064_v42  ;;  %v9088_v42 = vadd.f32 %v9056_v14, %v16191_v0  ;;  %v16200_v0 = vld [vmem:[#allocation235_spill] sm:$0xff]  ;;  %v16216_v26 = vld [vmem:[#allocation189_spill] sm:$0xff] }
 0x1e9   :  { %16185 = vst [vmem:[#allocation384_spill] sm:$0xff] %v9070_v18  ;;  %16186 = vst [vmem:[#allocation385_spill] sm:$0xff] %v9074_v50  ;;  %v9150_v18 = vadd.f32 %v9139_v43, %v16214_v51  ;;  %v16220_v3 = vld [vmem:[#allocation248_spill] sm:$0xff]  ;;  %v16225_v51 = vld [vmem:[#allocation291_spill] sm:$0xff] }
 0x1ea   :  { %16187 = vst [vmem:[#allocation386_spill] sm:$0xff] %v9077_v35  ;;  %16188 = vst [vmem:[#allocation387_spill] sm:$0xff] %v9080_v47  ;;  %v9154_v47 = vadd.f32 %v9139_v43, %v16216_v26  ;;  %v9158_v35 = vpop.f32.mrb[89].mxu0  ;;  %v9170_v48 = vsel %vm1277_vm2, %v8869_v38, %v16220_v3  ;;  %v9176_v23 = vmul.f32 0.2, %v16225_v51  ;;  %v16229_v26 = vld [vmem:[#allocation292_spill] sm:$0xff] }
 0x1eb   :  { %16190 = vst [vmem:[#allocation388_spill] sm:$0xff] %v9084_v62  ;;  %16192 = vst [vmem:[#allocation389_spill] sm:$0xff] %v9088_v42  ;;  %2398 = vrot.lane.b32.xlu0 %v16218_v37, %s7179_s1  ;;  %v9180_v37 = vpop.f32.mrb[90].mxu0  ;;  %v16242_v8 = vld [vmem:[#allocation306_spill] sm:$0xff]  ;;  %v16247_v29 = vld [vmem:[#allocation35_spill] sm:$0xff] }
 0x1ec   :  { %16193 = vst [vmem:[#allocation390_spill] sm:$0xff] %v9090_v46  ;;  %16197 = vst [vmem:[#allocation391_spill] sm:$0xff] %v9113_v40  ;;  %v9122_v46 = vsel %vm1277_vm2, %v16200_v0, %v8869_v38  ;;  %v9187_v38 = vmul.f32 0.2, %v16229_v26  ;;  %v9208_v57 = vpop.f32.mrb[91].mxu0  ;;  %v9250_v40 = vsel %vm1277_vm2, %v8952_v27, %v16248_v31  ;;  %v16276_v51 = vld [vmem:[#allocation69_spill] sm:$0xff] }
 0x1ed   :  { %16199 = vst [vmem:[#allocation392_spill] sm:$0xff] %v9116_v22  ;;  %16201 = vst [vmem:[#allocation235_spill] sm:$0xff] %v9122_v46  ;;  %v9164_v46 = vsel %vm1277_vm2, %v16220_v3, %v16200_v0  ;;  %v16231_v3 = vld [vmem:[#allocation210_spill] sm:$0xff]  ;;  %v9202_v0 = vadd.f32 %v9180_v37, %v16235_v52  ;;  %v16244_v52 = vld [vmem:[#allocation39_spill] sm:$0xff] }
 0x1ee   :  { %16203 = vst [vmem:[#allocation393_spill] sm:$0xff] %v9125_v63  ;;  %16204 = vst [vmem:[#allocation394_spill] sm:$0xff] %v9127_v61  ;;  %v9173_v61 = vmul.f32 0.2, %v16223_v30  ;;  %v9310_v30 = vmul.f32 0.2, %v8802_v32 }
 0x1ef   :  { %16206 = vst [vmem:[#allocation395_spill] sm:$0xff] %v9134_v16  ;;  %16208 = vst [vmem:[#allocation396_spill] sm:$0xff] %v9137_v15  ;;  %2462 = vrot.lane.b32.xlu0 %v16244_v52, %s7179_s1  ;;  %v9232_v16 = vsel %vm1277_vm2, %v16245_v9, %v8952_v27  ;;  %v9236_v15 = vpop.permute.xlu1 %1181  ;;  %v9269_v27 = vsel %vm1277_vm2, %v8649_v60, %v9022_v53  ;;  %v9288_v60 = vmul.f32 0.2, %v8794_v4  ;;  %v16273_v52 = vld [vmem:[#allocation241_spill] sm:$0xff] }
 0x1f0   :  { %16209 = vst [vmem:[#allocation397_spill] sm:$0xff] %v9139_v43  ;;  %16211 = vst [vmem:[#allocation398_spill] sm:$0xff] %v9142_v34  ;;  %v9396_v4 = vmul.f32 0.2, %v8901_v33 }
 0x1f1   :  { %16213 = vst [vmem:[#allocation399_spill] sm:$0xff] %v9146_v41  ;;  %16215 = vst [vmem:[#allocation400_spill] sm:$0xff] %v9150_v18 }
 0x1f2   :  { %16217 = vst [vmem:[#allocation401_spill] sm:$0xff] %v9154_v47  ;;  %16219 = vst [vmem:[#allocation402_spill] sm:$0xff] %v9158_v35  ;;  %v16227_v35 = vld [vmem:[#allocation34_spill] sm:$0xff] }
 0x1f3   :  { %16221 = vst [vmem:[#allocation248_spill] sm:$0xff] %v9164_v46  ;;  %16222 = vst [vmem:[#allocation403_spill] sm:$0xff] %v9170_v48  ;;  %2396 = vrot.lane.b32.xlu1 %v16227_v35, %s7179_s1  ;;  %v9191_v48 = vadd.f32 %v9180_v37, %v16231_v3  ;;  %v16237_v46 = vld [vmem:[#allocation200_spill] sm:$0xff]  ;;  %v16240_v35 = vld [vmem:[#allocation305_spill] sm:$0xff]  ;;  %v9218_v3 = vmul.f32 0.2, %v16242_v8  ;;  %1263 = vrot.lane.b32.xlu0 %v9017_v49, %s7179_s1 }
 0x1f4   :  { %16224 = vst [vmem:[#allocation404_spill] sm:$0xff] %v9173_v61  ;;  %16226 = vst [vmem:[#allocation405_spill] sm:$0xff] %v9176_v23  ;;  %v9206_v22 = vadd.f32 %v9180_v37, %v16237_v46  ;;  %v9215_v63 = vmul.f32 0.2, %v16240_v35  ;;  %v16266_v35 = vld [vmem:[#allocation220_spill] sm:$0xff] }
 0x1f5   :  { %16228 = vst [vmem:[#allocation406_spill] sm:$0xff] %v9180_v37  ;;  %16230 = vst [vmem:[#allocation407_spill] sm:$0xff] %v9187_v38  ;;  %v16253_v38 = vld [vmem:[#allocation310_spill] sm:$0xff]  ;;  %v16268_v8 = vld [vmem:[#allocation40_spill] sm:$0xff]  ;;  %v9313_v49 = vmul.f32 0.2, %v8813_v36 }
 0x1f6   :  { %16232 = vst [vmem:[#allocation408_spill] sm:$0xff] %v9191_v48  ;;  %16234 = vst [vmem:[#allocation409_spill] sm:$0xff] %v9198_v10  ;;  %v9260_v26 = vmul.f32 0.2, %v16253_v38  ;;  %v9281_v10 = vmul.f32 0.2, %v8787_v59 }
 0x1f7   :  { %16236 = vst [vmem:[#allocation410_spill] sm:$0xff] %v9202_v0  ;;  %16238 = vst [vmem:[#allocation411_spill] sm:$0xff] %v9206_v22  ;;  %2460 = vrot.lane.b32.xlu1 %v16247_v29, %s7179_s1  ;;  %v9326_v23 = vmul.f32 0.2, %v8817_v2  ;;  %1265 = vrot.lane.b32.xlu0 %v9056_v14, %s7179_s1  ;;  %v16281_v38 = vld [vmem:[#allocation314_spill] sm:$0xff]  ;;  %v16327_v2 = vld [vmem:[#allocation91_spill] sm:$0xff] }
 0x1f8   :  { %16239 = vst [vmem:[#allocation412_spill] sm:$0xff] %v9208_v57  ;;  %16241 = vst [vmem:[#allocation413_spill] sm:$0xff] %v9215_v63  ;;  %v9244_v57 = vsel %vm1277_vm2, %v16248_v31, %v16245_v9  ;;  %v9263_v9 = vmul.f32 0.2, %v8722_v6  ;;  %v9271_v31 = vpop.f32.mrb[92].mxu0  ;;  %v16264_v63 = vld [vmem:[#allocation65_spill] sm:$0xff] }
 0x1f9   :  { %16243 = vst [vmem:[#allocation414_spill] sm:$0xff] %v9218_v3  ;;  %16246 = vst [vmem:[#allocation261_spill] sm:$0xff] %v9232_v16  ;;  %v16251_v16 = vld [vmem:[#allocation309_spill] sm:$0xff]  ;;  %v9285_v1 = vpop.f32.mrb[93].mxu0  ;;  %v9296_v46 = vadd.f32 %v9271_v31, %v16264_v63  ;;  %v9300_v3 = vadd.f32 %v9271_v31, %v16266_v35  ;;  %v9319_v63 = vpop.permute.xlu0 %1213  ;;  %v16284_v6 = vld [vmem:[#allocation42_spill] sm:$0xff] }
 0x1fa   :  { %16249 = vst [vmem:[#allocation276_spill] sm:$0xff] %v9244_v57  ;;  %16250 = vst [vmem:[#allocation415_spill] sm:$0xff] %v9250_v40  ;;  %v9253_v34 = vmul.f32 0.2, %v16251_v16  ;;  %v9278_v57 = vmul.f32 0.2, %v8734_v39  ;;  %v9428_v14 = vsel %vm1277_vm2, %v9236_v15, %v9319_v63 }
 0x1fb   :  { %16254 = vst [vmem:[#allocation417_spill] sm:$0xff] %v9260_v26  ;;  %16255 = vst [vmem:[#allocation418_spill] sm:$0xff] %v9263_v9  ;;  %2430 = vrot.lane.b32.xlu1 %v16268_v8, %s7179_s1  ;;  %v9304_v61 = vpop.f32.mrb[94].mxu0  ;;  %v9339_v8 = vmul.f32 0.2, %v8835_v21  ;;  %1267 = vrot.lane.b32.xlu0 %v9139_v43, %s7179_s1  ;;  %v16295_v39 = vld [vmem:[#allocation43_spill] sm:$0xff] }
 0x1fc   :  { %16252 = vst [vmem:[#allocation416_spill] sm:$0xff] %v9253_v34  ;;  %16256 = vst [vmem:[#allocation419_spill] sm:$0xff] %v9269_v27  ;;  %v16262_v27 = vld [vmem:[#allocation226_spill] sm:$0xff]  ;;  %v9317_v29 = vadd.f32 %v9304_v61, %v16273_v52  ;;  %v9330_v35 = vadd.f32 %v9304_v61, %v16276_v51  ;;  %v9346_v26 = vpop.f32.mrb[95].mxu0  ;;  %v9352_v34 = vsel %vm1277_vm2, %v9022_v53, %v16281_v38  ;;  %v9359_v9 = vmul.f32 0.2, %v8883_v20 }
 0x1fd   :  { %16257 = vst [vmem:[#allocation420_spill] sm:$0xff] %v9271_v31  ;;  %16258 = vst [vmem:[#allocation421_spill] sm:$0xff] %v9278_v57  ;;  %v9292_v40 = vadd.f32 %v9271_v31, %v16262_v27  ;;  %v9342_v27 = vmul.f32 0.2, %v8873_v44  ;;  %v16285_v38 = vld [vmem:[#allocation230_spill] sm:$0xff]  ;;  %v9387_v53 = vsel %vm1277_vm2, %v9193_v54, %v9255_v13  ;;  %v16309_v21 = vld [vmem:[#allocation71_spill] sm:$0xff] }
 0x1fe   :  { %16259 = vst [vmem:[#allocation422_spill] sm:$0xff] %v9281_v10  ;;  %16260 = vst [vmem:[#allocation423_spill] sm:$0xff] %v9285_v1  ;;  %v9307_v1 = vmul.f32 0.2, %v8798_v55  ;;  %v9371_v52 = vadd.f32 %v9304_v61, %v16285_v38  ;;  %v9378_v59 = vmul.f32 0.2, %v8887_v19 }
 0x1ff   :  { %16261 = vst [vmem:[#allocation424_spill] sm:$0xff] %v9288_v60  ;;  %16263 = vst [vmem:[#allocation425_spill] sm:$0xff] %v9292_v40  ;;  %2400 = vrot.lane.b32.xlu1 %v16284_v6, %s7179_s1  ;;  %v9409_v60 = vmul.f32 0.2, %v8956_v58  ;;  %v9412_v10 = vmul.f32 0.2, %v8968_v45  ;;  %1269 = vrot.lane.b32.xlu0 %v9180_v37, %s7179_s1 }
 0x200   :  { %16265 = vst [vmem:[#allocation426_spill] sm:$0xff] %v9296_v46  ;;  %16267 = vst [vmem:[#allocation427_spill] sm:$0xff] %v9300_v3  ;;  %v9332_v3 = vpop.permute.xlu1 %1215  ;;  %v9417_v16 = vmul.f32 0.2, %v8972_v5  ;;  %v9420_v6 = vmul.f32 0.2, %v8980_v28 }
 0x201   :  { %16269 = vst [vmem:[#allocation428_spill] sm:$0xff] %v9304_v61  ;;  %16270 = vst [vmem:[#allocation429_spill] sm:$0xff] %v9307_v1  ;;  %v9399_v1 = vmul.f32 0.2, %v8937_v17  ;;  %v16298_v55 = vld [vmem:[#allocation74_spill] sm:$0xff]  ;;  %v16333_v51 = vld [vmem:[#allocation111_spill] sm:$0xff] }
 0x202   :  { %16271 = vst [vmem:[#allocation430_spill] sm:$0xff] %v9310_v30  ;;  %16272 = vst [vmem:[#allocation431_spill] sm:$0xff] %v9313_v49  ;;  %v1327_v43 = vmax.f32 %v16298_v55, %v9387_v53  ;;  %v9501_v28 = vmul.f32 0.2, %v9074_v50  ;;  %v9514_v5 = vmul.f32 0.2, %v9146_v41 }
 0x203   :  { %16274 = vst [vmem:[#allocation432_spill] sm:$0xff] %v9317_v29  ;;  %16275 = vst [vmem:[#allocation433_spill] sm:$0xff] %v9326_v23  ;;  %v9373_v29 = vpop.permute.xlu0 %1183  ;;  %2464 = vrot.lane.b32.xlu1 %v16295_v39, %s7179_s1  ;;  %v9504_v39 = vmul.f32 0.2, %v9084_v62  ;;  %1271 = vrot.lane.b32.xlu0 %v9271_v31, %s7179_s1  ;;  %v9525_v58 = vmul.f32 0.2, %v9154_v47 }
 0x204   :  { %16277 = vst [vmem:[#allocation434_spill] sm:$0xff] %v9330_v35  ;;  %16278 = vst [vmem:[#allocation435_spill] sm:$0xff] %v9339_v8  ;;  %v9389_v57 = vpop.permute.xlu1 %1185  ;;  %v9443_v44 = vsel %vm1277_vm2, %v9373_v29, %v9332_v3  ;;  %v9528_v31 = vmul.f32 0.2, %v9191_v48  ;;  %v16331_v30 = vld [vmem:[#allocation99_spill] sm:$0xff]  ;;  %v16359_v62 = vld [vmem:[#allocation56_spill] sm:$0xff] }
 0x205   :  { %16279 = vst [vmem:[#allocation436_spill] sm:$0xff] %v9342_v27  ;;  %16280 = vst [vmem:[#allocation437_spill] sm:$0xff] %v9346_v26  ;;  %v9381_v26 = vmul.f32 0.2, %v8897_v11  ;;  %v9437_v27 = vmul.f32 0.2, %v9026_v25 }
 0x206   :  { %16282 = vst [vmem:[#allocation314_spill] sm:$0xff] %v9352_v34  ;;  %16283 = vst [vmem:[#allocation438_spill] sm:$0xff] %v9359_v9  ;;  %v9406_v34 = vmul.f32 0.2, %v8941_v56  ;;  %v16324_v11 = vld [vmem:[#allocation70_spill] sm:$0xff]  ;;  %v16341_v50 = vld [vmem:[#allocation51_spill] sm:$0xff] }
 0x207   :  { %16286 = vst [vmem:[#allocation439_spill] sm:$0xff] %v9371_v52  ;;  %16287 = vst [vmem:[#allocation440_spill] sm:$0xff] %v9378_v59  ;;  %v9430_v9 = vpop.permute.xlu0 %1217  ;;  %v9452_v59 = vmul.f32 0.2, %v9030_v7  ;;  %v16321_v7 = vld [vmem:[#allocation81_spill] sm:$0xff]  ;;  %v9532_v19 = vadd.f32 %v9387_v53, %v16324_v11  ;;  %1273 = vrot.lane.b32.xlu0 %v9304_v61, %s7179_s1 }
 0x208   :  { %16288 = vst [vmem:[#allocation441_spill] sm:$0xff] %v9381_v26  ;;  %16289 = vst [vmem:[#allocation442_spill] sm:$0xff] %v9389_v57  ;;  %v9445_v8 = vpop.permute.xlu1 %1219  ;;  %v9458_v20 = vsel %vm1277_vm2, %v9389_v57, %v9430_v9  ;;  %v16307_v26 = vld [vmem:[#allocation94_spill] sm:$0xff]  ;;  %v9628_v47 = vmul.f32 0.2, %v9292_v40 }
 0x209   :  { %16290 = vst [vmem:[#allocation443_spill] sm:$0xff] %v9396_v4  ;;  %16291 = vst [vmem:[#allocation444_spill] sm:$0xff] %v9399_v1  ;;  %v16305_v1 = vld [vmem:[#allocation85_spill] sm:$0xff]  ;;  %v16306_v4 = vld [vmem:[#allocation48_spill] sm:$0xff] }
 0x20a   :  { %16292 = vst [vmem:[#allocation445_spill] sm:$0xff] %v9406_v34  ;;  %16293 = vst [vmem:[#allocation446_spill] sm:$0xff] %v9409_v60  ;;  %v1330_v17 = vmax.f32 %v16305_v1, %v9428_v14  ;;  %2434 = vrot.lane.b32.xlu1 %v16306_v4, %s7179_s1  ;;  %v1333_v34 = vmax.f32 %v16307_v26, %v9443_v44  ;;  %v9481_v60 = vmax.f32 %v1327_v43, %v16309_v21  ;;  %v16311_v4 = vld [vmem:[#allocation102_spill] sm:$0xff] }
 0x20b   :  { %16294 = vst [vmem:[#allocation447_spill] sm:$0xff] %v9412_v10  ;;  %16296 = vst [vmem:[#allocation448_spill] sm:$0xff] %v9417_v16  ;;  %v9478_v56 = vpop.permute.xlu0 %1187  ;;  %v9486_v10 = vmul.f32 0.2, %v9034_v12  ;;  %v1336_v33 = vmax.f32 %v16311_v4, %v9458_v20  ;;  %v9511_v16 = vmul.f32 0.2, %v9088_v42 }
 0x20c   :  { %16297 = vst [vmem:[#allocation449_spill] sm:$0xff] %v9420_v6  ;;  %16299 = vst [vmem:[#allocation74_spill] sm:$0xff] %v9430_v9  ;;  %v9494_v37 = vsel %vm1277_vm2, %v9478_v56, %v9445_v8  ;;  %v9496_v6 = vpop.permute.xlu1 %1189  ;;  %v9517_v43 = vmul.f32 0.2, %v9150_v18  ;;  %v9522_v45 = vmax.f32 %v1330_v17, %v16321_v7  ;;  %v9537_v49 = vmax.f32 %v1333_v34, %v16327_v2  ;;  %v16349_v18 = vld [vmem:[#allocation80_spill] sm:$0xff] }
 0x20d   :  { %16300 = vst [vmem:[#allocation450_spill] sm:$0xff] %v9437_v27  ;;  %16301 = vst [vmem:[#allocation451_spill] sm:$0xff] %v9443_v44  ;;  %v16316_v27 = vld [vmem:[#allocation113_spill] sm:$0xff]  ;;  %v9551_v32 = vmax.f32 %v1336_v33, %v16331_v30  ;;  %v9573_v34 = vmul.f32 0.2, %v9206_v22  ;;  %v16393_v30 = vld [vmem:[#allocation98_spill] sm:$0xff] }
 0x20e   :  { %16302 = vst [vmem:[#allocation452_spill] sm:$0xff] %v9445_v8  ;;  %16303 = vst [vmem:[#allocation453_spill] sm:$0xff] %v9452_v59  ;;  %v1339_v25 = vmax.f32 %v16316_v27, %v9494_v37  ;;  %v16320_v59 = vld [vmem:[#allocation50_spill] sm:$0xff]  ;;  %v16339_v27 = vld [vmem:[#allocation9_spill] sm:$0xff] }
 0x20f   :  { %16304 = vst [vmem:[#allocation454_spill] sm:$0xff] %v9458_v20  ;;  %16308 = vst [vmem:[#allocation85_spill] sm:$0xff] %v9478_v56  ;;  %2404 = vrot.lane.b32.xlu1 %v16320_v59, %s7179_s1  ;;  %v9534_v23 = vpop.permute.xlu0 %1221  ;;  %v9540_v59 = vmul.f32 0.2, %v9202_v0  ;;  %v16335_v56 = vld [vmem:[#allocation75_spill] sm:$0xff]  ;;  %v16354_v0 = vld [vmem:[#allocation44_spill] sm:$0xff] }
 0x210   :  { %16310 = vst [vmem:[#allocation94_spill] sm:$0xff] %v9486_v10  ;;  %16312 = vst [vmem:[#allocation71_spill] sm:$0xff] %v9494_v37  ;;  %v9546_v17 = vsel %vm1277_vm2, %v9496_v6, %v9534_v23  ;;  %v9548_v36 = vpop.permute.xlu1 %1223  ;;  %v9554_v38 = vmax.f32 %v1339_v25, %v16333_v51  ;;  %v9562_v8 = vadd.f32 %v9387_v53, %v16335_v56  ;;  %v9586_v25 = vmul.f32 0.2, %v9532_v19  ;;  %v16353_v10 = vld [vmem:[#allocation130_spill] sm:$0xff]  ;;  %v17898_v24 = vld [vmem:[#allocation439_spill] sm:$0xff] }
 0x211   :  { %16313 = vst [vmem:[#allocation455_spill] sm:$0xff] %v9496_v6  ;;  %16314 = vst [vmem:[#allocation456_spill] sm:$0xff] %v9501_v28  ;;  %v16337_v6 = vld [vmem:[#allocation119_spill] sm:$0xff]  ;;  %v9577_v28 = vadd.f32 %v9387_v53, %v16339_v27  ;;  %2432 = vrot.lane.b32.xlu0 %v16354_v0, %s7179_s1  ;;  %v9639_v0 = vmul.f32 0.2, %v9296_v46  ;;  %v16377_v51 = vld [vmem:[#allocation90_spill] sm:$0xff] }
 0x212   :  { %16315 = vst [vmem:[#allocation457_spill] sm:$0xff] %v9504_v39  ;;  %16317 = vst [vmem:[#allocation458_spill] sm:$0xff] %v9511_v16  ;;  %v16344_v16 = vld [vmem:[#allocation116_spill] sm:$0xff]  ;;  %v9612_v39 = vadd.f32 %v9428_v14, %v16349_v18  ;;  %v16398_v46 = vld [vmem:[#allocation21_spill] sm:$0xff] }
 0x213   :  { %16318 = vst [vmem:[#allocation459_spill] sm:$0xff] %v9514_v5  ;;  %16319 = vst [vmem:[#allocation460_spill] sm:$0xff] %v9517_v43  ;;  %2468 = vrot.lane.b32.xlu1 %v16341_v50, %s7179_s1  ;;  %v9588_v33 = vpop.permute.xlu0 %1191  ;;  %v9625_v48 = vmul.f32 0.2, %v9577_v28  ;;  %v16357_v5 = vld [vmem:[#allocation13_spill] sm:$0xff] }
 0x214   :  { %16322 = vst [vmem:[#allocation81_spill] sm:$0xff] %v9525_v58  ;;  %16323 = vst [vmem:[#allocation461_spill] sm:$0xff] %v9528_v31  ;;  %v9603_v12 = vsel %vm1277_vm2, %v9588_v33, %v9548_v36  ;;  %v9605_v43 = vpop.permute.xlu1 %1193  ;;  %v16351_v58 = vld [vmem:[#allocation84_spill] sm:$0xff]  ;;  %v9632_v41 = vadd.f32 %v9428_v14, %v16357_v5  ;;  %v16361_v31 = vld [vmem:[#allocation427_spill] sm:$0xff] }
 0x215   :  { %16325 = vst [vmem:[#allocation70_spill] sm:$0xff] %v9532_v19  ;;  %16326 = vst [vmem:[#allocation462_spill] sm:$0xff] %v9534_v23  ;;  %v1342_v23 = vmax.f32 %v16337_v6, %v9546_v17  ;;  %v9616_v50 = vadd.f32 %v9428_v14, %v16351_v58  ;;  %v9653_v6 = vmul.f32 0.2, %v9330_v35  ;;  %v9669_v19 = vmul.f32 0.2, %v9612_v39 }
 0x216   :  { %16328 = vst [vmem:[#allocation91_spill] sm:$0xff] %v9540_v59  ;;  %16329 = vst [vmem:[#allocation463_spill] sm:$0xff] %v9546_v17  ;;  %v1345_v59 = vmax.f32 %v16353_v10, %v9603_v12  ;;  %v16364_v10 = vld [vmem:[#allocation128_spill] sm:$0xff] }
 0x217   :  { %16330 = vst [vmem:[#allocation464_spill] sm:$0xff] %v9548_v36  ;;  %16332 = vst [vmem:[#allocation465_spill] sm:$0xff] %v9551_v32  ;;  %v9591_v42 = vmax.f32 %v1342_v23, %v16344_v16  ;;  %v9608_v23 = vmul.f32 0.2, %v9562_v8  ;;  %2438 = vrot.lane.b32.xlu1 %v16359_v62, %s7179_s1  ;;  %v9644_v22 = vpop.permute.xlu0 %1225  ;;  %v16366_v36 = vld [vmem:[#allocation432_spill] sm:$0xff]  ;;  %v16381_v32 = vld [vmem:[#allocation58_spill] sm:$0xff] }
 0x218   :  { %16334 = vst [vmem:[#allocation466_spill] sm:$0xff] %v9554_v38  ;;  %16336 = vst [vmem:[#allocation75_spill] sm:$0xff] %v9562_v8  ;;  %v9656_v62 = vmul.f32 0.2, %v9371_v52  ;;  %v9662_v61 = vsel %vm1277_vm2, %v9605_v43, %v9644_v22  ;;  %v16375_v38 = vld [vmem:[#allocation46_spill] sm:$0xff]  ;;  %v16390_v52 = vld [vmem:[#allocation47_spill] sm:$0xff] }
 0x219   :  { %16338 = vst [vmem:[#allocation467_spill] sm:$0xff] %v9573_v34  ;;  %16340 = vst [vmem:[#allocation9_spill] sm:$0xff] %v9577_v28  ;;  %v9642_v34 = vmul.f32 0.2, %v16361_v31  ;;  %2402 = vrot.lane.b32.xlu0 %v16375_v38, %s7179_s1  ;;  %v16389_v38 = vld [vmem:[#allocation150_spill] sm:$0xff]  ;;  %v16396_v31 = vld [vmem:[#allocation101_spill] sm:$0xff] }
 0x21a   :  { %16342 = vst [vmem:[#allocation468_spill] sm:$0xff] %v9586_v25  ;;  %16343 = vst [vmem:[#allocation469_spill] sm:$0xff] %v9588_v33  ;;  %v9647_v33 = vmax.f32 %v1345_v59, %v16364_v10  ;;  %v9664_v25 = vpop.permute.xlu1 %1227  ;;  %v16374_v10 = vld [vmem:[#allocation139_spill] sm:$0xff]  ;;  %v9685_v59 = vadd.f32 %v9443_v44, %v16377_v51  ;;  %v16442_v51 = vld [vmem:[#allocation54_spill] sm:$0xff] }
 0x21b   :  { %16345 = vst [vmem:[#allocation470_spill] sm:$0xff] %v9591_v42  ;;  %16346 = vst [vmem:[#allocation471_spill] sm:$0xff] %v9603_v12  ;;  %v9650_v42 = vmul.f32 0.2, %v16366_v36  ;;  %v1348_v16 = vmax.f32 %v16374_v10, %v9662_v61  ;;  %2408 = vrot.lane.b32.xlu1 %v16381_v32, %s7179_s1  ;;  %v9699_v28 = vpop.permute.xlu0 %1195  ;;  %v16383_v10 = vld [vmem:[#allocation135_spill] sm:$0xff]  ;;  %v9740_v36 = vadd.f32 %v9458_v20, %v16393_v30 }
 0x21c   :  { %16347 = vst [vmem:[#allocation472_spill] sm:$0xff] %v9605_v43  ;;  %16348 = vst [vmem:[#allocation473_spill] sm:$0xff] %v9608_v23  ;;  %v16379_v23 = vld [vmem:[#allocation95_spill] sm:$0xff]  ;;  %v9714_v43 = vsel %vm1277_vm2, %v9699_v28, %v9664_v25  ;;  %v9733_v35 = vmul.f32 0.2, %v9685_v59 }
 0x21d   :  { %16350 = vst [vmem:[#allocation80_spill] sm:$0xff] %v9612_v39  ;;  %16352 = vst [vmem:[#allocation84_spill] sm:$0xff] %v9616_v50  ;;  %v9689_v8 = vadd.f32 %v9443_v44, %v16379_v23  ;;  %v9702_v4 = vmax.f32 %v1348_v16, %v16383_v10  ;;  %2466 = vrot.lane.b32.xlu0 %v16390_v52, %s7179_s1  ;;  %v16409_v39 = vld [vmem:[#allocation115_spill] sm:$0xff] }
 0x21e   :  { %16355 = vst [vmem:[#allocation474_spill] sm:$0xff] %v9625_v48  ;;  %16356 = vst [vmem:[#allocation475_spill] sm:$0xff] %v9628_v47  ;;  %v9716_v48 = vpop.permute.xlu1 %1197  ;;  %v16400_v47 = vld [vmem:[#allocation110_spill] sm:$0xff] }
 0x21f   :  { %16358 = vst [vmem:[#allocation13_spill] sm:$0xff] %v9632_v41  ;;  %16360 = vst [vmem:[#allocation476_spill] sm:$0xff] %v9639_v0  ;;  %v9736_v16 = vmul.f32 0.2, %v9689_v8  ;;  %v9746_v0 = vadd.f32 %v9458_v20, %v16396_v31  ;;  %v9754_v40 = vadd.f32 %v9494_v37, %v16400_v47  ;;  %v9756_v52 = vpop.permute.xlu0 %1229  ;;  %v16435_v31 = vld [vmem:[#allocation33_spill] sm:$0xff] }
 0x220   :  { %16362 = vst [vmem:[#allocation477_spill] sm:$0xff] %v9642_v34  ;;  %16363 = vst [vmem:[#allocation478_spill] sm:$0xff] %v9644_v22  ;;  %v9681_v22 = vmul.f32 0.2, %v9632_v41  ;;  %v16395_v34 = vld [vmem:[#allocation59_spill] sm:$0xff]  ;;  %v16407_v41 = vld [vmem:[#allocation25_spill] sm:$0xff] }
 0x221   :  { %16365 = vst [vmem:[#allocation479_spill] sm:$0xff] %v9647_v33  ;;  %16367 = vst [vmem:[#allocation480_spill] sm:$0xff] %v9650_v42  ;;  %v9672_v33 = vmul.f32 0.2, %v9616_v50  ;;  %v16387_v42 = vld [vmem:[#allocation17_spill] sm:$0xff]  ;;  %2472 = vrot.lane.b32.xlu1 %v16395_v34, %s7179_s1 }
 0x222   :  { %16368 = vst [vmem:[#allocation481_spill] sm:$0xff] %v9653_v6  ;;  %16369 = vst [vmem:[#allocation482_spill] sm:$0xff] %v9656_v62  ;;  %v9724_v32 = vadd.f32 %v9443_v44, %v16387_v42  ;;  %v1351_v62 = vmax.f32 %v16389_v38, %v9714_v43  ;;  %v9750_v6 = vadd.f32 %v9458_v20, %v16398_v46  ;;  %v16447_v44 = vld [vmem:[#allocation66_spill] sm:$0xff] }
 0x223   :  { %16370 = vst [vmem:[#allocation483_spill] sm:$0xff] %v9662_v61  ;;  %16371 = vst [vmem:[#allocation484_spill] sm:$0xff] %v9664_v25  ;;  %v9771_v38 = vadd.f32 %v9546_v17, %v16409_v39  ;;  %v16418_v39 = vld [vmem:[#allocation158_spill] sm:$0xff]  ;;  %v9836_v46 = vadd.f32 %v9603_v12, %v16435_v31 }
 0x224   :  { %16372 = vst [vmem:[#allocation485_spill] sm:$0xff] %v9669_v19  ;;  %16373 = vst [vmem:[#allocation486_spill] sm:$0xff] %v9672_v33  ;;  %v16403_v33 = vld [vmem:[#allocation147_spill] sm:$0xff]  ;;  %v9767_v19 = vadd.f32 %v9494_v37, %v16407_v41 }
 0x225   :  { %16376 = vst [vmem:[#allocation487_spill] sm:$0xff] %v9681_v22  ;;  %16378 = vst [vmem:[#allocation488_spill] sm:$0xff] %v9685_v59  ;;  %v9759_v50 = vmax.f32 %v1351_v62, %v16403_v33  ;;  %v16405_v22 = vld [vmem:[#allocation114_spill] sm:$0xff]  ;;  %v9779_v62 = vpop.permute.xlu1 %1231  ;;  %v16423_v41 = vld [vmem:[#allocation131_spill] sm:$0xff] }
 0x226   :  { %16380 = vst [vmem:[#allocation95_spill] sm:$0xff] %v9689_v8  ;;  %16382 = vst [vmem:[#allocation489_spill] sm:$0xff] %v9699_v28  ;;  %v9763_v34 = vadd.f32 %v9494_v37, %v16405_v22  ;;  %v9777_v28 = vsel %vm1277_vm2, %v9716_v48, %v9756_v52  ;;  %v16414_v33 = vld [vmem:[#allocation118_spill] sm:$0xff]  ;;  %v16419_v37 = vld [vmem:[#allocation52_spill] sm:$0xff]  ;;  %v9829_v30 = vmul.f32 0.2, %v9767_v19 }
 0x227   :  { %16384 = vst [vmem:[#allocation490_spill] sm:$0xff] %v9702_v4  ;;  %16385 = vst [vmem:[#allocation491_spill] sm:$0xff] %v9714_v43  ;;  %v9786_v25 = vadd.f32 %v9546_v17, %v16414_v33  ;;  %v16416_v4 = vld [vmem:[#allocation29_spill] sm:$0xff]  ;;  %v1354_v47 = vmax.f32 %v16418_v39, %v9777_v28  ;;  %2436 = vrot.lane.b32.xlu0 %v16419_v37, %s7179_s1  ;;  %v16421_v22 = vld [vmem:[#allocation127_spill] sm:$0xff]  ;;  %v9812_v39 = vmul.f32 0.2, %v9746_v0 }
 0x228   :  { %16386 = vst [vmem:[#allocation492_spill] sm:$0xff] %v9716_v48  ;;  %16388 = vst [vmem:[#allocation17_spill] sm:$0xff] %v9724_v32  ;;  %v9790_v10 = vadd.f32 %v9546_v17, %v16416_v4  ;;  %v9803_v33 = vadd.f32 %v9603_v12, %v16421_v22  ;;  %v9807_v4 = vadd.f32 %v9603_v12, %v16423_v41  ;;  %v16425_v17 = vld [vmem:[#allocation64_spill] sm:$0xff]  ;;  %v9815_v37 = vmul.f32 0.2, %v9750_v6  ;;  %v16430_v59 = vld [vmem:[#allocation155_spill] sm:$0xff] }
 0x229   :  { %16391 = vst [vmem:[#allocation493_spill] sm:$0xff] %v9733_v35  ;;  %16392 = vst [vmem:[#allocation494_spill] sm:$0xff] %v9736_v16  ;;  %2442 = vrot.lane.b32.xlu1 %v16425_v17, %s7179_s1  ;;  %v9818_v48 = vmul.f32 0.2, %v9754_v40  ;;  %v9820_v35 = vpop.permute.xlu0 %1199  ;;  %v9823_v22 = vmax.f32 %v1354_v47, %v16430_v59  ;;  %v9826_v41 = vmul.f32 0.2, %v9763_v34  ;;  %v9838_v20 = vpop.permute.xlu1 %1233 }
 0x22a   :  { %16394 = vst [vmem:[#allocation495_spill] sm:$0xff] %v9740_v36  ;;  %16397 = vst [vmem:[#allocation496_spill] sm:$0xff] %v9746_v0  ;;  %v9832_v17 = vmul.f32 0.2, %v9771_v38  ;;  %v9843_v47 = vmul.f32 0.2, %v9786_v25 }
 0x22b   :  { %16399 = vst [vmem:[#allocation497_spill] sm:$0xff] %v9750_v6  ;;  %16401 = vst [vmem:[#allocation498_spill] sm:$0xff] %v9754_v40  ;;  %v16440_v59 = vld [vmem:[#allocation134_spill] sm:$0xff]  ;;  %2406 = vrot.lane.b32.xlu0 %v16442_v51, %s7179_s1  ;;  %v9857_v31 = vmul.f32 0.2, %v9803_v33  ;;  %v16470_v6 = vld [vmem:[#allocation157_spill] sm:$0xff] }
 0x22c   :  { %16402 = vst [vmem:[#allocation499_spill] sm:$0xff] %v9756_v52  ;;  %16404 = vst [vmem:[#allocation500_spill] sm:$0xff] %v9759_v50  ;;  %v9782_v50 = vmul.f32 0.2, %v9724_v32  ;;  %v9799_v52 = vmul.f32 0.2, %v9740_v36  ;;  %v9850_v9 = vadd.f32 %v9662_v61, %v16440_v59 }
 0x22d   :  { %16406 = vst [vmem:[#allocation501_spill] sm:$0xff] %v9763_v34  ;;  %16408 = vst [vmem:[#allocation502_spill] sm:$0xff] %v9767_v19  ;;  %v9860_v57 = vmul.f32 0.2, %v9807_v4  ;;  %v16445_v16 = vld [vmem:[#allocation138_spill] sm:$0xff]  ;;  %2412 = vrot.lane.b32.xlu1 %v16447_v44, %s7179_s1  ;;  %v9876_v32 = vpop.permute.xlu0 %1201  ;;  %v9887_v51 = vpop.permute.xlu1 %1235  ;;  %v16454_v59 = vld [vmem:[#allocation55_spill] sm:$0xff] }
 0x22e   :  { %16410 = vst [vmem:[#allocation503_spill] sm:$0xff] %v9771_v38  ;;  %16411 = vst [vmem:[#allocation504_spill] sm:$0xff] %v9777_v28  ;;  %v9864_v8 = vadd.f32 %v9662_v61, %v16445_v16  ;;  %v16452_v16 = vld [vmem:[#allocation37_spill] sm:$0xff]  ;;  %v4703_v12 = vld [vmem:[%s14664_s2 + $0x88] sm:$0xff] }
 0x22f   :  { %16412 = vst [vmem:[#allocation505_spill] sm:$0xff] %v9779_v62  ;;  %16413 = vst [vmem:[#allocation506_spill] sm:$0xff] %v9782_v50  ;;  %v9898_v44 = vadd.f32 %v9662_v61, %v16452_v16  ;;  %2470 = vrot.lane.b32.xlu0 %v16454_v59, %s7179_s1  ;;  %v16456_v19 = vld [vmem:[#allocation67_spill] sm:$0xff]  ;;  %v4686_v40 = vld [vmem:[%s14664_s2] sm:$0xff] }
 0x230   :  { %16415 = vst [vmem:[#allocation507_spill] sm:$0xff] %v9786_v25  ;;  %16417 = vst [vmem:[#allocation508_spill] sm:$0xff] %v9790_v10  ;;  %v16457_v0 = vld [vmem:[#allocation146_spill] sm:$0xff]  ;;  %v16459_v34 = vld [vmem:[#allocation151_spill] sm:$0xff] }
 0x231   :  { %16420 = vst [vmem:[#allocation509_spill] sm:$0xff] %v9799_v52  ;;  %16422 = vst [vmem:[#allocation510_spill] sm:$0xff] %v9803_v33  ;;  %v9885_v52 = vmul.f32 0.2, %v9836_v46  ;;  %2476 = vrot.lane.b32.xlu1 %v16456_v19, %s7179_s1  ;;  %v9925_v50 = vadd.f32 %v9714_v43, %v16457_v0  ;;  %v16463_v36 = vld [vmem:[#allocation41_spill] sm:$0xff]  ;;  %v16511_v38 = vld [vmem:[#allocation63_spill] sm:$0xff] }
 0x232   :  { %16424 = vst [vmem:[#allocation511_spill] sm:$0xff] %v9807_v4  ;;  %16426 = vst [vmem:[#allocation512_spill] sm:$0xff] %v9812_v39  ;;  %v4687_v39 = vld [vmem:[%s14664_s2 + $0x8] sm:$0xff] }
 0x233   :  { %16427 = vst [vmem:[#allocation513_spill] sm:$0xff] %v9815_v37  ;;  %16428 = vst [vmem:[#allocation514_spill] sm:$0xff] %v9818_v48  ;;  %v9894_v48 = vmul.f32 0.2, %v9850_v9  ;;  %v9929_v37 = vadd.f32 %v9714_v43, %v16459_v34  ;;  %v6145_v19 = vpack.c.bf16 %v4687_v39, %v4686_v40  ;;  %v16465_v4 = vld [vmem:[#allocation154_spill] sm:$0xff]  ;;  %v16496_v34 = vld [vmem:[#allocation195_spill] sm:$0xff] }
 0x234   :  { %16429 = vst [vmem:[#allocation515_spill] sm:$0xff] %v9820_v35  ;;  %16431 = vst [vmem:[#allocation516_spill] sm:$0xff] %v9823_v22  ;;  %v9846_v22 = vmul.f32 0.2, %v9790_v10  ;;  %v9960_v40 = vmul.f32 0.2, %v9898_v44 }
 0x235   :  { %16432 = vst [vmem:[#allocation517_spill] sm:$0xff] %v9826_v41  ;;  %16433 = vst [vmem:[#allocation518_spill] sm:$0xff] %v9829_v30  ;;  %v4702_v41 = vld [vmem:[%s14664_s2 + $0x80] sm:$0xff]  ;;  %v9913_v30 = vmul.f32 0.2, %v9864_v8 }
 0x236   :  { %16434 = vst [vmem:[#allocation519_spill] sm:$0xff] %v9832_v17  ;;  %16436 = vst [vmem:[#allocation520_spill] sm:$0xff] %v9836_v46  ;;  %v6143_v59 = vpack.c.bf16 %v4703_v12, %v4702_v41  ;;  %v9935_v41 = vsel %vm1277_vm2, %v9820_v35, %v9779_v62  ;;  %v9937_v12 = vpop.permute.xlu0 %1203  ;;  %v9953_v35 = vsel %vm1277_vm2, %v9876_v32, %v9838_v20  ;;  %v9955_v62 = vpop.permute.xlu1 %1237  ;;  %v16472_v46 = vld [vmem:[#allocation45_spill] sm:$0xff] }
 0x237   :  { %16437 = vst [vmem:[#allocation521_spill] sm:$0xff] %v9838_v20  ;;  %16438 = vst [vmem:[#allocation522_spill] sm:$0xff] %v9843_v47  ;;  %v9968_v33 = vadd.f32 %v9777_v28, %v16472_v46  ;;  %v16475_v20 = vld [vmem:[#allocation166_spill] sm:$0xff]  ;;  %v16504_v17 = vld [vmem:[#allocation57_spill] sm:$0xff] }
 0x238   :  { %16439 = vst [vmem:[#allocation523_spill] sm:$0xff] %v9846_v22  ;;  %16441 = vst [vmem:[#allocation524_spill] sm:$0xff] %v9850_v9  ;;  %6144 = vmatprep.subr.bf16.mxu1 %v6143_v59  ;;  %v9974_v59 = vadd.f32 %v9935_v41, %v16475_v20  ;;  %v9993_v20 = vmul.f32 0.2, %v9925_v50 }
 0x239   :  { %16443 = vst [vmem:[#allocation525_spill] sm:$0xff] %v9857_v31  ;;  %16444 = vst [vmem:[#allocation526_spill] sm:$0xff] %v9860_v57  ;;  %v9943_v57 = vadd.f32 %v9714_v43, %v16463_v36  ;;  %v9947_v31 = vadd.f32 %v9777_v28, %v16465_v4  ;;  %v16477_v4 = vld [vmem:[#allocation170_spill] sm:$0xff]  ;;  %6146 = vmatpush3.bf16.msra.mxu1 %v6145_v19  ;;  %v16494_v43 = vld [vmem:[#allocation189_spill] sm:$0xff] }
 0x23a   :  { %16446 = vst [vmem:[#allocation527_spill] sm:$0xff] %v9864_v8  ;;  %16448 = vst [vmem:[#allocation528_spill] sm:$0xff] %v9876_v32  ;;  %v16474_v32 = vld [vmem:[#allocation60_spill] sm:$0xff]  ;;  %v9978_v39 = vadd.f32 %v9935_v41, %v16477_v4  ;;  %v9996_v4 = vmul.f32 0.2, %v9929_v37  ;;  %v16488_v19 = vld [vmem:[#allocation174_spill] sm:$0xff]  ;;  %v10032_v22 = vpop.permute.xlu1 %1239 }
 0x23b   :  { %16449 = vst [vmem:[#allocation529_spill] sm:$0xff] %v9885_v52  ;;  %16450 = vst [vmem:[#allocation530_spill] sm:$0xff] %v9887_v51  ;;  %v9964_v52 = vadd.f32 %v9777_v28, %v16470_v6  ;;  %2440 = vrot.lane.b32.xlu0 %v16474_v32, %s7179_s1  ;;  %v9988_v6 = vsel %vm1277_vm2, %v9937_v12, %v9887_v51  ;;  %v16484_v28 = vld [vmem:[#allocation171_spill] sm:$0xff]  ;;  %v10003_v46 = vmul.f32 0.2, %v9943_v57  ;;  %v16490_v32 = vld [vmem:[#allocation53_spill] sm:$0xff] }
 0x23c   :  { %16451 = vst [vmem:[#allocation531_spill] sm:$0xff] %v9894_v48  ;;  %16453 = vst [vmem:[#allocation37_spill] sm:$0xff] %v9898_v44  ;;  %v16479_v48 = vld [vmem:[#allocation49_spill] sm:$0xff]  ;;  %v10010_v51 = vadd.f32 %v9953_v35, %v16488_v19  ;;  %v10024_v0 = vadd.f32 %v9988_v6, %v16494_v43  ;;  %v10028_v36 = vadd.f32 %v9988_v6, %v16496_v34  ;;  %v16498_v19 = vld [vmem:[#allocation62_spill] sm:$0xff]  ;;  %v10037_v10 = vmul.f32 0.2, %v9974_v59 }
 0x23d   :  { %16455 = vst [vmem:[#allocation532_spill] sm:$0xff] %v9913_v30  ;;  %16458 = vst [vmem:[#allocation533_spill] sm:$0xff] %v9925_v50  ;;  %v9982_v9 = vadd.f32 %v9935_v41, %v16479_v48  ;;  %v10000_v48 = vadd.f32 %v9953_v35, %v16484_v28  ;;  %v10014_v30 = vadd.f32 %v9953_v35, %v16490_v32  ;;  %v10017_v8 = vmul.f32 0.2, %v9964_v52 }
 0x23e   :  { %16460 = vst [vmem:[#allocation534_spill] sm:$0xff] %v9929_v37  ;;  %16461 = vst [vmem:[#allocation535_spill] sm:$0xff] %v9935_v41  ;;  %v10020_v28 = vmul.f32 0.2, %v9968_v33  ;;  %v10040_v47 = vmul.f32 0.2, %v9978_v39  ;;  %v10054_v32 = vadd.f32 %v9988_v6, %v16504_v17  ;;  %v1244_v44 = vpop.permute.xlu1 %1243 }
 0x23f   :  { %16462 = vst [vmem:[#allocation536_spill] sm:$0xff] %v9937_v12  ;;  %16464 = vst [vmem:[#allocation537_spill] sm:$0xff] %v9943_v57  ;;  %v10006_v12 = vmul.f32 0.2, %v9947_v31  ;;  %2410 = vrot.lane.b32.xlu0 %v16498_v19, %s7179_s1  ;;  %v10043_v43 = vmul.f32 0.2, %v9982_v9 }
 0x240   :  { %16466 = vst [vmem:[#allocation538_spill] sm:$0xff] %v9947_v31  ;;  %16467 = vst [vmem:[#allocation539_spill] sm:$0xff] %v9953_v35  ;;  %v10050_v25 = vmul.f32 0.2, %v10000_v48  ;;  %v10061_v61 = vmul.f32 0.2, %v10010_v51 }
 0x241   :  { %16468 = vst [vmem:[#allocation540_spill] sm:$0xff] %v9955_v62  ;;  %16469 = vst [vmem:[#allocation541_spill] sm:$0xff] %v9960_v40  ;;  %v10064_v34 = vmul.f32 0.2, %v10014_v30  ;;  %v10071_v17 = vmul.f32 0.2, %v10024_v0 }
 0x242   :  { %16471 = vst [vmem:[#allocation542_spill] sm:$0xff] %v9964_v52  ;;  %16473 = vst [vmem:[#allocation543_spill] sm:$0xff] %v9968_v33  ;;  %v10074_v40 = vmul.f32 0.2, %v10028_v36  ;;  %v4688_v52 = vld [vmem:[%s14664_s2 + $0x10] sm:$0xff] }
 0x243   :  { %16476 = vst [vmem:[#allocation544_spill] sm:$0xff] %v9974_v59  ;;  %16478 = vst [vmem:[#allocation545_spill] sm:$0xff] %v9978_v39  ;;  %2474 = vrot.lane.b32.xlu0 %v16511_v38, %s7179_s1  ;;  %v1310_v38 = vsel %vm1277_vm2, %v1244_v44, %v9193_v54 }
 0x244   :  { %16480 = vst [vmem:[#allocation546_spill] sm:$0xff] %v9982_v9  ;;  %16481 = vst [vmem:[#allocation547_spill] sm:$0xff] %v9988_v6  ;;  %v2046_v54 = vadd.f32 %v1310_v38, %v16339_v27  ;;  %v16523_v9 = vld [vmem:[#allocation61_spill] sm:$0xff]  ;;  %v3920_v33 = vadd.f32 %v1310_v38, %v16335_v56 }
 0x245   :  { %16482 = vst [vmem:[#allocation548_spill] sm:$0xff] %v9993_v20  ;;  %16483 = vst [vmem:[#allocation549_spill] sm:$0xff] %v9996_v4  ;;  %v1326_v4 = vmax.f32 %v16309_v21, %v1310_v38 }
 0x246   :  { %16485 = vst [vmem:[#allocation550_spill] sm:$0xff] %v10000_v48  ;;  %16486 = vst [vmem:[#allocation551_spill] sm:$0xff] %v10003_v46  ;;  %v4689_v46 = vld [vmem:[%s14664_s2 + $0x18] sm:$0xff] }
 0x247   :  { %16487 = vst [vmem:[#allocation552_spill] sm:$0xff] %v10006_v12  ;;  %16489 = vst [vmem:[#allocation553_spill] sm:$0xff] %v10010_v51  ;;  %v1278_v12 = vsel %vm1277_vm2, %v9255_v13, %v1244_v44  ;;  %v16517_v13 = vld [vmem:[#allocation68_spill] sm:$0xff]  ;;  %v1423_v44 = vmax.f32 %v9481_v60, %v1310_v38 }
 0x248   :  { %16491 = vst [vmem:[#allocation554_spill] sm:$0xff] %v10014_v30  ;;  %16492 = vst [vmem:[#allocation555_spill] sm:$0xff] %v10017_v8  ;;  %v10086_v8 = vpop.permute.xlu0 %1205  ;;  %2444 = vrot.lane.b32.xlu0 %v16517_v13, %s7179_s1  ;;  %v10124_v41 = vadd.f32 %v1278_v12, %v16335_v56  ;;  %v3919_v60 = vadd.f32 %v1278_v12, %v16324_v11  ;;  %v16519_v51 = vld [vmem:[#allocation200_spill] sm:$0xff] }
 0x249   :  { %16493 = vst [vmem:[#allocation556_spill] sm:$0xff] %v10020_v28  ;;  %16495 = vst [vmem:[#allocation557_spill] sm:$0xff] %v10024_v0  ;;  %v10095_v28 = vmul.f32 0.2, %v10054_v32  ;;  %v10115_v19 = vsel %vm1277_vm2, %v10086_v8, %v9955_v62  ;;  %v16653_v62 = vld [vmem:[#allocation134_spill] sm:$0xff] }
 0x24a   :  { %16497 = vst [vmem:[#allocation558_spill] sm:$0xff] %v10028_v36  ;;  %16499 = vst [vmem:[#allocation559_spill] sm:$0xff] %v10032_v22  ;;  %v3054_v36 = vadd.f32 %v1278_v12, %v16339_v27  ;;  %v10136_v48 = vadd.f32 %v10115_v19, %v16519_v51 }
 0x24b   :  { %16500 = vst [vmem:[#allocation560_spill] sm:$0xff] %v10037_v10  ;;  %16501 = vst [vmem:[#allocation561_spill] sm:$0xff] %v10040_v47 }
 0x24c   :  { %16502 = vst [vmem:[#allocation562_spill] sm:$0xff] %v10043_v43  ;;  %16503 = vst [vmem:[#allocation563_spill] sm:$0xff] %v10050_v25  ;;  %v16521_v43 = vld [vmem:[#allocation210_spill] sm:$0xff]  ;;  %v3102_v59 = vmul.f32 0.2, %v3054_v36 }
 0x24d   :  { %16505 = vst [vmem:[#allocation564_spill] sm:$0xff] %v10054_v32  ;;  %16507 = vst [vmem:[#allocation565_spill] sm:$0xff] %v10061_v61  ;;  %v2094_v61 = vmul.f32 0.2, %v2046_v54  ;;  %v10140_v25 = vadd.f32 %v10115_v19, %v16521_v43  ;;  %v1246_v32 = vpop.permute.xlu1 %1245  ;;  %v3967_v43 = vmul.f32 0.2, %v3919_v60 }
 0x24e   :  { %16508 = vst [vmem:[#allocation566_spill] sm:$0xff] %v10064_v34  ;;  %16509 = vst [vmem:[#allocation567_spill] sm:$0xff] %v10071_v17  ;;  %v16518_v34 = vld [vmem:[#allocation251_spill] sm:$0xff]  ;;  %v3055_v17 = vadd.f32 %v1310_v38, %v16324_v11 }
 0x24f   :  { %16510 = vst [vmem:[#allocation568_spill] sm:$0xff] %v10074_v40  ;;  %16512 = vst [vmem:[#allocation569_spill] sm:$0xff] %v10086_v8  ;;  %v1328_v30 = vmax.f32 %v16518_v34, %v1278_v12  ;;  %v1374_v40 = vmax.f32 %v1326_v4, %v16518_v34  ;;  %v1471_v0 = vmax.f32 %v1423_v44, %v16518_v34 }
 0x250   :  { %16515 = vst [vmem:[#allocation570_spill] sm:$0xff] %v10095_v28  ;;  %16516 = vst [vmem:[#allocation571_spill] sm:$0xff] %v10115_v19  ;;  %v2096_v28 = vmul.f32 0.2, %v10124_v41  ;;  %v3103_v47 = vmul.f32 0.2, %v3055_v17  ;;  %v2142_v10 = vmax.f32 %v2046_v54, %v2094_v61 }
 0x251   :  { %v1376_v13 = vmax.f32 %v1328_v30, %v16298_v55  ;;  %16520 = vst [vmem:[#allocation251_spill] sm:$0xff] %v10136_v48  ;;  %16522 = vst [vmem:[#allocation572_spill] sm:$0xff] %v10140_v25  ;;  %v1422_v4 = vmax.f32 %v1374_v40, %v1278_v12  ;;  %v10145_v30 = vadd.f32 %v10115_v19, %v16523_v9  ;;  %v16525_v61 = vld [vmem:[#allocation257_spill] sm:$0xff] }
 0x252   :  { %v1519_v44 = vmax.f32 %v1471_v0, %v1278_v12  ;;  %v1279_v9 = vsel %vm1277_vm2, %v9319_v63, %v1246_v32  ;;  %v2144_v0 = vmax.f32 %v10124_v41, %v2096_v28  ;;  %v3151_v54 = vmax.f32 %v3055_v17, %v3103_v47 }
 0x253   :  { %16524 = vst [vmem:[#allocation573_spill] sm:$0xff] %v10145_v30  ;;  %v1424_v34 = vmax.f32 %v1376_v13, %v9387_v53  ;;  %v1470_v39 = vmax.f32 %v1422_v4, %v16298_v55  ;;  %v10160_v55 = vsel %vm1277_vm2, %v1246_v32, %v9236_v15  ;;  %v1331_v12 = vmax.f32 %v16525_v61, %v1279_v9 }
 0x254   :  { %v1567_v40 = vadd.f32 %v1519_v44, %v16324_v11  ;;  %v1329_v11 = vmax.f32 %v16321_v7, %v10160_v55  ;;  %v3968_v63 = vmul.f32 0.2, %v3920_v33  ;;  %v1426_v28 = vmax.f32 %v9522_v45, %v10160_v55 }
 0x255   :  { %v1472_v51 = vmax.f32 %v1424_v34, %v16309_v21  ;;  %v1518_v8 = vmax.f32 %v1470_v39, %v9387_v53  ;;  %v1379_v53 = vmax.f32 %v1331_v12, %v16305_v1  ;;  %v4015_v32 = vmax.f32 %v3919_v60, %v3967_v43 }
 0x256   :  { %v1615_v21 = vmul.f32 0.2, %v1567_v40  ;;  %v3150_v17 = vmax.f32 %v3054_v36, %v3102_v59  ;;  %v1474_v39 = vmax.f32 %v1426_v28, %v16525_v61  ;;  %v4016_v44 = vmax.f32 %v3920_v33, %v3968_v63  ;;  %v10186_v59 = vpop.permute.xlu0 %1207 }
 0x257   :  { %v1520_v13 = vmax.f32 %v1472_v51, %v1310_v38  ;;  %v1566_v4 = vadd.f32 %v1518_v8, %v16339_v27  ;;  %v1377_v51 = vmax.f32 %v1329_v11, %v16525_v61  ;;  %v1427_v47 = vmax.f32 %v1379_v53, %v9428_v14  ;;  %16528 = vst [vmem:[#allocation575_spill] sm:$0xff] %v10186_v59 }
 0x258   :  { %v10170_v15 = vmax.f32 %v1567_v40, %v1615_v21  ;;  %v2049_v36 = vadd.f32 %v10160_v55, %v16357_v5  ;;  %v1522_v61 = vmax.f32 %v1474_v39, %v1279_v9  ;;  %v2051_v12 = vadd.f32 %v1279_v9, %v16351_v58  ;;  %v16531_v21 = vld [vmem:[#allocation176_spill] sm:$0xff] }
 0x259   :  { %v1568_v41 = vadd.f32 %v1520_v13, %v16335_v56  ;;  %v1614_v38 = vmul.f32 0.2, %v1566_v4  ;;  %v1425_v45 = vmax.f32 %v1377_v51, %v1279_v9  ;;  %v1475_v43 = vmax.f32 %v1427_v47, %v16321_v7  ;;  %v16530_v13 = vld [vmem:[#allocation72_spill] sm:$0xff] }
 0x25a   :  { %16526 = vst [vmem:[#allocation257_spill] sm:$0xff] %v10170_v15  ;;  %v10176_v27 = vsub.f32 %v3151_v54, %v10170_v15  ;;  %v10179_v34 = vsub.f32 %v4015_v32, %v10170_v15  ;;  %v16532_v54 = vmax.f32 %v16530_v13, %v16531_v21  ;;  %v10211_v32 = vmul.f32 0.2, %v10136_v48  ;;  %v1248_v21 = vpop.permute.xlu0 %1247 }
 0x25b   :  { %v1616_v8 = vmul.f32 0.2, %v1568_v41  ;;  %v10181_v56 = vmax.f32 %v1566_v4, %v1614_v38  ;;  %v1473_v40 = vmax.f32 %v1425_v45, %v16305_v1  ;;  %v1523_v4 = vmax.f32 %v1475_v43, %v10160_v55 }
 0x25c   :  { %16534 = vst [vmem:[#allocation72_spill] sm:$0xff] %v10211_v32  ;;  %v2097_v47 = vmul.f32 0.2, %v2049_v36  ;;  %v2099_v39 = vmul.f32 0.2, %v2051_v12 }
 0x25d   :  { %16527 = vst [vmem:[#allocation574_spill] sm:$0xff] %v10181_v56  ;;  %v10188_v60 = vmax.f32 %v1568_v41, %v1616_v8  ;;  %v1854_v11 = vsub.f32 %v16532_v54, %v10181_v56  ;;  %v2190_v33 = vsub.f32 %v2142_v10, %v10181_v56  ;;  %v10198_v7 = vsub.f32 %v3150_v17, %v10181_v56 }
 0x25e   :  { %v1521_v41 = vmax.f32 %v1473_v40, %v9428_v14  ;;  %v10217_v10 = vsel %vm1277_vm2, %v10186_v59, %v10032_v22  ;;  %v10222_v8 = vmul.f32 0.2, %v10140_v25  ;;  %v10225_v14 = vmul.f32 0.2, %v10145_v30  ;;  %v16542_v22 = vld [vmem:[#allocation220_spill] sm:$0xff] }
 0x25f   :  { %16529 = vst [vmem:[#allocation576_spill] sm:$0xff] %v10188_v60  ;;  %v10204_v1 = vsub.f32 %v2144_v0, %v10188_v60  ;;  %v10207_v28 = vsub.f32 %v4016_v44, %v10188_v60  ;;  %16535 = vst [vmem:[#allocation176_spill] sm:$0xff] %v10217_v10  ;;  %v1902_v51 = vmul.f32 1.442695, %v1854_v11  ;;  %v2238_v38 = vmul.f32 1.442695, %v2190_v33 }
 0x260   :  { %v1569_v17 = vadd.f32 %v1521_v41, %v16357_v5  ;;  %v1570_v0 = vadd.f32 %v1522_v61, %v16349_v18  ;;  %16536 = vst [vmem:[#allocation577_spill] sm:$0xff] %v10222_v8  ;;  %16537 = vst [vmem:[#allocation578_spill] sm:$0xff] %v10225_v14  ;;  %v1571_v45 = vadd.f32 %v1523_v4, %v16351_v58  ;;  %v16555_v14 = vld [vmem:[#allocation451_spill] sm:$0xff] }
 0x261   :  { %6383 = vpow2.f32 %v1902_v51  ;;  %v3057_v40 = vadd.f32 %v1279_v9, %v16357_v5  ;;  %v3058_v54 = vadd.f32 %v10160_v55, %v16349_v18  ;;  %v3922_v11 = vadd.f32 %v1279_v9, %v16349_v18 }
 0x262   :  { %6385 = vpow2.f32 %v2238_v38  ;;  %v1617_v44 = vmul.f32 0.2, %v1569_v17  ;;  %v1618_v43 = vmul.f32 0.2, %v1570_v0  ;;  %v1619_v61 = vmul.f32 0.2, %v1571_v45 }
 0x263   :  { %v2145_v41 = vmax.f32 %v2049_v36, %v2097_v47  ;;  %v2147_v51 = vmax.f32 %v2051_v12, %v2099_v39  ;;  %v3105_v53 = vmul.f32 0.2, %v3057_v40  ;;  %v3106_v59 = vmul.f32 0.2, %v3058_v54  ;;  %v16544_v12 = vld [vmem:[#allocation291_spill] sm:$0xff] }
 0x264   :  { %v10234_v33 = vmax.f32 %v1569_v17, %v1617_v44  ;;  %v10236_v4 = vmax.f32 %v1570_v0, %v1618_v43  ;;  %v10238_v38 = vmax.f32 %v1571_v45, %v1619_v61  ;;  %v3923_v5 = vadd.f32 %v10160_v55, %v16351_v58  ;;  %v16545_v17 = vld [vmem:[#allocation405_spill] sm:$0xff]  ;;  %v16547_v58 = vld [vmem:[#allocation226_spill] sm:$0xff] }
 0x265   :  { %v10244_v13 = vadd.f32 %v10217_v10, %v16542_v22  ;;  %v3153_v9 = vmax.f32 %v3057_v40, %v3105_v53  ;;  %v3970_v36 = vmul.f32 0.2, %v3922_v11  ;;  %v16546_v0 = vmax.f32 %v16544_v12, %v16545_v17 }
 0x266   :  { %16539 = vst [vmem:[#allocation579_spill] sm:$0xff] %v10234_v33  ;;  %16540 = vst [vmem:[#allocation580_spill] sm:$0xff] %v10236_v4  ;;  %v10247_v18 = vsub.f32 %v2145_v41, %v10234_v33  ;;  %v2195_v39 = vsub.f32 %v2147_v51, %v10238_v38  ;;  %v3154_v45 = vmax.f32 %v3058_v54, %v3106_v59  ;;  %v3971_v44 = vmul.f32 0.2, %v3923_v5  ;;  %v16549_v59 = vld [vmem:[#allocation65_spill] sm:$0xff] }
 0x267   :  { %16541 = vst [vmem:[#allocation581_spill] sm:$0xff] %v10238_v38  ;;  %16543 = vst [vmem:[#allocation582_spill] sm:$0xff] %v10244_v13  ;;  %v1859_v47 = vsub.f32 %v16546_v0, %v10238_v38  ;;  %v10256_v55 = vadd.f32 %v10217_v10, %v16547_v58  ;;  %v10259_v43 = vsub.f32 %v3153_v9, %v10234_v33  ;;  %v3248_v17 = vmul.f32 1.442695, %v10176_v27 }
 0x268   :  { %v4018_v61 = vmax.f32 %v3922_v11, %v3970_v36  ;;  %v1280_v53 = vsel %vm1277_vm2, %v9332_v3, %v1248_v21  ;;  %v2248_v41 = vmul.f32 1.442695, %v2195_v39  ;;  %v10265_v12 = vsub.f32 %v3154_v45, %v10236_v4  ;;  %v10289_v39 = vpop.permute.xlu1 %2422  ;;  %v16553_v45 = vld [vmem:[#allocation278_spill] sm:$0xff] }
 0x269   :  { %16548 = vst [vmem:[#allocation291_spill] sm:$0xff] %v10256_v55  ;;  %v1912_v40 = vmul.f32 1.442695, %v1859_v47  ;;  %v4019_v51 = vmax.f32 %v3923_v5, %v3971_v44  ;;  %v10269_v54 = vadd.f32 %v10217_v10, %v16549_v59  ;;  %v1312_v11 = vsel %vm1277_vm2, %v1248_v21, %v9373_v29 }
 0x26a   :  { %v10273_v9 = vsub.f32 %v4018_v61, %v10236_v4  ;;  %v1332_v0 = vmax.f32 %v16327_v2, %v1312_v11  ;;  %v4112_v27 = vmul.f32 1.442695, %v10179_v34  ;;  %v1334_v29 = vmax.f32 %v16553_v45, %v1280_v53 }
 0x26b   :  { %16550 = vst [vmem:[#allocation405_spill] sm:$0xff] %v10269_v54  ;;  %v10278_v3 = vpop.eup %6383  ;;  %6387 = vpow2.f32 %v1912_v40  ;;  %v10283_v5 = vsub.f32 %v4019_v51, %v10238_v38  ;;  %v1429_v21 = vmax.f32 %v9537_v49, %v1312_v11  ;;  %v2052_v36 = vadd.f32 %v1312_v11, %v16387_v42 }
 0x26c   :  { %16551 = vst [vmem:[#allocation583_spill] sm:$0xff] %v10278_v3  ;;  %v10286_v47 = vpop.eup %6385  ;;  %6389 = vpow2.f32 %v2248_v41  ;;  %v1380_v51 = vmax.f32 %v1332_v0, %v16553_v45  ;;  %v1382_v34 = vmax.f32 %v1334_v29, %v16307_v26  ;;  %v3246_v49 = vmul.f32 1.442695, %v10198_v7  ;;  %v16556_v29 = vld [vmem:[#allocation90_spill] sm:$0xff] }
 0x26d   :  { %16552 = vst [vmem:[#allocation584_spill] sm:$0xff] %v10286_v47  ;;  %v10299_v40 = vadd.f32 %v10286_v47, %v10278_v3  ;;  %6391 = vpow2.f32 %v3248_v17  ;;  %v1477_v41 = vmax.f32 %v1429_v21, %v16553_v45  ;;  %v2054_v44 = vadd.f32 %v1280_v53, %v16379_v23 }
 0x26e   :  { %v1428_v32 = vmax.f32 %v1380_v51, %v1280_v53  ;;  %v3060_v61 = vadd.f32 %v1280_v53, %v16387_v42  ;;  %6393 = vpow2.f32 %v4112_v27  ;;  %v1430_v30 = vmax.f32 %v1382_v34, %v16555_v14  ;;  %v1250_v27 = vpop.permute.xlu1 %1249 }
 0x26f   :  { %16554 = vst [vmem:[#allocation278_spill] sm:$0xff] %v10299_v40  ;;  %v1525_v8 = vmax.f32 %v1477_v41, %v1280_v53  ;;  %v2100_v25 = vmul.f32 0.2, %v2052_v36  ;;  %v2242_v17 = vmul.f32 1.442695, %v10204_v1  ;;  %v3061_v21 = vadd.f32 %v1312_v11, %v16556_v29 }
 0x270   :  { %v4114_v0 = vmul.f32 1.442695, %v10207_v28  ;;  %v1476_v45 = vmax.f32 %v1428_v32, %v16307_v26  ;;  %v1478_v7 = vmax.f32 %v1430_v30, %v16327_v2  ;;  %v2102_v48 = vmul.f32 0.2, %v2054_v44 }
 0x271   :  { %v1573_v51 = vadd.f32 %v1525_v8, %v16556_v29  ;;  %v3925_v38 = vadd.f32 %v1280_v53, %v16556_v29  ;;  %v2148_v41 = vmax.f32 %v2052_v36, %v2100_v25  ;;  %v3108_v33 = vmul.f32 0.2, %v3060_v61  ;;  %v16558_v8 = vld [vmem:[#allocation74_spill] sm:$0xff] }
 0x272   :  { %v1524_v34 = vmax.f32 %v1476_v45, %v16555_v14  ;;  %v3109_v22 = vmul.f32 0.2, %v3061_v21  ;;  %v1526_v1 = vmax.f32 %v1478_v7, %v1312_v11  ;;  %v3926_v28 = vadd.f32 %v1312_v11, %v16379_v23  ;;  %v16559_v29 = vld [vmem:[#allocation442_spill] sm:$0xff] }
 0x273   :  { %v1621_v40 = vmul.f32 0.2, %v1573_v51  ;;  %v3973_v26 = vmul.f32 0.2, %v3925_v38  ;;  %v1281_v53 = vsel %vm1277_vm2, %v16558_v8, %v1250_v27  ;;  %v10327_v25 = vsel %vm1277_vm2, %v1250_v27, %v16559_v29  ;;  %v16564_v8 = vld [vmem:[#allocation284_spill] sm:$0xff] }
 0x274   :  { %v1572_v2 = vadd.f32 %v1524_v34, %v16387_v42  ;;  %v3157_v30 = vmax.f32 %v3061_v21, %v3109_v22  ;;  %v1574_v36 = vadd.f32 %v1526_v1, %v16379_v23  ;;  %v3974_v45 = vmul.f32 0.2, %v3926_v28  ;;  %v16563_v21 = vld [vmem:[#allocation99_spill] sm:$0xff]  ;;  %v16567_v1 = vld [vmem:[#allocation102_spill] sm:$0xff] }
 0x275   :  { %v10318_v32 = vpop.eup %6387  ;;  %v10332_v11 = vmax.f32 %v1573_v51, %v1621_v40  ;;  %v4021_v7 = vmax.f32 %v3925_v38, %v3973_v26  ;;  %v1335_v34 = vmax.f32 %v16563_v21, %v10327_v25  ;;  %v1337_v58 = vmax.f32 %v16564_v8, %v1281_v53 }
 0x276   :  { %16557 = vst [vmem:[#allocation451_spill] sm:$0xff] %v10318_v32  ;;  %v10329_v14 = vpop.eup %6389  ;;  %v1620_v22 = vmul.f32 0.2, %v1572_v2  ;;  %v1622_v29 = vmul.f32 0.2, %v1574_v36  ;;  %v3156_v59 = vmax.f32 %v3060_v61, %v3108_v33  ;;  %v2150_v61 = vmax.f32 %v2054_v44, %v2102_v48 }
 0x277   :  { %16560 = vst [vmem:[#allocation90_spill] sm:$0xff] %v10329_v14  ;;  %16561 = vst [vmem:[#allocation74_spill] sm:$0xff] %v10332_v11  ;;  %v10336_v42 = vadd.f32 %v10329_v14, %v10318_v32  ;;  %v10341_v27 = vpop.eup %6391  ;;  %v10344_v23 = vsub.f32 %v3157_v30, %v10332_v11  ;;  %v10347_v40 = vsub.f32 %v4021_v7, %v10332_v11  ;;  %v2244_v4 = vmul.f32 1.442695, %v10247_v18 }
 0x278   :  { %16565 = vst [vmem:[#allocation99_spill] sm:$0xff] %v10341_v27  ;;  %v10349_v38 = vmax.f32 %v1572_v2, %v1620_v22  ;;  %v1383_v51 = vmax.f32 %v1335_v34, %v16564_v8  ;;  %v1385_v26 = vmax.f32 %v1337_v58, %v16567_v1  ;;  %v10355_v32 = vpop.eup %6393  ;;  %v10358_v33 = vmax.f32 %v1574_v36, %v1622_v29  ;;  %v16571_v34 = vld [vmem:[#allocation454_spill] sm:$0xff] }
 0x279   :  { %16562 = vst [vmem:[#allocation442_spill] sm:$0xff] %v10336_v42  ;;  %v16568_v42 = vld [vmem:[#allocation465_spill] sm:$0xff]  ;;  %16569 = vst [vmem:[#allocation102_spill] sm:$0xff] %v10355_v32  ;;  %v4022_v30 = vmax.f32 %v3926_v28, %v3974_v45  ;;  %6395 = vpow2.f32 %v2242_v17  ;;  %v10375_v48 = vmul.f32 0.2, %v10244_v13  ;;  %v10383_v17 = vpop.permute.xlu0 %1209 }
 0x27a   :  { %16566 = vst [vmem:[#allocation284_spill] sm:$0xff] %v10349_v38  ;;  %v1432_v14 = vmax.f32 %v16568_v42, %v10327_v25  ;;  %16570 = vst [vmem:[#allocation465_spill] sm:$0xff] %v10358_v33  ;;  %v10361_v7 = vsub.f32 %v2148_v41, %v10349_v38  ;;  %v10364_v2 = vsub.f32 %v3156_v59, %v10349_v38  ;;  %6397 = vpow2.f32 %v3246_v49  ;;  %v16573_v59 = vld [vmem:[#allocation21_spill] sm:$0xff] }
 0x27b   :  { %v1431_v22 = vmax.f32 %v1383_v51, %v1281_v53  ;;  %v1433_v58 = vmax.f32 %v1385_v26, %v16571_v34  ;;  %v10368_v42 = vsub.f32 %v2150_v61, %v10358_v33  ;;  %v10371_v11 = vsub.f32 %v4022_v30, %v10358_v33  ;;  %16572 = vst [vmem:[#allocation454_spill] sm:$0xff] %v10375_v48  ;;  %v16578_v26 = vld [vmem:[#allocation98_spill] sm:$0xff] }
 0x27c   :  { %v1480_v18 = vmax.f32 %v1432_v14, %v16564_v8  ;;  %v2055_v41 = vadd.f32 %v10327_v25, %v16573_v59  ;;  %v10381_v28 = vmul.f32 0.2, %v10256_v55  ;;  %6399 = vpow2.f32 %v4114_v0  ;;  %16575 = vst [vmem:[#allocation585_spill] sm:$0xff] %v10383_v17  ;;  %v16577_v8 = vld [vmem:[#allocation101_spill] sm:$0xff] }
 0x27d   :  { %v1479_v44 = vmax.f32 %v1431_v22, %v16567_v1  ;;  %v1481_v36 = vmax.f32 %v1433_v58, %v16563_v21  ;;  %v10387_v14 = vmul.f32 0.2, %v10269_v54  ;;  %6401 = vpow2.f32 %v2244_v4 }
 0x27e   :  { %16574 = vst [vmem:[#allocation21_spill] sm:$0xff] %v10381_v28  ;;  %v1528_v45 = vmax.f32 %v1480_v18, %v1281_v53  ;;  %v2057_v29 = vadd.f32 %v1281_v53, %v16577_v8  ;;  %v3252_v51 = vmul.f32 1.442695, %v10259_v43  ;;  %v3063_v0 = vadd.f32 %v1281_v53, %v16573_v59 }
 0x27f   :  { %16576 = vst [vmem:[#allocation586_spill] sm:$0xff] %v10387_v14  ;;  %v1527_v49 = vmax.f32 %v1479_v44, %v16571_v34  ;;  %v1529_v1 = vmax.f32 %v1481_v36, %v10327_v25  ;;  %v3254_v30 = vmul.f32 1.442695, %v10265_v12  ;;  %v4118_v21 = vmul.f32 1.442695, %v10273_v9 }
 0x280   :  { %v1576_v61 = vadd.f32 %v1528_v45, %v16578_v26  ;;  %v2103_v58 = vmul.f32 0.2, %v2055_v41  ;;  %v2105_v18 = vmul.f32 0.2, %v2057_v29  ;;  %v3064_v43 = vadd.f32 %v10327_v25, %v16578_v26 }
 0x281   :  { %v1575_v22 = vadd.f32 %v1527_v49, %v16573_v59  ;;  %v1577_v4 = vadd.f32 %v1529_v1, %v16577_v8  ;;  %v4120_v44 = vmul.f32 1.442695, %v10283_v5  ;;  %v3111_v45 = vmul.f32 0.2, %v3063_v0  ;;  %v1252_v49 = vpop.permute.xlu0 %1251 }
 0x282   :  { %v1624_v34 = vmul.f32 0.2, %v1576_v61  ;;  %v3928_v33 = vadd.f32 %v1281_v53, %v16578_v26  ;;  %v3112_v9 = vmul.f32 0.2, %v3064_v43  ;;  %v3929_v59 = vadd.f32 %v10327_v25, %v16577_v8 }
 0x283   :  { %v1623_v36 = vmul.f32 0.2, %v1575_v22  ;;  %v1625_v38 = vmul.f32 0.2, %v1577_v4  ;;  %v2151_v10 = vmax.f32 %v2055_v41, %v2103_v58  ;;  %v3159_v60 = vmax.f32 %v3063_v0, %v3111_v45  ;;  %v10409_v56 = vpop.eup %6395 }
 0x284   :  { %v10403_v12 = vmax.f32 %v1576_v61, %v1624_v34  ;;  %v3976_v32 = vmul.f32 0.2, %v3928_v33  ;;  %16581 = vst [vmem:[#allocation587_spill] sm:$0xff] %v10409_v56  ;;  %v2153_v47 = vmax.f32 %v2057_v29, %v2105_v18  ;;  %v3160_v3 = vmax.f32 %v3064_v43, %v3112_v9  ;;  %v10413_v26 = vpop.eup %6397  ;;  %v16588_v34 = vld [vmem:[#allocation111_spill] sm:$0xff]  ;;  %v10447_v43 = vpop.permute.xlu1 %2454  ;;  %v16590_v9 = vld [vmem:[#allocation466_spill] sm:$0xff] }
 0x285   :  { %v10407_v1 = vmax.f32 %v1575_v22, %v1623_v36  ;;  %v10411_v5 = vmax.f32 %v1577_v4, %v1625_v38  ;;  %v3977_v53 = vmul.f32 0.2, %v3929_v59  ;;  %16583 = vst [vmem:[#allocation589_spill] sm:$0xff] %v10413_v26  ;;  %v16584_v22 = vld [vmem:[#allocation452_spill] sm:$0xff]  ;;  %v16586_v4 = vld [vmem:[#allocation85_spill] sm:$0xff]  ;;  %6403 = vpow2.f32 %v3252_v51  ;;  %v16589_v36 = vld [vmem:[#allocation302_spill] sm:$0xff] }
 0x286   :  { %16579 = vst [vmem:[#allocation101_spill] sm:$0xff] %v10403_v12  ;;  %v4024_v8 = vmax.f32 %v3928_v33, %v3976_v32  ;;  %v1282_v41 = vsel %vm1277_vm2, %v16584_v22, %v1252_v49  ;;  %v10424_v0 = vpop.eup %6399  ;;  %v10430_v29 = vsub.f32 %v3160_v3, %v10403_v12  ;;  %v3260_v32 = vmul.f32 1.442695, %v10344_v23 }
 0x287   :  { %16580 = vst [vmem:[#allocation98_spill] sm:$0xff] %v10407_v1  ;;  %16582 = vst [vmem:[#allocation588_spill] sm:$0xff] %v10411_v5  ;;  %v10416_v61 = vsub.f32 %v2151_v10, %v10407_v1  ;;  %v10419_v25 = vsub.f32 %v3159_v60, %v10407_v1  ;;  %v10427_v38 = vsub.f32 %v2153_v47, %v10411_v5  ;;  %v10435_v60 = vpop.eup %6401  ;;  %6405 = vpow2.f32 %v3254_v30  ;;  %v16593_v47 = vld [vmem:[#allocation114_spill] sm:$0xff] }
 0x288   :  { %16585 = vst [vmem:[#allocation452_spill] sm:$0xff] %v10424_v0  ;;  %v4025_v58 = vmax.f32 %v3929_v59, %v3977_v53  ;;  %v1314_v10 = vsel %vm1277_vm2, %v1252_v49, %v16586_v4  ;;  %16587 = vst [vmem:[#allocation85_spill] sm:$0xff] %v10435_v60  ;;  %v10439_v33 = vsub.f32 %v4024_v8, %v10403_v12  ;;  %6407 = vpow2.f32 %v4118_v21  ;;  %v16591_v53 = vld [vmem:[#allocation113_spill] sm:$0xff]  ;;  %v16594_v21 = vld [vmem:[#allocation71_spill] sm:$0xff]  ;;  %v1254_v13 = vpop.permute.xlu1 %1253 }
 0x289   :  { %v1338_v18 = vmax.f32 %v16588_v34, %v1314_v10  ;;  %v1340_v45 = vmax.f32 %v16589_v36, %v1282_v41  ;;  %v1435_v59 = vmax.f32 %v16590_v9, %v1314_v10  ;;  %6409 = vpow2.f32 %v4120_v44  ;;  %v16592_v8 = vld [vmem:[#allocation25_spill] sm:$0xff] }
 0x28a   :  { %v10445_v3 = vsub.f32 %v4025_v58, %v10411_v5  ;;  %v4124_v49 = vmul.f32 1.442695, %v10347_v40  ;;  %v2058_v22 = vadd.f32 %v1314_v10, %v16592_v8  ;;  %6411 = vpow2.f32 %v3260_v32 }
 0x28b   :  { %v1386_v23 = vmax.f32 %v1338_v18, %v16589_v36  ;;  %v1388_v30 = vmax.f32 %v1340_v45, %v16591_v53  ;;  %v1483_v4 = vmax.f32 %v1435_v59, %v16589_v36  ;;  %v2060_v48 = vadd.f32 %v1282_v41, %v16593_v47 }
 0x28c   :  { %v2250_v51 = vmul.f32 1.442695, %v10361_v7  ;;  %v2106_v18 = vmul.f32 0.2, %v2058_v22  ;;  %v3066_v9 = vadd.f32 %v1282_v41, %v16592_v8  ;;  %v3258_v44 = vmul.f32 1.442695, %v10364_v2 }
 0x28d   :  { %v1434_v58 = vmax.f32 %v1386_v23, %v1282_v41  ;;  %v1436_v28 = vmax.f32 %v1388_v30, %v16594_v21  ;;  %v1531_v45 = vmax.f32 %v1483_v4, %v1282_v41  ;;  %v2108_v55 = vmul.f32 0.2, %v2060_v48  ;;  %v16595_v23 = vld [vmem:[#allocation110_spill] sm:$0xff] }
 0x28e   :  { %v2254_v32 = vmul.f32 1.442695, %v10368_v42  ;;  %6413 = vpow2.f32 %v4124_v49  ;;  %v3067_v59 = vadd.f32 %v1314_v10, %v16595_v23  ;;  %v2154_v5 = vmax.f32 %v2058_v22, %v2106_v18  ;;  %v16597_v49 = vld [vmem:[#allocation462_spill] sm:$0xff] }
 0x28f   :  { %v1482_v40 = vmax.f32 %v1434_v58, %v16591_v53  ;;  %v1484_v36 = vmax.f32 %v1436_v28, %v16588_v34  ;;  %v1579_v30 = vadd.f32 %v1531_v45, %v16595_v23  ;;  %v3114_v1 = vmul.f32 0.2, %v3066_v9  ;;  %v10471_v4 = vpop.eup %6403 }
 0x290   :  { %v3115_v2 = vmul.f32 0.2, %v3067_v59  ;;  %v3931_v53 = vadd.f32 %v1282_v41, %v16595_v23  ;;  %v3932_v58 = vadd.f32 %v1314_v10, %v16593_v47  ;;  %16596 = vst [vmem:[#allocation111_spill] sm:$0xff] %v10471_v4  ;;  %v2156_v34 = vmax.f32 %v2060_v48, %v2108_v55  ;;  %v16602_v48 = vld [vmem:[#allocation312_spill] sm:$0xff] }
 0x291   :  { %v1530_v7 = vmax.f32 %v1482_v40, %v16594_v21  ;;  %v1532_v12 = vmax.f32 %v1484_v36, %v1314_v10  ;;  %v1627_v28 = vmul.f32 0.2, %v1579_v30  ;;  %v10477_v21 = vsel %vm1277_vm2, %v16597_v49, %v1254_v13  ;;  %v10479_v40 = vpop.eup %6405 }
 0x292   :  { %16598 = vst [vmem:[#allocation302_spill] sm:$0xff] %v10479_v40  ;;  %v3163_v18 = vmax.f32 %v3067_v59, %v3115_v2  ;;  %v3979_v45 = vmul.f32 0.2, %v3931_v53  ;;  %v3980_v41 = vmul.f32 0.2, %v3932_v58  ;;  %v10482_v36 = vpop.eup %6407  ;;  %v3162_v60 = vmax.f32 %v3066_v9, %v3114_v1 }
 0x293   :  { %v1578_v42 = vadd.f32 %v1530_v7, %v16592_v8  ;;  %v1580_v22 = vadd.f32 %v1532_v12, %v16593_v47  ;;  %16599 = vst [vmem:[#allocation466_spill] sm:$0xff] %v10482_v36  ;;  %v10484_v23 = vmax.f32 %v1579_v30, %v1627_v28  ;;  %v16601_v8 = vld [vmem:[#allocation455_spill] sm:$0xff]  ;;  %v1343_v7 = vmax.f32 %v16602_v48, %v10477_v21  ;;  %v10491_v49 = vpop.eup %6409  ;;  %v16604_v47 = vld [vmem:[#allocation116_spill] sm:$0xff] }
 0x294   :  { %v1315_v55 = vsel %vm1277_vm2, %v1254_v13, %v16601_v8  ;;  %16603 = vst [vmem:[#allocation25_spill] sm:$0xff] %v10491_v49  ;;  %v4027_v12 = vmax.f32 %v3931_v53, %v3979_v45  ;;  %v10494_v2 = vpop.eup %6411  ;;  %v16607_v28 = vld [vmem:[#allocation119_spill] sm:$0xff]  ;;  %v16608_v13 = vld [vmem:[#allocation470_spill] sm:$0xff]  ;;  %v4028_v56 = vmax.f32 %v3932_v58, %v3980_v41  ;;  %v4126_v9 = vmul.f32 1.442695, %v10371_v11 }
 0x295   :  { %v1626_v10 = vmul.f32 0.2, %v1578_v42  ;;  %16600 = vst [vmem:[#allocation113_spill] sm:$0xff] %v10484_v23  ;;  %v1628_v4 = vmul.f32 0.2, %v1580_v22  ;;  %v1341_v59 = vmax.f32 %v16604_v47, %v1315_v55  ;;  %16605 = vst [vmem:[#allocation114_spill] sm:$0xff] %v10494_v2  ;;  %v10499_v30 = vsub.f32 %v3163_v18, %v10484_v23 }
 0x296   :  { %v1391_v40 = vmax.f32 %v1343_v7, %v16607_v28  ;;  %v1438_v8 = vmax.f32 %v16608_v13, %v1315_v55  ;;  %v10506_v49 = vsub.f32 %v4027_v12, %v10484_v23  ;;  %v16610_v18 = vld [vmem:[#allocation463_spill] sm:$0xff]  ;;  %6415 = vpow2.f32 %v2250_v51  ;;  %v16640_v2 = vld [vmem:[#allocation478_spill] sm:$0xff] }
 0x297   :  { %v10496_v36 = vmax.f32 %v1578_v42, %v1626_v10  ;;  %v10503_v0 = vmax.f32 %v1580_v22, %v1628_v4  ;;  %v1389_v1 = vmax.f32 %v1341_v59, %v16602_v48  ;;  %6417 = vpow2.f32 %v2254_v32  ;;  %v16613_v32 = vld [vmem:[#allocation118_spill] sm:$0xff] }
 0x298   :  { %v1439_v45 = vmax.f32 %v1391_v40, %v16610_v18  ;;  %v10517_v10 = vpop.eup %6413  ;;  %v2256_v11 = vmul.f32 1.442695, %v10416_v61  ;;  %6419 = vpow2.f32 %v3258_v44  ;;  %v2260_v51 = vmul.f32 1.442695, %v10427_v38 }
 0x299   :  { %16606 = vst [vmem:[#allocation71_spill] sm:$0xff] %v10496_v36  ;;  %16609 = vst [vmem:[#allocation110_spill] sm:$0xff] %v10503_v0  ;;  %v10511_v53 = vsub.f32 %v2154_v5, %v10496_v36  ;;  %v10514_v42 = vsub.f32 %v3162_v60, %v10496_v36  ;;  %v10520_v58 = vsub.f32 %v2156_v34, %v10503_v0  ;;  %v16612_v60 = vld [vmem:[#allocation29_spill] sm:$0xff]  ;;  %6421 = vpow2.f32 %v4126_v9 }
 0x29a   :  { %16611 = vst [vmem:[#allocation462_spill] sm:$0xff] %v10517_v10  ;;  %v10523_v4 = vsub.f32 %v4028_v56, %v10503_v0  ;;  %v1437_v22 = vmax.f32 %v1389_v1, %v10477_v21  ;;  %v1486_v5 = vmax.f32 %v1438_v8, %v16602_v48  ;;  %v2061_v41 = vadd.f32 %v1315_v55, %v16612_v60 }
 0x29b   :  { %v1487_v56 = vmax.f32 %v1439_v45, %v16604_v47  ;;  %v2063_v61 = vadd.f32 %v10477_v21, %v16613_v32  ;;  %v3264_v48 = vmul.f32 1.442695, %v10419_v25  ;;  %v3266_v12 = vmul.f32 1.442695, %v10430_v29  ;;  %v10546_v25 = vpop.permute.xlu0 %2392 }
 0x29c   :  { %v1485_v34 = vmax.f32 %v1437_v22, %v16607_v28  ;;  %v1534_v7 = vmax.f32 %v1486_v5, %v10477_v21  ;;  %v3069_v44 = vadd.f32 %v10477_v21, %v16612_v60  ;;  %6423 = vpow2.f32 %v2256_v11  ;;  %v16614_v28 = vld [vmem:[#allocation115_spill] sm:$0xff] }
 0x29d   :  { %v1535_v38 = vmax.f32 %v1487_v56, %v1315_v55  ;;  %v2109_v8 = vmul.f32 0.2, %v2061_v41  ;;  %6425 = vpow2.f32 %v2260_v51  ;;  %v4130_v47 = vmul.f32 1.442695, %v10439_v33 }
 0x29e   :  { %v1533_v59 = vmax.f32 %v1485_v34, %v16610_v18  ;;  %v1582_v13 = vadd.f32 %v1534_v7, %v16614_v28  ;;  %v3070_v9 = vadd.f32 %v1315_v55, %v16614_v28  ;;  %v2111_v45 = vmul.f32 0.2, %v2063_v61 }
 0x29f   :  { %v1583_v29 = vadd.f32 %v1535_v38, %v16613_v32  ;;  %v3117_v22 = vmul.f32 0.2, %v3069_v44  ;;  %v3934_v34 = vadd.f32 %v10477_v21, %v16614_v28  ;;  %v3935_v51 = vadd.f32 %v1315_v55, %v16613_v32 }
 0x2a0   :  { %v1581_v1 = vadd.f32 %v1533_v59, %v16612_v60  ;;  %v1630_v18 = vmul.f32 0.2, %v1582_v13  ;;  %v3118_v11 = vmul.f32 0.2, %v3070_v9  ;;  %v2157_v60 = vmax.f32 %v2061_v41, %v2109_v8  ;;  %v10554_v59 = vpop.eup %6415 }
 0x2a1   :  { %v1631_v56 = vmul.f32 0.2, %v1583_v29  ;;  %v3165_v7 = vmax.f32 %v3069_v44, %v3117_v22  ;;  %16615 = vst [vmem:[#allocation455_spill] sm:$0xff] %v10554_v59  ;;  %v3982_v14 = vmul.f32 0.2, %v3934_v34  ;;  %v10558_v0 = vpop.eup %6417  ;;  %6427 = vpow2.f32 %v3264_v48 }
 0x2a2   :  { %v1629_v5 = vmul.f32 0.2, %v1581_v1  ;;  %v10552_v33 = vmax.f32 %v1582_v13, %v1630_v18  ;;  %v3166_v38 = vmax.f32 %v3070_v9, %v3118_v11  ;;  %v3983_v54 = vmul.f32 0.2, %v3935_v51  ;;  %16616 = vst [vmem:[#allocation312_spill] sm:$0xff] %v10558_v0  ;;  %v10563_v32 = vpop.eup %6419  ;;  %v16619_v9 = vld [vmem:[#allocation394_spill] sm:$0xff] }
 0x2a3   :  { %v4132_v36 = vmul.f32 1.442695, %v10445_v3  ;;  %v10561_v21 = vmax.f32 %v1583_v29, %v1631_v56  ;;  %v2159_v55 = vmax.f32 %v2063_v61, %v2111_v45  ;;  %16617 = vst [vmem:[#allocation116_spill] sm:$0xff] %v10563_v32  ;;  %v4030_v13 = vmax.f32 %v3934_v34, %v3982_v14  ;;  %v10574_v8 = vpop.eup %6421  ;;  %v16627_v11 = vld [vmem:[#allocation469_spill] sm:$0xff]  ;;  %v16628_v34 = vld [vmem:[#allocation128_spill] sm:$0xff]  ;;  %v16629_v56 = vld [vmem:[#allocation327_spill] sm:$0xff] }
 0x2a4   :  { %v10556_v40 = vmax.f32 %v1581_v1, %v1629_v5  ;;  %v10572_v28 = vsub.f32 %v3166_v38, %v10552_v33  ;;  %16618 = vst [vmem:[#allocation119_spill] sm:$0xff] %v10574_v8  ;;  %6429 = vpow2.f32 %v3266_v12  ;;  %v3272_v3 = vmul.f32 1.442695, %v10499_v30  ;;  %v1256_v1 = vpop.permute.xlu0 %1255 }
 0x2a5   :  { %v10578_v48 = vsub.f32 %v2159_v55, %v10561_v21  ;;  %v4031_v61 = vmax.f32 %v3935_v51, %v3983_v54  ;;  %v10584_v29 = vsel %vm1277_vm2, %v16619_v9, %v10289_v39  ;;  %6431 = vpow2.f32 %v4130_v47  ;;  %v10607_v47 = vpop.permute.xlu1 %1241 }
 0x2a6   :  { %v10566_v41 = vsub.f32 %v2157_v60, %v10556_v40  ;;  %v10569_v44 = vsub.f32 %v3165_v7, %v10556_v40  ;;  %16620 = vst [vmem:[#allocation470_spill] sm:$0xff] %v10584_v29  ;;  %v4136_v18 = vmul.f32 1.442695, %v10506_v49  ;;  %v10588_v14 = vsub.f32 %v4030_v13, %v10552_v33  ;;  %v10590_v12 = vpop.eup %6423  ;;  %16624 = vst [vmem:[#allocation115_spill] sm:$0xff] %v10607_v47  ;;  %v16630_v7 = vld [vmem:[#allocation479_spill] sm:$0xff] }
 0x2a7   :  { %16621 = vst [vmem:[#allocation463_spill] sm:$0xff] %v10590_v12  ;;  %6433 = vpow2.f32 %v4132_v36  ;;  %v10596_v54 = vsel %vm1277_vm2, %v10289_v39, %v10447_v43  ;;  %v10602_v30 = vsel %vm1277_vm2, %v10447_v43, %v16619_v9  ;;  %v10605_v49 = vsub.f32 %v4031_v61, %v10561_v21  ;;  %v10609_v45 = vpop.eup %6425  ;;  %v16626_v39 = vld [vmem:[#allocation464_spill] sm:$0xff] }
 0x2a8   :  { %16622 = vst [vmem:[#allocation29_spill] sm:$0xff] %v10596_v54  ;;  %16623 = vst [vmem:[#allocation118_spill] sm:$0xff] %v10602_v30  ;;  %v2262_v36 = vmul.f32 1.442695, %v10511_v53  ;;  %v10613_v22 = vmul.f32 1.442695, %v10514_v42  ;;  %v1284_v5 = vsel %vm1277_vm2, %v16626_v39, %v1256_v1  ;;  %v1316_v43 = vsel %vm1277_vm2, %v1256_v1, %v16627_v11 }
 0x2a9   :  { %16625 = vst [vmem:[#allocation394_spill] sm:$0xff] %v10609_v45  ;;  %6435 = vpow2.f32 %v3272_v3  ;;  %v1344_v51 = vmax.f32 %v16628_v34, %v1316_v43  ;;  %v1346_v60 = vmax.f32 %v16629_v56, %v1284_v5  ;;  %v1441_v38 = vmax.f32 %v16630_v7, %v1316_v43  ;;  %v16631_v53 = vld [vmem:[#allocation33_spill] sm:$0xff]  ;;  %v16632_v42 = vld [vmem:[#allocation131_spill] sm:$0xff]  ;;  %v16633_v1 = vld [vmem:[#allocation130_spill] sm:$0xff]  ;;  %v1258_v45 = vpop.permute.xlu1 %1257 }
 0x2aa   :  { %6437 = vpow2.f32 %v4136_v18  ;;  %v10625_v55 = vadd.f32 %v1316_v43, %v16631_v53  ;;  %v10628_v13 = vadd.f32 %v1284_v5, %v16632_v42  ;;  %v10631_v61 = vadd.f32 %v1284_v5, %v16631_v53  ;;  %v16634_v11 = vld [vmem:[#allocation127_spill] sm:$0xff] }
 0x2ab   :  { %v1392_v9 = vmax.f32 %v1344_v51, %v16629_v56  ;;  %v1394_v3 = vmax.f32 %v1346_v60, %v16633_v1  ;;  %v1489_v39 = vmax.f32 %v1441_v38, %v16629_v56  ;;  %v3073_v29 = vadd.f32 %v1316_v43, %v16634_v11  ;;  %v10647_v54 = vpop.eup %6427  ;;  %v16637_v60 = vld [vmem:[#allocation471_spill] sm:$0xff] }
 0x2ac   :  { %6439 = vpow2.f32 %v2262_v36  ;;  %v10638_v18 = vmul.f32 1.442695, %v10520_v58  ;;  %v10644_v7 = vsel %vm1277_vm2, %v10383_v17, %v10607_v47  ;;  %v2112_v30 = vmul.f32 0.2, %v10625_v55  ;;  %16636 = vst [vmem:[#allocation469_spill] sm:$0xff] %v10647_v54  ;;  %v16645_v17 = vld [vmem:[#allocation490_spill] sm:$0xff] }
 0x2ad   :  { %16635 = vst [vmem:[#allocation464_spill] sm:$0xff] %v10644_v7  ;;  %v1440_v51 = vmax.f32 %v1392_v9, %v1284_v5  ;;  %v1442_v23 = vmax.f32 %v1394_v3, %v16637_v60  ;;  %v1537_v56 = vmax.f32 %v1489_v39, %v1284_v5  ;;  %v3121_v38 = vmul.f32 0.2, %v3073_v29 }
 0x2ae   :  { %v2114_v36 = vmul.f32 0.2, %v10628_v13  ;;  %v2160_v58 = vmax.f32 %v10625_v55, %v2112_v30  ;;  %v3120_v12 = vmul.f32 0.2, %v10631_v61  ;;  %v3937_v8 = vadd.f32 %v1284_v5, %v16634_v11  ;;  %v10654_v0 = vpop.eup %6429  ;;  %v16641_v55 = vld [vmem:[#allocation472_spill] sm:$0xff] }
 0x2af   :  { %16638 = vst [vmem:[#allocation128_spill] sm:$0xff] %v10654_v0  ;;  %v1488_v32 = vmax.f32 %v1440_v51, %v16633_v1  ;;  %v1490_v54 = vmax.f32 %v1442_v23, %v16628_v34  ;;  %v1585_v9 = vadd.f32 %v1537_v56, %v16634_v11  ;;  %v3169_v3 = vmax.f32 %v3073_v29, %v3121_v38  ;;  %v10659_v39 = vpop.eup %6431  ;;  %v16643_v29 = vld [vmem:[#allocation135_spill] sm:$0xff] }
 0x2b0   :  { %16639 = vst [vmem:[#allocation327_spill] sm:$0xff] %v10659_v39  ;;  %v3938_v59 = vadd.f32 %v1316_v43, %v16632_v42  ;;  %v3985_v10 = vmul.f32 0.2, %v3937_v8  ;;  %v1285_v30 = vsel %vm1277_vm2, %v16640_v2, %v1258_v45  ;;  %v1317_v5 = vsel %vm1277_vm2, %v1258_v45, %v16641_v55  ;;  %v16644_v38 = vld [vmem:[#allocation335_spill] sm:$0xff] }
 0x2b1   :  { %v10668_v0 = vpop.eup %6433  ;;  %v1536_v23 = vmax.f32 %v1488_v32, %v16637_v60  ;;  %v1538_v34 = vmax.f32 %v1490_v54, %v1316_v43  ;;  %v1633_v1 = vmul.f32 0.2, %v1585_v9  ;;  %v1347_v11 = vmax.f32 %v16643_v29, %v1317_v5  ;;  %v16648_v60 = vld [vmem:[#allocation139_spill] sm:$0xff] }
 0x2b2   :  { %16642 = vst [vmem:[#allocation479_spill] sm:$0xff] %v10668_v0  ;;  %v3986_v51 = vmul.f32 0.2, %v3938_v59  ;;  %v4033_v56 = vmax.f32 %v3937_v8, %v3985_v10  ;;  %v1349_v39 = vmax.f32 %v16644_v38, %v1285_v30  ;;  %v1444_v47 = vmax.f32 %v16645_v17, %v1317_v5 }
 0x2b3   :  { %v10674_v26 = vpop.eup %6435  ;;  %v1584_v2 = vadd.f32 %v1536_v23, %v16631_v53  ;;  %v1586_v45 = vadd.f32 %v1538_v34, %v16632_v42  ;;  %v10678_v55 = vmax.f32 %v1585_v9, %v1633_v1  ;;  %v1395_v32 = vmax.f32 %v1347_v11, %v16644_v38  ;;  %v16650_v34 = vld [vmem:[#allocation483_spill] sm:$0xff] }
 0x2b4   :  { %16646 = vst [vmem:[#allocation33_spill] sm:$0xff] %v10674_v26  ;;  %v10681_v54 = vpop.eup %6437  ;;  %v2162_v43 = vmax.f32 %v10628_v13, %v2114_v36  ;;  %v1397_v10 = vmax.f32 %v1349_v39, %v16648_v60  ;;  %v1492_v8 = vmax.f32 %v1444_v47, %v16644_v38  ;;  %v2067_v17 = vadd.f32 %v1317_v5, %v16452_v16  ;;  %v16651_v36 = vld [vmem:[#allocation138_spill] sm:$0xff] }
 0x2b5   :  { %16647 = vst [vmem:[#allocation131_spill] sm:$0xff] %v10681_v54  ;;  %v1632_v0 = vmul.f32 0.2, %v1584_v2  ;;  %v1634_v26 = vmul.f32 0.2, %v1586_v45  ;;  %v10688_v53 = vsub.f32 %v3169_v3, %v10678_v55  ;;  %v10691_v42 = vsub.f32 %v4033_v56, %v10678_v55 }
 0x2b6   :  { %v10693_v9 = vpop.eup %6439  ;;  %v1443_v23 = vmax.f32 %v1395_v32, %v1285_v30  ;;  %v1445_v1 = vmax.f32 %v1397_v10, %v16650_v34  ;;  %v1540_v13 = vmax.f32 %v1492_v8, %v1285_v30  ;;  %v2069_v39 = vadd.f32 %v1285_v30, %v16651_v36 }
 0x2b7   :  { %16649 = vst [vmem:[#allocation130_spill] sm:$0xff] %v10693_v9  ;;  %v10697_v11 = vmax.f32 %v1584_v2, %v1632_v0  ;;  %v10699_v47 = vmax.f32 %v1586_v45, %v1634_v26  ;;  %v3168_v38 = vmax.f32 %v10631_v61, %v3120_v12  ;;  %v4034_v54 = vmax.f32 %v3938_v59, %v3986_v51  ;;  %v16658_v45 = vld [vmem:[#allocation241_spill] sm:$0xff] }
 0x2b8   :  { %v1491_v3 = vmax.f32 %v1443_v23, %v16648_v60  ;;  %v1493_v56 = vmax.f32 %v1445_v1, %v16643_v29  ;;  %v1588_v19 = vadd.f32 %v1540_v13, %v16653_v62  ;;  %v2115_v9 = vmul.f32 0.2, %v2067_v17 }
 0x2b9   :  { %16652 = vst [vmem:[#allocation127_spill] sm:$0xff] %v10699_v47  ;;  %v10706_v32 = vsub.f32 %v2160_v58, %v10697_v11  ;;  %v10709_v10 = vsub.f32 %v2162_v43, %v10699_v47  ;;  %v10712_v0 = vsub.f32 %v3168_v38, %v10697_v11  ;;  %v10715_v26 = vsub.f32 %v4034_v54, %v10699_v47  ;;  %v16656_v58 = vld [vmem:[#allocation230_spill] sm:$0xff] }
 0x2ba   :  { %v1539_v59 = vmax.f32 %v1491_v3, %v16650_v34  ;;  %v1541_v12 = vmax.f32 %v1493_v56, %v1317_v5  ;;  %v1636_v61 = vmul.f32 0.2, %v1588_v19  ;;  %v2117_v29 = vmul.f32 0.2, %v2069_v39  ;;  %v16661_v56 = vld [vmem:[#allocation129_spill] sm:$0xff] }
 0x2bb   :  { %16654 = vst [vmem:[#allocation471_spill] sm:$0xff] %v10715_v26  ;;  %6441 = vpow2.f32 %v10638_v18  ;;  %v10720_v51 = vmul.f32 1.442695, %v10523_v4  ;;  %v10724_v2 = vadd.f32 %v10644_v7, %v16656_v58  ;;  %v10728_v43 = vadd.f32 %v10644_v7, %v16658_v45  ;;  %v16662_v58 = vld [vmem:[#allocation267_spill] sm:$0xff] }
 0x2bc   :  { %v1587_v54 = vadd.f32 %v1539_v59, %v16452_v16  ;;  %v1589_v60 = vadd.f32 %v1541_v12, %v16651_v36  ;;  %v10732_v8 = vmax.f32 %v1588_v19, %v1636_v61  ;;  %v2163_v23 = vmax.f32 %v2067_v17, %v2115_v9  ;;  %v16664_v17 = vld [vmem:[#allocation503_spill] sm:$0xff] }
 0x2bd   :  { %16655 = vst [vmem:[#allocation478_spill] sm:$0xff] %v10720_v51  ;;  %16657 = vst [vmem:[#allocation472_spill] sm:$0xff] %v10724_v2  ;;  %v2165_v34 = vmax.f32 %v2069_v39, %v2117_v29  ;;  %v3075_v18 = vadd.f32 %v1285_v30, %v16452_v16  ;;  %v3076_v4 = vadd.f32 %v1317_v5, %v16653_v62  ;;  %v16665_v9 = vld [vmem:[#allocation519_spill] sm:$0xff] }
 0x2be   :  { %16659 = vst [vmem:[#allocation135_spill] sm:$0xff] %v10728_v43  ;;  %16660 = vst [vmem:[#allocation335_spill] sm:$0xff] %v10732_v8  ;;  %v3940_v1 = vadd.f32 %v1285_v30, %v16653_v62  ;;  %v1635_v13 = vmul.f32 0.2, %v1587_v54  ;;  %v1637_v38 = vmul.f32 0.2, %v1589_v60  ;;  %v3941_v3 = vadd.f32 %v1317_v5, %v16651_v36 }
 0x2bf   :  { %v16663_v59 = vmax.f32 %v16661_v56, %v16662_v58  ;;  %v3123_v12 = vmul.f32 0.2, %v3075_v18  ;;  %v3124_v19 = vmul.f32 0.2, %v3076_v4  ;;  %v16666_v16 = vmax.f32 %v16664_v17, %v16665_v9 }
 0x2c0   :  { %v3988_v61 = vmul.f32 0.2, %v3940_v1  ;;  %v10746_v29 = vmax.f32 %v1587_v54, %v1635_v13  ;;  %v10748_v62 = vmax.f32 %v1589_v60, %v1637_v38  ;;  %v3989_v30 = vmul.f32 0.2, %v3941_v3  ;;  %v1260_v60 = vpop.permute.xlu0 %1259 }
 0x2c1   :  { %v1870_v45 = vsub.f32 %v16663_v59, %v10552_v33  ;;  %v2206_v39 = vsub.f32 %v16666_v16, %v10552_v33  ;;  %v3171_v5 = vmax.f32 %v3075_v18, %v3123_v12  ;;  %v3172_v36 = vmax.f32 %v3076_v4, %v3124_v19  ;;  %v16671_v18 = vld [vmem:[#allocation522_spill] sm:$0xff]  ;;  %v16678_v12 = vld [vmem:[#allocation523_spill] sm:$0xff] }
 0x2c2   :  { %16667 = vst [vmem:[#allocation490_spill] sm:$0xff] %v10746_v29  ;;  %16668 = vst [vmem:[#allocation139_spill] sm:$0xff] %v10748_v62  ;;  %v4036_v27 = vmax.f32 %v3940_v1, %v3988_v61  ;;  %v10751_v58 = vsub.f32 %v2163_v23, %v10746_v29  ;;  %v10754_v56 = vsub.f32 %v2165_v34, %v10748_v62  ;;  %v10767_v23 = vmul.f32 0.2, %v10724_v2 }
 0x2c3   :  { %v1934_v63 = vmul.f32 1.442695, %v1870_v45  ;;  %v2270_v15 = vmul.f32 1.442695, %v2206_v39  ;;  %v4037_v59 = vmax.f32 %v3941_v3, %v3989_v30  ;;  %v10757_v17 = vsub.f32 %v3171_v5, %v10746_v29  ;;  %v16677_v3 = vld [vmem:[#allocation508_spill] sm:$0xff] }
 0x2c4   :  { %v10760_v54 = vsub.f32 %v3172_v36, %v10732_v8  ;;  %v10763_v45 = vsub.f32 %v4036_v27, %v10732_v8  ;;  %16669 = vst [vmem:[#allocation483_spill] sm:$0xff] %v10767_v23  ;;  %v10779_v27 = vmul.f32 1.442695, %v10566_v41  ;;  %v16679_v19 = vmax.f32 %v16677_v3, %v16678_v12  ;;  %v16680_v39 = vld [vmem:[#allocation484_spill] sm:$0xff] }
 0x2c5   :  { %6443 = vpow2.f32 %v1934_v63  ;;  %v10770_v34 = vsub.f32 %v4037_v59, %v10748_v62  ;;  %v16670_v63 = vld [vmem:[#allocation507_spill] sm:$0xff]  ;;  %v10776_v13 = vpop.eup %6441  ;;  %v10795_v9 = vmul.f32 1.442695, %v10578_v48  ;;  %v10798_v16 = vmul.f32 1.442695, %v10569_v44  ;;  %v16683_v59 = vld [vmem:[#allocation489_spill] sm:$0xff] }
 0x2c6   :  { %6445 = vpow2.f32 %v2270_v15  ;;  %v16672_v4 = vmax.f32 %v16670_v63, %v16671_v18  ;;  %16673 = vst [vmem:[#allocation138_spill] sm:$0xff] %v10776_v13  ;;  %v10782_v15 = vmul.f32 0.2, %v10728_v43  ;;  %v10792_v61 = vsub.f32 %v16679_v19, %v10556_v40  ;;  %v16684_v63 = vld [vmem:[#allocation350_spill] sm:$0xff]  ;;  %v10816_v18 = vpop.permute.xlu1 %2424  ;;  %v16686_v3 = vld [vmem:[#allocation500_spill] sm:$0xff]  ;;  %v16687_v19 = vld [vmem:[#allocation41_spill] sm:$0xff] }
 0x2c7   :  { %6447 = vpow2.f32 %v10613_v22  ;;  %v16675_v22 = vld [vmem:[#allocation69_spill] sm:$0xff]  ;;  %v10801_v41 = vmul.f32 1.442695, %v10572_v28  ;;  %v1286_v30 = vsel %vm1277_vm2, %v16680_v39, %v1260_v60  ;;  %v10807_v5 = vmul.f32 1.442695, %v10588_v14  ;;  %v16685_v28 = vld [vmem:[#allocation147_spill] sm:$0xff] }
 0x2c8   :  { %v3215_v1 = vsub.f32 %v16672_v4, %v10561_v21  ;;  %16674 = vst [vmem:[#allocation134_spill] sm:$0xff] %v10782_v15  ;;  %v10786_v38 = vadd.f32 %v10644_v7, %v16675_v22  ;;  %v10810_v36 = vmul.f32 1.442695, %v10605_v49  ;;  %v1318_v48 = vsel %vm1277_vm2, %v1260_v60, %v16683_v59  ;;  %v16688_v14 = vld [vmem:[#allocation151_spill] sm:$0xff]  ;;  %v16691_v59 = vld [vmem:[#allocation150_spill] sm:$0xff]  ;;  %v4705_v7 = vld [vmem:[%s14664_s2 + $0x98] sm:$0xff] }
 0x2c9   :  { %16681 = vst [vmem:[#allocation267_spill] sm:$0xff] %v10807_v5  ;;  %v1352_v44 = vmax.f32 %v16684_v63, %v1286_v30  ;;  %v1350_v4 = vmax.f32 %v16685_v28, %v1318_v48  ;;  %v1447_v12 = vmax.f32 %v16686_v3, %v1318_v48  ;;  %v10821_v39 = vadd.f32 %v1318_v48, %v16687_v19  ;;  %v16692_v15 = vld [vmem:[#allocation146_spill] sm:$0xff] }
 0x2ca   :  { %16676 = vst [vmem:[#allocation129_spill] sm:$0xff] %v10786_v38  ;;  %16682 = vst [vmem:[#allocation503_spill] sm:$0xff] %v10810_v36  ;;  %v10824_v13 = vadd.f32 %v1286_v30, %v16688_v14  ;;  %v10827_v49 = vmul.f32 0.2, %v10786_v38  ;;  %v10830_v22 = vmul.f32 1.442695, %v10688_v53  ;;  %v10839_v43 = vadd.f32 %v1286_v30, %v16687_v19  ;;  %v1262_v20 = vpop.permute.xlu1 %1261 }
 0x2cb   :  { %v10833_v60 = vmul.f32 1.442695, %v10691_v42  ;;  %v1400_v6 = vmax.f32 %v1352_v44, %v16691_v59  ;;  %v1398_v31 = vmax.f32 %v1350_v4, %v16684_v63  ;;  %v1495_v3 = vmax.f32 %v1447_v12, %v16684_v63  ;;  %v16694_v42 = vld [vmem:[#allocation491_spill] sm:$0xff] }
 0x2cc   :  { %16689 = vst [vmem:[#allocation519_spill] sm:$0xff] %v10827_v49  ;;  %v3079_v26 = vadd.f32 %v1318_v48, %v16692_v15  ;;  %v10842_v2 = vmul.f32 1.442695, %v3215_v1  ;;  %v10848_v53 = vsel %vm1277_vm2, %v10546_v25, %v10816_v18  ;;  %v3943_v44 = vadd.f32 %v1286_v30, %v16692_v15  ;;  %v4704_v1 = vld [vmem:[%s14664_s2 + $0x90] sm:$0xff] }
 0x2cd   :  { %16690 = vst [vmem:[#allocation507_spill] sm:$0xff] %v10833_v60  ;;  %16693 = vst [vmem:[#allocation522_spill] sm:$0xff] %v10848_v53  ;;  %v1448_v38 = vmax.f32 %v1400_v6, %v16694_v42  ;;  %v1446_v63 = vmax.f32 %v1398_v31, %v1286_v30  ;;  %v1543_v12 = vmax.f32 %v1495_v3, %v1286_v30  ;;  %v2118_v49 = vmul.f32 0.2, %v10821_v39  ;;  %v16697_v6 = vld [vmem:[#allocation28_spill] sm:$0xff] }
 0x2ce   :  { %v2120_v23 = vmul.f32 0.2, %v10824_v13  ;;  %v3127_v30 = vmul.f32 0.2, %v3079_v26  ;;  %v3944_v3 = vadd.f32 %v1318_v48, %v16688_v14  ;;  %v3991_v29 = vmul.f32 0.2, %v3943_v44 }
 0x2cf   :  { %v10852_v4 = vpop.eup %6443  ;;  %v1496_v31 = vmax.f32 %v1448_v38, %v16685_v28  ;;  %v1591_v38 = vadd.f32 %v1543_v12, %v16692_v15  ;;  %v3126_v28 = vmul.f32 0.2, %v10839_v43  ;;  %v6147_v60 = vpack.c.bf16 %v4705_v7, %v4704_v1  ;;  %v16701_v7 = vld [vmem:[#allocation358_spill] sm:$0xff] }
 0x2d0   :  { %16695 = vst [vmem:[#allocation508_spill] sm:$0xff] %v10852_v4  ;;  %v10862_v51 = vpop.eup %6445  ;;  %v2014_v35 = vmul.f32 %v10852_v4, %v16697_v6  ;;  %v1494_v4 = vmax.f32 %v1446_v63, %v16691_v59  ;;  %v3992_v62 = vmul.f32 0.2, %v3944_v3  ;;  %v4039_v47 = vmax.f32 %v3943_v44, %v3991_v29  ;;  %v16699_v59 = vld [vmem:[#allocation499_spill] sm:$0xff] }
 0x2d1   :  { %16696 = vst [vmem:[#allocation523_spill] sm:$0xff] %v10862_v51  ;;  %v10874_v57 = vpop.eup %6447  ;;  %v2542_v37 = vmul.f32 %v10862_v51, %v10848_v53  ;;  %v1544_v50 = vmax.f32 %v1496_v31, %v1318_v48  ;;  %v1639_v36 = vmul.f32 0.2, %v1591_v38  ;;  %v3175_v51 = vmax.f32 %v3079_v26, %v3127_v30  ;;  %6148 = vmatprep.subr.bf16.mxu1 %v6147_v60  ;;  %v16702_v26 = vld [vmem:[#allocation155_spill] sm:$0xff]  ;;  %v16706_v30 = vld [vmem:[#allocation504_spill] sm:$0xff] }
 0x2d2   :  { %16698 = vst [vmem:[#allocation484_spill] sm:$0xff] %v10874_v57  ;;  %v1542_v6 = vmax.f32 %v1494_v4, %v16694_v42  ;;  %v6149_v57 = vpack.c.bf16 %v4689_v46, %v4688_v52  ;;  %v1287_v15 = vsel %vm1277_vm2, %v16699_v59, %v1262_v20  ;;  %v16704_v4 = vld [vmem:[#allocation158_spill] sm:$0xff]  ;;  %v2166_v1 = vmax.f32 %v10821_v39, %v2118_v49  ;;  %v16707_v49 = vld [vmem:[#allocation157_spill] sm:$0xff] }
 0x2d3   :  { %v10881_v8 = vadd.f32 %v2542_v37, %v2014_v35  ;;  %v1592_v5 = vadd.f32 %v1544_v50, %v16688_v14  ;;  %v10889_v63 = vmax.f32 %v1591_v38, %v1639_v36  ;;  %v16700_v37 = vld [vmem:[#allocation492_spill] sm:$0xff]  ;;  %v1355_v52 = vmax.f32 %v16701_v7, %v1287_v15 }
 0x2d4   :  { %v1590_v48 = vadd.f32 %v1542_v6, %v16687_v19  ;;  %6150 = vmatpush3.bf16.msra.mxu1 %v6149_v57  ;;  %v1319_v35 = vsel %vm1277_vm2, %v1262_v20, %v16700_v37  ;;  %v2168_v50 = vmax.f32 %v10824_v13, %v2120_v23  ;;  %v16703_v14 = vld [vmem:[#allocation516_spill] sm:$0xff]  ;;  %v4040_v36 = vmax.f32 %v3944_v3, %v3992_v62 }
 0x2d5   :  { %v1640_v46 = vmul.f32 0.2, %v1592_v5  ;;  %v1353_v29 = vmax.f32 %v16702_v26, %v1319_v35  ;;  %v1450_v60 = vmax.f32 %v16703_v14, %v1319_v35  ;;  %v10899_v44 = vsub.f32 %v3175_v51, %v10889_v63  ;;  %v16705_v51 = vld [vmem:[#allocation45_spill] sm:$0xff] }
 0x2d6   :  { %v1638_v42 = vmul.f32 0.2, %v1590_v48  ;;  %v10902_v57 = vsub.f32 %v4039_v47, %v10889_v63  ;;  %v1403_v12 = vmax.f32 %v1355_v52, %v16704_v4  ;;  %v3174_v6 = vmax.f32 %v10839_v43, %v3126_v28 }
 0x2d7   :  { %v10904_v19 = vmax.f32 %v1592_v5, %v1640_v46  ;;  %v1401_v20 = vmax.f32 %v1353_v29, %v16701_v7  ;;  %v1498_v23 = vmax.f32 %v1450_v60, %v16701_v7  ;;  %v2073_v31 = vadd.f32 %v1319_v35, %v16705_v51  ;;  %v16708_v46 = vld [vmem:[#allocation154_spill] sm:$0xff] }
 0x2d8   :  { %v10909_v13 = vmax.f32 %v1590_v48, %v1638_v42  ;;  %v1451_v3 = vmax.f32 %v1403_v12, %v16706_v30  ;;  %v2075_v43 = vadd.f32 %v1287_v15, %v16707_v49  ;;  %v2274_v28 = vmul.f32 1.442695, %v10706_v32 }
 0x2d9   :  { %v10915_v62 = vsub.f32 %v2168_v50, %v10904_v19  ;;  %v10918_v47 = vsub.f32 %v4040_v36, %v10904_v19  ;;  %v1449_v5 = vmax.f32 %v1401_v20, %v1287_v15  ;;  %v1546_v39 = vmax.f32 %v1498_v23, %v1287_v15 }
 0x2da   :  { %v10922_v38 = vsub.f32 %v2166_v1, %v10909_v13  ;;  %v10925_v59 = vsub.f32 %v3174_v6, %v10909_v13  ;;  %6449 = vpow2.f32 %v10842_v2  ;;  %v1499_v37 = vmax.f32 %v1451_v3, %v16702_v26 }
 0x2db   :  { %v1497_v48 = vmax.f32 %v1449_v5, %v16704_v4  ;;  %v10933_v7 = vmul.f32 1.442695, %v10709_v10  ;;  %v10936_v52 = vmul.f32 1.442695, %v10712_v0  ;;  %v1594_v50 = vadd.f32 %v1546_v39, %v16708_v46  ;;  %v16710_v39 = vld [vmem:[#allocation136_spill] sm:$0xff] }
 0x2dc   :  { %v2121_v29 = vmul.f32 0.2, %v2073_v31  ;;  %v1547_v60 = vmax.f32 %v1499_v37, %v1319_v35  ;;  %v2123_v42 = vmul.f32 0.2, %v2075_v43  ;;  %v3081_v32 = vadd.f32 %v1287_v15, %v16705_v51 }
 0x2dd   :  { %v1545_v14 = vmax.f32 %v1497_v48, %v16706_v30  ;;  %v10942_v2 = vmul.f32 1.442695, %v10751_v58  ;;  %v1642_v36 = vmul.f32 0.2, %v1594_v50  ;;  %v3082_v26 = vadd.f32 %v1319_v35, %v16708_v46  ;;  %v16711_v48 = vld [vmem:[#allocation271_spill] sm:$0xff] }
 0x2de   :  { %v3946_v10 = vadd.f32 %v1287_v15, %v16708_v46  ;;  %v1595_v20 = vadd.f32 %v1547_v60, %v16707_v49  ;;  %v2169_v4 = vmax.f32 %v2073_v31, %v2121_v29  ;;  %v3129_v12 = vmul.f32 0.2, %v3081_v32  ;;  %v10955_v31 = vpop.permute.xlu0 %2394 }
 0x2df   :  { %v1593_v0 = vadd.f32 %v1545_v14, %v16705_v51  ;;  %v10948_v23 = vmax.f32 %v1594_v50, %v1642_v36  ;;  %v3130_v1 = vmul.f32 0.2, %v3082_v26  ;;  %v3947_v6 = vadd.f32 %v1319_v35, %v16707_v49 }
 0x2e0   :  { %v3994_v5 = vmul.f32 0.2, %v3946_v10  ;;  %v1643_v58 = vmul.f32 0.2, %v1595_v20  ;;  %v2171_v3 = vmax.f32 %v2075_v43, %v2123_v42  ;;  %v16712_v37 = vmax.f32 %v16710_v39, %v16711_v48  ;;  %v16727_v39 = vld [vmem:[#allocation431_spill] sm:$0xff] }
 0x2e1   :  { %16709 = vst [vmem:[#allocation489_spill] sm:$0xff] %v10948_v23  ;;  %v1641_v30 = vmul.f32 0.2, %v1593_v0  ;;  %v3178_v46 = vmax.f32 %v3082_v26, %v3130_v1  ;;  %v3995_v51 = vmul.f32 0.2, %v3947_v6  ;;  %6451 = vpow2.f32 %v2274_v28 }
 0x2e2   :  { %v1872_v15 = vsub.f32 %v16712_v37, %v10697_v11  ;;  %v4042_v14 = vmax.f32 %v3946_v10, %v3994_v5  ;;  %v10959_v29 = vmax.f32 %v1595_v20, %v1643_v58  ;;  %v3177_v35 = vmax.f32 %v3081_v32, %v3129_v12  ;;  %v16724_v58 = vld [vmem:[#allocation430_spill] sm:$0xff]  ;;  %v11017_v37 = vpop.permute.xlu0 %2458 }
 0x2e3   :  { %v10957_v50 = vmax.f32 %v1593_v0, %v1641_v30  ;;  %v10962_v60 = vmul.f32 1.442695, %v10754_v56  ;;  %v10965_v43 = vsub.f32 %v3178_v46, %v10948_v23  ;;  %v4043_v42 = vmax.f32 %v3947_v6, %v3995_v51  ;;  %v16721_v6 = vld [vmem:[#allocation263_spill] sm:$0xff]  ;;  %v16723_v30 = vld [vmem:[#allocation326_spill] sm:$0xff]  ;;  %v16729_v46 = vld [vmem:[#allocation125_spill] sm:$0xff] }
 0x2e4   :  { %16714 = vst [vmem:[#allocation147_spill] sm:$0xff] %v10959_v29  ;;  %v1938_v49 = vmul.f32 1.442695, %v1872_v15  ;;  %v10968_v36 = vsub.f32 %v4042_v14, %v10948_v23  ;;  %v10970_v26 = vpop.eup %6449  ;;  %v10976_v10 = vsub.f32 %v2171_v3, %v10959_v29  ;;  %v10982_v56 = vmul.f32 1.442695, %v10757_v17  ;;  %v16720_v17 = vld [vmem:[#allocation124_spill] sm:$0xff] }
 0x2e5   :  { %16713 = vst [vmem:[#allocation350_spill] sm:$0xff] %v10957_v50  ;;  %16716 = vst [vmem:[#allocation41_spill] sm:$0xff] %v10970_v26  ;;  %v10973_v28 = vsub.f32 %v2169_v4, %v10957_v50  ;;  %v10979_v32 = vsub.f32 %v3177_v35, %v10957_v50  ;;  %v10985_v0 = vmul.f32 1.442695, %v10760_v54  ;;  %v10988_v20 = vmul.f32 1.442695, %v10763_v45 }
 0x2e6   :  { %16715 = vst [vmem:[#allocation500_spill] sm:$0xff] %v10968_v36  ;;  %16717 = vst [vmem:[#allocation151_spill] sm:$0xff] %v10976_v10  ;;  %6453 = vpow2.f32 %v1938_v49  ;;  %v10991_v12 = vsub.f32 %v4043_v42, %v10959_v29  ;;  %v10994_v4 = vmul.f32 1.442695, %v10770_v34  ;;  %v10997_v1 = vmul.f32 1.442695, %v10792_v61 }
 0x2e7   :  { %16718 = vst [vmem:[#allocation150_spill] sm:$0xff] %v10979_v32  ;;  %6455 = vpow2.f32 %v10830_v22  ;;  %v16722_v5 = vmax.f32 %v16720_v17, %v16721_v6  ;;  %v11006_v45 = vmul.f32 %v10970_v26, %v10848_v53  ;;  %v16725_v3 = vmax.f32 %v16723_v30, %v16724_v58  ;;  %v16726_v61 = vld [vmem:[#allocation329_spill] sm:$0xff]  ;;  %v16730_v51 = vld [vmem:[#allocation264_spill] sm:$0xff]  ;;  %v16736_v58 = vld [vmem:[#allocation270_spill] sm:$0xff] }
 0x2e8   :  { %16719 = vst [vmem:[#allocation146_spill] sm:$0xff] %v10991_v12  ;;  %6457 = vpow2.f32 %v10779_v27  ;;  %v16728_v22 = vmax.f32 %v16726_v61, %v16727_v39  ;;  %v16731_v14 = vmax.f32 %v16729_v46, %v16730_v51  ;;  %v16732_v49 = vld [vmem:[#allocation132_spill] sm:$0xff]  ;;  %v16735_v30 = vld [vmem:[#allocation133_spill] sm:$0xff]  ;;  %v16738_v46 = vld [vmem:[#allocation330_spill] sm:$0xff] }
 0x2e9   :  { %v1869_v54 = vsub.f32 %v16722_v5, %v10556_v40  ;;  %v1871_v34 = vsub.f32 %v16725_v3, %v10561_v21  ;;  %6459 = vpow2.f32 %v10795_v9  ;;  %v16733_v42 = vld [vmem:[#allocation268_spill] sm:$0xff]  ;;  %v2457_v9 = vpop.permute.xlu1 %2456  ;;  %v4718_v61 = vld [vmem:[%s14664_s2 + $0x100] sm:$0xff] }
 0x2ea   :  { %v2781_v48 = vsub.f32 %v16728_v22, %v10556_v40  ;;  %v2782_v35 = vsub.f32 %v16731_v14, %v10552_v33  ;;  %v16734_v17 = vmax.f32 %v16732_v49, %v16733_v42  ;;  %6461 = vpow2.f32 %v10798_v16  ;;  %v16739_v51 = vld [vmem:[#allocation433_spill] sm:$0xff]  ;;  %v16781_v23 = vld [vmem:[#allocation344_spill] sm:$0xff] }
 0x2eb   :  { %v1932_v15 = vmul.f32 1.442695, %v1869_v54  ;;  %v1936_v6 = vmul.f32 1.442695, %v1871_v34  ;;  %v16737_v54 = vmax.f32 %v16735_v30, %v16736_v58  ;;  %v16740_v34 = vmax.f32 %v16738_v46, %v16739_v51  ;;  %v4706_v16 = vld [vmem:[%s14664_s2 + $0xa0] sm:$0xff]  ;;  %v11046_v14 = vpop.eup %6451  ;;  %v4719_v30 = vld [vmem:[%s14664_s2 + $0x108] sm:$0xff] }
 0x2ec   :  { %v2783_v27 = vsub.f32 %v16734_v17, %v10561_v21  ;;  %v2844_v5 = vmul.f32 1.442695, %v2781_v48  ;;  %v2846_v39 = vmul.f32 1.442695, %v2782_v35  ;;  %16741 = vst [vmem:[#allocation491_spill] sm:$0xff] %v11046_v14  ;;  %v16743_v35 = vld [vmem:[#allocation265_spill] sm:$0xff]  ;;  %v11080_v46 = vsel %vm1277_vm2, %v2457_v9, %v10546_v25 }
 0x2ed   :  { %v3645_v3 = vsub.f32 %v16737_v54, %v10556_v40  ;;  %6463 = vpow2.f32 %v1932_v15  ;;  %v3646_v48 = vsub.f32 %v16740_v34, %v10552_v33  ;;  %v4707_v40 = vld [vmem:[%s14664_s2 + $0xa8] sm:$0xff]  ;;  %v11049_v49 = vmul.f32 1.442695, %v10899_v44 }
 0x2ee   :  { %v2848_v22 = vmul.f32 1.442695, %v2783_v27  ;;  %v11055_v15 = vsel %vm1277_vm2, %v11017_v37, %v10955_v31  ;;  %6465 = vpow2.f32 %v1936_v6  ;;  %v16742_v33 = vld [vmem:[#allocation126_spill] sm:$0xff]  ;;  %v6151_v51 = vpack.c.bf16 %v4707_v40, %v4706_v16  ;;  %v16750_v25 = vld [vmem:[#allocation127_spill] sm:$0xff] }
 0x2ef   :  { %v16744_v42 = vmax.f32 %v16742_v33, %v16743_v35  ;;  %v4690_v27 = vld [vmem:[%s14664_s2 + $0x20] sm:$0xff]  ;;  %v4691_v44 = vld [vmem:[%s14664_s2 + $0x28] sm:$0xff]  ;;  %v2544_v6 = vmul.f32 %v11046_v14, %v11055_v15  ;;  %6467 = vpow2.f32 %v2844_v5  ;;  %v3708_v58 = vmul.f32 1.442695, %v3645_v3 }
 0x2f0   :  { %6469 = vpow2.f32 %v2846_v39  ;;  %v3710_v54 = vmul.f32 1.442695, %v3646_v48  ;;  %v11082_v34 = vpop.eup %6453  ;;  %v6153_v35 = vpack.c.bf16 %v4691_v44, %v4690_v27  ;;  %v6175_v5 = vpack.c.bf16 %v4719_v30, %v4718_v61  ;;  %v16746_v3 = vld [vmem:[#allocation30_spill] sm:$0xff]  ;;  %6152 = vmatprep.subr.bf16.mxu1 %v6151_v51  ;;  %v16748_v39 = vld [vmem:[#allocation279_spill] sm:$0xff]  ;;  %v16759_v30 = vld [vmem:[#allocation436_spill] sm:$0xff] }
 0x2f1   :  { %v3647_v17 = vsub.f32 %v16744_v42, %v10561_v21  ;;  %v11075_v21 = vsel %vm1277_vm2, %v10816_v18, %v2457_v9  ;;  %16745 = vst [vmem:[#allocation499_spill] sm:$0xff] %v11082_v34  ;;  %6471 = vpow2.f32 %v2848_v22  ;;  %v2016_v42 = vmul.f32 %v11082_v34, %v16746_v3  ;;  %v16747_v18 = vld [vmem:[#allocation140_spill] sm:$0xff]  ;;  %v16751_v9 = vld [vmem:[#allocation334_spill] sm:$0xff]  ;;  %v16752_v16 = vld [vmem:[#allocation435_spill] sm:$0xff]  ;;  %v11095_v22 = vpop.eup %6455 }
 0x2f2   :  { %6473 = vpow2.f32 %v10801_v41  ;;  %v16749_v48 = vmax.f32 %v16747_v18, %v16748_v39  ;;  %v16753_v40 = vmax.f32 %v16751_v9, %v16752_v16  ;;  %16754 = vst [vmem:[#allocation492_spill] sm:$0xff] %v11095_v22  ;;  %6154 = vmatpush3.bf16.msra.mxu1 %v6153_v35  ;;  %6176 = vmatprep.subr.bf16.mxu0 %v6175_v5  ;;  %v16755_v61 = vld [vmem:[#allocation510_spill] sm:$0xff]  ;;  %v16758_v44 = vld [vmem:[#allocation343_spill] sm:$0xff]  ;;  %v16761_v39 = vld [vmem:[#allocation137_spill] sm:$0xff] }
 0x2f3   :  { %v3712_v33 = vmul.f32 1.442695, %v3647_v17  ;;  %6475 = vpow2.f32 %v3708_v58  ;;  %v16756_v17 = vld [vmem:[#allocation525_spill] sm:$0xff]  ;;  %v16760_v51 = vmax.f32 %v16758_v44, %v16759_v30  ;;  %v11111_v58 = vadd.f32 %v2544_v6, %v2016_v42  ;;  %6178 = vmatpush3.bf16.msra.mxu0 %v6175_v5  ;;  %v16766_v44 = vld [vmem:[#allocation142_spill] sm:$0xff]  ;;  %v16770_v6 = vld [vmem:[#allocation267_spill] sm:$0xff] }
 0x2f4   :  { %v1873_v14 = vsub.f32 %v16749_v48, %v10678_v55  ;;  %v1874_v26 = vsub.f32 %v16753_v40, %v16750_v25  ;;  %v16757_v41 = vmax.f32 %v16755_v61, %v16756_v17  ;;  %v16762_v48 = vld [vmem:[#allocation274_spill] sm:$0xff]  ;;  %v11109_v40 = vpop.eup %6457  ;;  %6477 = vpow2.f32 %v3710_v54 }
 0x2f5   :  { %v2784_v18 = vsub.f32 %v16760_v51, %v10697_v11  ;;  %v16763_v9 = vmax.f32 %v16761_v39, %v16762_v48  ;;  %16764 = vst [vmem:[#allocation358_spill] sm:$0xff] %v11109_v40  ;;  %v11113_v61 = vpop.eup %6459  ;;  %6479 = vpow2.f32 %v3712_v33  ;;  %v2541_v17 = vmul.f32 %v11109_v40, %v11080_v46  ;;  %v16767_v30 = vld [vmem:[#allocation282_spill] sm:$0xff]  ;;  %v16772_v33 = vld [vmem:[#allocation503_spill] sm:$0xff] }
 0x2f6   :  { %v2209_v27 = vsub.f32 %v16757_v41, %v10678_v55  ;;  %v1940_v35 = vmul.f32 1.442695, %v1873_v14  ;;  %v1942_v34 = vmul.f32 1.442695, %v1874_v26  ;;  %16765 = vst [vmem:[#allocation155_spill] sm:$0xff] %v11113_v61  ;;  %v16768_v51 = vmax.f32 %v16766_v44, %v16767_v30  ;;  %v11121_v48 = vpop.eup %6461  ;;  %v16774_v44 = vld [vmem:[#allocation526_spill] sm:$0xff] }
 0x2f7   :  { %v2785_v16 = vsub.f32 %v16763_v9, %v10678_v55  ;;  %16769 = vst [vmem:[#allocation516_spill] sm:$0xff] %v11121_v48  ;;  %6481 = vpow2.f32 %v16770_v6  ;;  %v2543_v26 = vmul.f32 %v11113_v61, %v11075_v21  ;;  %v2850_v14 = vmul.f32 1.442695, %v2784_v18  ;;  %v11126_v5 = vpop.eup %6463  ;;  %v16773_v9 = vld [vmem:[#allocation511_spill] sm:$0xff]  ;;  %v16777_v6 = vld [vmem:[#allocation26_spill] sm:$0xff]  ;;  %v16778_v18 = vld [vmem:[#allocation141_spill] sm:$0xff] }
 0x2f8   :  { %v2276_v41 = vmul.f32 1.442695, %v2209_v27  ;;  %v2786_v39 = vsub.f32 %v16768_v51, %v16750_v25  ;;  %16771 = vst [vmem:[#allocation158_spill] sm:$0xff] %v11126_v5  ;;  %6483 = vpow2.f32 %v16772_v33  ;;  %v3405_v42 = vmul.f32 %v11121_v48, %v11075_v21  ;;  %v11135_v40 = vpop.eup %6465  ;;  %v16782_v48 = vld [vmem:[#allocation438_spill] sm:$0xff] }
 0x2f9   :  { %v2852_v54 = vmul.f32 1.442695, %v2785_v16  ;;  %v16775_v30 = vmax.f32 %v16773_v9, %v16774_v44  ;;  %16776 = vst [vmem:[#allocation45_spill] sm:$0xff] %v11135_v40  ;;  %v2013_v61 = vmul.f32 %v11126_v5, %v16777_v6  ;;  %6485 = vpow2.f32 %v1940_v35  ;;  %v16779_v16 = vld [vmem:[#allocation280_spill] sm:$0xff]  ;;  %v11147_v53 = vpop.eup %6467  ;;  %v16785_v9 = vld [vmem:[#allocation27_spill] sm:$0xff]  ;;  %v16787_v35 = vld [vmem:[#allocation285_spill] sm:$0xff] }
 0x2fa   :  { %v2854_v27 = vmul.f32 1.442695, %v2786_v39  ;;  %v16780_v29 = vmax.f32 %v16778_v18, %v16779_v16  ;;  %v16783_v39 = vmax.f32 %v16781_v23, %v16782_v48  ;;  %16784 = vst [vmem:[#allocation504_spill] sm:$0xff] %v11147_v53  ;;  %v2015_v44 = vmul.f32 %v11135_v40, %v16785_v9  ;;  %v16786_v5 = vld [vmem:[#allocation143_spill] sm:$0xff]  ;;  %v11155_v36 = vpop.eup %6469 }
 0x2fb   :  { %v3218_v51 = vsub.f32 %v16775_v30, %v16750_v25  ;;  %6487 = vpow2.f32 %v1942_v34  ;;  %v16788_v32 = vmax.f32 %v16786_v5, %v16787_v35  ;;  %16789 = vst [vmem:[#allocation157_spill] sm:$0xff] %v11155_v36  ;;  %v2589_v18 = vadd.f32 %v2541_v17, %v2013_v61  ;;  %v11159_v23 = vpop.eup %6471 }
 0x2fc   :  { %v3648_v33 = vsub.f32 %v16780_v29, %v10697_v11  ;;  %v3649_v12 = vsub.f32 %v16783_v39, %v10678_v55  ;;  %v2973_v29 = vmul.f32 %v11147_v53, %v16785_v9  ;;  %6489 = vpow2.f32 %v2276_v41  ;;  %16790 = vst [vmem:[#allocation154_spill] sm:$0xff] %v11159_v23  ;;  %v11164_v16 = vpop.eup %6473 }
 0x2fd   :  { %v3286_v30 = vmul.f32 1.442695, %v3218_v51  ;;  %v3650_v10 = vsub.f32 %v16788_v32, %v16750_v25  ;;  %v2974_v48 = vmul.f32 %v11155_v36, %v16777_v6  ;;  %v2591_v34 = vadd.f32 %v2543_v26, %v2015_v44  ;;  %16791 = vst [vmem:[#allocation136_spill] sm:$0xff] %v11164_v16  ;;  %v16792_v32 = vld [vmem:[#allocation28_spill] sm:$0xff]  ;;  %v11168_v61 = vpop.eup %6475 }
 0x2fe   :  { %v3714_v55 = vmul.f32 1.442695, %v3648_v33  ;;  %6491 = vpow2.f32 %v10933_v7  ;;  %v3716_v51 = vmul.f32 1.442695, %v3649_v12  ;;  %v2975_v25 = vmul.f32 %v11159_v23, %v16792_v32  ;;  %16793 = vst [vmem:[#allocation271_spill] sm:$0xff] %v11168_v61  ;;  %v16794_v26 = vld [vmem:[#allocation520_spill] sm:$0xff]  ;;  %v11177_v44 = vpop.eup %6477 }
 0x2ff   :  { %v3021_v5 = vadd.f32 %v2973_v29, %v2589_v18  ;;  %6493 = vpow2.f32 %v2850_v14  ;;  %v3718_v39 = vmul.f32 1.442695, %v3650_v10  ;;  %v3022_v17 = vadd.f32 %v2974_v48, %v10881_v8  ;;  %v16795_v7 = vld [vmem:[#allocation529_spill] sm:$0xff]  ;;  %16797 = vst [vmem:[#allocation124_spill] sm:$0xff] %v11177_v44  ;;  %v2427_v29 = vpop.permute.xlu1 %2426  ;;  %v11181_v18 = vpop.eup %6479 }
 0x300   :  { %v3406_v41 = vmul.f32 %v11164_v16, %v11080_v46  ;;  %6495 = vpow2.f32 %v2852_v54  ;;  %v16796_v12 = vmax.f32 %v16794_v26, %v16795_v7  ;;  %v3837_v35 = vmul.f32 %v11168_v61, %v16792_v32  ;;  %16798 = vst [vmem:[#allocation263_spill] sm:$0xff] %v11181_v18 }
 0x301   :  { %v3023_v14 = vadd.f32 %v2975_v25, %v2591_v34  ;;  %v3453_v10 = vadd.f32 %v3405_v42, %v3021_v5  ;;  %6497 = vpow2.f32 %v2854_v27  ;;  %v3838_v8 = vmul.f32 %v11177_v44, %v16785_v9  ;;  %v11186_v26 = vpop.eup %6481  ;;  %v4720_v42 = vld [vmem:[%s14664_s2 + $0x110] sm:$0xff]  ;;  %v4721_v27 = vld [vmem:[%s14664_s2 + $0x118] sm:$0xff] }
 0x302   :  { %v4080_v33 = vsub.f32 %v16796_v12, %v10697_v11  ;;  %v3454_v54 = vadd.f32 %v3406_v41, %v3022_v17  ;;  %6499 = vpow2.f32 %v10936_v52  ;;  %16799 = vst [vmem:[#allocation326_spill] sm:$0xff] %v11186_v26  ;;  %v3839_v11 = vmul.f32 %v11181_v18, %v16777_v6  ;;  %v11199_v52 = vpop.eup %6483 }
 0x303   :  { %v3455_v32 = vadd.f32 %v11006_v45, %v3023_v14  ;;  %v11191_v34 = vadd.f32 %v3837_v35, %v3453_v10  ;;  %6501 = vpow2.f32 %v3286_v30  ;;  %16801 = vst [vmem:[#allocation329_spill] sm:$0xff] %v11199_v52  ;;  %v4270_v25 = vmul.f32 %v11186_v26, %v11075_v21  ;;  %v11208_v6 = vpop.eup %6485  ;;  %v16809_v35 = vld [vmem:[#allocation335_spill] sm:$0xff]  ;;  %v16811_v14 = vld [vmem:[#allocation294_spill] sm:$0xff] }
 0x304   :  { %v4146_v48 = vmul.f32 1.442695, %v4080_v33  ;;  %v3886_v9 = vadd.f32 %v3838_v8, %v3454_v54  ;;  %6503 = vpow2.f32 %v3714_v55  ;;  %v11206_v45 = vsel %vm1277_vm2, %v2427_v29, %v11017_v37  ;;  %16802 = vst [vmem:[#allocation431_spill] sm:$0xff] %v11208_v6  ;;  %v16805_v55 = vld [vmem:[#allocation32_spill] sm:$0xff]  ;;  %v16814_v54 = vld [vmem:[#allocation507_spill] sm:$0xff] }
 0x305   :  { %16800 = vst [vmem:[#allocation430_spill] sm:$0xff] %v11191_v34  ;;  %v3887_v30 = vadd.f32 %v3839_v11, %v3455_v32  ;;  %v4271_v5 = vmul.f32 %v11199_v52, %v11080_v46  ;;  %6505 = vpow2.f32 %v3716_v51  ;;  %v11215_v17 = vsel %vm1277_vm2, %v10955_v31, %v2427_v29  ;;  %v11217_v41 = vpop.eup %6487  ;;  %v16808_v46 = vld [vmem:[#allocation31_spill] sm:$0xff]  ;;  %v16810_v31 = vld [vmem:[#allocation149_spill] sm:$0xff]  ;;  %v16815_v11 = vld [vmem:[#allocation524_spill] sm:$0xff] }
 0x306   :  { %16803 = vst [vmem:[#allocation125_spill] sm:$0xff] %v11217_v41  ;;  %v11219_v21 = vadd.f32 %v4270_v25, %v3886_v9  ;;  %v2017_v37 = vmul.f32 %v11208_v6, %v16805_v55  ;;  %6507 = vpow2.f32 %v3718_v39  ;;  %v6179_v7 = vpack.c.bf16 %v4721_v27, %v4720_v42  ;;  %v11223_v12 = vpop.eup %6489  ;;  %v16816_v32 = vld [vmem:[#allocation531_spill] sm:$0xff]  ;;  %v16820_v25 = vld [vmem:[#allocation532_spill] sm:$0xff]  ;;  %v16825_v6 = vld [vmem:[#allocation541_spill] sm:$0xff] }
 0x307   :  { %16806 = vst [vmem:[#allocation132_spill] sm:$0xff] %v11223_v12  ;;  %v11225_v33 = vadd.f32 %v4271_v5, %v3887_v30  ;;  %v2018_v51 = vmul.f32 %v11217_v41, %v16808_v46  ;;  %6509 = vpow2.f32 %v4146_v48  ;;  %v16812_v10 = vmax.f32 %v16810_v31, %v16811_v14  ;;  %v16818_v9 = vld [vmem:[#allocation139_spill] sm:$0xff]  ;;  %v16823_v41 = vld [vmem:[#allocation490_spill] sm:$0xff] }
 0x308   :  { %16804 = vst [vmem:[#allocation264_spill] sm:$0xff] %v11219_v21  ;;  %v11233_v8 = vpop.eup %6491  ;;  %6511 = vpow2.f32 %v16814_v54  ;;  %v2545_v39 = vmul.f32 %v11223_v12, %v11215_v17  ;;  %6180 = vmatprep.subr.bf16.mxu0 %v6179_v7  ;;  %v16817_v42 = vmax.f32 %v16815_v11, %v16816_v32  ;;  %v16819_v48 = vld [vmem:[#allocation527_spill] sm:$0xff]  ;;  %v2286_v14 = vmul.f32 1.442695, %v10922_v38  ;;  %v16824_v12 = vld [vmem:[#allocation37_spill] sm:$0xff] }
 0x309   :  { %16807 = vst [vmem:[#allocation268_spill] sm:$0xff] %v11225_v33  ;;  %v1876_v29 = vsub.f32 %v16812_v10, %v16809_v35  ;;  %16813 = vst [vmem:[#allocation133_spill] sm:$0xff] %v11233_v8  ;;  %v16821_v30 = vmax.f32 %v16819_v48, %v16820_v25  ;;  %v11246_v31 = vpop.eup %6493  ;;  %v2546_v10 = vmul.f32 %v11233_v8, %v11206_v45  ;;  %v4708_v11 = vld [vmem:[%s14664_s2 + $0xb0] sm:$0xff]  ;;  %v4709_v32 = vld [vmem:[%s14664_s2 + $0xb8] sm:$0xff]  ;;  %6182 = vmatpush3.bf16.msra.mxu0 %v6179_v7 }
 0x30a   :  { %v2212_v27 = vsub.f32 %v16817_v42, %v16809_v35  ;;  %16822 = vst [vmem:[#allocation270_spill] sm:$0xff] %v11246_v31  ;;  %v16826_v33 = vmax.f32 %v16824_v12, %v16825_v6  ;;  %v11263_v38 = vpop.eup %6495  ;;  %v11265_v42 = vpop.permute.xlu0 %2428  ;;  %v2593_v48 = vadd.f32 %v2545_v39, %v2017_v37  ;;  %v4693_v25 = vld [vmem:[%s14664_s2 + $0x38] sm:$0xff]  ;;  %v3409_v7 = vmul.f32 %v11095_v22, %v11055_v15  ;;  %v4722_v37 = vld [vmem:[%s14664_s2 + $0x120] sm:$0xff]  ;;  %v4723_v39 = vld [vmem:[%s14664_s2 + $0x128] sm:$0xff] }
 0x30b   :  { %v3221_v5 = vsub.f32 %v16821_v30, %v16818_v9  ;;  %v1946_v54 = vmul.f32 1.442695, %v1876_v29  ;;  %16827 = vst [vmem:[#allocation330_spill] sm:$0xff] %v11263_v38  ;;  %v2976_v29 = vmul.f32 %v11246_v31, %v16808_v46  ;;  %v11275_v30 = vpop.eup %6497  ;;  %v2977_v8 = vmul.f32 %v11263_v38, %v16746_v3 }
 0x30c   :  { %v11255_v21 = vsub.f32 %v16826_v33, %v16823_v41  ;;  %v2282_v6 = vmul.f32 1.442695, %v2212_v27  ;;  %v4692_v33 = vld [vmem:[%s14664_s2 + $0x30] sm:$0xff]  ;;  %16828 = vst [vmem:[#allocation433_spill] sm:$0xff] %v11275_v30  ;;  %v2594_v31 = vadd.f32 %v2546_v10, %v2018_v51  ;;  %v11287_v27 = vpop.eup %6499  ;;  %v6155_v52 = vpack.c.bf16 %v4709_v32, %v4708_v11 }
 0x30d   :  { %v3292_v12 = vmul.f32 1.442695, %v3221_v5  ;;  %6513 = vpow2.f32 %v1946_v54  ;;  %16829 = vst [vmem:[#allocation126_spill] sm:$0xff] %v11287_v27  ;;  %v2978_v5 = vmul.f32 %v11275_v30, %v16805_v55  ;;  %v3024_v22 = vadd.f32 %v2976_v29, %v11111_v58  ;;  %v11292_v38 = vpop.eup %6501 }
 0x30e   :  { %6515 = vpow2.f32 %v2282_v6  ;;  %16830 = vst [vmem:[#allocation265_spill] sm:$0xff] %v11292_v38  ;;  %v3025_v51 = vadd.f32 %v2977_v8, %v2593_v48  ;;  %v3408_v10 = vmul.f32 %v11287_v27, %v11206_v45  ;;  %v6157_v54 = vpack.c.bf16 %v4693_v25, %v4692_v33  ;;  %v11296_v26 = vpop.eup %6503  ;;  %6156 = vmatprep.subr.bf16.mxu1 %v6155_v52  ;;  %v11307_v48 = vpop.permute.xlu1 %2396  ;;  %v16833_v6 = vld [vmem:[#allocation156_spill] sm:$0xff] }
 0x30f   :  { %6517 = vpow2.f32 %v3292_v12  ;;  %16831 = vst [vmem:[#allocation30_spill] sm:$0xff] %v11296_v26  ;;  %v11299_v18 = vmul.f32 1.442695, %v10902_v57  ;;  %v3026_v61 = vadd.f32 %v2978_v5, %v2594_v31  ;;  %v3410_v30 = vmul.f32 %v11292_v38, %v11215_v17  ;;  %v11303_v11 = vpop.eup %6505  ;;  %v16834_v57 = vld [vmem:[#allocation297_spill] sm:$0xff] }
 0x310   :  { %v6183_v58 = vpack.c.bf16 %v4723_v39, %v4722_v37  ;;  %16832 = vst [vmem:[#allocation140_spill] sm:$0xff] %v11303_v11  ;;  %v3840_v8 = vmul.f32 %v11296_v26, %v16805_v55  ;;  %v3456_v32 = vadd.f32 %v3408_v10, %v3024_v22  ;;  %v3457_v29 = vadd.f32 %v3409_v7, %v3025_v51  ;;  %v11313_v33 = vpop.eup %6507  ;;  %v11320_v55 = vpop.permute.xlu0 %2398 }
 0x311   :  { %6158 = vmatpush3.bf16.msra.mxu1 %v6157_v54  ;;  %v16835_v12 = vmax.f32 %v16833_v6, %v16834_v57  ;;  %16836 = vst [vmem:[#allocation279_spill] sm:$0xff] %v11313_v33  ;;  %v11316_v52 = vmul.f32 1.442695, %v10915_v62  ;;  %v3841_v25 = vmul.f32 %v11303_v11, %v16808_v46  ;;  %v3458_v37 = vadd.f32 %v3410_v30, %v3026_v61  ;;  %v11322_v22 = vpop.eup %6509  ;;  %v16847_v57 = vld [vmem:[#allocation348_spill] sm:$0xff] }
 0x312   :  { %6184 = vmatprep.subr.bf16.mxu0 %v6183_v58  ;;  %6519 = vpow2.f32 %v2286_v14  ;;  %16837 = vst [vmem:[#allocation127_spill] sm:$0xff] %v11322_v22  ;;  %v3842_v7 = vmul.f32 %v11313_v33, %v16746_v3  ;;  %v3888_v39 = vadd.f32 %v3840_v8, %v3456_v32  ;;  %v11327_v62 = vpop.eup %6511  ;;  %v4272_v61 = vmul.f32 %v11322_v22, %v11215_v17  ;;  %v16839_v14 = vld [vmem:[#allocation144_spill] sm:$0xff]  ;;  %v16840_v3 = vld [vmem:[#allocation289_spill] sm:$0xff] }
 0x313   :  { %v1878_v31 = vsub.f32 %v16835_v12, %v10909_v13  ;;  %6521 = vpow2.f32 %v11049_v49  ;;  %6186 = vmatpush3.bf16.msra.mxu0 %v6183_v58  ;;  %16838 = vst [vmem:[#allocation334_spill] sm:$0xff] %v11327_v62  ;;  %v3889_v51 = vadd.f32 %v3841_v25, %v3457_v29  ;;  %v11335_v46 = vsel %vm1277_vm2, %v11307_v48, %v11265_v42  ;;  %v16843_v58 = vld [vmem:[#allocation345_spill] sm:$0xff]  ;;  %v16844_v17 = vld [vmem:[#allocation440_spill] sm:$0xff] }
 0x314   :  { %v16841_v30 = vmax.f32 %v16839_v14, %v16840_v3  ;;  %v11341_v54 = vadd.f32 %v3842_v7, %v3458_v37  ;;  %v4273_v49 = vmul.f32 %v11327_v62, %v11206_v45  ;;  %v16845_v8 = vmax.f32 %v16843_v58, %v16844_v17  ;;  %v16848_v12 = vld [vmem:[#allocation441_spill] sm:$0xff]  ;;  %v16853_v14 = vld [vmem:[#allocation290_spill] sm:$0xff]  ;;  %v16857_v58 = vld [vmem:[#allocation152_spill] sm:$0xff] }
 0x315   :  { %v1950_v5 = vmul.f32 1.442695, %v1878_v31  ;;  %v11349_v29 = vadd.f32 %v4272_v61, %v3888_v39  ;;  %v16849_v31 = vmax.f32 %v16847_v57, %v16848_v12  ;;  %v16861_v12 = vld [vmem:[#allocation153_spill] sm:$0xff] }
 0x316   :  { %v1875_v10 = vsub.f32 %v16841_v30, %v16823_v41  ;;  %16842 = vst [vmem:[#allocation435_spill] sm:$0xff] %v11341_v54  ;;  %v1877_v32 = vsub.f32 %v16845_v8, %v16818_v9  ;;  %v11358_v7 = vadd.f32 %v4273_v49, %v3889_v51  ;;  %v16858_v51 = vld [vmem:[#allocation295_spill] sm:$0xff] }
 0x317   :  { %6523 = vpow2.f32 %v1950_v5  ;;  %16846 = vst [vmem:[#allocation510_spill] sm:$0xff] %v11349_v29  ;;  %v2787_v25 = vsub.f32 %v16849_v31, %v16823_v41  ;;  %v11356_v37 = vpop.eup %6513  ;;  %v16852_v5 = vld [vmem:[#allocation145_spill] sm:$0xff]  ;;  %v16859_v49 = vmax.f32 %v16857_v58, %v16858_v51  ;;  %v16862_v31 = vld [vmem:[#allocation296_spill] sm:$0xff]  ;;  %v2461_v29 = vpop.permute.xlu1 %2460 }
 0x318   :  { %v1944_v6 = vmul.f32 1.442695, %v1875_v10  ;;  %6525 = vpow2.f32 %v10942_v2  ;;  %16850 = vst [vmem:[#allocation525_spill] sm:$0xff] %v11356_v37  ;;  %16851 = vst [vmem:[#allocation343_spill] sm:$0xff] %v11358_v7  ;;  %v1948_v45 = vmul.f32 1.442695, %v1877_v32  ;;  %v16854_v39 = vmax.f32 %v16852_v5, %v16853_v14  ;;  %v11365_v3 = vpop.eup %6515  ;;  %v11369_v10 = vpop.permute.xlu0 %2462 }
 0x319   :  { %6527 = vpow2.f32 %v10962_v60  ;;  %16855 = vst [vmem:[#allocation436_spill] sm:$0xff] %v11365_v3  ;;  %v16856_v2 = vld [vmem:[#allocation36_spill] sm:$0xff]  ;;  %v2789_v17 = vsub.f32 %v16859_v49, %v16818_v9  ;;  %v2856_v8 = vmul.f32 1.442695, %v2787_v25  ;;  %v11375_v60 = vpop.eup %6517  ;;  %v2548_v32 = vmul.f32 %v11365_v3, %v11335_v46  ;;  %v16864_v58 = vld [vmem:[#allocation349_spill] sm:$0xff]  ;;  %v16865_v25 = vld [vmem:[#allocation443_spill] sm:$0xff] }
 0x31a   :  { %v2788_v61 = vsub.f32 %v16854_v39, %v16809_v35  ;;  %v2020_v30 = vmul.f32 %v11356_v37, %v16856_v2  ;;  %6529 = vpow2.f32 %v1944_v6  ;;  %16860 = vst [vmem:[#allocation137_spill] sm:$0xff] %v11375_v60  ;;  %v16863_v5 = vmax.f32 %v16861_v12, %v16862_v31 }
 0x31b   :  { %6531 = vpow2.f32 %v1948_v45  ;;  %v11384_v6 = vmul.f32 1.442695, %v10925_v59  ;;  %v2860_v39 = vmul.f32 1.442695, %v2789_v17  ;;  %v16866_v51 = vmax.f32 %v16864_v58, %v16865_v25  ;;  %v4710_v45 = vld [vmem:[%s14664_s2 + $0xc0] sm:$0xff] }
 0x31c   :  { %v2858_v57 = vmul.f32 1.442695, %v2788_v61  ;;  %v3651_v14 = vsub.f32 %v16863_v5, %v16823_v41  ;;  %6533 = vpow2.f32 %v2856_v8  ;;  %v11393_v61 = vadd.f32 %v2548_v32, %v2020_v30  ;;  %v16867_v41 = vld [vmem:[#allocation148_spill] sm:$0xff]  ;;  %v16868_v17 = vld [vmem:[#allocation293_spill] sm:$0xff]  ;;  %v11414_v31 = vpop.eup %6519 }
 0x31d   :  { %v3652_v49 = vsub.f32 %v16866_v51, %v16809_v35  ;;  %v11399_v59 = vsel %vm1277_vm2, %v11369_v10, %v11320_v55  ;;  %v16869_v8 = vmax.f32 %v16867_v41, %v16868_v17  ;;  %v4711_v35 = vld [vmem:[%s14664_s2 + $0xc8] sm:$0xff]  ;;  %v4724_v30 = vld [vmem:[%s14664_s2 + $0x130] sm:$0xff]  ;;  %v4725_v32 = vld [vmem:[%s14664_s2 + $0x138] sm:$0xff]  ;;  %16870 = vst [vmem:[#allocation274_spill] sm:$0xff] %v11414_v31  ;;  %v11420_v58 = vpop.eup %6521  ;;  %v11428_v41 = vsel %vm1277_vm2, %v11265_v42, %v2461_v29 }
 0x31e   :  { %6535 = vpow2.f32 %v2858_v57  ;;  %v11418_v57 = vmul.f32 %v11375_v60, %v11335_v46  ;;  %16871 = vst [vmem:[#allocation142_spill] sm:$0xff] %v11420_v58  ;;  %v2550_v25 = vmul.f32 %v11414_v31, %v11399_v59  ;;  %v16874_v42 = vld [vmem:[#allocation299_spill] sm:$0xff]  ;;  %v16877_v60 = vld [vmem:[#allocation444_spill] sm:$0xff] }
 0x31f   :  { %v3653_v12 = vsub.f32 %v16869_v8, %v16818_v9  ;;  %6537 = vpow2.f32 %v2860_v39  ;;  %v3720_v9 = vmul.f32 1.442695, %v3651_v14  ;;  %v3722_v5 = vmul.f32 1.442695, %v3652_v49  ;;  %v16873_v8 = vld [vmem:[#allocation160_spill] sm:$0xff] }
 0x320   :  { %6539 = vpow2.f32 %v10982_v56  ;;  %v11434_v14 = vsel %vm1277_vm2, %v2461_v29, %v11307_v48  ;;  %v6159_v39 = vpack.c.bf16 %v4711_v35, %v4710_v45  ;;  %v6187_v49 = vpack.c.bf16 %v4725_v32, %v4724_v30  ;;  %v16880_v45 = vld [vmem:[#allocation38_spill] sm:$0xff]  ;;  %v16881_v30 = vld [vmem:[#allocation533_spill] sm:$0xff]  ;;  %v16882_v32 = vld [vmem:[#allocation548_spill] sm:$0xff] }
 0x321   :  { %v3724_v51 = vmul.f32 1.442695, %v3653_v12  ;;  %6541 = vpow2.f32 %v10985_v0  ;;  %v11436_v17 = vpop.eup %6523  ;;  %v11440_v56 = vmul.f32 %v11420_v58, %v11399_v59  ;;  %v16875_v12 = vmax.f32 %v16873_v8, %v16874_v42  ;;  %v16876_v0 = vld [vmem:[#allocation356_spill] sm:$0xff]  ;;  %v16884_v8 = vld [vmem:[#allocation357_spill] sm:$0xff] }
 0x322   :  { %16872 = vst [vmem:[#allocation282_spill] sm:$0xff] %v11436_v17  ;;  %6543 = vpow2.f32 %v3720_v9  ;;  %v16878_v7 = vmax.f32 %v16876_v0, %v16877_v60  ;;  %v11450_v29 = vpop.eup %6525  ;;  %v2022_v35 = vmul.f32 %v11436_v17, %v16880_v45  ;;  %6160 = vmatprep.subr.bf16.mxu1 %v6159_v39  ;;  %6188 = vmatprep.subr.bf16.mxu0 %v6187_v49  ;;  %v16885_v42 = vld [vmem:[#allocation445_spill] sm:$0xff] }
 0x323   :  { %v1879_v31 = vsub.f32 %v16875_v12, %v10889_v63  ;;  %16879 = vst [vmem:[#allocation267_spill] sm:$0xff] %v11450_v29  ;;  %6545 = vpow2.f32 %v3722_v5  ;;  %v16883_v9 = vmax.f32 %v16881_v30, %v16882_v32  ;;  %v16886_v12 = vmax.f32 %v16884_v8, %v16885_v42  ;;  %v11462_v60 = vpop.eup %6527  ;;  %6190 = vmatpush3.bf16.msra.mxu0 %v6187_v49  ;;  %v16890_v8 = vld [vmem:[#allocation34_spill] sm:$0xff] }
 0x324   :  { %v1880_v48 = vsub.f32 %v16878_v7, %v10904_v19  ;;  %16887 = vst [vmem:[#allocation503_spill] sm:$0xff] %v11462_v60  ;;  %6547 = vpow2.f32 %v3724_v51  ;;  %v2547_v7 = vmul.f32 %v11450_v29, %v11434_v14  ;;  %v11466_v39 = vpop.eup %6529  ;;  %v11468_v17 = vadd.f32 %v2550_v25, %v2022_v35  ;;  %v16892_v49 = vld [vmem:[#allocation298_spill] sm:$0xff]  ;;  %v16895_v35 = vld [vmem:[#allocation301_spill] sm:$0xff] }
 0x325   :  { %v2215_v58 = vsub.f32 %v16883_v9, %v10889_v63  ;;  %v2790_v3 = vsub.f32 %v16886_v12, %v10909_v13  ;;  %v1952_v0 = vmul.f32 1.442695, %v1879_v31  ;;  %16888 = vst [vmem:[#allocation511_spill] sm:$0xff] %v11466_v39  ;;  %6549 = vpow2.f32 %v10988_v20  ;;  %v11473_v9 = vpop.eup %6531  ;;  %v16891_v31 = vld [vmem:[#allocation159_spill] sm:$0xff]  ;;  %v16894_v25 = vld [vmem:[#allocation162_spill] sm:$0xff] }
 0x326   :  { %v1954_v5 = vmul.f32 1.442695, %v1880_v48  ;;  %v2549_v30 = vmul.f32 %v11462_v60, %v11428_v41  ;;  %16889 = vst [vmem:[#allocation526_spill] sm:$0xff] %v11473_v9  ;;  %v2019_v51 = vmul.f32 %v11466_v39, %v16890_v8  ;;  %6551 = vpow2.f32 %v10994_v4  ;;  %v11486_v29 = vpop.eup %6533  ;;  %v16899_v39 = vld [vmem:[#allocation534_spill] sm:$0xff]  ;;  %v16900_v4 = vld [vmem:[#allocation549_spill] sm:$0xff] }
 0x327   :  { %v2288_v32 = vmul.f32 1.442695, %v2215_v58  ;;  %v16893_v48 = vmax.f32 %v16891_v31, %v16892_v49  ;;  %v16896_v20 = vmax.f32 %v16894_v25, %v16895_v35  ;;  %16897 = vst [vmem:[#allocation26_spill] sm:$0xff] %v11486_v29  ;;  %v16898_v58 = vld [vmem:[#allocation35_spill] sm:$0xff]  ;;  %6553 = vpow2.f32 %v1952_v0 }
 0x328   :  { %v2021_v60 = vmul.f32 %v11473_v9, %v16898_v58  ;;  %v2862_v37 = vmul.f32 1.442695, %v2790_v3  ;;  %v16901_v22 = vmax.f32 %v16899_v39, %v16900_v4  ;;  %v11494_v26 = vpop.eup %6535  ;;  %v2979_v31 = vmul.f32 %v11486_v29, %v16898_v58 }
 0x329   :  { %v2791_v42 = vsub.f32 %v16893_v48, %v10889_v63  ;;  %v2792_v12 = vsub.f32 %v16896_v20, %v10904_v19  ;;  %16902 = vst [vmem:[#allocation141_spill] sm:$0xff] %v11494_v26  ;;  %v2595_v49 = vadd.f32 %v2547_v7, %v2019_v51  ;;  %6555 = vpow2.f32 %v1954_v5  ;;  %v11498_v25 = vpop.eup %6537 }
 0x32a   :  { %v3224_v33 = vsub.f32 %v16901_v22, %v10904_v19  ;;  %16903 = vst [vmem:[#allocation280_spill] sm:$0xff] %v11498_v25  ;;  %v2980_v35 = vmul.f32 %v11494_v26, %v16890_v8  ;;  %v2597_v0 = vadd.f32 %v2549_v30, %v2021_v60  ;;  %6557 = vpow2.f32 %v2288_v32  ;;  %v11502_v20 = vpop.eup %6539  ;;  %v16906_v60 = vld [vmem:[#allocation161_spill] sm:$0xff]  ;;  %v16907_v30 = vld [vmem:[#allocation300_spill] sm:$0xff] }
 0x32b   :  { %v2864_v48 = vmul.f32 1.442695, %v2791_v42  ;;  %v2866_v3 = vmul.f32 1.442695, %v2792_v12  ;;  %16904 = vst [vmem:[#allocation344_spill] sm:$0xff] %v11502_v20  ;;  %v2981_v22 = vmul.f32 %v11498_v25, %v16856_v2  ;;  %v3027_v39 = vadd.f32 %v2979_v31, %v2595_v49  ;;  %v11507_v7 = vpop.eup %6541  ;;  %v16911_v31 = vld [vmem:[#allocation446_spill] sm:$0xff] }
 0x32c   :  { %6559 = vpow2.f32 %v11316_v52  ;;  %v3298_v4 = vmul.f32 1.442695, %v3224_v33  ;;  %16905 = vst [vmem:[#allocation438_spill] sm:$0xff] %v11507_v7  ;;  %v3028_v5 = vadd.f32 %v2980_v35, %v11393_v61  ;;  %v3411_v51 = vmul.f32 %v11502_v20, %v11428_v41  ;;  %v11516_v12 = vpop.eup %6543  ;;  %v16910_v33 = vld [vmem:[#allocation360_spill] sm:$0xff] }
 0x32d   :  { %6561 = vpow2.f32 %v2862_v37  ;;  %v16908_v32 = vmax.f32 %v16906_v60, %v16907_v30  ;;  %16909 = vst [vmem:[#allocation27_spill] sm:$0xff] %v11516_v12  ;;  %v3029_v25 = vadd.f32 %v2981_v22, %v2597_v0  ;;  %v3412_v52 = vmul.f32 %v11507_v7, %v11434_v14  ;;  %v11524_v35 = vpop.eup %6545  ;;  %v16914_v60 = vld [vmem:[#allocation163_spill] sm:$0xff] }
 0x32e   :  { %6563 = vpow2.f32 %v2864_v48  ;;  %v16912_v61 = vmax.f32 %v16910_v33, %v16911_v31  ;;  %16913 = vst [vmem:[#allocation143_spill] sm:$0xff] %v11524_v35  ;;  %v3843_v37 = vmul.f32 %v11516_v12, %v16856_v2  ;;  %v3459_v20 = vadd.f32 %v3411_v51, %v3027_v39  ;;  %v16915_v30 = vld [vmem:[#allocation303_spill] sm:$0xff] }
 0x32f   :  { %v3654_v42 = vsub.f32 %v16908_v32, %v10909_v13  ;;  %6565 = vpow2.f32 %v2866_v3  ;;  %v16916_v0 = vmax.f32 %v16914_v60, %v16915_v30  ;;  %v11532_v32 = vpop.eup %6547  ;;  %v3844_v48 = vmul.f32 %v11524_v35, %v16898_v58 }
 0x330   :  { %v3655_v49 = vsub.f32 %v16912_v61, %v10889_v63  ;;  %16917 = vst [vmem:[#allocation285_spill] sm:$0xff] %v11532_v32  ;;  %v3460_v7 = vadd.f32 %v3412_v52, %v3028_v5  ;;  %v3461_v63 = vadd.f32 %v11418_v57, %v3029_v25  ;;  %6567 = vpow2.f32 %v11384_v6  ;;  %v11538_v33 = vpop.eup %6549  ;;  %v1264_v61 = vpop.permute.xlu0 %1263 }
 0x331   :  { %v3656_v22 = vsub.f32 %v16916_v0, %v10904_v19  ;;  %16918 = vst [vmem:[#allocation28_spill] sm:$0xff] %v11538_v33  ;;  %v3845_v2 = vmul.f32 %v11532_v32, %v16890_v8  ;;  %v11542_v3 = vadd.f32 %v3843_v37, %v3459_v20  ;;  %6569 = vpow2.f32 %v3298_v4  ;;  %v2431_v19 = vpop.permute.xlu1 %2430  ;;  %v11544_v51 = vpop.eup %6551  ;;  %v16922_v8 = vld [vmem:[#allocation537_spill] sm:$0xff]  ;;  %v16923_v20 = vld [vmem:[#allocation551_spill] sm:$0xff] }
 0x332   :  { %v3726_v39 = vmul.f32 1.442695, %v3654_v42  ;;  %16920 = vst [vmem:[#allocation529_spill] sm:$0xff] %v11544_v51  ;;  %v3892_v31 = vadd.f32 %v3844_v48, %v3460_v7  ;;  %v4276_v58 = vmul.f32 %v11538_v33, %v11428_v41  ;;  %v3728_v5 = vmul.f32 1.442695, %v3655_v49  ;;  %v11548_v25 = vpop.eup %6553  ;;  %v16927_v41 = vld [vmem:[#allocation40_spill] sm:$0xff] }
 0x333   :  { %16919 = vst [vmem:[#allocation520_spill] sm:$0xff] %v11542_v3  ;;  %v3730_v57 = vmul.f32 1.442695, %v3656_v22  ;;  %16921 = vst [vmem:[#allocation32_spill] sm:$0xff] %v11548_v25  ;;  %v3893_v6 = vadd.f32 %v3845_v2, %v3461_v63  ;;  %v4277_v52 = vmul.f32 %v11544_v51, %v11434_v14  ;;  %v16924_v4 = vmax.f32 %v16922_v8, %v16923_v20  ;;  %v11556_v37 = vpop.eup %6555  ;;  %v16930_v0 = vld [vmem:[#allocation39_spill] sm:$0xff]  ;;  %v4729_v33 = vld [vmem:[%s14664_s2 + $0x158] sm:$0xff] }
 0x334   :  { %6571 = vpow2.f32 %v3726_v39  ;;  %16925 = vst [vmem:[#allocation31_spill] sm:$0xff] %v11556_v37  ;;  %v11558_v7 = vadd.f32 %v4276_v58, %v3892_v31  ;;  %v2023_v49 = vmul.f32 %v11548_v25, %v16927_v41  ;;  %v2486_v60 = vsel %vm1277_vm2, %v2431_v19, %v11369_v10  ;;  %v11565_v14 = vpop.eup %6557  ;;  %v16932_v2 = vld [vmem:[#allocation167_spill] sm:$0xff]  ;;  %v16933_v39 = vld [vmem:[#allocation169_spill] sm:$0xff] }
 0x335   :  { %v4086_v42 = vsub.f32 %v16924_v4, %v10909_v13  ;;  %6573 = vpow2.f32 %v3728_v5  ;;  %16928 = vst [vmem:[#allocation149_spill] sm:$0xff] %v11565_v14  ;;  %v11567_v30 = vadd.f32 %v4277_v52, %v3893_v6  ;;  %v2024_v13 = vmul.f32 %v11556_v37, %v16930_v0  ;;  %v16934_v10 = vld [vmem:[#allocation535_spill] sm:$0xff]  ;;  %v16936_v5 = vld [vmem:[#allocation505_spill] sm:$0xff] }
 0x336   :  { %16926 = vst [vmem:[#allocation335_spill] sm:$0xff] %v11558_v7  ;;  %6575 = vpow2.f32 %v3730_v57  ;;  %v11571_v48 = vpop.eup %6559  ;;  %v2502_v63 = vsel %vm1277_vm2, %v11320_v55, %v2431_v19  ;;  %v16935_v31 = vmax.f32 %v16933_v39, %v16934_v10  ;;  %v11584_v6 = vsel %vm1277_vm2, %v16936_v5, %v1264_v61  ;;  %v16938_v8 = vld [vmem:[#allocation515_spill] sm:$0xff]  ;;  %v16942_v7 = vld [vmem:[#allocation49_spill] sm:$0xff] }
 0x337   :  { %16929 = vst [vmem:[#allocation294_spill] sm:$0xff] %v11567_v30  ;;  %v4158_v22 = vmul.f32 1.442695, %v4086_v42  ;;  %16931 = vst [vmem:[#allocation507_spill] sm:$0xff] %v11571_v48  ;;  %6577 = vpow2.f32 %v11299_v18  ;;  %v11586_v57 = vpop.eup %6561  ;;  %v2551_v52 = vmul.f32 %v11565_v14, %v2502_v63  ;;  %v2552_v18 = vmul.f32 %v11571_v48, %v2486_v60  ;;  %v16940_v42 = vld [vmem:[#allocation374_spill] sm:$0xff] }
 0x338   :  { %v1405_v58 = vmax.f32 %v16935_v31, %v16932_v2  ;;  %16937 = vst [vmem:[#allocation524_spill] sm:$0xff] %v11586_v57  ;;  %v11593_v55 = vsel %vm1277_vm2, %v1264_v61, %v16938_v8  ;;  %v11595_v19 = vpop.eup %6563  ;;  %v2982_v20 = vmul.f32 %v11586_v57, %v16930_v0  ;;  %v4152_v12 = vmul.f32 1.442695, %v11255_v21 }
 0x339   :  { %6579 = vpow2.f32 %v4158_v22  ;;  %16939 = vst [vmem:[#allocation531_spill] sm:$0xff] %v11595_v19  ;;  %v1356_v4 = vmax.f32 %v16932_v2, %v11593_v55  ;;  %v1358_v22 = vmax.f32 %v16940_v42, %v11584_v6  ;;  %v11604_v5 = vpop.eup %6565  ;;  %v2983_v30 = vmul.f32 %v11595_v19, %v16880_v45 }
 0x33a   :  { %v1453_v31 = vmax.f32 %v1405_v58, %v11593_v55  ;;  %16941 = vst [vmem:[#allocation139_spill] sm:$0xff] %v11604_v5  ;;  %v2599_v61 = vadd.f32 %v2551_v52, %v2023_v49  ;;  %v2600_v8 = vadd.f32 %v2552_v18, %v2024_v13  ;;  %v11610_v48 = vadd.f32 %v11593_v55, %v16942_v7  ;;  %v11612_v57 = vpop.eup %6567  ;;  %v16945_v52 = vld [vmem:[#allocation170_spill] sm:$0xff] }
 0x33b   :  { %16943 = vst [vmem:[#allocation527_spill] sm:$0xff] %v11612_v57  ;;  %v2984_v37 = vmul.f32 %v11604_v5, %v16927_v41  ;;  %v3030_v14 = vadd.f32 %v2982_v20, %v11468_v17  ;;  %v1404_v58 = vmax.f32 %v1356_v4, %v16940_v42  ;;  %v1406_v25 = vmax.f32 %v1358_v22, %v16933_v39  ;;  %v11619_v51 = vpop.eup %6569 }
 0x33c   :  { %16944 = vst [vmem:[#allocation532_spill] sm:$0xff] %v11619_v51  ;;  %v3031_v19 = vadd.f32 %v2983_v30, %v2599_v61  ;;  %v3414_v49 = vmul.f32 %v11612_v57, %v2486_v60  ;;  %v1501_v13 = vmax.f32 %v1453_v31, %v16940_v42  ;;  %v11625_v18 = vadd.f32 %v11584_v6, %v16945_v52 }
 0x33d   :  { %v3032_v32 = vadd.f32 %v2984_v37, %v2600_v8  ;;  %v3416_v5 = vmul.f32 %v11619_v51, %v2502_v63  ;;  %v1452_v17 = vmax.f32 %v1404_v58, %v11584_v6  ;;  %v1454_v20 = vmax.f32 %v1406_v25, %v16934_v10 }
 0x33e   :  { %v11630_v4 = vpop.eup %6571  ;;  %v3462_v22 = vadd.f32 %v3414_v49, %v3030_v14  ;;  %v3463_v30 = vadd.f32 %v11440_v56, %v3031_v19  ;;  %v1549_v61 = vmax.f32 %v1501_v13, %v11584_v6  ;;  %v2124_v42 = vmul.f32 0.2, %v11610_v48  ;;  %v16949_v56 = vld [vmem:[#allocation166_spill] sm:$0xff] }
 0x33f   :  { %16946 = vst [vmem:[#allocation490_spill] sm:$0xff] %v11630_v4  ;;  %v11635_v31 = vpop.eup %6573  ;;  %v3846_v37 = vmul.f32 %v11630_v4, %v16927_v41  ;;  %v3464_v8 = vadd.f32 %v3416_v5, %v3032_v32  ;;  %v1500_v51 = vmax.f32 %v1452_v17, %v16933_v39  ;;  %v1502_v58 = vmax.f32 %v1454_v20, %v16932_v2 }
 0x340   :  { %16947 = vst [vmem:[#allocation37_spill] sm:$0xff] %v11635_v31  ;;  %v11641_v25 = vpop.eup %6575  ;;  %v3847_v14 = vmul.f32 %v11635_v31, %v16930_v0  ;;  %v1597_v19 = vadd.f32 %v1549_v61, %v16949_v56  ;;  %v2126_v49 = vmul.f32 0.2, %v11625_v18  ;;  %v2172_v13 = vmax.f32 %v11610_v48, %v2124_v42  ;;  %v16973_v31 = vld [vmem:[#allocation53_spill] sm:$0xff] }
 0x341   :  { %16948 = vst [vmem:[#allocation541_spill] sm:$0xff] %v11641_v25  ;;  %v11648_v57 = vpop.eup %6577  ;;  %v3848_v32 = vmul.f32 %v11641_v25, %v16880_v45  ;;  %v3894_v41 = vadd.f32 %v3846_v37, %v3462_v22  ;;  %v1548_v39 = vmax.f32 %v1500_v51, %v16934_v10  ;;  %v1550_v2 = vmax.f32 %v1502_v58, %v11593_v55  ;;  %v4694_v51 = vld [vmem:[%s14664_s2 + $0x40] sm:$0xff]  ;;  %v4695_v10 = vld [vmem:[%s14664_s2 + $0x48] sm:$0xff]  ;;  %v4713_v37 = vld [vmem:[%s14664_s2 + $0xd8] sm:$0xff] }
 0x342   :  { %16950 = vst [vmem:[#allocation156_spill] sm:$0xff] %v11648_v57  ;;  %v3895_v17 = vadd.f32 %v3847_v14, %v3463_v30  ;;  %v4279_v0 = vmul.f32 %v11648_v57, %v2486_v60  ;;  %v1645_v20 = vmul.f32 0.2, %v1597_v19  ;;  %v2174_v61 = vmax.f32 %v11625_v18, %v2126_v49  ;;  %v4712_v30 = vld [vmem:[%s14664_s2 + $0xd0] sm:$0xff]  ;;  %v4727_v49 = vld [vmem:[%s14664_s2 + $0x148] sm:$0xff] }
 0x343   :  { %v11654_v5 = vpop.eup %6579  ;;  %v11658_v4 = vadd.f32 %v3848_v32, %v3464_v8  ;;  %v1596_v42 = vadd.f32 %v1548_v39, %v16942_v7  ;;  %v1598_v45 = vadd.f32 %v1550_v2, %v16945_v52  ;;  %v3084_v18 = vadd.f32 %v11584_v6, %v16942_v7  ;;  %v4726_v7 = vld [vmem:[%s14664_s2 + $0x140] sm:$0xff] }
 0x344   :  { %16951 = vst [vmem:[#allocation297_spill] sm:$0xff] %v11654_v5  ;;  %v4278_v48 = vmul.f32 %v11654_v5, %v2502_v63  ;;  %v11669_v60 = vadd.f32 %v4279_v0, %v3895_v17  ;;  %v11671_v22 = vmax.f32 %v1597_v19, %v1645_v20  ;;  %v3085_v63 = vadd.f32 %v11593_v55, %v16949_v56 }
 0x345   :  { %16952 = vst [vmem:[#allocation144_spill] sm:$0xff] %v11658_v4  ;;  %v1644_v58 = vmul.f32 0.2, %v1596_v42  ;;  %v1646_v14 = vmul.f32 0.2, %v1598_v45  ;;  %v3949_v19 = vadd.f32 %v11584_v6, %v16949_v56  ;;  %v3950_v2 = vadd.f32 %v11593_v55, %v16945_v52  ;;  %v1266_v56 = vpop.permute.xlu0 %1265  ;;  %v16958_v52 = vld [vmem:[#allocation172_spill] sm:$0xff] }
 0x346   :  { %16953 = vst [vmem:[#allocation289_spill] sm:$0xff] %v11669_v60  ;;  %16954 = vst [vmem:[#allocation345_spill] sm:$0xff] %v11671_v22  ;;  %v11683_v8 = vadd.f32 %v4278_v48, %v3894_v41  ;;  %v3132_v32 = vmul.f32 0.2, %v3084_v18  ;;  %v3133_v39 = vmul.f32 0.2, %v3085_v63  ;;  %v6161_v41 = vpack.c.bf16 %v4695_v10, %v4694_v51 }
 0x347   :  { %v11695_v17 = vmax.f32 %v1596_v42, %v1644_v58  ;;  %v11697_v0 = vmax.f32 %v1598_v45, %v1646_v14  ;;  %v3997_v20 = vmul.f32 0.2, %v3949_v19  ;;  %v6163_v6 = vpack.c.bf16 %v4713_v37, %v4712_v30  ;;  %v16959_v42 = vld [vmem:[#allocation175_spill] sm:$0xff]  ;;  %v16963_v37 = vld [vmem:[#allocation478_spill] sm:$0xff]  ;;  %v16964_v58 = vld [vmem:[#allocation464_spill] sm:$0xff] }
 0x348   :  { %16955 = vst [vmem:[#allocation440_spill] sm:$0xff] %v11683_v8  ;;  %v3180_v48 = vmax.f32 %v3084_v18, %v3132_v32  ;;  %v3181_v8 = vmax.f32 %v3085_v63, %v3133_v39  ;;  %v3998_v60 = vmul.f32 0.2, %v3950_v2  ;;  %6162 = vmatpush3.bf16.msra.mxu1 %v6161_v41  ;;  %v6191_v25 = vpack.c.bf16 %v4727_v49, %v4726_v7  ;;  %v16960_v45 = vld [vmem:[#allocation539_spill] sm:$0xff]  ;;  %v16965_v14 = vld [vmem:[#allocation238_spill] sm:$0xff]  ;;  %v16966_v49 = vld [vmem:[#allocation528_spill] sm:$0xff] }
 0x349   :  { %16956 = vst [vmem:[#allocation348_spill] sm:$0xff] %v11695_v17  ;;  %16957 = vst [vmem:[#allocation441_spill] sm:$0xff] %v11697_v0  ;;  %v11700_v5 = vsub.f32 %v2172_v13, %v11695_v17  ;;  %v11703_v57 = vsub.f32 %v2174_v61, %v11697_v0  ;;  %v4045_v55 = vmax.f32 %v3949_v19, %v3997_v20  ;;  %6164 = vmatprep.subr.bf16.mxu1 %v6163_v6  ;;  %v16962_v13 = vld [vmem:[#allocation521_spill] sm:$0xff] }
 0x34a   :  { %v16961_v51 = vmax.f32 %v16959_v42, %v16960_v45  ;;  %v11710_v30 = vsub.f32 %v3180_v48, %v11695_v17  ;;  %v11713_v18 = vsub.f32 %v3181_v8, %v11671_v22  ;;  %v4046_v63 = vmax.f32 %v3950_v2, %v3998_v60  ;;  %6192 = vmatprep.subr.bf16.mxu0 %v6191_v25  ;;  %v16969_v2 = vld [vmem:[#allocation471_spill] sm:$0xff] }
 0x34b   :  { %v1289_v61 = vsel %vm1277_vm2, %v16962_v13, %v1266_v56  ;;  %6581 = vpow2.f32 %v16963_v37  ;;  %v11722_v7 = vsub.f32 %v4045_v55, %v11671_v22  ;;  %v1321_v32 = vsel %vm1277_vm2, %v1266_v56, %v16966_v49  ;;  %6194 = vmatpush3.bf16.msra.mxu0 %v6191_v25  ;;  %v16972_v55 = vld [vmem:[#allocation382_spill] sm:$0xff]  ;;  %v16977_v48 = vld [vmem:[#allocation171_spill] sm:$0xff] }
 0x34c   :  { %v1408_v10 = vmax.f32 %v16961_v51, %v16958_v52  ;;  %v4150_v41 = vmul.f32 1.442695, %v16969_v2  ;;  %v11731_v20 = vsub.f32 %v4046_v63, %v11697_v0  ;;  %v1359_v6 = vmax.f32 %v16958_v52, %v1321_v32  ;;  %v16976_v63 = vld [vmem:[#allocation174_spill] sm:$0xff]  ;;  %v4696_v49 = vld [vmem:[%s14664_s2 + $0x50] sm:$0xff] }
 0x34d   :  { %v1361_v37 = vmax.f32 %v16972_v55, %v1289_v61  ;;  %v11738_v4 = vadd.f32 %v1321_v32, %v16973_v31  ;;  %6583 = vpow2.f32 %v10997_v1  ;;  %v11745_v39 = vadd.f32 %v1289_v61, %v16976_v63  ;;  %v4728_v60 = vld [vmem:[%s14664_s2 + $0x150] sm:$0xff] }
 0x34e   :  { %v1456_v19 = vmax.f32 %v1408_v10, %v1321_v32  ;;  %v1407_v2 = vmax.f32 %v1359_v6, %v16972_v55  ;;  %v11748_v8 = vmul.f32 1.442695, %v10918_v47  ;;  %v3088_v51 = vadd.f32 %v1321_v32, %v16977_v48  ;;  %v4697_v47 = vld [vmem:[%s14664_s2 + $0x58] sm:$0xff] }
 0x34f   :  { %v1409_v13 = vmax.f32 %v1361_v37, %v16959_v42  ;;  %6585 = vpow2.f32 %v4150_v41  ;;  %v3087_v6 = vadd.f32 %v1289_v61, %v16973_v31  ;;  %v3952_v25 = vadd.f32 %v1289_v61, %v16977_v48 }
 0x350   :  { %v1504_v10 = vmax.f32 %v1456_v19, %v16972_v55  ;;  %v1455_v1 = vmax.f32 %v1407_v2, %v1289_v61  ;;  %v4714_v19 = vld [vmem:[%s14664_s2 + $0xe0] sm:$0xff]  ;;  %v4715_v55 = vld [vmem:[%s14664_s2 + $0xe8] sm:$0xff]  ;;  %v2292_v37 = vmul.f32 1.442695, %v10973_v28  ;;  %v2127_v56 = vmul.f32 0.2, %v11738_v4 }
 0x351   :  { %v1457_v41 = vmax.f32 %v1409_v13, %v16960_v45  ;;  %v2129_v29 = vmul.f32 0.2, %v11745_v39  ;;  %v3136_v28 = vmul.f32 0.2, %v3088_v51  ;;  %v4000_v9 = vmul.f32 0.2, %v3952_v25 }
 0x352   :  { %v1552_v2 = vmax.f32 %v1504_v10, %v1289_v61  ;;  %v1503_v35 = vmax.f32 %v1455_v1, %v16959_v42  ;;  %v3953_v10 = vadd.f32 %v1321_v32, %v16976_v63  ;;  %v3135_v3 = vmul.f32 0.2, %v3087_v6 }
 0x353   :  { %v1505_v13 = vmax.f32 %v1457_v41, %v16958_v52  ;;  %v6165_v62 = vpack.c.bf16 %v4697_v47, %v4696_v49  ;;  %v6167_v38 = vpack.c.bf16 %v4715_v55, %v4714_v19  ;;  %v2175_v42 = vmax.f32 %v11738_v4, %v2127_v56  ;;  %v16980_v41 = vld [vmem:[#allocation304_spill] sm:$0xff]  ;;  %v16987_v56 = vld [vmem:[#allocation547_spill] sm:$0xff] }
 0x354   :  { %v1600_v61 = vadd.f32 %v1552_v2, %v16977_v48  ;;  %v1551_v26 = vmax.f32 %v1503_v35, %v16960_v45  ;;  %v6195_v1 = vpack.c.bf16 %v4729_v33, %v4728_v60  ;;  %v3184_v52 = vmax.f32 %v3088_v51, %v3136_v28  ;;  %v16979_v48 = vld [vmem:[#allocation164_spill] sm:$0xff]  ;;  %v1268_v35 = vpop.permute.xlu0 %1267  ;;  %v16985_v60 = vld [vmem:[#allocation190_spill] sm:$0xff]  ;;  %v16993_v28 = vld [vmem:[#allocation397_spill] sm:$0xff] }
 0x355   :  { %v11783_v27 = vpop.eup %6581  ;;  %v1553_v21 = vmax.f32 %v1505_v13, %v1321_v32  ;;  %6166 = vmatpush3.bf16.msra.mxu1 %v6165_v62  ;;  %v16981_v2 = vmax.f32 %v16979_v48, %v16980_v41  ;;  %6587 = vpow2.f32 %v2292_v37  ;;  %v4001_v32 = vmul.f32 0.2, %v3953_v10  ;;  %v16986_v51 = vld [vmem:[#allocation194_spill] sm:$0xff] }
 0x356   :  { %16978 = vst [vmem:[#allocation145_spill] sm:$0xff] %v11783_v27  ;;  %v1648_v11 = vmul.f32 0.2, %v1600_v61  ;;  %v1599_v54 = vadd.f32 %v1551_v26, %v16973_v31  ;;  %v4048_v47 = vmax.f32 %v3952_v25, %v4000_v9  ;;  %6168 = vmatprep.subr.bf16.mxu1 %v6167_v38  ;;  %6196 = vmatprep.subr.bf16.mxu0 %v6195_v1  ;;  %v11796_v26 = vpop.permute.xlu1 %2400  ;;  %v16989_v9 = vld [vmem:[#allocation530_spill] sm:$0xff] }
 0x357   :  { %v1881_v44 = vsub.f32 %v16981_v2, %v10957_v50  ;;  %v1601_v45 = vadd.f32 %v1553_v21, %v16976_v63  ;;  %v11794_v33 = vpop.eup %6583  ;;  %16984 = vst [vmem:[#allocation152_spill] sm:$0xff] %v11796_v26  ;;  %v3183_v4 = vmax.f32 %v3087_v6, %v3135_v3  ;;  %v16988_v19 = vmax.f32 %v16986_v51, %v16987_v56  ;;  %v16992_v3 = vld [vmem:[#allocation536_spill] sm:$0xff] }
 0x358   :  { %v11792_v49 = vmax.f32 %v1600_v61, %v1648_v11  ;;  %16983 = vst [vmem:[#allocation36_spill] sm:$0xff] %v11794_v33  ;;  %v1647_v62 = vmul.f32 0.2, %v1599_v54  ;;  %6198 = vmatpush3.bf16.msra.mxu0 %v6195_v1  ;;  %v1290_v25 = vsel %vm1277_vm2, %v16989_v9, %v1268_v35  ;;  %v1322_v6 = vsel %vm1277_vm2, %v1268_v35, %v16992_v3 }
 0x359   :  { %v1956_v31 = vmul.f32 1.442695, %v1881_v44  ;;  %v1411_v55 = vmax.f32 %v16988_v19, %v16985_v60  ;;  %v1649_v63 = vmul.f32 0.2, %v1601_v45  ;;  %v11811_v37 = vpop.eup %6585  ;;  %v1364_v13 = vmax.f32 %v16993_v28, %v1290_v25 }
 0x35a   :  { %16982 = vst [vmem:[#allocation290_spill] sm:$0xff] %v11792_v49  ;;  %v11803_v11 = vsub.f32 %v3184_v52, %v11792_v49  ;;  %v11806_v38 = vsub.f32 %v4048_v47, %v11792_v49  ;;  %16990 = vst [vmem:[#allocation295_spill] sm:$0xff] %v11811_v37  ;;  %v11813_v44 = vmax.f32 %v1599_v54, %v1647_v62 }
 0x35b   :  { %6589 = vpow2.f32 %v1956_v31  ;;  %v11819_v61 = vmax.f32 %v1601_v45, %v1649_v63  ;;  %v2177_v21 = vmax.f32 %v11745_v39, %v2129_v29  ;;  %v4049_v1 = vmax.f32 %v3953_v10, %v4001_v32  ;;  %v16995_v39 = vld [vmem:[#allocation57_spill] sm:$0xff]  ;;  %v11843_v32 = vpop.permute.xlu1 %2464 }
 0x35c   :  { %16991 = vst [vmem:[#allocation153_spill] sm:$0xff] %v11813_v44  ;;  %v1362_v52 = vmax.f32 %v16985_v60, %v1322_v6  ;;  %v11824_v48 = vsub.f32 %v2175_v42, %v11813_v44  ;;  %v11827_v54 = vsub.f32 %v3183_v4, %v11813_v44  ;;  %v1412_v41 = vmax.f32 %v1364_v13, %v16986_v51  ;;  %v16997_v4 = vld [vmem:[#allocation500_spill] sm:$0xff] }
 0x35d   :  { %16994 = vst [vmem:[#allocation296_spill] sm:$0xff] %v11819_v61  ;;  %v1459_v2 = vmax.f32 %v1411_v55, %v1322_v6  ;;  %v11831_v35 = vsub.f32 %v2177_v21, %v11819_v61  ;;  %v11834_v45 = vsub.f32 %v4049_v1, %v11819_v61  ;;  %v11838_v10 = vadd.f32 %v1322_v6, %v16995_v39  ;;  %v16999_v55 = vld [vmem:[#allocation195_spill] sm:$0xff]  ;;  %v17001_v1 = vld [vmem:[#allocation189_spill] sm:$0xff] }
 0x35e   :  { %v1410_v29 = vmax.f32 %v1362_v52, %v16993_v28  ;;  %v11841_v42 = vmul.f32 1.442695, %v10965_v43  ;;  %6591 = vpow2.f32 %v4152_v12  ;;  %16996 = vst [vmem:[#allocation349_spill] sm:$0xff] %v11843_v32  ;;  %v1460_v47 = vmax.f32 %v1412_v41, %v16987_v56  ;;  %v17002_v41 = vld [vmem:[#allocation151_spill] sm:$0xff] }
 0x35f   :  { %v1507_v62 = vmax.f32 %v1459_v2, %v16993_v28  ;;  %v11848_v31 = vmul.f32 1.442695, %v16997_v4  ;;  %6593 = vpow2.f32 %v11748_v8  ;;  %v2084_v63 = vadd.f32 %v1290_v25, %v16999_v55  ;;  %v11852_v9 = vpop.eup %6587 }
 0x360   :  { %v1458_v19 = vmax.f32 %v1410_v29, %v1290_v25  ;;  %17000 = vst [vmem:[#allocation148_spill] sm:$0xff] %v11852_v9  ;;  %v1508_v43 = vmax.f32 %v1460_v47, %v16985_v60  ;;  %v2130_v12 = vmul.f32 0.2, %v11838_v10  ;;  %v3090_v13 = vadd.f32 %v1290_v25, %v16995_v39 }
 0x361   :  { %16998 = vst [vmem:[#allocation443_spill] sm:$0xff] %v11848_v31  ;;  %v1555_v3 = vmax.f32 %v1507_v62, %v1290_v25  ;;  %v11861_v28 = vsel %vm1277_vm2, %v11843_v32, %v11796_v26  ;;  %v2132_v21 = vmul.f32 0.2, %v2084_v63  ;;  %v3091_v52 = vadd.f32 %v1322_v6, %v17001_v1 }
 0x362   :  { %v1506_v8 = vmax.f32 %v1458_v19, %v16986_v51  ;;  %v11866_v2 = vmul.f32 1.442695, %v17002_v41  ;;  %v2553_v60 = vmul.f32 %v11852_v9, %v11861_v28  ;;  %v1556_v29 = vmax.f32 %v1508_v43, %v1322_v6  ;;  %v4698_v43 = vld [vmem:[%s14664_s2 + $0x60] sm:$0xff] }
 0x363   :  { %v1603_v47 = vadd.f32 %v1555_v3, %v17001_v1  ;;  %v2178_v4 = vmax.f32 %v11838_v10, %v2130_v12  ;;  %v2180_v61 = vmax.f32 %v2084_v63, %v2132_v21  ;;  %v3138_v16 = vmul.f32 0.2, %v3090_v13  ;;  %v17005_v3 = vld [vmem:[#allocation42_spill] sm:$0xff]  ;;  %v4717_v21 = vld [vmem:[%s14664_s2 + $0xf8] sm:$0xff] }
 0x364   :  { %17003 = vst [vmem:[#allocation293_spill] sm:$0xff] %v11866_v2  ;;  %v1554_v62 = vmax.f32 %v1506_v8, %v16987_v56  ;;  %v1604_v51 = vadd.f32 %v1556_v29, %v16999_v55  ;;  %v3139_v23 = vmul.f32 0.2, %v3091_v52  ;;  %v3955_v41 = vadd.f32 %v1290_v25, %v17001_v1  ;;  %v4699_v56 = vld [vmem:[%s14664_s2 + $0x68] sm:$0xff]  ;;  %v4716_v25 = vld [vmem:[%s14664_s2 + $0xf0] sm:$0xff] }
 0x365   :  { %v11873_v49 = vpop.eup %6589  ;;  %v1651_v19 = vmul.f32 0.2, %v1603_v47  ;;  %v3186_v12 = vmax.f32 %v3090_v13, %v3138_v16  ;;  %v3956_v8 = vadd.f32 %v1322_v6, %v16999_v55  ;;  %v6169_v16 = vpack.c.bf16 %v4699_v56, %v4698_v43  ;;  %v17016_v56 = vld [vmem:[#allocation70_spill] sm:$0xff] }
 0x366   :  { %17004 = vst [vmem:[#allocation160_spill] sm:$0xff] %v11873_v49  ;;  %v2025_v10 = vmul.f32 %v11873_v49, %v17005_v3  ;;  %v1602_v63 = vadd.f32 %v1554_v62, %v16995_v39  ;;  %v1652_v1 = vmul.f32 0.2, %v1604_v51  ;;  %v3187_v9 = vmax.f32 %v3091_v52, %v3139_v23  ;;  %v17012_v52 = vld [vmem:[#allocation257_spill] sm:$0xff] }
 0x367   :  { %v11893_v29 = vmax.f32 %v1603_v47, %v1651_v19  ;;  %v4003_v53 = vmul.f32 0.2, %v3955_v41  ;;  %v4004_v39 = vmul.f32 0.2, %v3956_v8  ;;  %v6171_v40 = vpack.c.bf16 %v4717_v21, %v4716_v25  ;;  %6170 = vmatpush3.bf16.msra.mxu1 %v6169_v16  ;;  %v17014_v19 = vld [vmem:[#allocation184_spill] sm:$0xff] }
 0x368   :  { %v11895_v36 = vadd.f32 %v2553_v60, %v2025_v10  ;;  %v1650_v49 = vmul.f32 0.2, %v1602_v63  ;;  %v11897_v13 = vpop.eup %6591  ;;  %v11899_v6 = vmax.f32 %v1604_v51, %v1652_v1  ;;  %v17013_v60 = vld [vmem:[#allocation76_spill] sm:$0xff] }
 0x369   :  { %17006 = vst [vmem:[#allocation299_spill] sm:$0xff] %v11893_v29  ;;  %17008 = vst [vmem:[#allocation444_spill] sm:$0xff] %v11897_v13  ;;  %v11902_v55 = vsub.f32 %v3187_v9, %v11893_v29  ;;  %v4051_v62 = vmax.f32 %v3955_v41, %v4003_v53  ;;  %v11904_v34 = vpop.eup %6593  ;;  %v4052_v23 = vmax.f32 %v3956_v8, %v4004_v39  ;;  %v17017_v51 = vld [vmem:[#allocation468_spill] sm:$0xff]  ;;  %v17019_v9 = vld [vmem:[#allocation150_spill] sm:$0xff]  ;;  %6172 = vmatprep.subr.bf16.mxu1 %v6171_v40 }
 0x36a   :  { %17007 = vst [vmem:[#allocation356_spill] sm:$0xff] %v11895_v36  ;;  %17009 = vst [vmem:[#allocation38_spill] sm:$0xff] %v11899_v6  ;;  %v11906_v47 = vmax.f32 %v1602_v63, %v1650_v49  ;;  %v17015_v10 = vmax.f32 %v17013_v60, %v17014_v19  ;;  %v17018_v1 = vmax.f32 %v17016_v56, %v17017_v51  ;;  %v11917_v17 = vmul.f32 1.442695, %v17019_v9  ;;  %v17021_v41 = vld [vmem:[#allocation73_spill] sm:$0xff]  ;;  %v17022_v63 = vld [vmem:[#allocation179_spill] sm:$0xff] }
 0x36b   :  { %17010 = vst [vmem:[#allocation533_spill] sm:$0xff] %v11904_v34  ;;  %v11920_v53 = vsub.f32 %v2180_v61, %v11899_v6  ;;  %v11923_v49 = vsub.f32 %v4051_v62, %v11893_v29  ;;  %v17023_v8 = vmax.f32 %v17021_v41, %v17022_v63  ;;  %v11936_v16 = vsub.f32 %v4052_v23, %v11899_v6  ;;  %v17024_v60 = vld [vmem:[#allocation522_spill] sm:$0xff]  ;;  %v17032_v9 = vld [vmem:[#allocation99_spill] sm:$0xff] }
 0x36c   :  { %17011 = vst [vmem:[#allocation548_spill] sm:$0xff] %v11906_v47  ;;  %v1855_v43 = vsub.f32 %v17015_v10, %v17012_v52  ;;  %v2191_v27 = vsub.f32 %v17018_v1, %v17012_v52  ;;  %17020 = vst [vmem:[#allocation357_spill] sm:$0xff] %v11917_v17  ;;  %v11930_v21 = vsub.f32 %v2178_v4, %v11906_v47  ;;  %v17026_v40 = vld [vmem:[#allocation146_spill] sm:$0xff]  ;;  %v17033_v63 = vld [vmem:[#allocation287_spill] sm:$0xff] }
 0x36d   :  { %v2767_v25 = vsub.f32 %v17023_v8, %v17012_v52  ;;  %v11933_v39 = vsub.f32 %v3186_v12, %v11906_v47  ;;  %v11940_v62 = vmul.f32 %v11794_v33, %v17024_v60  ;;  %v11943_v19 = vmul.f32 1.442695, %v17026_v40  ;;  %v4730_v12 = vld [vmem:[%s14664_s2 + $0x160] sm:$0xff]  ;;  %v4731_v23 = vld [vmem:[%s14664_s2 + $0x168] sm:$0xff]  ;;  %v17034_v8 = vld [vmem:[#allocation404_spill] sm:$0xff] }
 0x36e   :  { %v1904_v61 = vmul.f32 1.442695, %v1855_v43  ;;  %v11947_v10 = vmul.f32 %v11811_v37, %v11055_v15  ;;  %v2240_v4 = vmul.f32 1.442695, %v2191_v27  ;;  %v1270_v43 = vpop.permute.xlu0 %1269  ;;  %v11957_v56 = vmul.f32 %v11897_v13, %v11335_v46  ;;  %v17031_v1 = vld [vmem:[#allocation206_spill] sm:$0xff]  ;;  %v17036_v13 = vld [vmem:[#allocation201_spill] sm:$0xff] }
 0x36f   :  { %17025 = vst [vmem:[#allocation445_spill] sm:$0xff] %v11940_v62  ;;  %v11961_v51 = vmul.f32 %v11904_v34, %v11399_v59  ;;  %v11964_v15 = vmul.f32 1.442695, %v11700_v5  ;;  %v2816_v27 = vmul.f32 1.442695, %v2767_v25  ;;  %v11968_v41 = vmul.f32 %v17032_v9, %v17031_v1  ;;  %v17038_v59 = vld [vmem:[#allocation571_spill] sm:$0xff] }
 0x370   :  { %17027 = vst [vmem:[#allocation34_spill] sm:$0xff] %v11947_v10  ;;  %17028 = vst [vmem:[#allocation159_spill] sm:$0xff] %v11957_v56  ;;  %6595 = vpow2.f32 %v1904_v61  ;;  %v17035_v60 = vmax.f32 %v17033_v63, %v17034_v8  ;;  %v6199_v40 = vpack.c.bf16 %v4731_v23, %v4730_v12  ;;  %v17037_v56 = vld [vmem:[#allocation207_spill] sm:$0xff]  ;;  %v17040_v5 = vld [vmem:[#allocation540_spill] sm:$0xff] }
 0x371   :  { %17029 = vst [vmem:[#allocation298_spill] sm:$0xff] %v11961_v51  ;;  %17030 = vst [vmem:[#allocation162_spill] sm:$0xff] %v11964_v15  ;;  %6597 = vpow2.f32 %v2240_v4  ;;  %v17039_v34 = vmax.f32 %v17037_v56, %v17038_v59  ;;  %v1291_v61 = vsel %vm1277_vm2, %v17040_v5, %v1270_v43  ;;  %v17041_v25 = vld [vmem:[#allocation569_spill] sm:$0xff]  ;;  %v17042_v63 = vld [vmem:[#allocation406_spill] sm:$0xff] }
 0x372   :  { %v3631_v46 = vsub.f32 %v17035_v60, %v17012_v52  ;;  %v1323_v4 = vsel %vm1277_vm2, %v1270_v43, %v17041_v25  ;;  %6599 = vpow2.f32 %v2816_v27  ;;  %v1367_v52 = vmax.f32 %v17042_v63, %v1291_v61  ;;  %6200 = vmatprep.subr.bf16.mxu0 %v6199_v40  ;;  %v17043_v23 = vld [vmem:[#allocation61_spill] sm:$0xff]  ;;  %v17046_v17 = vld [vmem:[#allocation6_spill] sm:$0xff] }
 0x373   :  { %v1414_v51 = vmax.f32 %v17039_v34, %v17036_v13  ;;  %v1365_v6 = vmax.f32 %v17036_v13, %v1323_v4  ;;  %v11987_v8 = vadd.f32 %v1323_v4, %v17043_v23  ;;  %v17044_v34 = vld [vmem:[#allocation210_spill] sm:$0xff]  ;;  %v11993_v5 = vadd.f32 %v1291_v61, %v17043_v23  ;;  %6202 = vmatpush3.bf16.msra.mxu0 %v6199_v40  ;;  %v4701_v40 = vld [vmem:[%s14664_s2 + $0x78] sm:$0xff] }
 0x374   :  { %v3680_v47 = vmul.f32 1.442695, %v3631_v46  ;;  %v11990_v60 = vadd.f32 %v1291_v61, %v17044_v34  ;;  %v1415_v27 = vmax.f32 %v1367_v52, %v17037_v56  ;;  %v17045_v46 = vld [vmem:[#allocation200_spill] sm:$0xff]  ;;  %v3959_v26 = vadd.f32 %v1323_v4, %v17044_v34 }
 0x375   :  { %v1462_v12 = vmax.f32 %v1414_v51, %v1323_v4  ;;  %v1413_v43 = vmax.f32 %v1365_v6, %v17042_v63  ;;  %v3094_v25 = vadd.f32 %v1323_v4, %v17045_v46  ;;  %v2133_v51 = vmul.f32 0.2, %v11987_v8  ;;  %v4700_v6 = vld [vmem:[%s14664_s2 + $0x70] sm:$0xff] }
 0x376   :  { %6601 = vpow2.f32 %v3680_v47  ;;  %v2135_v29 = vmul.f32 0.2, %v11990_v60  ;;  %v3141_v10 = vmul.f32 0.2, %v11993_v5  ;;  %v1463_v62 = vmax.f32 %v1415_v27, %v17038_v59 }
 0x377   :  { %v1510_v37 = vmax.f32 %v1462_v12, %v17042_v63  ;;  %v1461_v33 = vmax.f32 %v1413_v43, %v1291_v61  ;;  %v3142_v15 = vmul.f32 0.2, %v3094_v25  ;;  %v3958_v47 = vadd.f32 %v1291_v61, %v17045_v46 }
 0x378   :  { %v2181_v52 = vmax.f32 %v11987_v8, %v2133_v51  ;;  %v2183_v12 = vmax.f32 %v11990_v60, %v2135_v29  ;;  %v3189_v43 = vmax.f32 %v11993_v5, %v3141_v10  ;;  %v1511_v0 = vmax.f32 %v1463_v62, %v17036_v13  ;;  %v17048_v51 = vld [vmem:[#allocation8_spill] sm:$0xff] }
 0x379   :  { %v1558_v63 = vmax.f32 %v1510_v37, %v1291_v61  ;;  %v1509_v27 = vmax.f32 %v1461_v33, %v17037_v56  ;;  %v3190_v22 = vmax.f32 %v3094_v25, %v3142_v15  ;;  %v4006_v3 = vmul.f32 0.2, %v3958_v47  ;;  %v17047_v37 = vld [vmem:[#allocation583_spill] sm:$0xff]  ;;  %v17049_v13 = vld [vmem:[#allocation384_spill] sm:$0xff] }
 0x37a   :  { %v6596_v32 = vpop.eup %6595  ;;  %v6173_v31 = vpack.c.bf16 %v4701_v40, %v4700_v6  ;;  %v1998_v61 = vmul.f32 %v17047_v37, %v17046_v17  ;;  %v1559_v60 = vmax.f32 %v1511_v0, %v1323_v4  ;;  %v4007_v33 = vmul.f32 0.2, %v3959_v26 }
 0x37b   :  { %v1606_v36 = vadd.f32 %v1558_v63, %v17045_v46  ;;  %v6598_v8 = vpop.eup %6597  ;;  %v1999_v29 = vmul.f32 %v6596_v32, %v17048_v51  ;;  %v1557_v10 = vmax.f32 %v1509_v27, %v17038_v59  ;;  %v4054_v5 = vmax.f32 %v3958_v47, %v4006_v3  ;;  %v17050_v63 = vld [vmem:[#allocation584_spill] sm:$0xff]  ;;  %v17053_v47 = vld [vmem:[#allocation286_spill] sm:$0xff] }
 0x37c   :  { %v2335_v56 = vadd.f32 %v6598_v8, %v6596_v32  ;;  %v2527_v62 = vmul.f32 %v6598_v8, %v17049_v13  ;;  %6174 = vmatpush3.bf16.msra.mxu1 %v6173_v31  ;;  %v6600_v25 = vpop.eup %6599  ;;  %v1607_v6 = vadd.f32 %v1559_v60, %v17044_v34  ;;  %v4055_v40 = vmax.f32 %v3959_v26, %v4007_v33  ;;  %v17052_v31 = vld [vmem:[#allocation574_spill] sm:$0xff]  ;;  %v17056_v60 = vld [vmem:[#allocation7_spill] sm:$0xff] }
 0x37d   :  { %v1654_v15 = vmul.f32 0.2, %v1606_v36  ;;  %v1605_v46 = vadd.f32 %v1557_v10, %v17043_v23  ;;  %v2526_v37 = vmul.f32 %v17050_v63, %v17031_v1  ;;  %v2959_v0 = vmul.f32 %v6600_v25, %v17046_v17  ;;  %v17054_v23 = vld [vmem:[#allocation398_spill] sm:$0xff] }
 0x37e   :  { %v2575_v2 = vadd.f32 %v2527_v62, %v1999_v29  ;;  %v2911_v50 = vadd.f32 %v6600_v25, %v2335_v56  ;;  %v1655_v27 = vmul.f32 0.2, %v1607_v6  ;;  %v17055_v8 = vmax.f32 %v17053_v47, %v17054_v23  ;;  %v17074_v23 = vld [vmem:[#allocation9_spill] sm:$0xff] }
 0x37f   :  { %v12027_v59 = vmax.f32 %v1606_v36, %v1654_v15  ;;  %v1653_v4 = vmul.f32 0.2, %v1605_v46  ;;  %v12029_v3 = vadd.f32 %v2526_v37, %v1998_v61  ;;  %v12048_v15 = vmul.f32 1.442695, %v11703_v57 }
 0x380   :  { %v6602_v32 = vpop.eup %6601  ;;  %v2766_v34 = vsub.f32 %v17055_v8, %v17052_v31  ;;  %v3007_v26 = vadd.f32 %v2959_v0, %v2575_v2  ;;  %v3343_v10 = vadd.f32 %v17032_v9, %v2911_v50  ;;  %v12042_v56 = vmax.f32 %v1607_v6, %v1655_v27  ;;  %v17066_v6 = vld [vmem:[#allocation102_spill] sm:$0xff]  ;;  %v17071_v0 = vld [vmem:[#allocation187_spill] sm:$0xff] }
 0x381   :  { %17051 = vst [vmem:[#allocation301_spill] sm:$0xff] %v12027_v59  ;;  %v3823_v29 = vmul.f32 %v6602_v32, %v17056_v60  ;;  %v12038_v33 = vsub.f32 %v3190_v22, %v12027_v59  ;;  %v12040_v36 = vmax.f32 %v1605_v46, %v1653_v4  ;;  %v12045_v61 = vsub.f32 %v4054_v5, %v12027_v59  ;;  %v17075_v8 = vld [vmem:[#allocation474_spill] sm:$0xff] }
 0x382   :  { %17058 = vst [vmem:[#allocation534_spill] sm:$0xff] %v12042_v56  ;;  %v2814_v62 = vmul.f32 1.442695, %v2766_v34  ;;  %17060 = vst [vmem:[#allocation161_spill] sm:$0xff] %v12048_v15  ;;  %v12051_v2 = vmul.f32 1.442695, %v11710_v30  ;;  %v3439_v50 = vadd.f32 %v11968_v41, %v3007_v26  ;;  %v3775_v9 = vadd.f32 %v6602_v32, %v3343_v10 }
 0x383   :  { %17057 = vst [vmem:[#allocation35_spill] sm:$0xff] %v12040_v36  ;;  %17059 = vst [vmem:[#allocation549_spill] sm:$0xff] %v12045_v61  ;;  %v12055_v22 = vsub.f32 %v2181_v52, %v12040_v36  ;;  %v12058_v25 = vsub.f32 %v2183_v12, %v12042_v56  ;;  %v12061_v46 = vsub.f32 %v3189_v43, %v12040_v36  ;;  %v17067_v30 = vld [vmem:[#allocation383_spill] sm:$0xff]  ;;  %v4733_v52 = vld [vmem:[%s14664_s2 + $0x178] sm:$0xff]  ;;  %v12076_v12 = vmul.f32 1.442695, %v11713_v18 }
 0x384   :  { %17061 = vst [vmem:[#allocation300_spill] sm:$0xff] %v12051_v2  ;;  %v12064_v5 = vsub.f32 %v4055_v40, %v12042_v56  ;;  %v3871_v57 = vadd.f32 %v3823_v29, %v3439_v50  ;;  %v4207_v63 = vadd.f32 %v17066_v6, %v3775_v9  ;;  %v4255_v37 = vmul.f32 %v17066_v6, %v17067_v30  ;;  %v4732_v41 = vld [vmem:[%s14664_s2 + $0x170] sm:$0xff]  ;;  %v17070_v40 = vld [vmem:[#allocation77_spill] sm:$0xff] }
 0x385   :  { %17062 = vst [vmem:[#allocation360_spill] sm:$0xff] %v12055_v22  ;;  %17063 = vst [vmem:[#allocation446_spill] sm:$0xff] %v12058_v25  ;;  %6603 = vpow2.f32 %v2814_v62  ;;  %v12079_v43 = vmul.f32 1.442695, %v11722_v7  ;;  %v17072_v32 = vmax.f32 %v17070_v40, %v17071_v0  ;;  %v12087_v27 = vmul.f32 1.442695, %v11731_v20 }
 0x386   :  { %17064 = vst [vmem:[#allocation163_spill] sm:$0xff] %v12061_v46  ;;  %17065 = vst [vmem:[#allocation303_spill] sm:$0xff] %v12064_v5  ;;  %6605 = vpow2.f32 %v11841_v42  ;;  %v4303_v47 = vadd.f32 %v4255_v37, %v3871_v57  ;;  %v17076_v18 = vmax.f32 %v17074_v23, %v17075_v8  ;;  %v6203_v26 = vpack.c.bf16 %v4733_v52, %v4732_v41  ;;  %v17077_v42 = vld [vmem:[#allocation576_spill] sm:$0xff]  ;;  %v17078_v10 = vld [vmem:[#allocation283_spill] sm:$0xff] }
 0x387   :  { %17068 = vst [vmem:[#allocation537_spill] sm:$0xff] %v12076_v12  ;;  %17069 = vst [vmem:[#allocation551_spill] sm:$0xff] %v12079_v43  ;;  %v3630_v4 = vsub.f32 %v17072_v32, %v17052_v31  ;;  %6607 = vrcp.f32 %v4207_v63  ;;  %v17079_v29 = vld [vmem:[#allocation396_spill] sm:$0xff]  ;;  %v17081_v20 = vld [vmem:[#allocation78_spill] sm:$0xff] }
 0x388   :  { %17073 = vst [vmem:[#allocation40_spill] sm:$0xff] %v12087_v27  ;;  %v4062_v34 = vsub.f32 %v17076_v18, %v17052_v31  ;;  %6609 = vpow2.f32 %v11943_v19  ;;  %v17080_v62 = vmax.f32 %v17078_v10, %v17079_v29  ;;  %v17082_v6 = vld [vmem:[#allocation188_spill] sm:$0xff]  ;;  %v17084_v37 = vld [vmem:[#allocation75_spill] sm:$0xff]  ;;  %v17085_v40 = vld [vmem:[#allocation473_spill] sm:$0xff]  ;;  %6204 = vmatprep.subr.bf16.mxu0 %v6203_v26 }
 0x389   :  { %v3678_v7 = vmul.f32 1.442695, %v3630_v4  ;;  %v17083_v57 = vmax.f32 %v17081_v20, %v17082_v6  ;;  %v17086_v0 = vmax.f32 %v17084_v37, %v17085_v40  ;;  %v17087_v19 = vld [vmem:[#allocation79_spill] sm:$0xff]  ;;  %v1272_v4 = vpop.permute.xlu0 %1271  ;;  %v17090_v23 = vld [vmem:[#allocation589_spill] sm:$0xff]  ;;  %v17093_v29 = vld [vmem:[#allocation176_spill] sm:$0xff]  ;;  %6206 = vmatpush3.bf16.msra.mxu0 %v6203_v26 }
 0x38a   :  { %v1856_v50 = vsub.f32 %v17080_v62, %v17077_v42  ;;  %v4110_v9 = vmul.f32 1.442695, %v4062_v34  ;;  %v17088_v32 = vld [vmem:[#allocation191_spill] sm:$0xff]  ;;  %v3390_v8 = vmul.f32 %v17090_v23, %v17067_v30  ;;  %v17091_v34 = vld [vmem:[#allocation225_spill] sm:$0xff]  ;;  %v17108_v36 = vld [vmem:[#allocation220_spill] sm:$0xff] }
 0x38b   :  { %v2768_v63 = vsub.f32 %v17083_v57, %v17077_v42  ;;  %v3200_v31 = vsub.f32 %v17086_v0, %v17077_v42  ;;  %v17089_v41 = vmax.f32 %v17087_v19, %v17088_v32  ;;  %6611 = vpow2.f32 %v3678_v7  ;;  %v17092_v10 = vld [vmem:[#allocation229_spill] sm:$0xff]  ;;  %v17095_v40 = vld [vmem:[#allocation559_spill] sm:$0xff]  ;;  %v17099_v32 = vld [vmem:[#allocation202_spill] sm:$0xff] }
 0x38c   :  { %v1906_v18 = vmul.f32 1.442695, %v1856_v50  ;;  %v17094_v62 = vmax.f32 %v17092_v10, %v17093_v29  ;;  %6613 = vpow2.f32 %v4110_v9  ;;  %v17096_v0 = vld [vmem:[#allocation575_spill] sm:$0xff]  ;;  %v17097_v50 = vld [vmem:[#allocation580_spill] sm:$0xff] }
 0x38d   :  { %v3632_v52 = vsub.f32 %v17089_v41, %v17077_v42  ;;  %v2818_v6 = vmul.f32 1.442695, %v2768_v63  ;;  %v3250_v57 = vmul.f32 1.442695, %v3200_v31  ;;  %v12119_v42 = vsel %vm1277_vm2, %v17095_v40, %v1272_v4  ;;  %v17098_v19 = vld [vmem:[#allocation87_spill] sm:$0xff]  ;;  %v17101_v63 = vld [vmem:[#allocation420_spill] sm:$0xff] }
 0x38e   :  { %v1417_v20 = vmax.f32 %v17094_v62, %v17091_v34  ;;  %6615 = vpow2.f32 %v1906_v18  ;;  %v12124_v7 = vsel %vm1277_vm2, %v1272_v4, %v17096_v0  ;;  %v17100_v41 = vmax.f32 %v17098_v19, %v17099_v32  ;;  %v17102_v18 = vld [vmem:[#allocation65_spill] sm:$0xff]  ;;  %v17103_v62 = vld [vmem:[#allocation226_spill] sm:$0xff] }
 0x38f   :  { %v3682_v37 = vmul.f32 1.442695, %v3632_v52  ;;  %6617 = vpow2.f32 %v2818_v6  ;;  %v1368_v26 = vmax.f32 %v17091_v34, %v12124_v7  ;;  %v1370_v31 = vmax.f32 %v17101_v63, %v12119_v42  ;;  %v6604_v0 = vpop.eup %6603 }
 0x390   :  { %v12130_v9 = vsub.f32 %v17100_v41, %v17097_v50  ;;  %v1465_v52 = vmax.f32 %v1417_v20, %v12124_v7  ;;  %6619 = vpow2.f32 %v3250_v57  ;;  %v12139_v4 = vadd.f32 %v12124_v7, %v17102_v18  ;;  %v12152_v57 = vpop.eup %6605  ;;  %v17105_v41 = vld [vmem:[#allocation278_spill] sm:$0xff] }
 0x391   :  { %v12143_v40 = vadd.f32 %v12119_v42, %v17103_v62  ;;  %v12147_v6 = vadd.f32 %v12119_v42, %v17102_v18  ;;  %6621 = vpow2.f32 %v3682_v37  ;;  %v1416_v19 = vmax.f32 %v1368_v26, %v17101_v63  ;;  %17104 = vst [vmem:[#allocation39_spill] sm:$0xff] %v12152_v57  ;;  %v6608_v12 = vpop.eup %6607  ;;  %v17106_v37 = vld [vmem:[#allocation587_spill] sm:$0xff] }
 0x392   :  { %v1418_v32 = vmax.f32 %v1370_v31, %v17092_v10  ;;  %v1513_v20 = vmax.f32 %v1465_v52, %v17101_v63  ;;  %v2910_v56 = vadd.f32 %v6604_v0, %v17105_v41  ;;  %v2958_v59 = vmul.f32 %v6604_v0, %v17056_v60  ;;  %v12167_v2 = vpop.eup %6609 }
 0x393   :  { %v12157_v27 = vmul.f32 0.2, %v12139_v4  ;;  %v12160_v43 = vmul.f32 0.2, %v12143_v40  ;;  %v2528_v26 = vmul.f32 %v17106_v37, %v17067_v30  ;;  %v1464_v31 = vmax.f32 %v1416_v19, %v12119_v42  ;;  %17107 = vst [vmem:[#allocation167_spill] sm:$0xff] %v12167_v2 }
 0x394   :  { %v1466_v63 = vmax.f32 %v1418_v32, %v17093_v29  ;;  %v1561_v52 = vmax.f32 %v1513_v20, %v12119_v42  ;;  %v12169_v41 = vmul.f32 %v6608_v12, %v4303_v47  ;;  %v3006_v0 = vadd.f32 %v2958_v59, %v12029_v3 }
 0x395   :  { %v3342_v15 = vadd.f32 %v17090_v23, %v2910_v56  ;;  %v3097_v5 = vadd.f32 %v12124_v7, %v17108_v36  ;;  %v1512_v46 = vmax.f32 %v1464_v31, %v17092_v10  ;;  %v2184_v32 = vmax.f32 %v12139_v4, %v12157_v27  ;;  %v6612_v20 = vpop.eup %6611 }
 0x396   :  { %v1514_v30 = vmax.f32 %v1466_v63, %v17091_v34  ;;  %v1609_v19 = vadd.f32 %v1561_v52, %v17108_v36  ;;  %v4496_v12 = vmul.f32 1.442695, %v12169_v41  ;;  %v3438_v47 = vadd.f32 %v3390_v8, %v3006_v0  ;;  %v6614_v56 = vpop.eup %6613 }
 0x397   :  { %v2186_v59 = vmax.f32 %v12143_v40, %v12160_v43  ;;  %v3144_v3 = vmul.f32 0.2, %v12147_v6  ;;  %v3774_v23 = vadd.f32 %v6612_v20, %v3342_v15  ;;  %v3822_v10 = vmul.f32 %v6612_v20, %v17048_v51 }
 0x398   :  { %v1560_v34 = vmax.f32 %v1512_v46, %v17093_v29  ;;  %v1562_v31 = vmax.f32 %v1514_v30, %v12124_v7  ;;  %v6616_v63 = vpop.eup %6615  ;;  %6623 = vpow2.f32 %v4496_v12  ;;  %v4254_v27 = vmul.f32 %v6614_v56, %v17049_v13 }
 0x399   :  { %v1657_v4 = vmul.f32 0.2, %v1609_v19  ;;  %v3145_v52 = vmul.f32 0.2, %v3097_v5  ;;  %v6618_v8 = vpop.eup %6617  ;;  %v3870_v0 = vadd.f32 %v3822_v10, %v3438_v47  ;;  %v4206_v25 = vadd.f32 %v6614_v56, %v3774_v23 }
 0x39a   :  { %v2000_v43 = vmul.f32 %v6616_v63, %v17056_v60  ;;  %v2336_v40 = vadd.f32 %v6616_v63, %v17106_v37  ;;  %v6620_v15 = vpop.eup %6619  ;;  %v2960_v20 = vmul.f32 %v6618_v8, %v17048_v51  ;;  %v1608_v46 = vadd.f32 %v1560_v34, %v17102_v18 }
 0x39b   :  { %v1610_v29 = vadd.f32 %v1562_v31, %v17103_v62  ;;  %v12193_v30 = vmax.f32 %v1609_v19, %v1657_v4  ;;  %v6622_v12 = vpop.eup %6621  ;;  %v4302_v22 = vadd.f32 %v4254_v27, %v3870_v0  ;;  %6625 = vrcp.f32 %v4206_v25 }
 0x39c   :  { %v2576_v2 = vadd.f32 %v2528_v26, %v2000_v43  ;;  %v2912_v61 = vadd.f32 %v6618_v8, %v2336_v40  ;;  %v3392_v47 = vmul.f32 %v6620_v15, %v17049_v13  ;;  %v3824_v60 = vmul.f32 %v6622_v12, %v17046_v17  ;;  %v17117_v43 = vld [vmem:[#allocation485_spill] sm:$0xff] }
 0x39d   :  { %17109 = vst [vmem:[#allocation169_spill] sm:$0xff] %v12193_v30  ;;  %v1656_v56 = vmul.f32 0.2, %v1608_v46  ;;  %v1658_v37 = vmul.f32 0.2, %v1610_v29  ;;  %v3192_v51 = vmax.f32 %v12147_v6, %v3144_v3  ;;  %v3193_v18 = vmax.f32 %v3097_v5, %v3145_v52  ;;  %v17113_v3 = vld [vmem:[#allocation452_spill] sm:$0xff] }
 0x39e   :  { %v3008_v23 = vadd.f32 %v2960_v20, %v2576_v2  ;;  %v3344_v10 = vadd.f32 %v6620_v15, %v2912_v61  ;;  %v3961_v25 = vadd.f32 %v12119_v42, %v17108_v36  ;;  %v3962_v26 = vadd.f32 %v12124_v7, %v17103_v62  ;;  %v17119_v15 = vld [vmem:[#allocation83_spill] sm:$0xff] }
 0x39f   :  { %v12198_v34 = vmax.f32 %v1608_v46, %v1656_v56  ;;  %v12200_v19 = vmax.f32 %v1610_v29, %v1658_v37  ;;  %v12207_v17 = vsub.f32 %v3193_v18, %v12193_v30  ;;  %v1910_v61 = vmul.f32 1.442695, %v12130_v9  ;;  %v17123_v37 = vld [vmem:[#allocation186_spill] sm:$0xff] }
 0x3a0   :  { %v3440_v13 = vadd.f32 %v3392_v47, %v3008_v23  ;;  %v3776_v31 = vadd.f32 %v6622_v12, %v3344_v10  ;;  %v4009_v36 = vmul.f32 0.2, %v3961_v25  ;;  %v4256_v62 = vmul.f32 %v17113_v3, %v17031_v1  ;;  %v17116_v1 = vld [vmem:[#allocation80_spill] sm:$0xff]  ;;  %v17124_v23 = vld [vmem:[#allocation409_spill] sm:$0xff] }
 0x3a1   :  { %17110 = vst [vmem:[#allocation535_spill] sm:$0xff] %v12198_v34  ;;  %17111 = vst [vmem:[#allocation505_spill] sm:$0xff] %v12200_v19  ;;  %v12211_v2 = vsub.f32 %v2184_v32, %v12198_v34  ;;  %v12214_v5 = vsub.f32 %v2186_v59, %v12200_v19  ;;  %v12217_v6 = vsub.f32 %v3192_v51, %v12198_v34  ;;  %v4010_v63 = vmul.f32 0.2, %v3962_v26 }
 0x3a2   :  { %v3872_v42 = vadd.f32 %v3824_v60, %v3440_v13  ;;  %v4208_v7 = vadd.f32 %v17113_v3, %v3776_v31  ;;  %v6624_v27 = vpop.eup %6623  ;;  %v12223_v9 = vmul.f32 1.442695, %v11803_v11  ;;  %v12226_v32 = vmul.f32 1.442695, %v11806_v38  ;;  %v17120_v38 = vld [vmem:[#allocation196_spill] sm:$0xff]  ;;  %v12244_v60 = vpop.permute.xlu1 %2434 }
 0x3a3   :  { %17112 = vst [vmem:[#allocation515_spill] sm:$0xff] %v12217_v6  ;;  %vm4447_vm3 = vcmp.gt.f32.partialorder %v12169_v41, 0.0  ;;  %v4057_v59 = vmax.f32 %v3961_v25, %v4009_v36  ;;  %v5775_v4 = vadd.f32 -1.0, %v6624_v27  ;;  %v4058_v8 = vmax.f32 %v3962_v26, %v4010_v63  ;;  %v17129_v36 = vld [vmem:[#allocation82_spill] sm:$0xff]  ;;  %v17135_v27 = vld [vmem:[#allocation292_spill] sm:$0xff] }
 0x3a4   :  { %17114 = vst [vmem:[#allocation374_spill] sm:$0xff] %v12226_v32  ;;  %v4304_v52 = vadd.f32 %v4256_v62, %v3872_v42  ;;  %6627 = vrcp.f32 %v4208_v7  ;;  %v17118_v40 = vmax.f32 %v17116_v1, %v17117_v43  ;;  %v17121_v20 = vmax.f32 %v17119_v15, %v17120_v38  ;;  %v17130_v42 = vld [vmem:[#allocation192_spill] sm:$0xff]  ;;  %v17138_v1 = vld [vmem:[#allocation89_spill] sm:$0xff]  ;;  %v17142_v15 = vld [vmem:[#allocation487_spill] sm:$0xff] }
 0x3a5   :  { %v12230_v0 = vsub.f32 %v4057_v59, %v12193_v30  ;;  %6629 = vpow2.f32 %v1910_v61  ;;  %v6626_v29 = vpop.eup %6625  ;;  %v12241_v12 = vmul.f32 1.442695, %v11824_v48  ;;  %v4639_v47 = vsel %vm4447_vm3, %v12169_v41, %v5775_v4  ;;  %v17128_v61 = vld [vmem:[#allocation579_spill] sm:$0xff]  ;;  %v17139_v43 = vld [vmem:[#allocation212_spill] sm:$0xff] }
 0x3a6   :  { %v2194_v11 = vsub.f32 %v17118_v40, %v17097_v50  ;;  %v2770_v46 = vsub.f32 %v17121_v20, %v17097_v50  ;;  %v12247_v56 = vsub.f32 %v4058_v8, %v12200_v19  ;;  %v17125_v10 = vmax.f32 %v17123_v37, %v17124_v23  ;;  %4805 = vmatprep.mubr.f32.mxu1 %v4639_v47  ;;  %v17136_v59 = vld [vmem:[#allocation407_spill] sm:$0xff]  ;;  %v12294_v37 = vpop.permute.xlu1 %2404  ;;  %v17173_v19 = vld [vmem:[#allocation10_spill] sm:$0xff] }
 0x3a7   :  { %17115 = vst [vmem:[#allocation49_spill] sm:$0xff] %v12230_v0  ;;  %v12254_v18 = vmul.f32 1.442695, %v11827_v54  ;;  %v12256_v25 = vmul.f32 %v6626_v29, %v4302_v22  ;;  %v12259_v41 = vmul.f32 1.442695, %v11831_v35  ;;  %v17131_v3 = vmax.f32 %v17129_v36, %v17130_v42  ;;  %v17133_v35 = vld [vmem:[#allocation235_spill] sm:$0xff] }
 0x3a8   :  { %17122 = vst [vmem:[#allocation170_spill] sm:$0xff] %v12247_v56  ;;  %v3634_v51 = vsub.f32 %v17125_v10, %v17097_v50  ;;  %v2246_v48 = vmul.f32 1.442695, %v2194_v11  ;;  %v2822_v26 = vmul.f32 1.442695, %v2770_v46  ;;  %v12270_v54 = vmul.f32 %v12152_v57, %v11861_v28  ;;  %v17141_v11 = vld [vmem:[#allocation13_spill] sm:$0xff] }
 0x3a9   :  { %17126 = vst [vmem:[#allocation166_spill] sm:$0xff] %v12254_v18  ;;  %17127 = vst [vmem:[#allocation172_spill] sm:$0xff] %v12259_v41  ;;  %v12262_v13 = vmul.f32 1.442695, %v11834_v45  ;;  %v1857_v50 = vsub.f32 %v17131_v3, %v17128_v61  ;;  %v12273_v22 = vmul.f32 1.442695, %v11902_v55  ;;  %v17137_v4 = vmax.f32 %v17135_v27, %v17136_v59 }
 0x3aa   :  { %v3686_v31 = vmul.f32 1.442695, %v3634_v51  ;;  %v4494_v7 = vmul.f32 1.442695, %v12256_v25  ;;  %6631 = vpow2.f32 %v2246_v48  ;;  %v17134_v45 = vld [vmem:[#allocation302_spill] sm:$0xff]  ;;  %v17140_v55 = vmax.f32 %v17138_v1, %v17139_v43  ;;  %v17144_v46 = vld [vmem:[#allocation11_spill] sm:$0xff] }
 0x3ab   :  { %17132 = vst [vmem:[#allocation175_spill] sm:$0xff] %v12273_v22  ;;  %6633 = vpow2.f32 %v2822_v26  ;;  %v12278_v62 = vmul.f32 %v17134_v45, %v17133_v35  ;;  %v1908_v63 = vmul.f32 1.442695, %v1857_v50  ;;  %v2769_v8 = vsub.f32 %v17137_v4, %v17128_v61  ;;  %v17145_v29 = vld [vmem:[#allocation451_spill] sm:$0xff]  ;;  %17146 = vst [vmem:[#allocation539_spill] sm:$0xff] %v12294_v37  ;;  %v17147_v10 = vld [vmem:[#allocation248_spill] sm:$0xff] }
 0x3ac   :  { %6635 = vpow2.f32 %v4494_v7  ;;  %v3633_v40 = vsub.f32 %v17140_v55, %v17128_v61  ;;  %v17143_v38 = vmax.f32 %v17141_v11, %v17142_v15  ;;  %v2003_v47 = vmul.f32 %v17145_v29, %v17144_v46  ;;  %v17148_v51 = vld [vmem:[#allocation90_spill] sm:$0xff]  ;;  %v17149_v26 = vld [vmem:[#allocation581_spill] sm:$0xff]  ;;  %v17150_v36 = vld [vmem:[#allocation88_spill] sm:$0xff] }
 0x3ad   :  { %6637 = vpow2.f32 %v3686_v31  ;;  %v2820_v23 = vmul.f32 1.442695, %v2769_v8  ;;  %v2531_v48 = vmul.f32 %v17148_v51, %v17147_v10  ;;  %v17151_v42 = vld [vmem:[#allocation203_spill] sm:$0xff]  ;;  %v17154_v59 = vld [vmem:[#allocation486_spill] sm:$0xff]  ;;  %v17157_v11 = vld [vmem:[#allocation197_spill] sm:$0xff]  ;;  %vm4446_vm4 = vcmp.gt.f32.partialorder %v12256_v25, 0.0 }
 0x3ae   :  { %v4065_v20 = vsub.f32 %v17143_v38, %v17128_v61  ;;  %v17152_v3 = vmax.f32 %v17150_v36, %v17151_v42  ;;  %6639 = vpow2.f32 %v1908_v63  ;;  %v3684_v7 = vmul.f32 1.442695, %v3633_v40  ;;  %v17153_v61 = vld [vmem:[#allocation84_spill] sm:$0xff]  ;;  %v6628_v43 = vpop.eup %6627  ;;  %v17156_v55 = vld [vmem:[#allocation86_spill] sm:$0xff]  ;;  %v1274_v36 = vpop.permute.xlu0 %1273  ;;  %v17172_v57 = vld [vmem:[#allocation403_spill] sm:$0xff] }
 0x3af   :  { %v17155_v4 = vmax.f32 %v17153_v61, %v17154_v59  ;;  %6641 = vpow2.f32 %v2820_v23  ;;  %v12306_v31 = vadd.f32 %v2531_v48, %v2003_v47  ;;  %v17158_v15 = vmax.f32 %v17156_v55, %v17157_v11  ;;  %v6630_v29 = vpop.eup %6629  ;;  %v17159_v63 = vld [vmem:[#allocation466_spill] sm:$0xff]  ;;  %v17160_v42 = vld [vmem:[#allocation12_spill] sm:$0xff]  ;;  %v17168_v55 = vld [vmem:[#allocation115_spill] sm:$0xff] }
 0x3b0   :  { %v2771_v50 = vsub.f32 %v17152_v3, %v17149_v26  ;;  %v4116_v27 = vmul.f32 1.442695, %v4065_v20  ;;  %v12312_v51 = vmul.f32 %v6628_v43, %v4304_v52  ;;  %v12316_v40 = vmul.f32 %v17159_v63, %v17147_v10  ;;  %v17161_v48 = vld [vmem:[#allocation198_spill] sm:$0xff]  ;;  %v17162_v3 = vld [vmem:[#allocation337_spill] sm:$0xff] }
 0x3b1   :  { %v3203_v1 = vsub.f32 %v17155_v4, %v17149_v26  ;;  %v3635_v38 = vsub.f32 %v17158_v15, %v17149_v26  ;;  %6643 = vpow2.f32 %v3684_v7  ;;  %v2002_v23 = vmul.f32 %v6630_v29, %v17160_v42  ;;  %v17164_v26 = vld [vmem:[#allocation85_spill] sm:$0xff]  ;;  %v12327_v7 = vpop.permute.xlu1 %2468 }
 0x3b2   :  { %v2824_v8 = vmul.f32 1.442695, %v2771_v50  ;;  %6645 = vpow2.f32 %v4116_v27  ;;  %v17163_v50 = vmax.f32 %v17161_v48, %v17162_v3  ;;  %v4498_v52 = vmul.f32 1.442695, %v12312_v51  ;;  %17165 = vst [vmem:[#allocation521_spill] sm:$0xff] %v12327_v7  ;;  %v17171_v3 = vld [vmem:[#allocation428_spill] sm:$0xff] }
 0x3b3   :  { %v3256_v20 = vmul.f32 1.442695, %v3203_v1  ;;  %v3688_v47 = vmul.f32 1.442695, %v3635_v38  ;;  %v2529_v59 = vmul.f32 %v17164_v26, %v17133_v35  ;;  %v17166_v1 = vld [vmem:[#allocation234_spill] sm:$0xff]  ;;  %v17167_v27 = vmax.f32 %v16965_v14, %v16964_v58  ;;  %v17169_v38 = vld [vmem:[#allocation111_spill] sm:$0xff] }
 0x3b4   :  { %v1887_v61 = vsub.f32 %v17163_v50, %v11813_v44  ;;  %6647 = vpow2.f32 %v2824_v8  ;;  %v12336_v11 = vsel %vm1277_vm2, %v17168_v55, %v1274_v36  ;;  %v6632_v15 = vpop.eup %6631  ;;  %v3393_v48 = vmul.f32 %v17169_v38, %v17147_v10  ;;  %v17170_v8 = vld [vmem:[#allocation585_spill] sm:$0xff] }
 0x3b5   :  { %6649 = vpow2.f32 %v3256_v20  ;;  %v1420_v43 = vmax.f32 %v17167_v27, %v17166_v1  ;;  %v12343_v20 = vsel %vm1277_vm2, %v1274_v36, %v17170_v8  ;;  %v1373_v50 = vmax.f32 %v17171_v3, %v12336_v11  ;;  %v17174_v18 = vld [vmem:[#allocation241_spill] sm:$0xff] }
 0x3b6   :  { %v1968_v4 = vmul.f32 1.442695, %v1887_v61  ;;  %6651 = vpow2.f32 %v4498_v52  ;;  %v6634_v61 = vpop.eup %6633  ;;  %v2338_v27 = vadd.f32 %v6632_v15, %v6630_v29  ;;  %v2530_v34 = vmul.f32 %v6632_v15, %v17172_v57 }
 0x3b7   :  { %6653 = vpow2.f32 %v3688_v47  ;;  %v1371_v55 = vmax.f32 %v17166_v1, %v12343_v20  ;;  %v6636_v52 = vpop.eup %6635  ;;  %v2962_v30 = vmul.f32 %v6634_v61, %v17173_v19  ;;  %v12355_v10 = vsel %vm1277_vm2, %v12327_v7, %v12294_v37 }
 0x3b8   :  { %6655 = vpow2.f32 %v1968_v4  ;;  %v1421_v36 = vmax.f32 %v1373_v50, %v16965_v14  ;;  %v6638_v8 = vpop.eup %6637  ;;  %v5774_v29 = vadd.f32 -1.0, %v6636_v52  ;;  %v2578_v22 = vadd.f32 %v2530_v34, %v2002_v23 }
 0x3b9   :  { %v2914_v15 = vadd.f32 %v6634_v61, %v2338_v27  ;;  %6657 = vpow2.f32 %v12241_v12  ;;  %v6640_v47 = vpop.eup %6639  ;;  %vm4448_vm5 = vcmp.gt.f32.partialorder %v12312_v51, 0.0  ;;  %v3826_v56 = vmul.f32 %v6638_v8, %v17144_v46 }
 0x3ba   :  { %v1419_v4 = vmax.f32 %v1371_v55, %v17171_v3  ;;  %v1468_v32 = vmax.f32 %v1420_v43, %v12343_v20  ;;  %v12365_v37 = vadd.f32 %v12336_v11, %v17174_v18  ;;  %v6642_v50 = vpop.eup %6641  ;;  %v4638_v34 = vsel %vm4446_vm4, %v12256_v25, %v5774_v29 }
 0x3bb   :  { %v3010_v23 = vadd.f32 %v2962_v30, %v2578_v22  ;;  %v3346_v12 = vadd.f32 %v17134_v45, %v2914_v15  ;;  %v2001_v61 = vmul.f32 %v6640_v47, %v17173_v19  ;;  %v6644_v27 = vpop.eup %6643  ;;  %4806 = vmatmul.mubr.f32.vlgmr.msra.gmra.mrb[64].mxu1 %v4638_v34  ;;  %v2337_v55 = vadd.f32 %v6640_v47, %v17164_v26  ;;  %v17175_v34 = vld [vmem:[#allocation442_spill] sm:$0xff] }
 0x3bc   :  { %v2961_v43 = vmul.f32 %v6642_v50, %v17144_v46  ;;  %v1467_v52 = vmax.f32 %v1419_v4, %v12336_v11  ;;  %v1469_v7 = vmax.f32 %v1421_v36, %v16964_v58  ;;  %v6646_v41 = vpop.eup %6645  ;;  %v3825_v30 = vmul.f32 %v6644_v27, %v17160_v42 }
 0x3bd   :  { %v3442_v44 = vadd.f32 %v12278_v62, %v3010_v23  ;;  %v3778_v0 = vadd.f32 %v6638_v8, %v3346_v12  ;;  %v2577_v25 = vadd.f32 %v2529_v59, %v2001_v61  ;;  %v2913_v45 = vadd.f32 %v6642_v50, %v2337_v55 }
 0x3be   :  { %v6648_v22 = vpop.eup %6647  ;;  %v4257_v29 = vmul.f32 %v6646_v41, %v17172_v57  ;;  %v1515_v15 = vmax.f32 %v1467_v52, %v16965_v14  ;;  %v1516_v26 = vmax.f32 %v1468_v32, %v17171_v3  ;;  %v1517_v23 = vmax.f32 %v1469_v7, %v17166_v1  ;;  %v17178_v7 = vld [vmem:[#allocation50_spill] sm:$0xff] }
 0x3bf   :  { %v6650_v46 = vpop.eup %6649  ;;  %v3874_v47 = vadd.f32 %v3826_v56, %v3442_v44  ;;  %v4210_v4 = vadd.f32 %v17159_v63, %v3778_v0  ;;  %v3009_v36 = vadd.f32 %v2961_v43, %v2577_v25  ;;  %v2915_v6 = vadd.f32 %v6648_v22, %v17175_v34 }
 0x3c0   :  { %v6652_v62 = vpop.eup %6651  ;;  %v3345_v59 = vadd.f32 %v17169_v38, %v2913_v45  ;;  %v2963_v8 = vmul.f32 %v6648_v22, %v17160_v42  ;;  %v3395_v50 = vmul.f32 %v6650_v46, %v17172_v57  ;;  %v1563_v1 = vmax.f32 %v1515_v15, %v16964_v58  ;;  %v17181_v22 = vld [vmem:[#allocation69_spill] sm:$0xff]  ;;  %v17182_v15 = vld [vmem:[#allocation230_spill] sm:$0xff] }
 0x3c1   :  { %v6654_v12 = vpop.eup %6653  ;;  %v5776_v14 = vadd.f32 -1.0, %v6652_v62  ;;  %v4306_v32 = vadd.f32 %v12316_v40, %v3874_v47  ;;  %6659 = vrcp.f32 %v4210_v4  ;;  %v3441_v44 = vadd.f32 %v3393_v48, %v3009_v36 }
 0x3c2   :  { %v12388_v56 = vpop.eup %6655  ;;  %v3777_v0 = vadd.f32 %v6644_v27, %v3345_v59  ;;  %v3011_v63 = vadd.f32 %v2963_v8, %v12306_v31  ;;  %v3347_v3 = vadd.f32 %v6650_v46, %v2915_v6  ;;  %v3827_v38 = vmul.f32 %v6654_v12, %v17173_v19  ;;  %v17179_v31 = vld [vmem:[#allocation25_spill] sm:$0xff] }
 0x3c3   :  { %17176 = vst [vmem:[#allocation478_spill] sm:$0xff] %v12388_v56  ;;  %v12392_v61 = vpop.eup %6657  ;;  %v4640_v57 = vsel %vm4448_vm5, %v12312_v51, %v5776_v14  ;;  %v3873_v42 = vadd.f32 %v3825_v30, %v3441_v44  ;;  %v2031_v40 = vmul.f32 %v12388_v56, %v17178_v7  ;;  %v4259_v43 = vmul.f32 %v17179_v31, %v17133_v35 }
 0x3c4   :  { %17177 = vst [vmem:[#allocation464_spill] sm:$0xff] %v12392_v61  ;;  %6047 = vmatprep.mubr.f32.mxu0 %v4640_v57  ;;  %v4209_v48 = vadd.f32 %v6646_v41, %v3777_v0  ;;  %v3443_v27 = vadd.f32 %v3395_v50, %v3011_v63  ;;  %v3779_v55 = vadd.f32 %v6654_v12, %v3347_v3  ;;  %v12410_v41 = vmul.f32 1.442695, %v11920_v53 }
 0x3c5   :  { %v2559_v6 = vmul.f32 %v12392_v61, %v12355_v10  ;;  %v4305_v19 = vadd.f32 %v4257_v29, %v3873_v42  ;;  %v1564_v52 = vmax.f32 %v1516_v26, %v12336_v11  ;;  %v1565_v51 = vmax.f32 %v1517_v23, %v12343_v20 }
 0x3c6   :  { %6661 = vrcp.f32 %v4209_v48  ;;  %v3875_v25 = vadd.f32 %v3827_v38, %v3443_v27  ;;  %v4211_v30 = vadd.f32 %v17179_v31, %v3779_v55  ;;  %17180 = vst [vmem:[#allocation238_spill] sm:$0xff] %v12410_v41  ;;  %v1611_v45 = vadd.f32 %v1563_v1, %v17181_v22  ;;  %v17187_v1 = vld [vmem:[#allocation96_spill] sm:$0xff]  ;;  %v17264_v41 = vld [vmem:[#allocation415_spill] sm:$0xff] }
 0x3c7   :  { %v12407_v58 = vadd.f32 %v2559_v6, %v2031_v40  ;;  %v1612_v29 = vadd.f32 %v1564_v52, %v17182_v15  ;;  %v1613_v46 = vadd.f32 %v1565_v51, %v17174_v18  ;;  %v2091_v26 = vadd.f32 %v12343_v20, %v17181_v22  ;;  %v17186_v40 = vld [vmem:[#allocation74_spill] sm:$0xff]  ;;  %v17188_v48 = vld [vmem:[#allocation216_spill] sm:$0xff] }
 0x3c8   :  { %v4307_v35 = vadd.f32 %v4259_v43, %v3875_v25  ;;  %6663 = vrcp.f32 %v4211_v30  ;;  %v2141_v47 = vmul.f32 0.2, %v12365_v37  ;;  %v1659_v4 = vmul.f32 0.2, %v1611_v45 }
 0x3c9   :  { %v1660_v36 = vmul.f32 0.2, %v1612_v29  ;;  %v1661_v34 = vmul.f32 0.2, %v1613_v46  ;;  %v3099_v53 = vadd.f32 %v12336_v11, %v17181_v22  ;;  %v2139_v62 = vmul.f32 0.2, %v2091_v26 }
 0x3ca   :  { %v2189_v59 = vmax.f32 %v12365_v37, %v2141_v47  ;;  %v3100_v8 = vadd.f32 %v12343_v20, %v17182_v15  ;;  %v3964_v50 = vadd.f32 %v12336_v11, %v17182_v15  ;;  %v12425_v12 = vmax.f32 %v1611_v45, %v1659_v4  ;;  %v17197_v47 = vld [vmem:[#allocation493_spill] sm:$0xff] }
 0x3cb   :  { %v6660_v23 = vpop.eup %6659  ;;  %v12427_v14 = vmax.f32 %v1612_v29, %v1660_v36  ;;  %v12429_v44 = vmax.f32 %v1613_v46, %v1661_v34  ;;  %v3147_v0 = vmul.f32 0.2, %v3099_v53  ;;  %v2187_v3 = vmax.f32 %v2091_v26, %v2139_v62  ;;  %v17199_v34 = vld [vmem:[#allocation93_spill] sm:$0xff] }
 0x3cc   :  { %v12431_v63 = vmul.f32 %v6660_v23, %v4306_v32  ;;  %v3148_v38 = vmul.f32 0.2, %v3100_v8  ;;  %v3965_v37 = vadd.f32 %v12343_v20, %v17174_v18  ;;  %v4012_v11 = vmul.f32 0.2, %v3964_v50  ;;  %v17202_v62 = vld [vmem:[#allocation549_spill] sm:$0xff]  ;;  %v17205_v23 = vld [vmem:[#allocation167_spill] sm:$0xff] }
 0x3cd   :  { %17183 = vst [vmem:[#allocation528_spill] sm:$0xff] %v12427_v14  ;;  %17184 = vst [vmem:[#allocation471_spill] sm:$0xff] %v12429_v44  ;;  %v12436_v57 = vsub.f32 %v2189_v59, %v12429_v44  ;;  %v3195_v42 = vmax.f32 %v3099_v53, %v3147_v0  ;;  %v17189_v27 = vmax.f32 %v17187_v1, %v17188_v48  ;;  %v12443_v6 = vmul.f32 1.442695, %v11923_v49  ;;  %v17208_v1 = vld [vmem:[#allocation261_spill] sm:$0xff] }
 0x3ce   :  { %v4502_v32 = vmul.f32 1.442695, %v12431_v63  ;;  %v12447_v31 = vsub.f32 %v2187_v3, %v12425_v12  ;;  %v3196_v43 = vmax.f32 %v3100_v8, %v3148_v38  ;;  %v12450_v18 = vmul.f32 1.442695, %v11930_v21  ;;  %v17207_v3 = vld [vmem:[#allocation360_spill] sm:$0xff] }
 0x3cf   :  { %17185 = vst [vmem:[#allocation382_spill] sm:$0xff] %v12436_v57  ;;  %v1861_v55 = vsub.f32 %v17189_v27, %v17186_v40  ;;  %17190 = vst [vmem:[#allocation53_spill] sm:$0xff] %v12443_v6  ;;  %v12453_v20 = vsub.f32 %v3195_v42, %v12425_v12  ;;  %v4013_v52 = vmul.f32 0.2, %v3965_v37  ;;  %v4060_v51 = vmax.f32 %v3964_v50, %v4012_v11  ;;  %v17210_v27 = vld [vmem:[#allocation309_spill] sm:$0xff] }
 0x3d0   :  { %17191 = vst [vmem:[#allocation174_spill] sm:$0xff] %v12450_v18  ;;  %v6662_v25 = vpop.eup %6661  ;;  %v12456_v30 = vmul.f32 1.442695, %v11933_v39  ;;  %6665 = vpow2.f32 %v4502_v32  ;;  %v12459_v49 = vsub.f32 %v3196_v43, %v12427_v14  ;;  %v12462_v45 = vmul.f32 1.442695, %v11936_v16  ;;  %v17196_v39 = vld [vmem:[#allocation488_spill] sm:$0xff] }
 0x3d1   :  { %17192 = vst [vmem:[#allocation171_spill] sm:$0xff] %v12453_v20  ;;  %v1916_v22 = vmul.f32 1.442695, %v1861_v55  ;;  %v12464_v15 = vmul.f32 %v6662_v25, %v4305_v19  ;;  %v4061_v21 = vmax.f32 %v3965_v37, %v4013_v52  ;;  %v12467_v29 = vsub.f32 %v4060_v51, %v12427_v14  ;;  %v17200_v16 = vld [vmem:[#allocation214_spill] sm:$0xff]  ;;  %v17211_v55 = vld [vmem:[#allocation416_spill] sm:$0xff]  ;;  %v17442_v20 = vld [vmem:[#allocation227_spill] sm:$0xff] }
 0x3d2   :  { %17193 = vst [vmem:[#allocation164_spill] sm:$0xff] %v12456_v30  ;;  %17194 = vst [vmem:[#allocation304_spill] sm:$0xff] %v12462_v45  ;;  %v6664_v46 = vpop.eup %6663  ;;  %v12470_v26 = vmul.f32 1.442695, %v12038_v33  ;;  %v17198_v4 = vmax.f32 %v17196_v39, %v17197_v47  ;;  %v17201_v53 = vmax.f32 %v17199_v34, %v17200_v16  ;;  %v12481_v59 = vmul.f32 1.442695, %v17202_v62 }
 0x3d3   :  { %17195 = vst [vmem:[#allocation190_spill] sm:$0xff] %v12467_v29  ;;  %6667 = vpow2.f32 %v1916_v22  ;;  %v4500_v8 = vmul.f32 1.442695, %v12464_v15  ;;  %v12484_v50 = vmul.f32 %v6664_v46, %v4307_v35  ;;  %v12487_v33 = vsub.f32 %v4061_v21, %v12429_v44  ;;  %v17209_v35 = vld [vmem:[#allocation114_spill] sm:$0xff]  ;;  %v17213_v43 = vld [vmem:[#allocation276_spill] sm:$0xff]  ;;  %v17217_v21 = vld [vmem:[#allocation213_spill] sm:$0xff] }
 0x3d4   :  { %v2197_v36 = vsub.f32 %v17198_v4, %v17186_v40  ;;  %v2773_v19 = vsub.f32 %v17201_v53, %v17186_v40  ;;  %17203 = vst [vmem:[#allocation194_spill] sm:$0xff] %v12481_v59  ;;  %v12491_v0 = vmul.f32 %v17205_v23, %v11861_v28  ;;  %v12494_v38 = vmul.f32 1.442695, %v17207_v3  ;;  %v17214_v52 = vld [vmem:[#allocation462_spill] sm:$0xff]  ;;  %v17215_v25 = vld [vmem:[#allocation284_spill] sm:$0xff]  ;;  %v17219_v47 = vld [vmem:[#allocation455_spill] sm:$0xff] }
 0x3d5   :  { %17204 = vst [vmem:[#allocation547_spill] sm:$0xff] %v12487_v33  ;;  %vm4450_vm6 = vcmp.gt.f32.partialorder %v12431_v63, 0.0  ;;  %6669 = vpow2.f32 %v4500_v8  ;;  %v4504_v11 = vmul.f32 1.442695, %v12484_v50  ;;  %v12500_v48 = vmul.f32 %v17209_v35, %v17208_v1  ;;  %v17216_v22 = vld [vmem:[#allocation92_spill] sm:$0xff]  ;;  %v17221_v34 = vld [vmem:[#allocation414_spill] sm:$0xff] }
 0x3d6   :  { %17206 = vst [vmem:[#allocation530_spill] sm:$0xff] %v12491_v0  ;;  %v2252_v37 = vmul.f32 1.442695, %v2197_v36  ;;  %v2828_v42 = vmul.f32 1.442695, %v2773_v19  ;;  %v17212_v28 = vmax.f32 %v17210_v27, %v17211_v55  ;;  %v12508_v51 = vmul.f32 %v17214_v52, %v17213_v43  ;;  %v17220_v36 = vld [vmem:[#allocation306_spill] sm:$0xff] }
 0x3d7   :  { %v17218_v46 = vmax.f32 %v17216_v22, %v17217_v21  ;;  %v12516_v4 = vmul.f32 %v17219_v47, %v17208_v1  ;;  %v17222_v16 = vmax.f32 %v17220_v36, %v17221_v34  ;;  %v17224_v3 = vld [vmem:[#allocation97_spill] sm:$0xff]  ;;  %vm4449_vm7 = vcmp.gt.f32.partialorder %v12464_v15, 0.0  ;;  %v17228_v22 = vld [vmem:[#allocation506_spill] sm:$0xff]  ;;  %v17255_v23 = vld [vmem:[#allocation552_spill] sm:$0xff] }
 0x3d8   :  { %6671 = vpow2.f32 %v2252_v37  ;;  %v3637_v32 = vsub.f32 %v17212_v28, %v17186_v40  ;;  %v17223_v40 = vld [vmem:[#allocation116_spill] sm:$0xff]  ;;  %v17225_v37 = vld [vmem:[#allocation217_spill] sm:$0xff]  ;;  %vm4451_vm8 = vcmp.gt.f32.partialorder %v12484_v50, 0.0  ;;  %v17242_v14 = vld [vmem:[#allocation222_spill] sm:$0xff] }
 0x3d9   :  { %v1860_v39 = vsub.f32 %v17218_v46, %v17215_v25  ;;  %6673 = vpow2.f32 %v4504_v11  ;;  %v2772_v53 = vsub.f32 %v17222_v16, %v17215_v25  ;;  %v12524_v19 = vmul.f32 %v17223_v40, %v17213_v43  ;;  %v17227_v28 = vld [vmem:[#allocation17_spill] sm:$0xff] }
 0x3da   :  { %6675 = vpow2.f32 %v2828_v42  ;;  %v3692_v62 = vmul.f32 1.442695, %v3637_v32  ;;  %v17226_v11 = vmax.f32 %v17224_v3, %v17225_v37  ;;  %v17229_v21 = vmax.f32 %v17227_v28, %v17228_v22  ;;  %v17230_v36 = vld [vmem:[#allocation465_spill] sm:$0xff]  ;;  %v17234_v32 = vld [vmem:[#allocation312_spill] sm:$0xff]  ;;  %v6666_v61 = vpop.eup %6665  ;;  %v17238_v28 = vld [vmem:[#allocation95_spill] sm:$0xff] }
 0x3db   :  { %v1914_v8 = vmul.f32 1.442695, %v1860_v39  ;;  %v2826_v55 = vmul.f32 1.442695, %v2772_v53  ;;  %v17231_v34 = vld [vmem:[#allocation305_spill] sm:$0xff]  ;;  %v12541_v39 = vmul.f32 %v17234_v32, %v17213_v43  ;;  %v17235_v37 = vld [vmem:[#allocation100_spill] sm:$0xff] }
 0x3dc   :  { %v3636_v27 = vsub.f32 %v17226_v11, %v17215_v25  ;;  %v4068_v46 = vsub.f32 %v17229_v21, %v17215_v25  ;;  %v17232_v16 = vld [vmem:[#allocation413_spill] sm:$0xff]  ;;  %6677 = vpow2.f32 %v3692_v62  ;;  %v17239_v25 = vld [vmem:[#allocation494_spill] sm:$0xff]  ;;  %v5778_v44 = vadd.f32 -1.0, %v6666_v61 }
 0x3dd   :  { %v17233_v33 = vmax.f32 %v17231_v34, %v17232_v16  ;;  %v17236_v53 = vld [vmem:[#allocation221_spill] sm:$0xff]  ;;  %v17240_v22 = vmax.f32 %v17238_v28, %v17239_v25  ;;  %6679 = vpow2.f32 %v1914_v8  ;;  %v6668_v34 = vpop.eup %6667  ;;  %v17241_v16 = vld [vmem:[#allocation103_spill] sm:$0xff]  ;;  %v17244_v28 = vld [vmem:[#allocation16_spill] sm:$0xff] }
 0x3de   :  { %v3690_v3 = vmul.f32 1.442695, %v3636_v27  ;;  %v17237_v11 = vmax.f32 %v17235_v37, %v17236_v53  ;;  %6681 = vpow2.f32 %v2826_v55  ;;  %v17243_v37 = vmax.f32 %v17241_v16, %v17242_v14  ;;  %v17245_v8 = vld [vmem:[#allocation119_spill] sm:$0xff]  ;;  %v17246_v55 = vld [vmem:[#allocation489_spill] sm:$0xff] }
 0x3df   :  { %v1862_v42 = vsub.f32 %v17233_v33, %v17230_v36  ;;  %v3206_v21 = vsub.f32 %v17240_v22, %v17230_v36  ;;  %v4122_v33 = vmul.f32 1.442695, %v4068_v46  ;;  %v2005_v61 = vmul.f32 %v6668_v34, %v17244_v28  ;;  %v17248_v25 = vld [vmem:[#allocation317_spill] sm:$0xff]  ;;  %v17252_v16 = vld [vmem:[#allocation447_spill] sm:$0xff] }
 0x3e0   :  { %v2774_v56 = vsub.f32 %v17237_v11, %v17230_v36  ;;  %v3638_v53 = vsub.f32 %v17243_v37, %v17230_v36  ;;  %v4642_v11 = vsel %vm4450_vm6, %v12431_v63, %v5778_v44  ;;  %6683 = vpow2.f32 %v3690_v3  ;;  %v17250_v36 = vld [vmem:[#allocation147_spill] sm:$0xff]  ;;  %v6670_v63 = vpop.eup %6669  ;;  %v17254_v3 = vld [vmem:[#allocation538_spill] sm:$0xff] }
 0x3e1   :  { %v1918_v43 = vmul.f32 1.442695, %v1862_v42  ;;  %v3262_v27 = vmul.f32 1.442695, %v3206_v21  ;;  %v12562_v46 = vmul.f32 %v17245_v8, %v17208_v1  ;;  %4810 = vmatprep.mubr.f32.mxu1 %v4642_v11  ;;  %6685 = vpow2.f32 %v4122_v33  ;;  %v17247_v42 = vld [vmem:[#allocation173_spill] sm:$0xff]  ;;  %v17251_v21 = vld [vmem:[#allocation364_spill] sm:$0xff] }
 0x3e2   :  { %v2830_v62 = vmul.f32 1.442695, %v2774_v56  ;;  %v3694_v56 = vmul.f32 1.442695, %v3638_v53  ;;  %v17249_v22 = vmax.f32 %v17247_v42, %v17248_v25  ;;  %v17253_v37 = vmax.f32 %v17251_v21, %v17252_v16  ;;  %v17257_v11 = vld [vmem:[#allocation350_spill] sm:$0xff]  ;;  %v17258_v33 = vld [vmem:[#allocation365_spill] sm:$0xff]  ;;  %v6672_v6 = vpop.eup %6671 }
 0x3e3   :  { %6687 = vpow2.f32 %v1918_v43  ;;  %v17256_v1 = vmax.f32 %v17254_v3, %v17255_v23  ;;  %v17259_v53 = vld [vmem:[#allocation448_spill] sm:$0xff]  ;;  %v17261_v42 = vld [vmem:[#allocation165_spill] sm:$0xff]  ;;  %v5777_v21 = vadd.f32 -1.0, %v6670_v63  ;;  %v2341_v30 = vadd.f32 %v6672_v6, %v6668_v34  ;;  %v17268_v34 = vld [vmem:[#allocation14_spill] sm:$0xff] }
 0x3e4   :  { %v1882_v14 = vsub.f32 %v17249_v22, %v17246_v55  ;;  %v1883_v44 = vsub.f32 %v17253_v37, %v17250_v36  ;;  %v17260_v59 = vmax.f32 %v17258_v33, %v17259_v53  ;;  %v17262_v25 = vld [vmem:[#allocation308_spill] sm:$0xff]  ;;  %6689 = vpow2.f32 %v2830_v62  ;;  %v6674_v37 = vpop.eup %6673  ;;  %v17265_v53 = vld [vmem:[#allocation177_spill] sm:$0xff] }
 0x3e5   :  { %v2218_v0 = vsub.f32 %v17256_v1, %v17246_v55  ;;  %v17263_v22 = vmax.f32 %v17261_v42, %v17262_v25  ;;  %v2533_v23 = vmul.f32 %v6672_v6, %v17264_v41  ;;  %6691 = vpow2.f32 %v3262_v27  ;;  %v6676_v1 = vpop.eup %6675  ;;  %v17266_v42 = vld [vmem:[#allocation319_spill] sm:$0xff] }
 0x3e6   :  { %v2793_v29 = vsub.f32 %v17260_v59, %v17257_v11  ;;  %v1958_v16 = vmul.f32 1.442695, %v1882_v14  ;;  %v1960_v43 = vmul.f32 1.442695, %v1883_v44  ;;  %v4641_v59 = vsel %vm4449_vm7, %v12464_v15, %v5777_v21  ;;  %v6678_v6 = vpop.eup %6677 }
 0x3e7   :  { %v2794_v45 = vsub.f32 %v17263_v22, %v17246_v55  ;;  %v2294_v3 = vmul.f32 1.442695, %v2218_v0  ;;  %v5779_v33 = vadd.f32 -1.0, %v6674_v37  ;;  %6693 = vpow2.f32 %v3694_v56  ;;  %4811 = vmatmul.mubr.f32.gmra.mrb[66].mxu1 %v4641_v59  ;;  %v6680_v56 = vpop.eup %6679  ;;  %v17269_v37 = vld [vmem:[#allocation15_spill] sm:$0xff] }
 0x3e8   :  { %v17267_v63 = vmax.f32 %v17265_v53, %v17266_v42  ;;  %v2581_v14 = vadd.f32 %v2533_v23, %v2005_v61  ;;  %v2917_v44 = vadd.f32 %v6676_v1, %v2341_v30  ;;  %v2965_v25 = vmul.f32 %v6676_v1, %v17268_v34  ;;  %v6682_v30 = vpop.eup %6681  ;;  %v17270_v23 = vld [vmem:[#allocation293_spill] sm:$0xff] }
 0x3e9   :  { %6695 = vpow2.f32 %v1958_v16  ;;  %v4643_v0 = vsel %vm4451_vm8, %v12484_v50, %v5779_v33  ;;  %v2868_v15 = vmul.f32 1.442695, %v2793_v29  ;;  %v2870_v27 = vmul.f32 1.442695, %v2794_v45 }
 0x3ea   :  { %v2795_v62 = vsub.f32 %v17267_v63, %v17250_v36  ;;  %6697 = vpow2.f32 %v1960_v43  ;;  %6048 = vmatmul.mubr.f32.vlgmr.msra.gmra.mrb[96].mxu0 %v4643_v0  ;;  %v3013_v22 = vadd.f32 %v2965_v25, %v2581_v14  ;;  %v3349_v21 = vadd.f32 %v17209_v35, %v2917_v44  ;;  %v6684_v50 = vpop.eup %6683 }
 0x3eb   :  { %v3829_v59 = vmul.f32 %v6678_v6, %v17269_v37  ;;  %6699 = vpow2.f32 %v2294_v3  ;;  %v2004_v61 = vmul.f32 %v6680_v56, %v17268_v34  ;;  %v2340_v16 = vadd.f32 %v6680_v56, %v17219_v47  ;;  %v6686_v33 = vpop.eup %6685 }
 0x3ec   :  { %6701 = vpow2.f32 %v17270_v23  ;;  %v2872_v1 = vmul.f32 1.442695, %v2795_v62  ;;  %v3445_v29 = vadd.f32 %v12500_v48, %v3013_v22  ;;  %v3781_v45 = vadd.f32 %v6678_v6, %v3349_v21 }
 0x3ed   :  { %v2964_v43 = vmul.f32 %v6682_v30, %v17269_v37  ;;  %6703 = vpow2.f32 %v2868_v15  ;;  %v2580_v35 = vadd.f32 %v12516_v4, %v2004_v61  ;;  %v2916_v53 = vadd.f32 %v6682_v30, %v2340_v16  ;;  %v6688_v42 = vpop.eup %6687  ;;  %v17275_v16 = vld [vmem:[#allocation357_spill] sm:$0xff] }
 0x3ee   :  { %v3828_v3 = vmul.f32 %v6684_v50, %v17244_v28  ;;  %6705 = vpow2.f32 %v2870_v27  ;;  %v3877_v63 = vadd.f32 %v3829_v59, %v3445_v29  ;;  %v4213_v47 = vadd.f32 %v17214_v52, %v3781_v45  ;;  %v6690_v14 = vpop.eup %6689  ;;  %v17271_v27 = vld [vmem:[#allocation542_spill] sm:$0xff]  ;;  %v17272_v52 = vld [vmem:[#allocation555_spill] sm:$0xff] }
 0x3ef   :  { %v4260_v62 = vmul.f32 %v6686_v33, %v17264_v41  ;;  %6707 = vpow2.f32 %v2872_v1  ;;  %v3012_v48 = vadd.f32 %v2964_v43, %v2580_v35  ;;  %v3348_v44 = vadd.f32 %v17223_v40, %v2916_v53  ;;  %v6692_v4 = vpop.eup %6691  ;;  %v17279_v35 = vld [vmem:[#allocation43_spill] sm:$0xff] }
 0x3f0   :  { %v2006_v25 = vmul.f32 %v6688_v42, %v17269_v37  ;;  %v2342_v6 = vadd.f32 %v6688_v42, %v17234_v32  ;;  %v4309_v0 = vadd.f32 %v12508_v51, %v3877_v63  ;;  %6709 = vrcp.f32 %v4213_v47 }
 0x3f1   :  { %v2966_v15 = vmul.f32 %v6690_v14, %v17244_v28  ;;  %v17273_v56 = vmax.f32 %v17271_v27, %v17272_v52  ;;  %v6694_v21 = vpop.eup %6693  ;;  %v3444_v59 = vadd.f32 %v12524_v19, %v3012_v48  ;;  %v3780_v30 = vadd.f32 %v6684_v50, %v3348_v44  ;;  %v17278_v50 = vld [vmem:[#allocation44_spill] sm:$0xff]  ;;  %v17285_v44 = vld [vmem:[#allocation366_spill] sm:$0xff] }
 0x3f2   :  { %v2582_v40 = vadd.f32 %v12541_v39, %v2006_v25  ;;  %v2918_v37 = vadd.f32 %v6690_v14, %v2342_v6  ;;  %v3398_v32 = vmul.f32 %v6692_v4, %v17264_v41  ;;  %v3830_v51 = vmul.f32 %v6694_v21, %v17268_v34  ;;  %v17280_v41 = vld [vmem:[#allocation178_spill] sm:$0xff]  ;;  %v17281_v34 = vld [vmem:[#allocation320_spill] sm:$0xff]  ;;  %v17286_v25 = vld [vmem:[#allocation449_spill] sm:$0xff] }
 0x3f3   :  { %v3227_v22 = vsub.f32 %v17273_v56, %v17250_v36  ;;  %v12618_v61 = vpop.eup %6695  ;;  %6711 = vpow2.f32 %v17275_v16  ;;  %v3876_v1 = vadd.f32 %v3828_v3, %v3444_v59  ;;  %v4212_v29 = vadd.f32 %v6686_v33, %v3780_v30  ;;  %v17289_v27 = vld [vmem:[#allocation316_spill] sm:$0xff]  ;;  %v17291_v59 = vld [vmem:[#allocation543_spill] sm:$0xff] }
 0x3f4   :  { %17274 = vst [vmem:[#allocation536_spill] sm:$0xff] %v12618_v61  ;;  %v12623_v23 = vpop.eup %6697  ;;  %v3014_v45 = vadd.f32 %v2966_v15, %v2582_v40  ;;  %v3350_v43 = vadd.f32 %v6692_v4, %v2918_v37  ;;  %v2026_v39 = vmul.f32 %v12618_v61, %v17278_v50  ;;  %v17282_v42 = vmax.f32 %v17280_v41, %v17281_v34  ;;  %v17288_v15 = vld [vmem:[#allocation168_spill] sm:$0xff] }
 0x3f5   :  { %v3304_v28 = vmul.f32 1.442695, %v3227_v22  ;;  %17276 = vst [vmem:[#allocation397_spill] sm:$0xff] %v12623_v23  ;;  %v12625_v19 = vpop.eup %6699  ;;  %v2027_v53 = vmul.f32 %v12623_v23, %v17279_v35  ;;  %v4308_v3 = vadd.f32 %v4260_v62, %v3876_v1  ;;  %v17287_v6 = vmax.f32 %v17285_v44, %v17286_v25  ;;  %v17292_v30 = vld [vmem:[#allocation556_spill] sm:$0xff] }
 0x3f6   :  { %17277 = vst [vmem:[#allocation57_spill] sm:$0xff] %v12625_v19  ;;  %v3657_v63 = vsub.f32 %v17282_v42, %v17257_v11  ;;  %v12635_v47 = vpop.eup %6701  ;;  %v3446_v33 = vadd.f32 %v3398_v32, %v3014_v45  ;;  %v3782_v14 = vadd.f32 %v6694_v21, %v3350_v43  ;;  %v17290_v52 = vmax.f32 %v17288_v15, %v17289_v27  ;;  %v17302_v15 = vld [vmem:[#allocation101_spill] sm:$0xff]  ;;  %v17303_v27 = vld [vmem:[#allocation107_spill] sm:$0xff] }
 0x3f7   :  { %6713 = vpow2.f32 %v3304_v28  ;;  %17283 = vst [vmem:[#allocation500_spill] sm:$0xff] %v12635_v47  ;;  %v12637_v48 = vpop.eup %6703  ;;  %v3658_v4 = vsub.f32 %v17287_v6, %v17246_v55  ;;  %v17293_v62 = vmax.f32 %v17291_v59, %v17292_v30  ;;  %v17295_v55 = vld [vmem:[#allocation443_spill] sm:$0xff]  ;;  %v2433_v28 = vpop.permute.xlu0 %2432  ;;  %v17307_v30 = vld [vmem:[#allocation509_spill] sm:$0xff] }
 0x3f8   :  { %6715 = vrcp.f32 %v4212_v29  ;;  %17284 = vst [vmem:[#allocation195_spill] sm:$0xff] %v12637_v48  ;;  %v3659_v56 = vsub.f32 %v17290_v52, %v17250_v36  ;;  %v3732_v22 = vmul.f32 1.442695, %v3657_v63  ;;  %v12651_v37 = vpop.eup %6705  ;;  %v3878_v21 = vadd.f32 %v3830_v51, %v3446_v33  ;;  %v17297_v36 = vld [vmem:[#allocation42_spill] sm:$0xff]  ;;  %v17298_v51 = vld [vmem:[#allocation356_spill] sm:$0xff]  ;;  %v17299_v63 = vld [vmem:[#allocation349_spill] sm:$0xff] }
 0x3f9   :  { %v4089_v40 = vsub.f32 %v17293_v62, %v17257_v11  ;;  %17294 = vst [vmem:[#allocation189_spill] sm:$0xff] %v12651_v37  ;;  %v4214_v32 = vadd.f32 %v17245_v8, %v3782_v14  ;;  %v2985_v16 = vmul.f32 %v12637_v48, %v17279_v35  ;;  %6717 = vpow2.f32 %v17295_v55  ;;  %v12657_v1 = vpop.eup %6707  ;;  %v17300_v14 = vld [vmem:[#allocation152_spill] sm:$0xff]  ;;  %v17304_v52 = vld [vmem:[#allocation237_spill] sm:$0xff]  ;;  %v17306_v59 = vld [vmem:[#allocation495_spill] sm:$0xff] }
 0x3fa   :  { %17296 = vst [vmem:[#allocation151_spill] sm:$0xff] %v12657_v1  ;;  %v2986_v29 = vmul.f32 %v12651_v37, %v17297_v36  ;;  %6719 = vpow2.f32 %v3732_v22  ;;  %v3734_v45 = vmul.f32 1.442695, %v3658_v4  ;;  %v3736_v43 = vmul.f32 1.442695, %v3659_v56  ;;  %v6710_v34 = vpop.eup %6709 }
 0x3fb   :  { %v4310_v11 = vadd.f32 %v12562_v46, %v3878_v21  ;;  %6721 = vrcp.f32 %v4214_v32  ;;  %v2987_v8 = vmul.f32 %v12657_v1, %v17278_v50  ;;  %v3033_v41 = vadd.f32 %v2985_v16, %v17298_v51  ;;  %v17310_v21 = vld [vmem:[#allocation232_spill] sm:$0xff] }
 0x3fc   :  { %6723 = vpow2.f32 %v3734_v45  ;;  %v4164_v42 = vmul.f32 1.442695, %v4089_v40  ;;  %v2487_v33 = vsel %vm1277_vm2, %v2433_v28, %v17299_v63  ;;  %v2503_v44 = vsel %vm1277_vm2, %v17300_v14, %v2433_v28  ;;  %v17363_v1 = vld [vmem:[#allocation236_spill] sm:$0xff] }
 0x3fd   :  { %v12671_v25 = vmul.f32 %v6710_v34, %v4309_v0  ;;  %6725 = vpow2.f32 %v3736_v43  ;;  %v2554_v46 = vmul.f32 %v12625_v19, %v2503_v44  ;;  %v2555_v6 = vmul.f32 %v12635_v47, %v2487_v33  ;;  %v12675_v4 = vpop.eup %6711  ;;  %v17309_v0 = vld [vmem:[#allocation105_spill] sm:$0xff] }
 0x3fe   :  { %17301 = vst [vmem:[#allocation257_spill] sm:$0xff] %v12675_v4  ;;  %6727 = vpow2.f32 %v4164_v42  ;;  %v17305_v56 = vmax.f32 %v17303_v27, %v17304_v52  ;;  %v17308_v62 = vmax.f32 %v17306_v59, %v17307_v30  ;;  %v17311_v32 = vmax.f32 %v17309_v0, %v17310_v21  ;;  %v17313_v30 = vld [vmem:[#allocation419_spill] sm:$0xff] }
 0x3ff   :  { %6729 = vpow2.f32 %v12223_v9  ;;  %v4508_v55 = vmul.f32 1.442695, %v12671_v25  ;;  %v2602_v28 = vadd.f32 %v2554_v46, %v2026_v39  ;;  %v2603_v45 = vadd.f32 %v2555_v6, %v2027_v53  ;;  %v17314_v39 = vld [vmem:[#allocation128_spill] sm:$0xff]  ;;  %v17322_v21 = vld [vmem:[#allocation163_spill] sm:$0xff] }
 0x400   :  { %v1864_v22 = vsub.f32 %v17305_v56, %v17302_v15  ;;  %v2200_v40 = vsub.f32 %v17308_v62, %v17302_v15  ;;  %v2776_v16 = vsub.f32 %v17311_v32, %v17302_v15  ;;  %v3417_v51 = vmul.f32 %v12675_v4, %v2487_v33  ;;  %v17316_v62 = vld [vmem:[#allocation313_spill] sm:$0xff] }
 0x401   :  { %v12691_v43 = vpop.eup %6713  ;;  %6731 = vpow2.f32 %v4508_v55  ;;  %v3034_v27 = vadd.f32 %v2986_v29, %v2602_v28  ;;  %v3035_v52 = vadd.f32 %v2987_v8, %v2603_v45  ;;  %v12699_v53 = vmul.f32 %v17314_v39, %v17313_v30  ;;  %v17317_v29 = vld [vmem:[#allocation421_spill] sm:$0xff]  ;;  %v17324_v45 = vld [vmem:[#allocation318_spill] sm:$0xff] }
 0x402   :  { %17312 = vst [vmem:[#allocation76_spill] sm:$0xff] %v12691_v43  ;;  %v1922_v34 = vmul.f32 1.442695, %v1864_v22  ;;  %v2258_v42 = vmul.f32 1.442695, %v2200_v40  ;;  %v6716_v14 = vpop.eup %6715  ;;  %v3419_v56 = vmul.f32 %v12691_v43, %v2503_v44  ;;  %v3465_v9 = vadd.f32 %v3417_v51, %v3033_v41 }
 0x403   :  { %v2834_v63 = vmul.f32 1.442695, %v2776_v16  ;;  %v12695_v59 = vmul.f32 %v6716_v14, %v4308_v3  ;;  %v12701_v46 = vpop.eup %6717  ;;  %v3466_v6 = vadd.f32 %v12270_v54, %v3034_v27  ;;  %v17318_v8 = vmax.f32 %v17316_v62, %v17317_v29  ;;  %v17320_v3 = vld [vmem:[#allocation446_spill] sm:$0xff]  ;;  %v17328_v14 = vld [vmem:[#allocation231_spill] sm:$0xff] }
 0x404   :  { %6733 = vpow2.f32 %v1922_v34  ;;  %17315 = vst [vmem:[#allocation184_spill] sm:$0xff] %v12701_v46  ;;  %v3467_v22 = vadd.f32 %v3419_v56, %v3035_v52  ;;  %v12708_v0 = vpop.eup %6719  ;;  %v12711_v41 = vmul.f32 1.442695, %v17320_v3  ;;  %v12714_v32 = vmul.f32 1.442695, %v17322_v21  ;;  %v17326_v34 = vld [vmem:[#allocation98_spill] sm:$0xff] }
 0x405   :  { %6735 = vpow2.f32 %v2258_v42  ;;  %v3640_v40 = vsub.f32 %v17318_v8, %v17302_v15  ;;  %17319 = vst [vmem:[#allocation70_spill] sm:$0xff] %v12708_v0  ;;  %v4506_v16 = vmul.f32 1.442695, %v12695_v59  ;;  %v6722_v55 = vpop.eup %6721  ;;  %vm4453_vm9 = vcmp.gt.f32.partialorder %v12671_v25, 0.0  ;;  %v17325_v15 = vld [vmem:[#allocation327_spill] sm:$0xff]  ;;  %v17327_v42 = vld [vmem:[#allocation104_spill] sm:$0xff] }
 0x406   :  { %17321 = vst [vmem:[#allocation468_spill] sm:$0xff] %v12711_v41  ;;  %17323 = vst [vmem:[#allocation150_spill] sm:$0xff] %v12714_v32  ;;  %6737 = vpow2.f32 %v2834_v63  ;;  %v3849_v54 = vmul.f32 %v12708_v0, %v17278_v50  ;;  %v12722_v51 = vmul.f32 %v17325_v15, %v17324_v45  ;;  %v17329_v27 = vmax.f32 %v17327_v42, %v17328_v14  ;;  %v12728_v56 = vpop.eup %6723  ;;  %v17331_v62 = vld [vmem:[#allocation463_spill] sm:$0xff]  ;;  %v17333_v8 = vld [vmem:[#allocation418_spill] sm:$0xff] }
 0x407   :  { %v3698_v28 = vmul.f32 1.442695, %v3640_v40  ;;  %17330 = vst [vmem:[#allocation73_spill] sm:$0xff] %v12728_v56  ;;  %6739 = vpow2.f32 %v4506_v16  ;;  %v12730_v63 = vmul.f32 %v6722_v55, %v4310_v11  ;;  %v12734_v29 = vmul.f32 %v17331_v62, %v17313_v30  ;;  %v17332_v50 = vld [vmem:[#allocation311_spill] sm:$0xff]  ;;  %v12740_v21 = vpop.eup %6725 }
 0x408   :  { %v1863_v52 = vsub.f32 %v17329_v27, %v17326_v34  ;;  %v17334_v40 = vmax.f32 %v17332_v50, %v17333_v8  ;;  %17335 = vst [vmem:[#allocation179_spill] sm:$0xff] %v12740_v21  ;;  %v3850_v42 = vmul.f32 %v12728_v56, %v17279_v35  ;;  %v3897_v14 = vadd.f32 %v3849_v54, %v3465_v9  ;;  %v12744_v16 = vpop.eup %6727  ;;  %v17338_v35 = vld [vmem:[#allocation469_spill] sm:$0xff] }
 0x409   :  { %6741 = vpow2.f32 %v3698_v28  ;;  %17336 = vst [vmem:[#allocation522_spill] sm:$0xff] %v12744_v16  ;;  %v4510_v11 = vmul.f32 1.442695, %v12730_v63  ;;  %v3851_v55 = vmul.f32 %v12740_v21, %v17297_v36  ;;  %v4282_v0 = vmul.f32 %v12701_v46, %v2487_v33  ;;  %v12750_v50 = vpop.eup %6729  ;;  %v17340_v36 = vld [vmem:[#allocation109_spill] sm:$0xff]  ;;  %v17341_v28 = vld [vmem:[#allocation242_spill] sm:$0xff]  ;;  %v17348_v46 = vld [vmem:[#allocation588_spill] sm:$0xff] }
 0x40a   :  { %v2775_v3 = vsub.f32 %v17334_v40, %v17326_v34  ;;  %v1920_v27 = vmul.f32 1.442695, %v1863_v52  ;;  %17337 = vst [vmem:[#allocation146_spill] sm:$0xff] %v12750_v50  ;;  %v3898_v8 = vadd.f32 %v3850_v42, %v3466_v6  ;;  %v4281_v40 = vmul.f32 %v12744_v16, %v2503_v44  ;;  %v17344_v6 = vld [vmem:[#allocation513_spill] sm:$0xff] }
 0x40b   :  { %v12755_v9 = vmul.f32 %v17338_v35, %v17324_v45  ;;  %vm4452_vm10 = vcmp.gt.f32.partialorder %v12695_v59, 0.0  ;;  %v12758_v54 = vadd.f32 %v3851_v55, %v3467_v22  ;;  %v17342_v33 = vmax.f32 %v17340_v36, %v17341_v28  ;;  %v17350_v22 = vld [vmem:[#allocation417_spill] sm:$0xff] }
 0x40c   :  { %v2832_v4 = vmul.f32 1.442695, %v2775_v3  ;;  %6743 = vpow2.f32 %v1920_v27  ;;  %v17343_v3 = vld [vmem:[#allocation497_spill] sm:$0xff]  ;;  %v6732_v27 = vpop.eup %6731  ;;  %v12768_v16 = vadd.f32 %v4281_v40, %v3897_v14  ;;  %v12770_v48 = vadd.f32 %v4282_v0, %v3898_v8  ;;  %v17354_v0 = vld [vmem:[#allocation108_spill] sm:$0xff] }
 0x40d   :  { %6745 = vpow2.f32 %v4510_v11  ;;  %17339 = vst [vmem:[#allocation206_spill] sm:$0xff] %v12758_v54  ;;  %v3639_v52 = vsub.f32 %v17342_v33, %v17326_v34  ;;  %v17345_v42 = vmax.f32 %v17343_v3, %v17344_v6  ;;  %v17349_v11 = vld [vmem:[#allocation310_spill] sm:$0xff]  ;;  %v5781_v54 = vadd.f32 -1.0, %v6732_v27  ;;  %v17353_v3 = vld [vmem:[#allocation20_spill] sm:$0xff] }
 0x40e   :  { %17346 = vst [vmem:[#allocation99_spill] sm:$0xff] %v12768_v16  ;;  %17347 = vst [vmem:[#allocation287_spill] sm:$0xff] %v12770_v48  ;;  %6747 = vpow2.f32 %v2832_v4  ;;  %v17351_v55 = vmax.f32 %v17349_v11, %v17350_v22  ;;  %v6734_v56 = vpop.eup %6733  ;;  %v17352_v33 = vld [vmem:[#allocation394_spill] sm:$0xff]  ;;  %v17355_v4 = vld [vmem:[#allocation239_spill] sm:$0xff]  ;;  %vm4454_vm11 = vcmp.gt.f32.partialorder %v12730_v63, 0.0 }
 0x40f   :  { %v4071_v44 = vsub.f32 %v17345_v42, %v17326_v34  ;;  %v3696_v36 = vmul.f32 1.442695, %v3639_v52  ;;  %v12778_v43 = vmul.f32 %v17352_v33, %v17324_v45  ;;  %v6736_v34 = vpop.eup %6735  ;;  %v2008_v14 = vmul.f32 %v6734_v56, %v17353_v3  ;;  %v17357_v42 = vld [vmem:[#allocation496_spill] sm:$0xff]  ;;  %v17361_v16 = vld [vmem:[#allocation18_spill] sm:$0xff] }
 0x410   :  { %v1865_v21 = vsub.f32 %v17351_v55, %v17348_v46  ;;  %v17356_v8 = vmax.f32 %v17354_v0, %v17355_v4  ;;  %v17358_v11 = vld [vmem:[#allocation512_spill] sm:$0xff]  ;;  %v6738_v52 = vpop.eup %6737  ;;  %v4645_v45 = vsel %vm4453_vm9, %v12671_v25, %v5781_v54  ;;  %v17360_v55 = vld [vmem:[#allocation314_spill] sm:$0xff] }
 0x411   :  { %v4128_v28 = vmul.f32 1.442695, %v4071_v44  ;;  %v17359_v22 = vmax.f32 %v17357_v42, %v17358_v11  ;;  %v2344_v44 = vadd.f32 %v6736_v34, %v6734_v56  ;;  %6749 = vpow2.f32 %v3696_v36  ;;  %4815 = vmatprep.mubr.f32.mxu1 %v4645_v45  ;;  %v6740_v48 = vpop.eup %6739  ;;  %v17365_v36 = vld [vmem:[#allocation479_spill] sm:$0xff]  ;;  %v17366_v45 = vld [vmem:[#allocation345_spill] sm:$0xff] }
 0x412   :  { %v1924_v40 = vmul.f32 1.442695, %v1865_v21  ;;  %v2777_v6 = vsub.f32 %v17356_v8, %v17348_v46  ;;  %v2536_v21 = vmul.f32 %v6736_v34, %v17360_v55  ;;  %v2968_v0 = vmul.f32 %v6738_v52, %v17361_v16 }
 0x413   :  { %v3209_v27 = vsub.f32 %v17359_v22, %v17348_v46  ;;  %6751 = vpow2.f32 %v4128_v28  ;;  %v2920_v11 = vadd.f32 %v6738_v52, %v2344_v44  ;;  %v17362_v22 = vld [vmem:[#allocation106_spill] sm:$0xff]  ;;  %v6742_v37 = vpop.eup %6741  ;;  %v5780_v56 = vadd.f32 -1.0, %v6740_v48  ;;  %v17370_v52 = vld [vmem:[#allocation19_spill] sm:$0xff] }
 0x414   :  { %v2836_v4 = vmul.f32 1.442695, %v2777_v6  ;;  %v2584_v42 = vadd.f32 %v2536_v21, %v2008_v14  ;;  %6753 = vpow2.f32 %v1924_v40  ;;  %v17364_v25 = vmax.f32 %v17362_v22, %v17363_v1  ;;  %v17367_v28 = vld [vmem:[#allocation182_spill] sm:$0xff]  ;;  %v17368_v6 = vld [vmem:[#allocation328_spill] sm:$0xff] }
 0x415   :  { %v3268_v8 = vmul.f32 1.442695, %v3209_v27  ;;  %v12801_v34 = vmul.f32 %v17365_v36, %v17313_v30  ;;  %v17369_v27 = vmax.f32 %v17367_v28, %v17368_v6  ;;  %v3352_v40 = vadd.f32 %v17314_v39, %v2920_v11  ;;  %v17371_v30 = vld [vmem:[#allocation544_spill] sm:$0xff] }
 0x416   :  { %v3641_v54 = vsub.f32 %v17364_v25, %v17348_v46  ;;  %6755 = vpow2.f32 %v2836_v4  ;;  %v3016_v14 = vadd.f32 %v2968_v0, %v2584_v42  ;;  %v3832_v44 = vmul.f32 %v6742_v37, %v17370_v52  ;;  %v6744_v1 = vpop.eup %6743  ;;  %v17372_v4 = vld [vmem:[#allocation560_spill] sm:$0xff] }
 0x417   :  { %v1885_v47 = vsub.f32 %v17369_v27, %v17366_v45  ;;  %6757 = vpow2.f32 %v3268_v8  ;;  %v4644_v48 = vsel %vm4452_vm10, %v12695_v59, %v5780_v56  ;;  %v17373_v22 = vmax.f32 %v17371_v30, %v17372_v4  ;;  %v6746_v28 = vpop.eup %6745  ;;  %v17376_v56 = vld [vmem:[#allocation561_spill] sm:$0xff] }
 0x418   :  { %v3700_v46 = vmul.f32 1.442695, %v3641_v54  ;;  %4816 = vmatmul.mubr.f32.gmra.mrb[68].mxu1 %v4644_v48  ;;  %v3448_v0 = vadd.f32 %v12699_v53, %v3016_v14  ;;  %v3784_v39 = vadd.f32 %v6742_v37, %v3352_v40  ;;  %v2007_v42 = vmul.f32 %v6744_v1, %v17361_v16  ;;  %v6748_v11 = vpop.eup %6747  ;;  %v17374_v54 = vld [vmem:[#allocation441_spill] sm:$0xff]  ;;  %v12829_v40 = vpop.permute.xlu0 %2402 }
 0x419   :  { %v1964_v21 = vmul.f32 1.442695, %v1885_v47  ;;  %v2221_v25 = vsub.f32 %v17373_v22, %v17366_v45  ;;  %v2343_v8 = vadd.f32 %v6744_v1, %v17331_v62  ;;  %v5782_v6 = vadd.f32 -1.0, %v6746_v28  ;;  %v17375_v47 = vld [vmem:[#allocation545_spill] sm:$0xff]  ;;  %v17380_v22 = vld [vmem:[#allocation562_spill] sm:$0xff] }
 0x41a   :  { %6759 = vpow2.f32 %v3700_v46  ;;  %v17377_v27 = vmax.f32 %v17375_v47, %v17376_v56  ;;  %v3880_v30 = vadd.f32 %v3832_v44, %v3448_v0  ;;  %v4216_v4 = vadd.f32 %v17325_v15, %v3784_v39  ;;  %v17378_v44 = vld [vmem:[#allocation348_spill] sm:$0xff] }
 0x41b   :  { %v2300_v59 = vmul.f32 1.442695, %v2221_v25  ;;  %v2583_v48 = vadd.f32 %v12734_v29, %v2007_v42  ;;  %v2919_v53 = vadd.f32 %v6748_v11, %v2343_v8  ;;  %v4646_v37 = vsel %vm4454_vm11, %v12730_v63, %v5782_v6  ;;  %v6750_v1 = vpop.eup %6749  ;;  %v17379_v29 = vld [vmem:[#allocation546_spill] sm:$0xff]  ;;  %v17382_v63 = vld [vmem:[#allocation303_spill] sm:$0xff] }
 0x41c   :  { %v3230_v23 = vsub.f32 %v17377_v27, %v17374_v54  ;;  %v2967_v62 = vmul.f32 %v6748_v11, %v17370_v52  ;;  %6761 = vpow2.f32 %v1964_v21  ;;  %6050 = vmatprep.mubr.f32.mxu0 %v4646_v37  ;;  %v4312_v46 = vadd.f32 %v12722_v51, %v3880_v30  ;;  %v17384_v27 = vld [vmem:[#allocation120_spill] sm:$0xff]  ;;  %v17385_v30 = vld [vmem:[#allocation246_spill] sm:$0xff] }
 0x41d   :  { %6763 = vrcp.f32 %v4216_v4  ;;  %v3351_v15 = vadd.f32 %v17338_v35, %v2919_v53  ;;  %v17381_v25 = vmax.f32 %v17379_v29, %v17380_v22  ;;  %v6752_v0 = vpop.eup %6751  ;;  %v12838_v39 = vmul.f32 1.442695, %v17382_v63 }
 0x41e   :  { %v3310_v14 = vmul.f32 1.442695, %v3230_v23  ;;  %v3015_v21 = vadd.f32 %v2967_v62, %v2583_v48  ;;  %v3831_v23 = vmul.f32 %v6750_v1, %v17353_v3  ;;  %6765 = vpow2.f32 %v2300_v59  ;;  %v6754_v42 = vpop.eup %6753  ;;  %v17383_v59 = vld [vmem:[#allocation113_spill] sm:$0xff]  ;;  %v17387_v62 = vld [vmem:[#allocation498_spill] sm:$0xff] }
 0x41f   :  { %v4092_v28 = vsub.f32 %v17381_v25, %v17378_v44  ;;  %6767 = vpow2.f32 %v12262_v13  ;;  %v3783_v51 = vadd.f32 %v6750_v1, %v3351_v15  ;;  %v4263_v8 = vmul.f32 %v6752_v0, %v17360_v55  ;;  %v17388_v1 = vld [vmem:[#allocation514_spill] sm:$0xff] }
 0x420   :  { %v12847_v35 = vsel %vm1277_vm2, %v12829_v40, %v12244_v60  ;;  %v6756_v11 = vpop.eup %6755  ;;  %v3447_v6 = vadd.f32 %v12755_v9, %v3015_v21  ;;  %v2009_v47 = vmul.f32 %v6754_v42, %v17370_v52  ;;  %v2345_v56 = vadd.f32 %v6754_v42, %v17352_v33  ;;  %v17390_v21 = vld [vmem:[#allocation117_spill] sm:$0xff] }
 0x421   :  { %v17386_v13 = vmax.f32 %v17384_v27, %v17385_v30  ;;  %v6758_v48 = vpop.eup %6757  ;;  %v4215_v53 = vadd.f32 %v6752_v0, %v3783_v51  ;;  %v2969_v37 = vmul.f32 %v6756_v11, %v17353_v3  ;;  %6769 = vpow2.f32 %v3310_v14  ;;  %v17391_v0 = vld [vmem:[#allocation244_spill] sm:$0xff] }
 0x422   :  { %v17389_v15 = vmax.f32 %v17387_v62, %v17388_v1  ;;  %v3879_v9 = vadd.f32 %v3831_v23, %v3447_v6  ;;  %v2585_v52 = vadd.f32 %v12778_v43, %v2009_v47  ;;  %v2921_v22 = vadd.f32 %v6756_v11, %v2345_v56  ;;  %v17393_v11 = vld [vmem:[#allocation325_spill] sm:$0xff]  ;;  %v17398_v1 = vld [vmem:[#allocation131_spill] sm:$0xff] }
 0x423   :  { %v1867_v4 = vsub.f32 %v17386_v13, %v17383_v59  ;;  %v3401_v33 = vmul.f32 %v6758_v48, %v17360_v55  ;;  %6771 = vrcp.f32 %v4215_v53  ;;  %v17392_v42 = vmax.f32 %v17390_v21, %v17391_v0  ;;  %v17394_v55 = vld [vmem:[#allocation429_spill] sm:$0xff] }
 0x424   :  { %v2203_v29 = vsub.f32 %v17389_v15, %v17383_v59  ;;  %v6760_v14 = vpop.eup %6759  ;;  %v4311_v51 = vadd.f32 %v4263_v8, %v3879_v9  ;;  %v3017_v27 = vadd.f32 %v2969_v37, %v2585_v52  ;;  %v3353_v30 = vadd.f32 %v6758_v48, %v2921_v22  ;;  %v17397_v62 = vld [vmem:[#allocation29_spill] sm:$0xff]  ;;  %v17400_v15 = vld [vmem:[#allocation71_spill] sm:$0xff] }
 0x425   :  { %v1928_v25 = vmul.f32 1.442695, %v1867_v4  ;;  %v2779_v3 = vsub.f32 %v17392_v42, %v17383_v59  ;;  %v4170_v13 = vmul.f32 1.442695, %v4092_v28  ;;  %v3833_v23 = vmul.f32 %v6760_v14, %v17361_v16  ;;  %v17399_v28 = vld [vmem:[#allocation48_spill] sm:$0xff]  ;;  %v17402_v9 = vld [vmem:[#allocation243_spill] sm:$0xff] }
 0x426   :  { %v2264_v63 = vmul.f32 1.442695, %v2203_v29  ;;  %v17395_v6 = vmax.f32 %v17393_v11, %v17394_v55  ;;  %v12872_v56 = vpop.eup %6761  ;;  %v3449_v4 = vadd.f32 %v3401_v33, %v3017_v27  ;;  %v3785_v53 = vadd.f32 %v6760_v14, %v3353_v30  ;;  %v17401_v29 = vld [vmem:[#allocation112_spill] sm:$0xff] }
 0x427   :  { %6773 = vpow2.f32 %v1928_v25  ;;  %v2840_v43 = vmul.f32 1.442695, %v2779_v3  ;;  %17396 = vst [vmem:[#allocation404_spill] sm:$0xff] %v12872_v56  ;;  %v12876_v8 = vmul.f32 %v17398_v1, %v17397_v62  ;;  %v6764_v48 = vpop.eup %6763  ;;  %v2029_v16 = vmul.f32 %v12872_v56, %v17399_v28  ;;  %v17406_v3 = vld [vmem:[#allocation324_spill] sm:$0xff] }
 0x428   :  { %v3643_v47 = vsub.f32 %v17395_v6, %v17383_v59  ;;  %6775 = vpow2.f32 %v2264_v63  ;;  %v17403_v52 = vmax.f32 %v17401_v29, %v17402_v9  ;;  %v12884_v22 = vpop.eup %6765  ;;  %v12886_v33 = vmul.f32 %v6764_v48, %v4312_v46  ;;  %v17407_v14 = vld [vmem:[#allocation424_spill] sm:$0xff]  ;;  %v12909_v6 = vpop.permute.xlu1 %2438 }
 0x429   :  { %6777 = vpow2.f32 %v2840_v43  ;;  %17404 = vst [vmem:[#allocation201_spill] sm:$0xff] %v12884_v22  ;;  %v3881_v25 = vadd.f32 %v3833_v23, %v3449_v4  ;;  %v4217_v63 = vadd.f32 %v17365_v36, %v3785_v53  ;;  %v12889_v21 = vpop.eup %6767  ;;  %v2557_v0 = vmul.f32 %v12884_v22, %v12847_v35  ;;  %17412 = vst [vmem:[#allocation406_spill] sm:$0xff] %v12909_v6  ;;  %v17415_v53 = vld [vmem:[#allocation484_spill] sm:$0xff] }
 0x42a   :  { %v3704_v37 = vmul.f32 1.442695, %v3643_v47  ;;  %v1866_v59 = vsub.f32 %v17403_v52, %v17400_v15  ;;  %6779 = vpow2.f32 %v4170_v13  ;;  %17405 = vst [vmem:[#allocation207_spill] sm:$0xff] %v12889_v21  ;;  %v17408_v27 = vmax.f32 %v17406_v3, %v17407_v14  ;;  %v17413_v47 = vld [vmem:[#allocation118_spill] sm:$0xff] }
 0x42b   :  { %v12898_v43 = vmul.f32 1.442695, %v12207_v17  ;;  %v4514_v46 = vmul.f32 1.442695, %v12886_v33  ;;  %v4313_v36 = vadd.f32 %v12801_v34, %v3881_v25  ;;  %v12902_v13 = vpop.eup %6769  ;;  %v12905_v23 = vmul.f32 1.442695, %v12211_v2 }
 0x42c   :  { %6781 = vpow2.f32 %v3704_v37  ;;  %v1926_v42 = vmul.f32 1.442695, %v1866_v59  ;;  %v2778_v30 = vsub.f32 %v17408_v27, %v17400_v15  ;;  %17410 = vst [vmem:[#allocation540_spill] sm:$0xff] %v12902_v13  ;;  %v12907_v11 = vadd.f32 %v2557_v0, %v2029_v16  ;;  %v17414_v17 = vld [vmem:[#allocation33_spill] sm:$0xff]  ;;  %v17417_v37 = vld [vmem:[#allocation252_spill] sm:$0xff]  ;;  %v17419_v16 = vld [vmem:[#allocation502_spill] sm:$0xff]  ;;  %v12955_v61 = vpop.permute.xlu1 %2408 }
 0x42d   :  { %17409 = vst [vmem:[#allocation571_spill] sm:$0xff] %v12898_v43  ;;  %6783 = vrcp.f32 %v4217_v63  ;;  %17411 = vst [vmem:[#allocation569_spill] sm:$0xff] %v12905_v23  ;;  %v3403_v4 = vmul.f32 %v17414_v17, %v17413_v47  ;;  %v12915_v48 = vmul.f32 %v17415_v53, %v17397_v62  ;;  %v17416_v34 = vld [vmem:[#allocation121_spill] sm:$0xff]  ;;  %v6772_v9 = vpop.eup %6771  ;;  %v17420_v52 = vld [vmem:[#allocation518_spill] sm:$0xff]  ;;  %vm4456_vm12 = vcmp.gt.f32.partialorder %v12886_v33, 0.0 }
 0x42e   :  { %6785 = vpow2.f32 %v1926_v42  ;;  %v2838_v55 = vmul.f32 1.442695, %v2778_v30  ;;  %v17418_v29 = vmax.f32 %v17416_v34, %v17417_v37  ;;  %v17421_v59 = vmax.f32 %v17419_v16, %v17420_v52  ;;  %v17422_v63 = vld [vmem:[#allocation110_spill] sm:$0xff]  ;;  %v17430_v16 = vld [vmem:[#allocation501_spill] sm:$0xff] }
 0x42f   :  { %6787 = vpow2.f32 %v4514_v46  ;;  %v17423_v0 = vld [vmem:[#allocation322_spill] sm:$0xff]  ;;  %v12933_v46 = vmul.f32 %v6772_v9, %v4311_v51  ;;  %v17434_v51 = vld [vmem:[#allocation123_spill] sm:$0xff] }
 0x430   :  { %v3642_v2 = vsub.f32 %v17418_v29, %v17400_v15  ;;  %6789 = vpow2.f32 %v2838_v55  ;;  %v4074_v25 = vsub.f32 %v17421_v59, %v17400_v15  ;;  %v17424_v42 = vld [vmem:[#allocation422_spill] sm:$0xff]  ;;  %v17431_v15 = vld [vmem:[#allocation517_spill] sm:$0xff]  ;;  %v17435_v9 = vld [vmem:[#allocation259_spill] sm:$0xff] }
 0x431   :  { %v17425_v3 = vmax.f32 %v17423_v0, %v17424_v42  ;;  %v17426_v27 = vld [vmem:[#allocation138_spill] sm:$0xff]  ;;  %v17432_v52 = vmax.f32 %v17430_v16, %v17431_v15  ;;  %v6774_v56 = vpop.eup %6773  ;;  %vm4455_vm13 = vcmp.gt.f32.partialorder %v12933_v46, 0.0 }
 0x432   :  { %v12931_v30 = vmul.f32 %v17426_v27, %v17397_v62  ;;  %v3702_v34 = vmul.f32 1.442695, %v3642_v2  ;;  %v17427_v37 = vld [vmem:[#allocation122_spill] sm:$0xff]  ;;  %v17436_v2 = vmax.f32 %v17434_v51, %v17435_v9  ;;  %v6776_v23 = vpop.eup %6775 }
 0x433   :  { %v1868_v14 = vsub.f32 %v17425_v3, %v17422_v63  ;;  %v17428_v55 = vld [vmem:[#allocation258_spill] sm:$0xff]  ;;  %v3212_v59 = vsub.f32 %v17432_v52, %v17422_v63  ;;  %v4134_v3 = vmul.f32 1.442695, %v4074_v25  ;;  %v6778_v16 = vpop.eup %6777  ;;  %v2347_v15 = vadd.f32 %v6776_v23, %v6774_v56 }
 0x434   :  { %v17429_v29 = vmax.f32 %v17427_v37, %v17428_v55  ;;  %v17433_v0 = vld [vmem:[#allocation130_spill] sm:$0xff]  ;;  %v3644_v43 = vsub.f32 %v17436_v2, %v17422_v63  ;;  %v4512_v37 = vmul.f32 1.442695, %v12933_v46  ;;  %v17437_v55 = vld [vmem:[#allocation24_spill] sm:$0xff]  ;;  %6791 = vpow2.f32 %v3702_v34  ;;  %v17441_v34 = vld [vmem:[#allocation35_spill] sm:$0xff] }
 0x435   :  { %v2538_v42 = vmul.f32 %v17433_v0, %v17413_v47  ;;  %v1930_v62 = vmul.f32 1.442695, %v1868_v14  ;;  %v17438_v52 = vld [vmem:[#allocation470_spill] sm:$0xff]  ;;  %6793 = vpow2.f32 %v4134_v3  ;;  %v12953_v14 = vpop.eup %6779  ;;  %v3274_v9 = vmul.f32 1.442695, %v3212_v59  ;;  %v17447_v59 = vld [vmem:[#allocation180_spill] sm:$0xff] }
 0x436   :  { %v2780_v22 = vsub.f32 %v17429_v29, %v17422_v63  ;;  %v2011_v29 = vmul.f32 %v6774_v56, %v17437_v55  ;;  %v2539_v19 = vmul.f32 %v6776_v23, %v17438_v52  ;;  %17439 = vst [vmem:[#allocation61_spill] sm:$0xff] %v12953_v14  ;;  %6795 = vpow2.f32 %v4512_v37  ;;  %v17440_v63 = vld [vmem:[#allocation22_spill] sm:$0xff]  ;;  %v6782_v32 = vpop.eup %6781  ;;  %v17446_v37 = vld [vmem:[#allocation145_spill] sm:$0xff] }
 0x437   :  { %v2971_v51 = vmul.f32 %v6778_v16, %v17440_v63  ;;  %v3706_v2 = vmul.f32 1.442695, %v3644_v43  ;;  %v2923_v18 = vadd.f32 %v6778_v16, %v2347_v15  ;;  %6797 = vpow2.f32 %v1930_v62  ;;  %v17443_v56 = vld [vmem:[#allocation362_spill] sm:$0xff]  ;;  %v6784_v3 = vpop.eup %6783  ;;  %v17448_v43 = vld [vmem:[#allocation321_spill] sm:$0xff] }
 0x438   :  { %v2842_v25 = vmul.f32 1.442695, %v2780_v22  ;;  %v2587_v41 = vadd.f32 %v2539_v19, %v2011_v29  ;;  %v17444_v57 = vmax.f32 %v17442_v20, %v17443_v56  ;;  %v17445_v22 = vld [vmem:[#allocation23_spill] sm:$0xff]  ;;  %v12965_v14 = vmul.f32 %v17446_v37, %v17413_v47  ;;  %v6786_v29 = vpop.eup %6785 }
 0x439   :  { %v3835_v21 = vmul.f32 %v6782_v32, %v17445_v22  ;;  %v17449_v6 = vmax.f32 %v17447_v59, %v17448_v43  ;;  %v12971_v62 = vmul.f32 %v6784_v3, %v4313_v36  ;;  %v3355_v20 = vadd.f32 %v17414_v17, %v2923_v18  ;;  %v12979_v17 = vpop.permute.xlu1 %2472 }
 0x43a   :  { %v1893_v23 = vsub.f32 %v17444_v57, %v17441_v34  ;;  %6799 = vpow2.f32 %v2842_v25  ;;  %v3019_v16 = vadd.f32 %v2971_v51, %v2587_v41  ;;  %v6788_v57 = vpop.eup %6787  ;;  %v2010_v15 = vmul.f32 %v6786_v29, %v17440_v63 }
 0x43b   :  { %v1884_v19 = vsub.f32 %v17449_v6, %v17378_v44  ;;  %6801 = vpow2.f32 %v3274_v9  ;;  %v2346_v25 = vadd.f32 %v6786_v29, %v17433_v0  ;;  %v6790_v56 = vpop.eup %6789  ;;  %v5784_v34 = vadd.f32 -1.0, %v6788_v57  ;;  %v17450_v9 = vld [vmem:[#allocation376_spill] sm:$0xff] }
 0x43c   :  { %6803 = vpow2.f32 %v3706_v2  ;;  %v1980_v47 = vmul.f32 1.442695, %v1893_v23  ;;  %v4516_v6 = vmul.f32 1.442695, %v12971_v62  ;;  %v3451_v59 = vadd.f32 %v3403_v4, %v3019_v16  ;;  %v17451_v2 = vld [vmem:[#allocation450_spill] sm:$0xff] }
 0x43d   :  { %v3787_v36 = vadd.f32 %v6782_v32, %v3355_v20  ;;  %v2586_v3 = vadd.f32 %v2538_v42, %v2010_v15  ;;  %v2922_v41 = vadd.f32 %v6790_v56, %v2346_v25  ;;  %v2970_v18 = vmul.f32 %v6790_v56, %v17445_v22  ;;  %v17454_v56 = vld [vmem:[#allocation377_spill] sm:$0xff] }
 0x43e   :  { %v4648_v0 = vsel %vm4456_vm12, %v12886_v33, %v5784_v34  ;;  %6805 = vpow2.f32 %v4516_v6  ;;  %v3883_v51 = vadd.f32 %v3835_v21, %v3451_v59  ;;  %v17452_v23 = vmax.f32 %v17450_v9, %v17451_v2  ;;  %v6792_v29 = vpop.eup %6791  ;;  %v17457_v9 = vld [vmem:[#allocation181_spill] sm:$0xff]  ;;  %v17458_v2 = vld [vmem:[#allocation323_spill] sm:$0xff] }
 0x43f   :  { %4820 = vmatprep.mubr.f32.mxu1 %v4648_v0  ;;  %v4219_v32 = vadd.f32 %v17398_v1, %v3787_v36  ;;  %v3018_v4 = vadd.f32 %v2970_v18, %v2586_v3  ;;  %v3354_v42 = vadd.f32 %v17415_v53, %v2922_v41  ;;  %6807 = vpow2.f32 %v1980_v47  ;;  %v6794_v16 = vpop.eup %6793 }
 0x440   :  { %v1886_v43 = vsub.f32 %v17452_v23, %v17374_v54  ;;  %v4315_v20 = vadd.f32 %v12876_v8, %v3883_v51  ;;  %v3834_v33 = vmul.f32 %v6792_v29, %v17437_v55  ;;  %6809 = vpow2.f32 %v12494_v38  ;;  %v6796_v34 = vpop.eup %6795  ;;  %v17455_v38 = vld [vmem:[#allocation453_spill] sm:$0xff] }
 0x441   :  { %v12997_v21 = vsel %vm1277_vm2, %v12979_v17, %v12955_v61  ;;  %6811 = vrcp.f32 %v4219_v32  ;;  %v3450_v1 = vadd.f32 %v12915_v48, %v3018_v4  ;;  %v3786_v57 = vadd.f32 %v6792_v29, %v3354_v42  ;;  %v6798_v15 = vpop.eup %6797  ;;  %v17460_v42 = vld [vmem:[#allocation185_spill] sm:$0xff] }
 0x442   :  { %17453 = vst [vmem:[#allocation210_spill] sm:$0xff] %v12997_v21  ;;  %v4266_v53 = vmul.f32 %v6794_v16, %v17438_v52  ;;  %v5783_v25 = vadd.f32 -1.0, %v6796_v34  ;;  %v1962_v8 = vmul.f32 1.442695, %v1884_v19  ;;  %v1966_v47 = vmul.f32 1.442695, %v1886_v43 }
 0x443   :  { %v17456_v6 = vmax.f32 %v17454_v56, %v17455_v38  ;;  %v3882_v3 = vadd.f32 %v3834_v33, %v3450_v1  ;;  %v4218_v41 = vadd.f32 %v6794_v16, %v3786_v57  ;;  %v2012_v18 = vmul.f32 %v6798_v15, %v17445_v22  ;;  %v17464_v56 = vld [vmem:[#allocation183_spill] sm:$0xff] }
 0x444   :  { %v6800_v36 = vpop.eup %6799  ;;  %v2348_v0 = vadd.f32 %v6798_v15, %v17426_v27  ;;  %v4647_v51 = vsel %vm4455_vm13, %v12933_v46, %v5783_v25  ;;  %vm4457_vm14 = vcmp.gt.f32.partialorder %v12971_v62, 0.0  ;;  %v17459_v23 = vmax.f32 %v17457_v9, %v17458_v2  ;;  %v17475_v9 = vld [vmem:[#allocation336_spill] sm:$0xff] }
 0x445   :  { %v2796_v59 = vsub.f32 %v17456_v6, %v17378_v44  ;;  %v6802_v48 = vpop.eup %6801  ;;  %v2972_v19 = vmul.f32 %v6800_v36, %v17437_v55  ;;  %4821 = vmatmul.mubr.f32.gmra.mrb[70].mxu1 %v4647_v51  ;;  %v4314_v32 = vadd.f32 %v4266_v53, %v3882_v3  ;;  %6813 = vrcp.f32 %v4218_v41  ;;  %v17461_v55 = vld [vmem:[#allocation333_spill] sm:$0xff]  ;;  %v17463_v53 = vld [vmem:[#allocation162_spill] sm:$0xff] }
 0x446   :  { %v2797_v43 = vsub.f32 %v17459_v23, %v17366_v45  ;;  %v6804_v29 = vpop.eup %6803  ;;  %v2588_v27 = vadd.f32 %v12931_v30, %v2012_v18  ;;  %v2924_v22 = vadd.f32 %v6800_v36, %v2348_v0  ;;  %v3404_v4 = vmul.f32 %v6802_v48, %v17438_v52  ;;  %v17465_v52 = vld [vmem:[#allocation332_spill] sm:$0xff]  ;;  %v17468_v41 = vld [vmem:[#allocation161_spill] sm:$0xff]  ;;  %v17471_v0 = vld [vmem:[#allocation378_spill] sm:$0xff] }
 0x447   :  { %v3836_v46 = vmul.f32 %v6804_v29, %v17440_v63  ;;  %6815 = vpow2.f32 %v1962_v8  ;;  %v17462_v16 = vmax.f32 %v17460_v42, %v17461_v55  ;;  %v2874_v57 = vmul.f32 1.442695, %v2796_v59 }
 0x448   :  { %v3020_v34 = vadd.f32 %v2972_v19, %v2588_v27  ;;  %v3356_v1 = vadd.f32 %v6802_v48, %v2924_v22  ;;  %6817 = vpow2.f32 %v1966_v47  ;;  %v6806_v15 = vpop.eup %6805  ;;  %v2876_v25 = vmul.f32 1.442695, %v2797_v43  ;;  %v17470_v47 = vld [vmem:[#allocation58_spill] sm:$0xff] }
 0x449   :  { %v2798_v33 = vsub.f32 %v17462_v16, %v17374_v54  ;;  %6819 = vpow2.f32 %v17463_v53  ;;  %v17466_v38 = vmax.f32 %v17464_v56, %v17465_v52  ;;  %v13028_v8 = vpop.eup %6807  ;;  %v5785_v6 = vadd.f32 -1.0, %v6806_v15  ;;  %v17472_v48 = vld [vmem:[#allocation94_spill] sm:$0xff]  ;;  %v17479_v15 = vld [vmem:[#allocation300_spill] sm:$0xff]  ;;  %v17481_v52 = vld [vmem:[#allocation523_spill] sm:$0xff] }
 0x44a   :  { %17467 = vst [vmem:[#allocation200_spill] sm:$0xff] %v13028_v8  ;;  %v3452_v36 = vadd.f32 %v3404_v4, %v3020_v34  ;;  %v3788_v3 = vadd.f32 %v6804_v29, %v3356_v1  ;;  %6821 = vpow2.f32 %v17468_v41  ;;  %v13031_v18 = vpop.eup %6809  ;;  %v2037_v59 = vmul.f32 %v13028_v8, %v17470_v47  ;;  %v17480_v56 = vld [vmem:[#allocation508_spill] sm:$0xff] }
 0x44b   :  { %v2878_v30 = vmul.f32 1.442695, %v2798_v33  ;;  %v3660_v63 = vsub.f32 %v17466_v38, %v17378_v44  ;;  %17469 = vst [vmem:[#allocation6_spill] sm:$0xff] %v13031_v18  ;;  %6823 = vpow2.f32 %v2874_v57  ;;  %v17473_v51 = vmax.f32 %v17471_v0, %v17472_v48  ;;  %v17474_v44 = vld [vmem:[#allocation193_spill] sm:$0xff]  ;;  %v6812_v43 = vpop.eup %6811 }
 0x44c   :  { %v17476_v2 = vmax.f32 %v17474_v44, %v17475_v9  ;;  %v4649_v29 = vsel %vm4457_vm14, %v12971_v62, %v5785_v6  ;;  %v3884_v27 = vadd.f32 %v3836_v46, %v3452_v36  ;;  %v4220_v22 = vadd.f32 %v17446_v37, %v3788_v3  ;;  %v17478_v33 = vld [vmem:[#allocation49_spill] sm:$0xff]  ;;  %v17483_v6 = vld [vmem:[#allocation158_spill] sm:$0xff] }
 0x44d   :  { %v3661_v19 = vsub.f32 %v17473_v51, %v17366_v45  ;;  %v2565_v4 = vmul.f32 %v13031_v18, %v12997_v21  ;;  %v13050_v42 = vmul.f32 1.442695, %v12214_v5  ;;  %v17477_v45 = vld [vmem:[#allocation515_spill] sm:$0xff]  ;;  %6051 = vmatmul.mubr.f32.gmra.mrb[98].mxu0 %v4649_v29  ;;  %v13055_v16 = vmul.f32 %v6812_v43, %v4315_v20  ;;  %v17488_v0 = vld [vmem:[#allocation445_spill] sm:$0xff] }
 0x44e   :  { %v3662_v23 = vsub.f32 %v17476_v2, %v17374_v54  ;;  %v13053_v55 = vmul.f32 1.442695, %v17477_v45  ;;  %6825 = vpow2.f32 %v2876_v25  ;;  %v2467_v54 = vpop.permute.xlu0 %2466  ;;  %v13058_v34 = vmul.f32 1.442695, %v17478_v33  ;;  %v17489_v51 = vld [vmem:[#allocation155_spill] sm:$0xff]  ;;  %v17494_v45 = vld [vmem:[#allocation504_spill] sm:$0xff] }
 0x44f   :  { %v4316_v62 = vadd.f32 %v12965_v14, %v3884_v27  ;;  %6827 = vrcp.f32 %v4220_v22  ;;  %v13061_v37 = vadd.f32 %v2565_v4, %v2037_v59  ;;  %v4520_v46 = vmul.f32 1.442695, %v13055_v16  ;;  %v6814_v57 = vpop.eup %6813  ;;  %v17486_v59 = vld [vmem:[#allocation537_spill] sm:$0xff] }
 0x450   :  { %6829 = vpow2.f32 %v2878_v30  ;;  %v3738_v5 = vmul.f32 1.442695, %v3660_v63  ;;  %v3740_v1 = vmul.f32 1.442695, %v3661_v19  ;;  %v3742_v20 = vmul.f32 1.442695, %v3662_v23 }
 0x451   :  { %6831 = vpow2.f32 %v17479_v15  ;;  %v13068_v53 = vsel %vm1277_vm2, %v12244_v60, %v2467_v54  ;;  %v13073_v14 = vsel %vm1277_vm2, %v2467_v54, %v12829_v40  ;;  %v13075_v25 = vpop.eup %6815  ;;  %v13077_v30 = vmul.f32 %v6814_v57, %v4314_v32  ;;  %v17482_v63 = vld [vmem:[#allocation358_spill] sm:$0xff]  ;;  %v17490_v32 = vld [vmem:[#allocation45_spill] sm:$0xff]  ;;  %v17491_v23 = vld [vmem:[#allocation47_spill] sm:$0xff] }
 0x452   :  { %6833 = vpow2.f32 %v4520_v46  ;;  %v2350_v38 = vadd.f32 %v17481_v52, %v17480_v56  ;;  %v2349_v36 = vadd.f32 %v17483_v6, %v17482_v63  ;;  %v13083_v3 = vpop.eup %6817  ;;  %v17485_v60 = vld [vmem:[#allocation46_spill] sm:$0xff]  ;;  %v2351_v19 = vadd.f32 %v17490_v32, %v17489_v51  ;;  %v17493_v22 = vld [vmem:[#allocation157_spill] sm:$0xff]  ;;  %v17503_v32 = vld [vmem:[#allocation516_spill] sm:$0xff] }
 0x453   :  { %17484 = vst [vmem:[#allocation583_spill] sm:$0xff] %v13083_v3  ;;  %v2028_v41 = vmul.f32 %v13075_v25, %v17485_v60  ;;  %6835 = vpow2.f32 %v17486_v59  ;;  %v17487_v40 = vld [vmem:[#allocation430_spill] sm:$0xff]  ;;  %v13094_v44 = vpop.eup %6819  ;;  %v3422_v9 = vmul.f32 %v12902_v13, %v12847_v35  ;;  %v4518_v2 = vmul.f32 1.442695, %v13077_v30  ;;  %v17498_v56 = vld [vmem:[#allocation205_spill] sm:$0xff] }
 0x454   :  { %v13090_v48 = vadd.f32 %v17488_v0, %v17487_v40  ;;  %v2030_v43 = vmul.f32 %v13083_v3, %v17491_v23  ;;  %6837 = vpow2.f32 %v3738_v5  ;;  %v13101_v29 = vpop.eup %6821  ;;  %v2556_v27 = vmul.f32 %v13094_v44, %v13073_v14  ;;  %v17496_v57 = vld [vmem:[#allocation154_spill] sm:$0xff]  ;;  %v17502_v0 = vld [vmem:[#allocation551_spill] sm:$0xff] }
 0x455   :  { %17492 = vst [vmem:[#allocation8_spill] sm:$0xff] %v13101_v29  ;;  %6839 = vpow2.f32 %v3740_v1  ;;  %v2926_v4 = vadd.f32 %v17493_v22, %v2350_v38  ;;  %v2925_v54 = vadd.f32 %v17494_v45, %v2349_v36  ;;  %v13107_v33 = vpop.eup %6823  ;;  %vm4459_vm15 = vcmp.gt.f32.partialorder %v13055_v16, 0.0  ;;  %v17497_v15 = vld [vmem:[#allocation290_spill] sm:$0xff]  ;;  %v17499_v1 = vld [vmem:[#allocation341_spill] sm:$0xff]  ;;  %v17501_v36 = vld [vmem:[#allocation136_spill] sm:$0xff] }
 0x456   :  { %17495 = vst [vmem:[#allocation384_spill] sm:$0xff] %v13107_v33  ;;  %6841 = vpow2.f32 %v4518_v2  ;;  %v2558_v46 = vmul.f32 %v13101_v29, %v13068_v53  ;;  %v2927_v5 = vadd.f32 %v17496_v57, %v2351_v19  ;;  %v17500_v52 = vmax.f32 %v17498_v56, %v17499_v1  ;;  %v17504_v19 = vld [vmem:[#allocation41_spill] sm:$0xff]  ;;  %v17505_v56 = vld [vmem:[#allocation40_spill] sm:$0xff]  ;;  %v17692_v29 = vld [vmem:[#allocation335_spill] sm:$0xff] }
 0x457   :  { %v2988_v38 = vmul.f32 %v13107_v33, %v17491_v23  ;;  %6843 = vpow2.f32 %v3742_v20  ;;  %v2604_v6 = vadd.f32 %v2556_v27, %v2028_v41  ;;  %v3358_v59 = vadd.f32 %v17501_v36, %v2926_v4  ;;  %v17506_v20 = vld [vmem:[#allocation124_spill] sm:$0xff]  ;;  %v17696_v3 = vld [vmem:[#allocation298_spill] sm:$0xff] }
 0x458   :  { %v1888_v63 = vsub.f32 %v17500_v52, %v17497_v15  ;;  %v13120_v40 = vpop.eup %6825  ;;  %6845 = vpow2.f32 %v17502_v0  ;;  %v2606_v51 = vadd.f32 %v2558_v46, %v2030_v43  ;;  %v3357_v2 = vadd.f32 %v17503_v32, %v2925_v54  ;;  %v17508_v52 = vld [vmem:[#allocation271_spill] sm:$0xff]  ;;  %v17510_v54 = vld [vmem:[#allocation296_spill] sm:$0xff]  ;;  %v17511_v0 = vld [vmem:[#allocation385_spill] sm:$0xff] }
 0x459   :  { %v3359_v22 = vadd.f32 %v17504_v19, %v2927_v5  ;;  %v6828_v45 = vpop.eup %6827  ;;  %v2989_v57 = vmul.f32 %v13120_v40, %v17485_v60  ;;  %6847 = vpow2.f32 %v17505_v56  ;;  %v3036_v1 = vadd.f32 %v2988_v38, %v2604_v6  ;;  %v17509_v43 = vld [vmem:[#allocation263_spill] sm:$0xff]  ;;  %v17512_v5 = vld [vmem:[#allocation456_spill] sm:$0xff] }
 0x45a   :  { %v3790_v41 = vadd.f32 %v17506_v20, %v3358_v59  ;;  %v13129_v27 = vpop.eup %6829  ;;  %v13131_v4 = vmul.f32 %v6828_v45, %v4316_v62  ;;  %v3789_v36 = vadd.f32 %v17508_v52, %v3357_v2  ;;  %v17513_v32 = vmax.f32 %v17511_v0, %v17512_v5  ;;  %v17515_v62 = vld [vmem:[#allocation326_spill] sm:$0xff]  ;;  %v17516_v56 = vld [vmem:[#allocation36_spill] sm:$0xff] }
 0x45b   :  { %17507 = vst [vmem:[#allocation584_spill] sm:$0xff] %v13129_v27  ;;  %v3791_v46 = vadd.f32 %v17509_v43, %v3359_v22  ;;  %v13139_v18 = vpop.eup %6831  ;;  %vm4458_vm0 = vcmp.gt.f32.partialorder %v13077_v30, 0.0  ;;  %v2990_v38 = vmul.f32 %v13129_v27, %v17399_v28  ;;  %v3037_v6 = vadd.f32 %v2989_v57, %v12907_v11 }
 0x45c   :  { %v1889_v19 = vsub.f32 %v17513_v32, %v17510_v54  ;;  %17514 = vst [vmem:[#allocation574_spill] sm:$0xff] %v13139_v18  ;;  %v4222_v59 = vadd.f32 %v17515_v62, %v3790_v41  ;;  %v6834_v45 = vpop.eup %6833  ;;  %v4522_v2 = vmul.f32 1.442695, %v13131_v4  ;;  %v3420_v22 = vmul.f32 %v13139_v18, %v13068_v53  ;;  %v17518_v32 = vld [vmem:[#allocation329_spill] sm:$0xff] }
 0x45d   :  { %v4221_v20 = vadd.f32 %v17516_v56, %v3789_v36  ;;  %v1970_v52 = vmul.f32 1.442695, %v1888_v63  ;;  %v13150_v43 = vpop.eup %6835  ;;  %v5787_v0 = vadd.f32 -1.0, %v6834_v45  ;;  %v3038_v5 = vadd.f32 %v2990_v38, %v2606_v51 }
 0x45e   :  { %17517 = vst [vmem:[#allocation286_spill] sm:$0xff] %v13150_v43  ;;  %6849 = vrcp.f32 %v4222_v59  ;;  %v4223_v8 = vadd.f32 %v17518_v32, %v3791_v46  ;;  %v13153_v13 = vpop.eup %6837  ;;  %v3421_v11 = vmul.f32 %v13150_v43, %v13073_v14  ;;  %v3468_v57 = vadd.f32 %v3420_v22, %v3036_v1  ;;  %v17521_v1 = vld [vmem:[#allocation550_spill] sm:$0xff] }
 0x45f   :  { %17519 = vst [vmem:[#allocation398_spill] sm:$0xff] %v13153_v13  ;;  %6851 = vpow2.f32 %v4522_v2  ;;  %v1972_v41 = vmul.f32 1.442695, %v1889_v19  ;;  %v13157_v62 = vpop.eup %6839  ;;  %v4651_v63 = vsel %vm4459_vm15, %v13055_v16, %v5787_v0  ;;  %v3852_v51 = vmul.f32 %v13153_v13, %v17399_v28  ;;  %v17522_v19 = vld [vmem:[#allocation563_spill] sm:$0xff]  ;;  %v17525_v28 = vld [vmem:[#allocation153_spill] sm:$0xff] }
 0x460   :  { %17520 = vst [vmem:[#allocation7_spill] sm:$0xff] %v13157_v62  ;;  %v3470_v36 = vadd.f32 %v3422_v9, %v3038_v5  ;;  %6853 = vrcp.f32 %v4221_v20  ;;  %v6842_v46 = vpop.eup %6841  ;;  %4825 = vmatprep.mubr.f32.mxu1 %v4651_v63  ;;  %v3853_v38 = vmul.f32 %v13157_v62, %v17491_v23  ;;  %v3469_v59 = vadd.f32 %v3421_v11, %v3037_v6  ;;  %v17526_v9 = vld [vmem:[#allocation388_spill] sm:$0xff]  ;;  %v17527_v20 = vld [vmem:[#allocation457_spill] sm:$0xff] }
 0x461   :  { %6855 = vrcp.f32 %v4223_v8  ;;  %v17523_v45 = vmax.f32 %v17521_v1, %v17522_v19  ;;  %v13170_v22 = vpop.eup %6843  ;;  %v5786_v16 = vadd.f32 -1.0, %v6842_v46  ;;  %v13172_v56 = vadd.f32 %v3852_v51, %v3468_v57  ;;  %v17531_v63 = vld [vmem:[#allocation172_spill] sm:$0xff]  ;;  %v17532_v51 = vld [vmem:[#allocation199_spill] sm:$0xff]  ;;  %v17533_v46 = vld [vmem:[#allocation338_spill] sm:$0xff] }
 0x462   :  { %17524 = vst [vmem:[#allocation102_spill] sm:$0xff] %v13170_v22  ;;  %6857 = vpow2.f32 %v1970_v52  ;;  %v17528_v0 = vmax.f32 %v17526_v9, %v17527_v20  ;;  %v13178_v32 = vpop.eup %6845  ;;  %v3854_v8 = vmul.f32 %v13170_v22, %v17485_v60  ;;  %v3901_v23 = vadd.f32 %v3853_v38, %v3469_v59  ;;  %v17535_v38 = vld [vmem:[#allocation208_spill] sm:$0xff]  ;;  %v17536_v59 = vld [vmem:[#allocation342_spill] sm:$0xff]  ;;  %v17539_v9 = vld [vmem:[#allocation553_spill] sm:$0xff] }
 0x463   :  { %v2224_v2 = vsub.f32 %v17523_v45, %v17497_v15  ;;  %17529 = vst [vmem:[#allocation383_spill] sm:$0xff] %v13178_v32  ;;  %6859 = vpow2.f32 %v1972_v41  ;;  %v13182_v11 = vpop.eup %6847  ;;  %v4650_v57 = vsel %vm4458_vm0, %v13077_v30, %v5786_v16  ;;  %v4285_v52 = vmul.f32 %v13178_v32, %v13068_v53  ;;  %v17540_v20 = vld [vmem:[#allocation565_spill] sm:$0xff]  ;;  %v17591_v62 = vld [vmem:[#allocation140_spill] sm:$0xff] }
 0x464   :  { %v2799_v5 = vsub.f32 %v17528_v0, %v17525_v28  ;;  %17530 = vst [vmem:[#allocation77_spill] sm:$0xff] %v13182_v11  ;;  %6861 = vpow2.f32 %v17531_v63  ;;  %v17534_v1 = vmax.f32 %v17532_v51, %v17533_v46  ;;  %4826 = vmatmul.mubr.f32.gmra.mrb[72].mxu1 %v4650_v57  ;;  %v3902_v60 = vadd.f32 %v3854_v8, %v3470_v36  ;;  %v17543_v8 = vld [vmem:[#allocation166_spill] sm:$0xff] }
 0x465   :  { %v2306_v6 = vmul.f32 1.442695, %v2224_v2  ;;  %v4286_v41 = vmul.f32 %v13182_v11, %v13073_v14  ;;  %v17537_v30 = vmax.f32 %v17535_v38, %v17536_v59  ;;  %v13200_v2 = vadd.f32 %v4285_v52, %v3901_v23  ;;  %v17544_v14 = vld [vmem:[#allocation209_spill] sm:$0xff]  ;;  %v17548_v52 = vld [vmem:[#allocation458_spill] sm:$0xff]  ;;  %v17550_v59 = vld [vmem:[#allocation204_spill] sm:$0xff] }
 0x466   :  { %v2800_v19 = vsub.f32 %v17534_v1, %v17497_v15  ;;  %v2880_v53 = vmul.f32 1.442695, %v2799_v5  ;;  %v17541_v0 = vmax.f32 %v17539_v9, %v17540_v20  ;;  %v17547_v5 = vld [vmem:[#allocation389_spill] sm:$0xff]  ;;  %v17553_v9 = vld [vmem:[#allocation264_spill] sm:$0xff]  ;;  %vm4460_vm1 = vcmp.gt.f32.partialorder %v13131_v4, 0.0 }
 0x467   :  { %6863 = vpow2.f32 %v2306_v6  ;;  %v2801_v45 = vsub.f32 %v17537_v30, %v17510_v54  ;;  %17538 = vst [vmem:[#allocation187_spill] sm:$0xff] %v13200_v2  ;;  %v13206_v57 = vadd.f32 %v4286_v41, %v3902_v60  ;;  %v17545_v6 = vld [vmem:[#allocation346_spill] sm:$0xff]  ;;  %v17551_v60 = vld [vmem:[#allocation339_spill] sm:$0xff]  ;;  %v17573_v2 = vld [vmem:[#allocation133_spill] sm:$0xff] }
 0x468   :  { %v2882_v16 = vmul.f32 1.442695, %v2800_v19  ;;  %v3233_v63 = vsub.f32 %v17541_v0, %v17510_v54  ;;  %6865 = vpow2.f32 %v17543_v8  ;;  %v17546_v51 = vmax.f32 %v17544_v14, %v17545_v6  ;;  %v6850_v1 = vpop.eup %6849  ;;  %v17554_v8 = vld [vmem:[#allocation554_spill] sm:$0xff] }
 0x469   :  { %17542 = vst [vmem:[#allocation9_spill] sm:$0xff] %v13206_v57  ;;  %v2884_v36 = vmul.f32 1.442695, %v2801_v45  ;;  %6867 = vpow2.f32 %v2880_v53  ;;  %v17549_v19 = vmax.f32 %v17547_v5, %v17548_v52  ;;  %v17552_v41 = vmax.f32 %v17550_v59, %v17551_v60  ;;  %v6852_v45 = vpop.eup %6851  ;;  %v17555_v53 = vld [vmem:[#allocation566_spill] sm:$0xff]  ;;  %v17560_v60 = vld [vmem:[#allocation52_spill] sm:$0xff]  ;;  %v17572_v57 = vld [vmem:[#allocation125_spill] sm:$0xff] }
 0x46a   :  { %v3663_v46 = vsub.f32 %v17546_v51, %v17525_v28  ;;  %v3316_v23 = vmul.f32 1.442695, %v3233_v63  ;;  %v13222_v20 = vmul.f32 %v6850_v1, %v17553_v9  ;;  %6869 = vpow2.f32 %v2882_v16  ;;  %v6854_v6 = vpop.eup %6853 }
 0x46b   :  { %v3664_v38 = vsub.f32 %v17549_v19, %v17497_v15  ;;  %v3665_v30 = vsub.f32 %v17552_v41, %v17510_v54  ;;  %v17556_v63 = vmax.f32 %v17554_v8, %v17555_v53  ;;  %v13230_v15 = vmul.f32 %v12750_v50, %v12355_v10  ;;  %v6856_v54 = vpop.eup %6855  ;;  %v17558_v19 = vld [vmem:[#allocation268_spill] sm:$0xff]  ;;  %v17564_v53 = vld [vmem:[#allocation521_spill] sm:$0xff] }
 0x46c   :  { %v3744_v0 = vmul.f32 1.442695, %v3663_v46  ;;  %v5788_v51 = vadd.f32 -1.0, %v6852_v45  ;;  %6871 = vpow2.f32 %v2884_v36  ;;  %v4526_v1 = vmul.f32 1.442695, %v13222_v20  ;;  %v13237_v46 = vpop.eup %6857  ;;  %v2437_v36 = vpop.permute.xlu0 %2436 }
 0x46d   :  { %v4095_v14 = vsub.f32 %v17556_v63, %v17525_v28  ;;  %v3746_v5 = vmul.f32 1.442695, %v3664_v38  ;;  %v13235_v16 = vmul.f32 %v6854_v6, %v13090_v48  ;;  %6873 = vpow2.f32 %v3316_v23  ;;  %17557 = vst [vmem:[#allocation474_spill] sm:$0xff] %v13237_v46  ;;  %v13246_v38 = vpop.eup %6859  ;;  %v17565_v6 = vld [vmem:[#allocation539_spill] sm:$0xff] }
 0x46e   :  { %v13240_v28 = vmul.f32 1.442695, %v12447_v31  ;;  %v4652_v52 = vsel %vm4460_vm1, %v13131_v4, %v5788_v51  ;;  %v13244_v59 = vmul.f32 %v6856_v54, %v17558_v19  ;;  %6875 = vpow2.f32 %v3744_v0  ;;  %17559 = vst [vmem:[#allocation576_spill] sm:$0xff] %v13246_v38  ;;  %v13251_v45 = vpop.eup %6861  ;;  %v17562_v4 = vld [vmem:[#allocation51_spill] sm:$0xff]  ;;  %v17567_v54 = vld [vmem:[#allocation132_spill] sm:$0xff] }
 0x46f   :  { %6053 = vmatprep.mubr.f32.mxu0 %v4652_v52  ;;  %6877 = vpow2.f32 %v4526_v1  ;;  %v4524_v48 = vmul.f32 1.442695, %v13235_v16  ;;  %v2032_v23 = vmul.f32 %v13237_v46, %v17560_v60  ;;  %v3748_v41 = vmul.f32 1.442695, %v3665_v30  ;;  %17561 = vst [vmem:[#allocation283_spill] sm:$0xff] %v13251_v45  ;;  %v17566_v51 = vld [vmem:[#allocation431_spill] sm:$0xff] }
 0x470   :  { %v4528_v31 = vmul.f32 1.442695, %v13244_v59  ;;  %v2033_v9 = vmul.f32 %v13246_v38, %v17562_v4  ;;  %6879 = vpow2.f32 %v3746_v5  ;;  %v4176_v0 = vmul.f32 1.442695, %v4095_v14  ;;  %v17568_v52 = vld [vmem:[#allocation491_spill] sm:$0xff] }
 0x471   :  { %v13256_v8 = vpop.eup %6863  ;;  %6881 = vpow2.f32 %v4524_v48  ;;  %v13261_v63 = vsel %vm1277_vm2, %v2437_v36, %v17564_v53  ;;  %v13266_v30 = vsel %vm1277_vm2, %v17565_v6, %v2437_v36  ;;  %v2353_v1 = vadd.f32 %v17567_v54, %v17566_v51  ;;  %v17569_v19 = vld [vmem:[#allocation499_spill] sm:$0xff]  ;;  %v17571_v36 = vld [vmem:[#allocation330_spill] sm:$0xff] }
 0x472   :  { %17563 = vst [vmem:[#allocation396_spill] sm:$0xff] %v13256_v8  ;;  %6883 = vpow2.f32 %v4528_v31  ;;  %v2560_v14 = vmul.f32 %v13256_v8, %v13266_v30  ;;  %v2561_v5 = vmul.f32 %v13251_v45, %v13261_v63  ;;  %v2352_v48 = vadd.f32 %v17569_v19, %v17568_v52  ;;  %v13276_v53 = vpop.eup %6865  ;;  %v17574_v31 = vld [vmem:[#allocation435_spill] sm:$0xff]  ;;  %v17575_v54 = vld [vmem:[#allocation34_spill] sm:$0xff] }
 0x473   :  { %17570 = vst [vmem:[#allocation78_spill] sm:$0xff] %v13276_v53  ;;  %vm4462_vm3 = vcmp.gt.f32.partialorder %v13222_v20, 0.0  ;;  %6885 = vpow2.f32 %v3748_v41  ;;  %v2929_v6 = vadd.f32 %v17571_v36, %v2353_v1  ;;  %v2354_v51 = vadd.f32 %v17573_v2, %v17572_v57  ;;  %v13286_v22 = vpop.eup %6867  ;;  %v17578_v2 = vld [vmem:[#allocation374_spill] sm:$0xff]  ;;  %v17579_v57 = vld [vmem:[#allocation492_spill] sm:$0xff] }
 0x474   :  { %v13284_v11 = vadd.f32 %v17575_v54, %v17574_v31  ;;  %17576 = vst [vmem:[#allocation188_spill] sm:$0xff] %v13286_v22  ;;  %6887 = vpow2.f32 %v4176_v0  ;;  %v2608_v32 = vadd.f32 %v2560_v14, %v2032_v23  ;;  %v2609_v45 = vadd.f32 %v2561_v5, %v2033_v9  ;;  %v13290_v19 = vpop.eup %6869  ;;  %v17580_v36 = vld [vmem:[#allocation270_spill] sm:$0xff]  ;;  %v17582_v9 = vld [vmem:[#allocation433_spill] sm:$0xff]  ;;  %v17583_v14 = vld [vmem:[#allocation299_spill] sm:$0xff] }
 0x475   :  { %v3423_v52 = vmul.f32 %v13276_v53, %v13261_v63  ;;  %17577 = vst [vmem:[#allocation75_spill] sm:$0xff] %v13290_v19  ;;  %vm4461_vm4 = vcmp.gt.f32.partialorder %v13235_v16, 0.0  ;;  %v2991_v41 = vmul.f32 %v13286_v22, %v17562_v4  ;;  %6889 = vpow2.f32 %v17578_v2  ;;  %v17584_v5 = vld [vmem:[#allocation218_spill] sm:$0xff]  ;;  %v17585_v53 = vld [vmem:[#allocation352_spill] sm:$0xff]  ;;  %v17587_v2 = vld [vmem:[#allocation557_spill] sm:$0xff] }
 0x476   :  { %v3361_v1 = vadd.f32 %v17579_v57, %v2929_v6  ;;  %v2928_v31 = vadd.f32 %v17580_v36, %v2352_v48  ;;  %v13298_v54 = vpop.eup %6871  ;;  %vm4463_vm5 = vcmp.gt.f32.partialorder %v13244_v59, 0.0  ;;  %v2992_v23 = vmul.f32 %v13290_v19, %v17178_v7  ;;  %v17588_v22 = vld [vmem:[#allocation567_spill] sm:$0xff] }
 0x477   :  { %17581 = vst [vmem:[#allocation473_spill] sm:$0xff] %v13298_v54  ;;  %v2930_v0 = vadd.f32 %v17582_v9, %v2354_v51  ;;  %v17586_v38 = vmax.f32 %v17584_v5, %v17585_v53  ;;  %v17589_v6 = vmax.f32 %v17587_v2, %v17588_v22  ;;  %v13312_v48 = vpop.eup %6873  ;;  %v2993_v36 = vmul.f32 %v13298_v54, %v17560_v60  ;;  %v17592_v51 = vld [vmem:[#allocation126_spill] sm:$0xff]  ;;  %v17594_v5 = vld [vmem:[#allocation265_spill] sm:$0xff] }
 0x478   :  { %17590 = vst [vmem:[#allocation79_spill] sm:$0xff] %v13312_v48  ;;  %v3039_v13 = vadd.f32 %v2991_v41, %v12407_v58  ;;  %v3793_v19 = vadd.f32 %v17591_v62, %v3361_v1  ;;  %v3360_v9 = vadd.f32 %v17592_v51, %v2928_v31  ;;  %v13319_v27 = vpop.eup %6875  ;;  %v3040_v53 = vadd.f32 %v2992_v23, %v2608_v32  ;;  %v17595_v58 = vld [vmem:[#allocation334_spill] sm:$0xff]  ;;  %v17598_v51 = vld [vmem:[#allocation279_spill] sm:$0xff] }
 0x479   :  { %v1891_v50 = vsub.f32 %v17586_v38, %v17583_v14  ;;  %v2227_v57 = vsub.f32 %v17589_v6, %v17583_v14  ;;  %17593 = vst [vmem:[#allocation191_spill] sm:$0xff] %v13319_v27  ;;  %v3425_v38 = vmul.f32 %v13312_v48, %v13266_v30  ;;  %v3362_v22 = vadd.f32 %v17594_v5, %v2930_v0  ;;  %v6878_v6 = vpop.eup %6877  ;;  %v17597_v32 = vld [vmem:[#allocation30_spill] sm:$0xff] }
 0x47a   :  { %v3855_v18 = vmul.f32 %v13319_v27, %v17560_v60  ;;  %v3041_v54 = vadd.f32 %v2993_v36, %v2609_v45  ;;  %v3471_v43 = vadd.f32 %v3423_v52, %v3039_v13  ;;  %v4225_v41 = vadd.f32 %v17595_v58, %v3793_v19  ;;  %v13327_v62 = vpop.eup %6879  ;;  %v17599_v52 = vld [vmem:[#allocation127_spill] sm:$0xff] }
 0x47b   :  { %v1976_v2 = vmul.f32 1.442695, %v1891_v50  ;;  %17596 = vst [vmem:[#allocation589_spill] sm:$0xff] %v13327_v62  ;;  %v5790_v1 = vadd.f32 -1.0, %v6878_v6  ;;  %v3472_v31 = vadd.f32 %v13230_v15, %v3040_v53  ;;  %v3792_v23 = vadd.f32 %v17597_v32, %v3360_v9  ;;  %v6882_v8 = vpop.eup %6881  ;;  %v17600_v15 = vld [vmem:[#allocation295_spill] sm:$0xff] }
 0x47c   :  { %v3794_v48 = vadd.f32 %v17598_v51, %v3362_v22  ;;  %v3856_v50 = vmul.f32 %v13327_v62, %v17562_v4  ;;  %v3473_v0 = vadd.f32 %v3425_v38, %v3041_v54  ;;  %v3903_v5 = vadd.f32 %v3855_v18, %v3471_v43  ;;  %v6884_v60 = vpop.eup %6883  ;;  %v17690_v27 = vld [vmem:[#allocation31_spill] sm:$0xff] }
 0x47d   :  { %6891 = vrcp.f32 %v4225_v41  ;;  %v4654_v13 = vsel %vm4462_vm3, %v13222_v20, %v5790_v1  ;;  %v5789_v45 = vadd.f32 -1.0, %v6882_v8  ;;  %v4224_v19 = vadd.f32 %v17599_v52, %v3792_v23  ;;  %v13339_v9 = vpop.eup %6885  ;;  %v17603_v20 = vld [vmem:[#allocation38_spill] sm:$0xff]  ;;  %v17609_v41 = vld [vmem:[#allocation564_spill] sm:$0xff]  ;;  %v13364_v23 = vpop.permute.xlu1 %2442  ;;  %v17691_v62 = vld [vmem:[#allocation507_spill] sm:$0xff] }
 0x47e   :  { %v4226_v36 = vadd.f32 %v17600_v15, %v3794_v48  ;;  %17601 = vst [vmem:[#allocation225_spill] sm:$0xff] %v13339_v9  ;;  %4830 = vmatprep.mubr.f32.mxu1 %v4654_v13  ;;  %v5791_v53 = vadd.f32 -1.0, %v6884_v60  ;;  %v3904_v22 = vadd.f32 %v3856_v50, %v3472_v31  ;;  %6893 = vpow2.f32 %v1976_v2  ;;  %v13341_v54 = vpop.eup %6887  ;;  %v17604_v8 = vld [vmem:[#allocation558_spill] sm:$0xff]  ;;  %v17605_v48 = vld [vmem:[#allocation568_spill] sm:$0xff]  ;;  %v13373_v60 = vpop.permute.xlu0 %2406  ;;  %v17614_v13 = vld [vmem:[#allocation525_spill] sm:$0xff] }
 0x47f   :  { %v2312_v4 = vmul.f32 1.442695, %v2227_v57  ;;  %17602 = vst [vmem:[#allocation229_spill] sm:$0xff] %v13341_v54  ;;  %v4653_v18 = vsel %vm4461_vm4, %v13235_v16, %v5789_v45  ;;  %v3857_v43 = vmul.f32 %v13339_v9, %v17178_v7  ;;  %6895 = vrcp.f32 %v4224_v19  ;;  %v13352_v58 = vpop.eup %6889  ;;  %v17608_v16 = vld [vmem:[#allocation548_spill] sm:$0xff]  ;;  %v17610_v7 = vld [vmem:[#allocation570_spill] sm:$0xff]  ;;  %v17617_v15 = vld [vmem:[#allocation267_spill] sm:$0xff] }
 0x480   :  { %v17606_v38 = vmax.f32 %v17604_v8, %v17605_v48  ;;  %17607 = vst [vmem:[#allocation176_spill] sm:$0xff] %v13352_v58  ;;  %4831 = vmatmul.mubr.f32.gmra.mrb[74].mxu1 %v4653_v18  ;;  %v4655_v57 = vsel %vm4463_vm5, %v13244_v59, %v5791_v53  ;;  %v4287_v2 = vmul.f32 %v13341_v54, %v13266_v30  ;;  %6897 = vrcp.f32 %v4226_v36  ;;  %v17615_v45 = vld [vmem:[#allocation436_spill] sm:$0xff]  ;;  %v17620_v18 = vld [vmem:[#allocation159_spill] sm:$0xff]  ;;  %v17624_v48 = vld [vmem:[#allocation266_spill] sm:$0xff] }
 0x481   :  { %v17611_v1 = vmax.f32 %v17609_v41, %v17610_v7  ;;  %v3338_v32 = vmul.f32 1.442695, %v12459_v49  ;;  %6054 = vmatmul.mubr.f32.gmra.mrb[100].mxu0 %v4655_v57  ;;  %v13366_v51 = vadd.f32 %v3857_v43, %v3473_v0  ;;  %v4288_v50 = vmul.f32 %v13352_v58, %v13261_v63  ;;  %v17618_v0 = vld [vmem:[#allocation511_spill] sm:$0xff]  ;;  %v17619_v53 = vld [vmem:[#allocation520_spill] sm:$0xff]  ;;  %v17623_v43 = vld [vmem:[#allocation526_spill] sm:$0xff] }
 0x482   :  { %v3236_v6 = vsub.f32 %v17606_v38, %v17603_v20  ;;  %6899 = vpow2.f32 %v2312_v4  ;;  %v13371_v59 = vadd.f32 %v4287_v2, %v3903_v5  ;;  %v2356_v52 = vadd.f32 %v17615_v45, %v17614_v13  ;;  %v17622_v4 = vld [vmem:[#allocation503_spill] sm:$0xff]  ;;  %v17625_v38 = vld [vmem:[#allocation386_spill] sm:$0xff]  ;;  %v17674_v54 = vld [vmem:[#allocation401_spill] sm:$0xff] }
 0x483   :  { %v4098_v31 = vsub.f32 %v17611_v1, %v17608_v16  ;;  %17612 = vst [vmem:[#allocation559_spill] sm:$0xff] %v13366_v51  ;;  %6901 = vpow2.f32 %v12470_v26  ;;  %v13377_v49 = vadd.f32 %v4288_v50, %v3904_v22  ;;  %v2355_v36 = vadd.f32 %v17618_v0, %v17617_v15  ;;  %v17621_v26 = vld [vmem:[#allocation141_spill] sm:$0xff]  ;;  %v17627_v57 = vld [vmem:[#allocation406_spill] sm:$0xff]  ;;  %v17630_v1 = vld [vmem:[#allocation347_spill] sm:$0xff] }
 0x484   :  { %17613 = vst [vmem:[#allocation575_spill] sm:$0xff] %v13371_v59  ;;  %v3322_v30 = vmul.f32 1.442695, %v3236_v6  ;;  %v13383_v63 = vadd.f32 %v17620_v18, %v17619_v53  ;;  %6903 = vpow2.f32 %v12838_v39  ;;  %v2932_v5 = vadd.f32 %v17621_v26, %v2356_v52  ;;  %v17628_v41 = vld [vmem:[#allocation26_spill] sm:$0xff]  ;;  %v17629_v39 = vld [vmem:[#allocation211_spill] sm:$0xff]  ;;  %v17633_v15 = vld [vmem:[#allocation280_spill] sm:$0xff] }
 0x485   :  { %17616 = vst [vmem:[#allocation580_spill] sm:$0xff] %v13377_v49  ;;  %v4182_v19 = vmul.f32 1.442695, %v4098_v31  ;;  %v2357_v8 = vadd.f32 %v17623_v43, %v17622_v4  ;;  %v17626_v22 = vmax.f32 %v17624_v48, %v17625_v38  ;;  %v13397_v2 = vsel %vm1277_vm2, %v13373_v60, %v17627_v57  ;;  %v17632_v45 = vld [vmem:[#allocation438_spill] sm:$0xff]  ;;  %v17634_v18 = vld [vmem:[#allocation343_spill] sm:$0xff]  ;;  %v13410_v4 = vpop.permute.xlu1 %2412  ;;  %v17675_v58 = vld [vmem:[#allocation81_spill] sm:$0xff] }
 0x486   :  { %v2931_v7 = vadd.f32 %v17628_v41, %v2355_v36  ;;  %6905 = vpow2.f32 %v13240_v28  ;;  %v17631_v31 = vmax.f32 %v17629_v39, %v17630_v1  ;;  %v3364_v52 = vadd.f32 %v17632_v45, %v2932_v5  ;;  %v17635_v36 = vld [vmem:[#allocation344_spill] sm:$0xff]  ;;  %v17636_v43 = vld [vmem:[#allocation399_spill] sm:$0xff]  ;;  %v17641_v39 = vld [vmem:[#allocation137_spill] sm:$0xff] }
 0x487   :  { %v1899_v6 = vsub.f32 %v17626_v22, %v12425_v12  ;;  %v6892_v13 = vpop.eup %6891  ;;  %6907 = vpow2.f32 %v3322_v30  ;;  %v2933_v0 = vadd.f32 %v17633_v15, %v2357_v8  ;;  %v17637_v48 = vld [vmem:[#allocation459_spill] sm:$0xff] }
 0x488   :  { %v1890_v50 = vsub.f32 %v17631_v31, %v17608_v16  ;;  %v13408_v26 = vmul.f32 %v6892_v13, %v17634_v18  ;;  %6909 = vpow2.f32 %v4182_v19  ;;  %v3363_v28 = vadd.f32 %v17635_v36, %v2931_v7  ;;  %v13417_v41 = vpop.eup %6893  ;;  %v17640_v30 = vld [vmem:[#allocation143_spill] sm:$0xff]  ;;  %v17642_v13 = vld [vmem:[#allocation56_spill] sm:$0xff]  ;;  %v17644_v18 = vld [vmem:[#allocation510_spill] sm:$0xff] }
 0x489   :  { %v1992_v53 = vmul.f32 1.442695, %v1899_v6  ;;  %v17638_v38 = vmax.f32 %v17636_v43, %v17637_v48  ;;  %17639 = vst [vmem:[#allocation87_spill] sm:$0xff] %v13417_v41  ;;  %v3796_v5 = vadd.f32 %v17640_v30, %v3364_v52  ;;  %v3365_v8 = vadd.f32 %v17641_v39, %v2933_v0  ;;  %v6896_v1 = vpop.eup %6895  ;;  %v17643_v7 = vld [vmem:[#allocation27_spill] sm:$0xff]  ;;  %v17645_v43 = vld [vmem:[#allocation28_spill] sm:$0xff]  ;;  %v17646_v52 = vld [vmem:[#allocation285_spill] sm:$0xff] }
 0x48a   :  { %v1974_v6 = vmul.f32 1.442695, %v1890_v50  ;;  %v4532_v31 = vmul.f32 1.442695, %v13408_v26  ;;  %v2035_v19 = vmul.f32 %v13417_v41, %v17642_v13  ;;  %v3795_v45 = vadd.f32 %v17643_v7, %v3363_v28  ;;  %v6898_v15 = vpop.eup %6897  ;;  %v17648_v50 = vld [vmem:[#allocation170_spill] sm:$0xff]  ;;  %v17649_v28 = vld [vmem:[#allocation444_spill] sm:$0xff] }
 0x48b   :  { %v1892_v22 = vsub.f32 %v17638_v38, %v17603_v20  ;;  %6911 = vpow2.f32 %v1992_v53  ;;  %v13426_v36 = vmul.f32 %v6896_v1, %v17644_v18  ;;  %v4228_v48 = vadd.f32 %v17645_v43, %v3796_v5  ;;  %v17651_v1 = vld [vmem:[#allocation207_spill] sm:$0xff]  ;;  %v17655_v43 = vld [vmem:[#allocation382_spill] sm:$0xff] }
 0x48c   :  { %6913 = vpow2.f32 %v3338_v32  ;;  %v3797_v38 = vadd.f32 %v17646_v52, %v3365_v8  ;;  %v13430_v0 = vpop.eup %6899  ;;  %v13433_v53 = vmul.f32 1.442695, %v17648_v50  ;;  %v13436_v30 = vmul.f32 %v6898_v15, %v13284_v11  ;;  %v13450_v15 = vpop.permute.xlu1 %2476  ;;  %v17656_v50 = vld [vmem:[#allocation400_spill] sm:$0xff] }
 0x48d   :  { %6915 = vpow2.f32 %v1974_v6  ;;  %17647 = vst [vmem:[#allocation202_spill] sm:$0xff] %v13430_v0  ;;  %v4227_v32 = vadd.f32 %v17649_v28, %v3795_v45  ;;  %v13439_v39 = vpop.eup %6901  ;;  %v13443_v7 = vmul.f32 %v17651_v1, %v12355_v10  ;;  %v4530_v5 = vmul.f32 1.442695, %v13426_v36  ;;  %v17657_v28 = vld [vmem:[#allocation460_spill] sm:$0xff] }
 0x48e   :  { %6917 = vpow2.f32 %v4532_v31  ;;  %17650 = vst [vmem:[#allocation420_spill] sm:$0xff] %v13439_v39  ;;  %v2563_v8 = vmul.f32 %v13430_v0, %v13397_v2  ;;  %v4534_v6 = vmul.f32 1.442695, %v13436_v30  ;;  %v17653_v31 = vld [vmem:[#allocation529_spill] sm:$0xff]  ;;  %v1978_v45 = vmul.f32 1.442695, %v1892_v22  ;;  %v13452_v18 = vpop.eup %6903 }
 0x48f   :  { %17652 = vst [vmem:[#allocation65_spill] sm:$0xff] %v13443_v7  ;;  %6919 = vrcp.f32 %v4228_v48  ;;  %v4229_v11 = vadd.f32 %v17653_v31, %v3797_v38  ;;  %17654 = vst [vmem:[#allocation226_spill] sm:$0xff] %v13452_v18  ;;  %v13455_v52 = vmul.f32 1.442695, %v17655_v43  ;;  %v17658_v48 = vmax.f32 %v17656_v50, %v17657_v28  ;;  %v17661_v22 = vld [vmem:[#allocation215_spill] sm:$0xff] }
 0x490   :  { %6921 = vrcp.f32 %v4227_v32  ;;  %v13457_v10 = vadd.f32 %v2563_v8, %v2035_v19  ;;  %v13463_v49 = vpop.eup %6905  ;;  %v17660_v32 = vld [vmem:[#allocation171_spill] sm:$0xff]  ;;  %v13482_v50 = vsel %vm1277_vm2, %v13450_v15, %v13410_v4  ;;  %vm4465_vm6 = vcmp.gt.f32.partialorder %v13408_v26, 0.0 }
 0x491   :  { %6923 = vpow2.f32 %v4530_v5  ;;  %v2802_v59 = vsub.f32 %v17658_v48, %v17608_v16  ;;  %17659 = vst [vmem:[#allocation278_spill] sm:$0xff] %v13463_v49  ;;  %v13466_v38 = vmul.f32 1.442695, %v17660_v32  ;;  %v17662_v31 = vld [vmem:[#allocation351_spill] sm:$0xff]  ;;  %v13476_v9 = vpop.eup %6907  ;;  %17668 = vst [vmem:[#allocation220_spill] sm:$0xff] %v13482_v50  ;;  %v17670_v48 = vld [vmem:[#allocation354_spill] sm:$0xff] }
 0x492   :  { %6925 = vpow2.f32 %v4534_v6  ;;  %v17663_v18 = vmax.f32 %v17661_v22, %v17662_v31  ;;  %v17664_v5 = vld [vmem:[#allocation223_spill] sm:$0xff]  ;;  %17667 = vst [vmem:[#allocation587_spill] sm:$0xff] %v13476_v9  ;;  %v13488_v22 = vpop.eup %6909  ;;  %v2571_v31 = vmul.f32 %v13463_v49, %v13482_v50  ;;  %vm4464_vm7 = vcmp.gt.f32.partialorder %v13426_v36, 0.0 }
 0x493   :  { %v17665_v19 = vld [vmem:[#allocation355_spill] sm:$0xff]  ;;  %6927 = vrcp.f32 %v4229_v11  ;;  %v2886_v6 = vmul.f32 1.442695, %v2802_v59  ;;  %vm4466_vm8 = vcmp.gt.f32.partialorder %v13436_v30, 0.0 }
 0x494   :  { %v2803_v43 = vsub.f32 %v17663_v18, %v17583_v14  ;;  %v17666_v8 = vmax.f32 %v17664_v5, %v17665_v19  ;;  %v17669_v28 = vld [vmem:[#allocation219_spill] sm:$0xff]  ;;  %6929 = vpow2.f32 %v1978_v45  ;;  %v2471_v5 = vpop.permute.xlu0 %2470  ;;  %v17681_v45 = vld [vmem:[#allocation66_spill] sm:$0xff] }
 0x495   :  { %v17671_v32 = vmax.f32 %v17669_v28, %v17670_v48  ;;  %v13493_v19 = vpop.eup %6911  ;;  %v17676_v28 = vmax.f32 %v17674_v54, %v17675_v58  ;;  %v17677_v48 = vld [vmem:[#allocation224_spill] sm:$0xff] }
 0x496   :  { %v2804_v1 = vsub.f32 %v17666_v8, %v17603_v20  ;;  %v2888_v11 = vmul.f32 1.442695, %v2803_v43  ;;  %17672 = vst [vmem:[#allocation452_spill] sm:$0xff] %v13493_v19  ;;  %v17673_v8 = vld [vmem:[#allocation174_spill] sm:$0xff]  ;;  %v13504_v7 = vpop.eup %6913  ;;  %v2043_v43 = vmul.f32 %v13493_v19, %v17681_v45  ;;  %v17687_v19 = vld [vmem:[#allocation149_spill] sm:$0xff] }
 0x497   :  { %v3666_v18 = vsub.f32 %v17671_v32, %v17608_v16  ;;  %6931 = vpow2.f32 %v17673_v8  ;;  %v3667_v16 = vsub.f32 %v17676_v28, %v17583_v14  ;;  %v17678_v32 = vld [vmem:[#allocation359_spill] sm:$0xff]  ;;  %17680 = vst [vmem:[#allocation80_spill] sm:$0xff] %v13504_v7  ;;  %v13511_v8 = vpop.eup %6915  ;;  %v17685_v28 = vld [vmem:[#allocation54_spill] sm:$0xff] }
 0x498   :  { %v2890_v59 = vmul.f32 1.442695, %v2804_v1  ;;  %v17679_v0 = vmax.f32 %v17677_v48, %v17678_v32  ;;  %v17682_v1 = vld [vmem:[#allocation238_spill] sm:$0xff]  ;;  %17683 = vst [vmem:[#allocation485_spill] sm:$0xff] %v13511_v8  ;;  %v6918_v58 = vpop.eup %6917  ;;  %v2034_v48 = vmul.f32 %v13511_v8, %v17685_v28  ;;  %v17686_v32 = vld [vmem:[#allocation32_spill] sm:$0xff]  ;;  %v17694_v8 = vld [vmem:[#allocation531_spill] sm:$0xff] }
 0x499   :  { %6933 = vpow2.f32 %v17682_v1  ;;  %v3750_v14 = vmul.f32 1.442695, %v3666_v18  ;;  %v3752_v54 = vmul.f32 1.442695, %v3667_v16  ;;  %v2359_v1 = vadd.f32 %v17687_v19, %v17686_v32  ;;  %v6920_v49 = vpop.eup %6919  ;;  %v17689_v18 = vld [vmem:[#allocation282_spill] sm:$0xff] }
 0x49a   :  { %v3668_v41 = vsub.f32 %v17679_v0, %v17603_v20  ;;  %6935 = vpow2.f32 %v2886_v6  ;;  %v13516_v20 = vsel %vm1277_vm2, %v17627_v57, %v2471_v5  ;;  %v13518_v0 = vadd.f32 %v2571_v31, %v2043_v43  ;;  %v17688_v6 = vld [vmem:[#allocation274_spill] sm:$0xff]  ;;  %v6922_v46 = vpop.eup %6921  ;;  %v17693_v43 = vld [vmem:[#allocation164_spill] sm:$0xff] }
 0x49b   :  { %6937 = vpow2.f32 %v2888_v11  ;;  %v5793_v51 = vadd.f32 -1.0, %v6918_v58  ;;  %v2358_v16 = vadd.f32 %v17689_v18, %v17688_v6  ;;  %v2360_v57 = vadd.f32 %v17691_v62, %v17690_v27  ;;  %v6924_v58 = vpop.eup %6923  ;;  %v17697_v27 = vld [vmem:[#allocation175_spill] sm:$0xff] }
 0x49c   :  { %17684 = vst [vmem:[#allocation83_spill] sm:$0xff] %v13518_v0  ;;  %6939 = vpow2.f32 %v2890_v59  ;;  %v13529_v31 = vmul.f32 %v6920_v49, %v17692_v29  ;;  %v2935_v11 = vadd.f32 %v17694_v8, %v2359_v1  ;;  %v17695_v0 = vld [vmem:[#allocation144_spill] sm:$0xff]  ;;  %v13541_v32 = vmul.f32 %v6922_v46, %v13383_v63  ;;  %v6926_v49 = vpop.eup %6925 }
 0x49d   :  { %6941 = vpow2.f32 %v17693_v43  ;;  %v13535_v19 = vadd.f32 %v17696_v3, %v17695_v0  ;;  %v4657_v59 = vsel %vm4465_vm6, %v13408_v26, %v5793_v51  ;;  %v17698_v29 = vld [vmem:[#allocation524_spill] sm:$0xff]  ;;  %v5792_v6 = vadd.f32 -1.0, %v6924_v58  ;;  %v6928_v0 = vpop.eup %6927  ;;  %v17700_v26 = vld [vmem:[#allocation294_spill] sm:$0xff]  ;;  %v17704_v58 = vld [vmem:[#allocation527_spill] sm:$0xff] }
 0x49e   :  { %6943 = vpow2.f32 %v17697_v27  ;;  %v2934_v62 = vadd.f32 %v17698_v29, %v2358_v16  ;;  %4835 = vmatprep.mubr.f32.mxu1 %v4657_v59  ;;  %v4538_v8 = vmul.f32 1.442695, %v13529_v31  ;;  %v3754_v3 = vmul.f32 1.442695, %v3668_v41  ;;  %v13552_v51 = vpop.eup %6929  ;;  %v17701_v41 = vld [vmem:[#allocation142_spill] sm:$0xff] }
 0x49f   :  { %6945 = vpow2.f32 %v3750_v14  ;;  %v5794_v1 = vadd.f32 -1.0, %v6926_v49  ;;  %v4536_v18 = vmul.f32 1.442695, %v13541_v32  ;;  %v13550_v46 = vsel %vm1277_vm2, %v2471_v5, %v13373_v60  ;;  %17699 = vst [vmem:[#allocation196_spill] sm:$0xff] %v13552_v51  ;;  %v17703_v5 = vld [vmem:[#allocation55_spill] sm:$0xff] }
 0x4a0   :  { %6947 = vpow2.f32 %v3752_v54  ;;  %v4656_v63 = vsel %vm4464_vm7, %v13426_v36, %v5792_v6  ;;  %v13558_v14 = vmul.f32 %v6928_v0, %v17700_v26  ;;  %v3367_v16 = vadd.f32 %v17701_v41, %v2935_v11  ;;  %v17709_v0 = vld [vmem:[#allocation490_spill] sm:$0xff]  ;;  %v17711_v26 = vld [vmem:[#allocation139_spill] sm:$0xff] }
 0x4a1   :  { %6949 = vpow2.f32 %v4538_v8  ;;  %v13561_v43 = vpop.eup %6931  ;;  %4836 = vmatmul.mubr.f32.gmra.mrb[76].mxu1 %v4656_v63  ;;  %v4658_v60 = vsel %vm4466_vm8, %v13436_v30, %v5794_v1  ;;  %v2036_v54 = vmul.f32 %v13552_v51, %v17703_v5  ;;  %v3366_v59 = vadd.f32 %v17704_v58, %v2934_v62  ;;  %v17707_v30 = vld [vmem:[#allocation53_spill] sm:$0xff]  ;;  %v17713_v58 = vld [vmem:[#allocation304_spill] sm:$0xff] }
 0x4a2   :  { %17702 = vst [vmem:[#allocation186_spill] sm:$0xff] %v13561_v43  ;;  %6951 = vpow2.f32 %v4536_v18  ;;  %6056 = vmatprep.mubr.f32.mxu0 %v4658_v60  ;;  %v3428_v27 = vmul.f32 %v13476_v9, %v13397_v2  ;;  %v4540_v11 = vmul.f32 1.442695, %v13558_v14  ;;  %v2562_v29 = vmul.f32 %v13561_v43, %v13550_v46  ;;  %v17708_v62 = vld [vmem:[#allocation37_spill] sm:$0xff] }
 0x4a3   :  { %v13569_v36 = vpop.eup %6933  ;;  %6953 = vpow2.f32 %v3754_v3  ;;  %v3799_v8 = vadd.f32 %v17708_v62, %v3367_v16  ;;  %v3798_v1 = vadd.f32 %v17709_v0, %v3366_v59  ;;  %vm4468_vm9 = vcmp.gt.f32.partialorder %v13529_v31, 0.0 }
 0x4a4   :  { %17705 = vst [vmem:[#allocation409_spill] sm:$0xff] %v13569_v36  ;;  %v13576_v49 = vpop.eup %6935  ;;  %6955 = vpow2.f32 %v17707_v30  ;;  %v2564_v6 = vmul.f32 %v13569_v36, %v13516_v20  ;;  %v2610_v63 = vadd.f32 %v2562_v29, %v2034_v48  ;;  %v2936_v41 = vadd.f32 %v17711_v26, %v2360_v57  ;;  %v17714_v30 = vld [vmem:[#allocation156_spill] sm:$0xff]  ;;  %v17716_v29 = vld [vmem:[#allocation297_spill] sm:$0xff] }
 0x4a5   :  { %17706 = vst [vmem:[#allocation579_spill] sm:$0xff] %v13576_v49  ;;  %v13583_v18 = vpop.eup %6937  ;;  %6957 = vpow2.f32 %v4540_v11  ;;  %v2994_v3 = vmul.f32 %v13576_v49, %v17703_v5  ;;  %vm4467_vm10 = vcmp.gt.f32.partialorder %v13541_v32, 0.0  ;;  %v4231_v62 = vadd.f32 %v17714_v30, %v3799_v8  ;;  %v17717_v26 = vld [vmem:[#allocation532_spill] sm:$0xff]  ;;  %v17721_v8 = vld [vmem:[#allocation367_spill] sm:$0xff] }
 0x4a6   :  { %17710 = vst [vmem:[#allocation82_spill] sm:$0xff] %v13583_v18  ;;  %v13589_v60 = vpop.eup %6939  ;;  %v2995_v16 = vmul.f32 %v13583_v18, %v17685_v28  ;;  %6959 = vpow2.f32 %v17713_v58  ;;  %v2612_v59 = vadd.f32 %v2564_v6, %v2036_v54  ;;  %v4230_v57 = vadd.f32 %v17716_v29, %v3798_v1  ;;  %v17719_v54 = vld [vmem:[#allocation301_spill] sm:$0xff]  ;;  %v17725_v29 = vld [vmem:[#allocation534_spill] sm:$0xff] }
 0x4a7   :  { %17712 = vst [vmem:[#allocation192_spill] sm:$0xff] %v13589_v60  ;;  %v13596_v0 = vpop.eup %6941  ;;  %v2996_v11 = vmul.f32 %v13589_v60, %v17642_v13  ;;  %v3042_v48 = vadd.f32 %v2994_v3, %v2610_v63  ;;  %v3368_v9 = vadd.f32 %v17717_v26, %v2936_v41  ;;  %6961 = vrcp.f32 %v4231_v62  ;;  %v17720_v6 = vld [vmem:[#allocation233_spill] sm:$0xff]  ;;  %v17726_v26 = vld [vmem:[#allocation408_spill] sm:$0xff] }
 0x4a8   :  { %17715 = vst [vmem:[#allocation235_spill] sm:$0xff] %v13596_v0  ;;  %v13602_v49 = vpop.eup %6943  ;;  %v3043_v36 = vadd.f32 %v2995_v16, %v13457_v10  ;;  %v3426_v58 = vmul.f32 %v13596_v0, %v13516_v20  ;;  %v17722_v30 = vmax.f32 %v17720_v6, %v17721_v8  ;;  %vm4469_vm11 = vcmp.gt.f32.partialorder %v13558_v14, 0.0  ;;  %v17724_v63 = vld [vmem:[#allocation541_spill] sm:$0xff] }
 0x4a9   :  { %17718 = vst [vmem:[#allocation302_spill] sm:$0xff] %v13602_v49  ;;  %v13611_v43 = vpop.eup %6945  ;;  %v3044_v1 = vadd.f32 %v2996_v11, %v2612_v59  ;;  %v3427_v3 = vmul.f32 %v13602_v49, %v13550_v46  ;;  %6963 = vrcp.f32 %v4230_v57  ;;  %v3800_v10 = vadd.f32 %v17724_v63, %v3368_v9  ;;  %v17727_v6 = vld [vmem:[#allocation461_spill] sm:$0xff] }
 0x4aa   :  { %v1894_v51 = vsub.f32 %v17722_v30, %v17719_v54  ;;  %17723 = vst [vmem:[#allocation292_spill] sm:$0xff] %v13611_v43  ;;  %v13617_v41 = vpop.eup %6947  ;;  %v3858_v16 = vmul.f32 %v13611_v43, %v17642_v13  ;;  %v3474_v62 = vadd.f32 %v3426_v58, %v3042_v48  ;;  %v17728_v8 = vmax.f32 %v17726_v26, %v17727_v6  ;;  %v17729_v49 = vld [vmem:[#allocation533_spill] sm:$0xff]  ;;  %v17732_v6 = vld [vmem:[#allocation72_spill] sm:$0xff] }
 0x4ab   :  { %v6950_v60 = vpop.eup %6949  ;;  %v3859_v59 = vmul.f32 %v13617_v41, %v17703_v5  ;;  %v3475_v11 = vadd.f32 %v3427_v3, %v3043_v36  ;;  %v3476_v57 = vadd.f32 %v3428_v27, %v3044_v1  ;;  %v4232_v9 = vadd.f32 %v17729_v49, %v3800_v10  ;;  %v17737_v1 = vld [vmem:[#allocation91_spill] sm:$0xff] }
 0x4ac   :  { %v1895_v30 = vsub.f32 %v17728_v8, %v17725_v29  ;;  %v1982_v0 = vmul.f32 1.442695, %v1894_v51  ;;  %v6952_v63 = vpop.eup %6951  ;;  %v5796_v18 = vadd.f32 -1.0, %v6950_v60  ;;  %v13628_v33 = vadd.f32 %v3858_v16, %v3474_v62  ;;  %v17731_v51 = vld [vmem:[#allocation251_spill] sm:$0xff] }
 0x4ad   :  { %v13630_v48 = vpop.eup %6953  ;;  %v5795_v58 = vadd.f32 -1.0, %v6952_v63  ;;  %v3907_v26 = vadd.f32 %v3859_v59, %v3475_v11  ;;  %v17733_v8 = vmax.f32 %v17731_v51, %v17732_v6  ;;  %v17735_v60 = vld [vmem:[#allocation35_spill] sm:$0xff]  ;;  %v17744_v6 = vld [vmem:[#allocation245_spill] sm:$0xff] }
 0x4ae   :  { %6965 = vpow2.f32 %v1982_v0  ;;  %v1984_v13 = vmul.f32 1.442695, %v1895_v30  ;;  %17730 = vst [vmem:[#allocation407_spill] sm:$0xff] %v13630_v48  ;;  %v13636_v36 = vpop.eup %6955  ;;  %v4660_v27 = vsel %vm4468_vm9, %v13529_v31, %v5796_v18  ;;  %v3860_v49 = vmul.f32 %v13630_v48, %v17685_v28  ;;  %v17736_v0 = vld [vmem:[#allocation410_spill] sm:$0xff]  ;;  %v17739_v31 = vld [vmem:[#allocation468_spill] sm:$0xff]  ;;  %v17742_v63 = vld [vmem:[#allocation363_spill] sm:$0xff] }
 0x4af   :  { %6967 = vrcp.f32 %v4232_v9  ;;  %v2230_v5 = vsub.f32 %v17733_v8, %v17719_v54  ;;  %17734 = vst [vmem:[#allocation89_spill] sm:$0xff] %v13636_v36  ;;  %v17738_v3 = vmax.f32 %v17736_v0, %v17737_v1  ;;  %v6958_v16 = vpop.eup %6957  ;;  %4840 = vmatprep.mubr.f32.mxu1 %v4660_v27  ;;  %v4659_v62 = vsel %vm4467_vm10, %v13541_v32, %v5795_v58  ;;  %v17741_v9 = vld [vmem:[#allocation228_spill] sm:$0xff]  ;;  %v17745_v8 = vld [vmem:[#allocation369_spill] sm:$0xff] }
 0x4b0   :  { %6969 = vpow2.f32 %v1984_v13  ;;  %v4291_v30 = vmul.f32 %v13636_v36, %v13516_v20  ;;  %v13653_v18 = vpop.eup %6959  ;;  %4841 = vmatmul.mubr.f32.gmra.mrb[78].mxu1 %v4659_v62  ;;  %v5797_v28 = vadd.f32 -1.0, %v6958_v16  ;;  %v3908_v11 = vadd.f32 %v3860_v49, %v3476_v57  ;;  %v17749_v16 = vld [vmem:[#allocation577_spill] sm:$0xff] }
 0x4b1   :  { %v2805_v10 = vsub.f32 %v17738_v3, %v17735_v60  ;;  %v2318_v59 = vmul.f32 1.442695, %v2230_v5  ;;  %6971 = vpow2.f32 %v17739_v31  ;;  %17740 = vst [vmem:[#allocation212_spill] sm:$0xff] %v13653_v18  ;;  %v17743_v13 = vmax.f32 %v17741_v9, %v17742_v63  ;;  %v6962_v0 = vpop.eup %6961  ;;  %v17748_v3 = vld [vmem:[#allocation572_spill] sm:$0xff] }
 0x4b2   :  { %v17746_v32 = vmax.f32 %v17744_v6, %v17745_v8  ;;  %v4292_v20 = vmul.f32 %v13653_v18, %v13550_v46  ;;  %v13665_v5 = vadd.f32 %v4291_v30, %v3907_v26  ;;  %v4661_v57 = vsel %vm4469_vm11, %v13558_v14, %v5797_v28  ;;  %v17752_v46 = vld [vmem:[#allocation289_spill] sm:$0xff]  ;;  %v17754_v30 = vld [vmem:[#allocation368_spill] sm:$0xff]  ;;  %v17756_v28 = vld [vmem:[#allocation190_spill] sm:$0xff] }
 0x4b3   :  { %v2806_v51 = vsub.f32 %v17743_v13, %v17719_v54  ;;  %6973 = vpow2.f32 %v2318_v59  ;;  %v2892_v27 = vmul.f32 1.442695, %v2805_v10  ;;  %v17750_v62 = vmax.f32 %v17748_v3, %v17749_v16  ;;  %v6964_v9 = vpop.eup %6963  ;;  %6057 = vmatmul.mubr.f32.gmra.mrb[102].mxu0 %v4661_v57  ;;  %v17753_v10 = vld [vmem:[#allocation240_spill] sm:$0xff]  ;;  %v17758_v8 = vld [vmem:[#allocation411_spill] sm:$0xff]  ;;  %v17762_v57 = vld [vmem:[#allocation370_spill] sm:$0xff] }
 0x4b4   :  { %v2807_v58 = vsub.f32 %v17746_v32, %v17725_v29  ;;  %17747 = vst [vmem:[#allocation13_spill] sm:$0xff] %v13665_v5  ;;  %v13674_v63 = vadd.f32 %v4292_v20, %v3908_v11  ;;  %v13677_v26 = vmul.f32 %v6962_v0, %v17752_v46  ;;  %v17755_v59 = vmax.f32 %v17753_v10, %v17754_v30  ;;  %v17759_v11 = vld [vmem:[#allocation467_spill] sm:$0xff]  ;;  %v17765_v30 = vld [vmem:[#allocation150_spill] sm:$0xff] }
 0x4b5   :  { %v2894_v49 = vmul.f32 1.442695, %v2806_v51  ;;  %v3239_v31 = vsub.f32 %v17750_v62, %v17725_v29  ;;  %6975 = vpow2.f32 %v2892_v27  ;;  %v13684_v13 = vmul.f32 1.442695, %v17756_v28  ;;  %v17757_v51 = vld [vmem:[#allocation440_spill] sm:$0xff]  ;;  %v17761_v0 = vld [vmem:[#allocation247_spill] sm:$0xff]  ;;  %v2441_v62 = vpop.permute.xlu0 %2440 }
 0x4b6   :  { %v2896_v1 = vmul.f32 1.442695, %v2807_v58  ;;  %17751 = vst [vmem:[#allocation487_spill] sm:$0xff] %v13674_v63  ;;  %v3669_v14 = vsub.f32 %v17755_v59, %v17735_v60  ;;  %v13687_v6 = vmul.f32 %v6964_v9, %v17757_v51  ;;  %v17760_v32 = vmax.f32 %v17758_v8, %v17759_v11  ;;  %v17764_v9 = vld [vmem:[#allocation61_spill] sm:$0xff]  ;;  %v17769_v11 = vld [vmem:[#allocation578_spill] sm:$0xff]  ;;  %v17782_v5 = vld [vmem:[#allocation291_spill] sm:$0xff] }
 0x4b7   :  { %6977 = vpow2.f32 %v2894_v49  ;;  %v4544_v20 = vmul.f32 1.442695, %v13677_v26  ;;  %v3328_v27 = vmul.f32 1.442695, %v3239_v31  ;;  %v17763_v3 = vmax.f32 %v17761_v0, %v17762_v57  ;;  %v17785_v18 = vld [vmem:[#allocation535_spill] sm:$0xff] }
 0x4b8   :  { %v3670_v58 = vsub.f32 %v17760_v32, %v17719_v54  ;;  %6979 = vpow2.f32 %v2896_v1  ;;  %v13698_v46 = vpop.eup %6965  ;;  %v13702_v49 = vmul.f32 %v17764_v9, %v12847_v35  ;;  %v4542_v10 = vmul.f32 1.442695, %v13687_v6  ;;  %v17766_v1 = vld [vmem:[#allocation60_spill] sm:$0xff]  ;;  %v17768_v35 = vld [vmem:[#allocation573_spill] sm:$0xff] }
 0x4b9   :  { %v3671_v16 = vsub.f32 %v17763_v3, %v17725_v29  ;;  %6981 = vpow2.f32 %v17765_v30  ;;  %v3756_v54 = vmul.f32 1.442695, %v3669_v14  ;;  %v6968_v59 = vpop.eup %6967  ;;  %v2038_v31 = vmul.f32 %v13698_v46, %v17766_v1  ;;  %v17773_v3 = vld [vmem:[#allocation169_spill] sm:$0xff] }
 0x4ba   :  { %6983 = vpow2.f32 %v4544_v20  ;;  %v3758_v28 = vmul.f32 1.442695, %v3670_v58  ;;  %v13708_v29 = vpop.eup %6969  ;;  %v13711_v8 = vmul.f32 %v6968_v59, %v13535_v19  ;;  %v17770_v32 = vmax.f32 %v17768_v35, %v17769_v11  ;;  %v17772_v58 = vld [vmem:[#allocation59_spill] sm:$0xff] }
 0x4bb   :  { %v3760_v51 = vmul.f32 1.442695, %v3671_v16  ;;  %17767 = vst [vmem:[#allocation11_spill] sm:$0xff] %v13708_v29  ;;  %6985 = vpow2.f32 %v4542_v10  ;;  %v13720_v14 = vsel %vm1277_vm2, %v2441_v62, %v12979_v17  ;;  %v13722_v20 = vpop.eup %6971  ;;  %v2039_v57 = vmul.f32 %v13708_v29, %v17772_v58  ;;  %v17774_v16 = vld [vmem:[#allocation253_spill] sm:$0xff] }
 0x4bc   :  { %v4101_v0 = vsub.f32 %v17770_v32, %v17735_v60  ;;  %17771 = vst [vmem:[#allocation451_spill] sm:$0xff] %v13722_v20  ;;  %6987 = vpow2.f32 %v3328_v27  ;;  %v13729_v19 = vsel %vm1277_vm2, %v12955_v61, %v2441_v62  ;;  %v17775_v10 = vld [vmem:[#allocation373_spill] sm:$0xff]  ;;  %v3430_v17 = vmul.f32 %v13439_v39, %v12997_v21  ;;  %v17778_v62 = vld [vmem:[#allocation582_spill] sm:$0xff] }
 0x4bd   :  { %v17776_v60 = vmax.f32 %v17774_v16, %v17775_v10  ;;  %v4546_v59 = vmul.f32 1.442695, %v13711_v8  ;;  %6989 = vpow2.f32 %v3756_v54  ;;  %v13738_v11 = vpop.eup %6973  ;;  %v2567_v27 = vmul.f32 %v13722_v20, %v13720_v14  ;;  %v17779_v32 = vld [vmem:[#allocation454_spill] sm:$0xff]  ;;  %v17783_v54 = vld [vmem:[#allocation21_spill] sm:$0xff] }
 0x4be   :  { %v4188_v35 = vmul.f32 1.442695, %v4101_v0  ;;  %17777 = vst [vmem:[#allocation248_spill] sm:$0xff] %v13738_v11  ;;  %6991 = vpow2.f32 %v3758_v28  ;;  %v17780_v63 = vmax.f32 %v17778_v62, %v17779_v32  ;;  %v2566_v10 = vmul.f32 %v13738_v11, %v13729_v19  ;;  %v17786_v28 = vld [vmem:[#allocation405_spill] sm:$0xff]  ;;  %v17787_v39 = vld [vmem:[#allocation586_spill] sm:$0xff] }
 0x4bf   :  { %v1897_v30 = vsub.f32 %v17776_v60, %v17773_v3  ;;  %6993 = vpow2.f32 %v4546_v59  ;;  %v17781_v60 = vld [vmem:[#allocation505_spill] sm:$0xff]  ;;  %v17784_v0 = vmax.f32 %v17782_v5, %v17783_v54  ;;  %v17788_v48 = vmax.f32 %v17786_v28, %v17787_v39 }
 0x4c0   :  { %v2233_v16 = vsub.f32 %v17780_v63, %v17773_v3  ;;  %vm4471_vm12 = vcmp.gt.f32.partialorder %v13677_v26, 0.0  ;;  %6995 = vpow2.f32 %v3760_v51  ;;  %v2615_v63 = vadd.f32 %v2567_v27, %v2039_v57  ;;  %v13771_v51 = vpop.permute.xlu0 %2410  ;;  %v17793_v57 = vld [vmem:[#allocation536_spill] sm:$0xff]  ;;  %v17794_v27 = vld [vmem:[#allocation57_spill] sm:$0xff] }
 0x4c1   :  { %v1988_v61 = vmul.f32 1.442695, %v1897_v30  ;;  %v3242_v21 = vsub.f32 %v17784_v0, %v17781_v60  ;;  %v13756_v43 = vsub.f32 %v17788_v48, %v17785_v18  ;;  %v13758_v30 = vpop.eup %6975  ;;  %vm4470_vm13 = vcmp.gt.f32.partialorder %v13687_v6, 0.0  ;;  %v17792_v48 = vld [vmem:[#allocation194_spill] sm:$0xff] }
 0x4c2   :  { %17789 = vst [vmem:[#allocation90_spill] sm:$0xff] %v13758_v30  ;;  %v2324_v59 = vmul.f32 1.442695, %v2233_v16  ;;  %v13761_v62 = vpop.eup %6977  ;;  %v2997_v5 = vmul.f32 %v13758_v30, %v17772_v58  ;;  %6997 = vpow2.f32 %v4188_v35  ;;  %v2614_v32 = vadd.f32 %v2566_v10, %v2038_v31  ;;  %v17796_v10 = vld [vmem:[#allocation397_spill] sm:$0xff]  ;;  %v17797_v30 = vld [vmem:[#allocation500_spill] sm:$0xff] }
 0x4c3   :  { %17790 = vst [vmem:[#allocation581_spill] sm:$0xff] %v13761_v62  ;;  %v13766_v54 = vpop.eup %6979  ;;  %v2998_v39 = vmul.f32 %v13761_v62, %v17470_v47  ;;  %6999 = vpow2.f32 %v17792_v48  ;;  %v3334_v0 = vmul.f32 1.442695, %v3242_v21  ;;  %v2362_v16 = vadd.f32 %v17794_v27, %v17793_v57  ;;  %v17798_v57 = vld [vmem:[#allocation189_spill] sm:$0xff] }
 0x4c4   :  { %17791 = vst [vmem:[#allocation88_spill] sm:$0xff] %v13766_v54  ;;  %v13775_v28 = vpop.eup %6981  ;;  %vm4472_vm14 = vcmp.gt.f32.partialorder %v13711_v8, 0.0  ;;  %v2999_v31 = vmul.f32 %v13766_v54, %v17766_v1  ;;  %v3045_v35 = vadd.f32 %v2997_v5, %v13061_v37  ;;  %7001 = vpow2.f32 %v1988_v61  ;;  %v17799_v61 = vld [vmem:[#allocation151_spill] sm:$0xff] }
 0x4c5   :  { %17795 = vst [vmem:[#allocation203_spill] sm:$0xff] %v13775_v28  ;;  %v2363_v62 = vadd.f32 %v17797_v30, %v17796_v10  ;;  %v6984_v48 = vpop.eup %6983  ;;  %v3046_v21 = vadd.f32 %v2998_v39, %v2614_v32  ;;  %v3429_v20 = vmul.f32 %v13775_v28, %v13720_v14  ;;  %7003 = vpow2.f32 %v2324_v59 }
 0x4c6   :  { %v2938_v27 = vadd.f32 %v17798_v57, %v2362_v16  ;;  %v6986_v29 = vpop.eup %6985  ;;  %v5799_v36 = vadd.f32 -1.0, %v6984_v48  ;;  %v3047_v11 = vadd.f32 %v2999_v31, %v2615_v63  ;;  %v13790_v37 = vsel %vm1277_vm2, %v13771_v51, %v13364_v23  ;;  %v17802_v31 = vld [vmem:[#allocation39_spill] sm:$0xff]  ;;  %v17803_v57 = vld [vmem:[#allocation76_spill] sm:$0xff] }
 0x4c7   :  { %v2939_v5 = vadd.f32 %v17799_v61, %v2363_v62  ;;  %v13793_v30 = vpop.eup %6987  ;;  %v5798_v32 = vadd.f32 -1.0, %v6986_v29  ;;  %v3477_v39 = vadd.f32 %v3429_v20, %v3045_v35  ;;  %v3478_v10 = vadd.f32 %v3430_v17, %v3046_v21  ;;  %v17804_v17 = vld [vmem:[#allocation206_spill] sm:$0xff]  ;;  %v17807_v35 = vld [vmem:[#allocation371_spill] sm:$0xff] }
 0x4c8   :  { %17800 = vst [vmem:[#allocation84_spill] sm:$0xff] %v13793_v30  ;;  %7005 = vpow2.f32 %v3334_v0  ;;  %v13795_v59 = vpop.eup %6989  ;;  %v4663_v63 = vsel %vm4471_vm12, %v13677_v26, %v5799_v36  ;;  %v3431_v16 = vmul.f32 %v13793_v30, %v13729_v19  ;;  %v3370_v48 = vadd.f32 %v17802_v31, %v2938_v27  ;;  %v17805_v0 = vld [vmem:[#allocation530_spill] sm:$0xff]  ;;  %v17806_v26 = vld [vmem:[#allocation249_spill] sm:$0xff] }
 0x4c9   :  { %17801 = vst [vmem:[#allocation486_spill] sm:$0xff] %v13795_v59  ;;  %v3371_v54 = vadd.f32 %v17803_v57, %v2939_v5  ;;  %v13804_v62 = vpop.eup %6991  ;;  %4845 = vmatprep.mubr.f32.mxu1 %v4663_v63  ;;  %v4662_v29 = vsel %vm4470_vm13, %v13687_v6, %v5798_v32  ;;  %v3861_v20 = vmul.f32 %v13795_v59, %v17766_v1  ;;  %v17809_v31 = vld [vmem:[#allocation73_spill] sm:$0xff]  ;;  %v17810_v32 = vld [vmem:[#allocation179_spill] sm:$0xff] }
 0x4ca   :  { %v13813_v36 = vadd.f32 %v17805_v0, %v17804_v17  ;;  %v17808_v21 = vmax.f32 %v17806_v26, %v17807_v35  ;;  %v6994_v61 = vpop.eup %6993  ;;  %4846 = vmatmul.mubr.f32.gmra.mrb[80].mxu1 %v4662_v29  ;;  %v3862_v5 = vmul.f32 %v13804_v62, %v17772_v58  ;;  %v3479_v63 = vadd.f32 %v3431_v16, %v3047_v11  ;;  %v17812_v0 = vld [vmem:[#allocation425_spill] sm:$0xff]  ;;  %v17813_v59 = vld [vmem:[#allocation475_spill] sm:$0xff]  ;;  %v17816_v16 = vld [vmem:[#allocation184_spill] sm:$0xff] }
 0x4cb   :  { %v3802_v6 = vadd.f32 %v17809_v31, %v3370_v48  ;;  %v3803_v57 = vadd.f32 %v17810_v32, %v3371_v54  ;;  %v13823_v1 = vpop.eup %6995  ;;  %v5800_v30 = vadd.f32 -1.0, %v6994_v61  ;;  %v3909_v17 = vadd.f32 %v3861_v20, %v3477_v39  ;;  %v17817_v29 = vld [vmem:[#allocation167_spill] sm:$0xff]  ;;  %v17819_v61 = vld [vmem:[#allocation476_spill] sm:$0xff] }
 0x4cc   :  { %v1896_v27 = vsub.f32 %v17808_v21, %v17785_v18  ;;  %17811 = vst [vmem:[#allocation86_spill] sm:$0xff] %v13823_v1  ;;  %v17814_v28 = vmax.f32 %v17812_v0, %v17813_v59  ;;  %v13829_v21 = vpop.eup %6997  ;;  %v3863_v58 = vmul.f32 %v13823_v1, %v17470_v47  ;;  %v3910_v11 = vadd.f32 %v3862_v5, %v3478_v10  ;;  %v17879_v1 = vld [vmem:[#allocation392_spill] sm:$0xff] }
 0x4cd   :  { %17815 = vst [vmem:[#allocation197_spill] sm:$0xff] %v13829_v21  ;;  %v4234_v48 = vadd.f32 %v17816_v16, %v3802_v6  ;;  %v4235_v54 = vadd.f32 %v17817_v29, %v3803_v57  ;;  %v13835_v31 = vpop.eup %6999  ;;  %v4664_v39 = vsel %vm4472_vm14, %v13711_v8, %v5800_v30  ;;  %v17824_v57 = vld [vmem:[#allocation372_spill] sm:$0xff] }
 0x4ce   :  { %v1898_v26 = vsub.f32 %v17814_v28, %v17781_v60  ;;  %v1986_v35 = vmul.f32 1.442695, %v1896_v27  ;;  %v4293_v28 = vmul.f32 %v13829_v21, %v13729_v19  ;;  %v13842_v20 = vpop.eup %7001  ;;  %6059 = vmatprep.mubr.f32.mxu0 %v4664_v39  ;;  %v13844_v47 = vadd.f32 %v3863_v58, %v3479_v63  ;;  %v17818_v27 = vld [vmem:[#allocation426_spill] sm:$0xff]  ;;  %v17822_v19 = vld [vmem:[#allocation64_spill] sm:$0xff]  ;;  %v17831_v39 = vld [vmem:[#allocation569_spill] sm:$0xff] }
 0x4cf   :  { %v4294_v10 = vmul.f32 %v13835_v31, %v13720_v14  ;;  %v17820_v5 = vmax.f32 %v17818_v27, %v17819_v61  ;;  %v13852_v8 = vpop.eup %7003  ;;  %v2041_v32 = vmul.f32 %v13842_v20, %v17822_v19  ;;  %v17823_v63 = vld [vmem:[#allocation250_spill] sm:$0xff]  ;;  %v17827_v58 = vld [vmem:[#allocation256_spill] sm:$0xff] }
 0x4d0   :  { %7007 = vpow2.f32 %v1986_v35  ;;  %v1990_v59 = vmul.f32 1.442695, %v1898_v26  ;;  %v13854_v30 = vadd.f32 %v4293_v28, %v3909_v17  ;;  %v17825_v0 = vmax.f32 %v17823_v63, %v17824_v57  ;;  %v17828_v16 = vld [vmem:[#allocation380_spill] sm:$0xff]  ;;  %v17832_v61 = vld [vmem:[#allocation254_spill] sm:$0xff]  ;;  %v17835_v57 = vld [vmem:[#allocation427_spill] sm:$0xff] }
 0x4d1   :  { %7009 = vrcp.f32 %v4234_v48  ;;  %v2808_v6 = vsub.f32 %v17820_v5, %v17785_v18  ;;  %v13862_v14 = vadd.f32 %v4294_v10, %v3910_v11  ;;  %v2569_v35 = vmul.f32 %v13852_v8, %v13790_v37  ;;  %v17833_v5 = vld [vmem:[#allocation375_spill] sm:$0xff] }
 0x4d2   :  { %17821 = vst [vmem:[#allocation466_spill] sm:$0xff] %v13854_v30  ;;  %7011 = vrcp.f32 %v4235_v54  ;;  %v2809_v26 = vsub.f32 %v17825_v0, %v17773_v3  ;;  %v17829_v17 = vmax.f32 %v17827_v58, %v17828_v16  ;;  %v13870_v29 = vpop.eup %7005  ;;  %v13874_v54 = vmul.f32 %v13488_v22, %v13397_v2  ;;  %v17836_v0 = vld [vmem:[#allocation477_spill] sm:$0xff]  ;;  %v17838_v58 = vld [vmem:[#allocation260_spill] sm:$0xff] }
 0x4d3   :  { %17826 = vst [vmem:[#allocation12_spill] sm:$0xff] %v13862_v14  ;;  %7013 = vpow2.f32 %v1990_v59  ;;  %17830 = vst [vmem:[#allocation198_spill] sm:$0xff] %v13870_v29  ;;  %v2898_v28 = vmul.f32 1.442695, %v2808_v6  ;;  %v13879_v10 = vmul.f32 %v13504_v7, %v13482_v50  ;;  %v13881_v59 = vadd.f32 %v2569_v35, %v2041_v32  ;;  %v17839_v16 = vld [vmem:[#allocation381_spill] sm:$0xff]  ;;  %v17864_v14 = vld [vmem:[#allocation62_spill] sm:$0xff] }
 0x4d4   :  { %v2810_v48 = vsub.f32 %v17829_v17, %v17781_v60  ;;  %7015 = vpow2.f32 %v17831_v39  ;;  %v2900_v11 = vmul.f32 1.442695, %v2809_v26  ;;  %v17834_v63 = vmax.f32 %v17832_v61, %v17833_v5  ;;  %v2475_v5 = vpop.permute.xlu0 %2474 }
 0x4d5   :  { %7017 = vpow2.f32 %v13050_v42  ;;  %v17837_v6 = vmax.f32 %v17835_v57, %v17836_v0  ;;  %v17840_v17 = vmax.f32 %v17838_v58, %v17839_v16  ;;  %v13897_v35 = vmul.f32 1.442695, %v13756_v43  ;;  %v17844_v57 = vld [vmem:[#allocation528_spill] sm:$0xff]  ;;  %v17846_v0 = vld [vmem:[#allocation391_spill] sm:$0xff] }
 0x4d6   :  { %v2902_v27 = vmul.f32 1.442695, %v2810_v48  ;;  %7019 = vpow2.f32 %v2898_v28  ;;  %v3672_v2 = vsub.f32 %v17834_v63, %v17785_v18  ;;  %v13901_v42 = vmul.f32 %v13870_v29, %v13790_v37  ;;  %v17841_v48 = vld [vmem:[#allocation148_spill] sm:$0xff]  ;;  %v17843_v63 = vld [vmem:[#allocation195_spill] sm:$0xff] }
 0x4d7   :  { %v3673_v26 = vsub.f32 %v17837_v6, %v17773_v3  ;;  %v3674_v32 = vsub.f32 %v17840_v17, %v17781_v60  ;;  %7021 = vpow2.f32 %v2900_v11  ;;  %v17842_v18 = vld [vmem:[#allocation160_spill] sm:$0xff]  ;;  %v17849_v11 = vld [vmem:[#allocation483_spill] sm:$0xff] }
 0x4d8   :  { %v2361_v39 = vadd.f32 %v17842_v18, %v17841_v48  ;;  %7023 = vpow2.f32 %v2902_v27  ;;  %v3762_v28 = vmul.f32 1.442695, %v3672_v2  ;;  %v17845_v43 = vld [vmem:[#allocation272_spill] sm:$0xff]  ;;  %v17852_v27 = vld [vmem:[#allocation571_spill] sm:$0xff]  ;;  %v17853_v2 = vld [vmem:[#allocation269_spill] sm:$0xff] }
 0x4d9   :  { %v3764_v61 = vmul.f32 1.442695, %v3673_v26  ;;  %v3766_v3 = vmul.f32 1.442695, %v3674_v32  ;;  %7025 = vpow2.f32 %v13053_v55  ;;  %v17847_v6 = vmax.f32 %v17845_v43, %v17846_v0  ;;  %v17848_v16 = vld [vmem:[#allocation472_spill] sm:$0xff]  ;;  %v17854_v26 = vld [vmem:[#allocation387_spill] sm:$0xff] }
 0x4da   :  { %v2937_v60 = vadd.f32 %v17843_v63, %v2361_v39  ;;  %v17850_v17 = vmax.f32 %v17848_v16, %v17849_v11  ;;  %v13915_v48 = vpop.eup %7007  ;;  %7027 = vpow2.f32 %v17852_v27  ;;  %v17855_v55 = vmax.f32 %v17853_v2, %v17854_v26  ;;  %v17856_v18 = vld [vmem:[#allocation471_spill] sm:$0xff]  ;;  %v17858_v63 = vld [vmem:[#allocation393_spill] sm:$0xff]  ;;  %v13930_v11 = vpop.f32.mrb[64].mxu1 }
 0x4db   :  { %v1900_v58 = vsub.f32 %v17847_v6, %v17844_v57  ;;  %17851 = vst [vmem:[#allocation337_spill] sm:$0xff] %v13915_v48  ;;  %v17857_v39 = vld [vmem:[#allocation275_spill] sm:$0xff]  ;;  %v17861_v6 = vld [vmem:[#allocation134_spill] sm:$0xff]  ;;  %17863 = vst [vmem:[#allocation85_spill] sm:$0xff] %v13930_v11  ;;  %v2040_v27 = vmul.f32 %v13915_v48, %v17864_v14  ;;  %7029 = vpow2.f32 %v3762_v28  ;;  %v13937_v2 = vsel %vm1277_vm2, %v13364_v23, %v2475_v5  ;;  %v13952_v11 = vpop.f32.mrb[96].mxu0 }
 0x4dc   :  { %v2236_v30 = vsub.f32 %v17850_v17, %v17844_v57  ;;  %v2812_v32 = vsub.f32 %v17855_v55, %v17844_v57  ;;  %v17859_v7 = vmax.f32 %v17857_v39, %v17858_v63  ;;  %v17860_v0 = vld [vmem:[#allocation135_spill] sm:$0xff]  ;;  %v7010_v17 = vpop.eup %7009  ;;  %v17865_v26 = vld [vmem:[#allocation257_spill] sm:$0xff]  ;;  %7031 = vpow2.f32 %v3764_v61  ;;  %17869 = vst [vmem:[#allocation111_spill] sm:$0xff] %v13952_v11 }
 0x4dd   :  { %v17862_v50 = vmax.f32 %v17860_v0, %v17861_v6  ;;  %v3369_v55 = vadd.f32 %v17865_v26, %v2937_v60  ;;  %v7012_v39 = vpop.eup %7011  ;;  %v17867_v63 = vld [vmem:[#allocation287_spill] sm:$0xff]  ;;  %v1994_v28 = vmul.f32 1.442695, %v1900_v58  ;;  %7033 = vpow2.f32 %v3766_v3  ;;  %v17871_v26 = vld [vmem:[#allocation70_spill] sm:$0xff] }
 0x4de   :  { %v2813_v43 = vsub.f32 %v17859_v7, %v17856_v18  ;;  %v13940_v7 = vpop.f32.mrb[65].mxu1  ;;  %v13943_v0 = vmul.f32 %v7010_v17, %v17867_v63  ;;  %v13954_v23 = vpop.eup %7013  ;;  %v13957_v60 = vmul.f32 %v7012_v39, %v13813_v36  ;;  %v2330_v63 = vmul.f32 1.442695, %v2236_v30  ;;  %v17875_v58 = vld [vmem:[#allocation63_spill] sm:$0xff] }
 0x4df   :  { %v3245_v16 = vsub.f32 %v17862_v50, %v17856_v18  ;;  %17866 = vst [vmem:[#allocation234_spill] sm:$0xff] %v13940_v7  ;;  %v13948_v50 = vsel %vm1277_vm2, %v2475_v5, %v13771_v51  ;;  %v13950_v6 = vpop.f32.mrb[66].mxu1  ;;  %17870 = vst [vmem:[#allocation585_spill] sm:$0xff] %v13954_v23  ;;  %v3801_v17 = vadd.f32 %v17871_v26, %v3369_v55  ;;  %v13962_v7 = vpop.f32.mrb[97].mxu0  ;;  %7035 = vpow2.f32 %v13058_v34 }
 0x4e0   :  { %17868 = vst [vmem:[#allocation115_spill] sm:$0xff] %v13950_v6  ;;  %v13960_v61 = vpop.f32.mrb[67].mxu1  ;;  %17873 = vst [vmem:[#allocation403_spill] sm:$0xff] %v13962_v7  ;;  %v13964_v51 = vpop.eup %7015  ;;  %v4550_v5 = vmul.f32 1.442695, %v13943_v0  ;;  %v2042_v11 = vmul.f32 %v13954_v23, %v17875_v58  ;;  %7037 = vpow2.f32 %v13433_v53  ;;  %v17877_v7 = vld [vmem:[#allocation522_spill] sm:$0xff] }
 0x4e1   :  { %17872 = vst [vmem:[#allocation428_spill] sm:$0xff] %v13960_v61  ;;  %17874 = vst [vmem:[#allocation10_spill] sm:$0xff] %v13964_v51  ;;  %v2906_v6 = vmul.f32 1.442695, %v2812_v32  ;;  %v13970_v36 = vpop.eup %7017  ;;  %v4552_v3 = vmul.f32 1.442695, %v13957_v60  ;;  %v2568_v30 = vmul.f32 %v13964_v51, %v13948_v50  ;;  %v4233_v61 = vadd.f32 %v17877_v7, %v3801_v17 }
 0x4e2   :  { %17876 = vst [vmem:[#allocation241_spill] sm:$0xff] %v13970_v36  ;;  %v2908_v55 = vmul.f32 1.442695, %v2813_v43  ;;  %v13976_v39 = vpop.eup %7019  ;;  %7039 = vpow2.f32 %v4550_v5  ;;  %v2570_v26 = vmul.f32 %v13970_v36, %v13937_v2  ;;  %v3340_v34 = vmul.f32 1.442695, %v3245_v16  ;;  %v17878_v23 = vld [vmem:[#allocation273_spill] sm:$0xff] }
 0x4e3   :  { %v13981_v32 = vpop.eup %7021  ;;  %7041 = vpow2.f32 %v4552_v3  ;;  %v3000_v29 = vmul.f32 %v13976_v39, %v17875_v58  ;;  %v2616_v53 = vadd.f32 %v2568_v30, %v2040_v27  ;;  %v17880_v43 = vmax.f32 %v17878_v23, %v17879_v1  ;;  %v17882_v16 = vld [vmem:[#allocation277_spill] sm:$0xff]  ;;  %v17883_v7 = vld [vmem:[#allocation395_spill] sm:$0xff] }
 0x4e4   :  { %v13989_v48 = vpop.eup %7023  ;;  %v3001_v5 = vmul.f32 %v13981_v32, %v17864_v14  ;;  %v2618_v36 = vadd.f32 %v2570_v26, %v2042_v11  ;;  %7043 = vrcp.f32 %v4233_v61  ;;  %v17884_v17 = vmax.f32 %v17882_v16, %v17883_v7 }
 0x4e5   :  { %v3675_v51 = vsub.f32 %v17880_v43, %v12425_v12  ;;  %17881 = vst [vmem:[#allocation442_spill] sm:$0xff] %v13989_v48  ;;  %v13997_v21 = vpop.eup %7025  ;;  %v3002_v27 = vmul.f32 %v13989_v48, %v17822_v19  ;;  %v3048_v30 = vadd.f32 %v3000_v29, %v2616_v53  ;;  %7045 = vpow2.f32 %v1994_v28  ;;  %v17886_v28 = vld [vmem:[#allocation129_spill] sm:$0xff] }
 0x4e6   :  { %v3677_v3 = vsub.f32 %v17884_v17, %v17856_v18  ;;  %17885 = vst [vmem:[#allocation50_spill] sm:$0xff] %v13997_v21  ;;  %v14001_v23 = vpop.eup %7027  ;;  %vm4474_vm15 = vcmp.gt.f32.partialorder %v13943_v0, 0.0  ;;  %v3049_v11 = vadd.f32 %v3001_v5, %v13881_v59  ;;  %v3432_v61 = vmul.f32 %v13997_v21, %v13937_v2  ;;  %v17889_v17 = vld [vmem:[#allocation432_spill] sm:$0xff] }
 0x4e7   :  { %v3768_v1 = vmul.f32 1.442695, %v3675_v51  ;;  %7047 = vpow2.f32 %v2330_v63  ;;  %v14007_v43 = vpop.eup %7029  ;;  %vm4475_vm0 = vcmp.gt.f32.partialorder %v13957_v60, 0.0  ;;  %v3050_v16 = vadd.f32 %v3002_v27, %v2618_v36  ;;  %v17887_v51 = vld [vmem:[#allocation519_spill] sm:$0xff]  ;;  %v17890_v36 = vld [vmem:[#allocation480_spill] sm:$0xff] }
 0x4e8   :  { %v3772_v26 = vmul.f32 1.442695, %v3677_v3  ;;  %v3433_v29 = vmul.f32 %v14001_v23, %v13948_v50  ;;  %7049 = vpow2.f32 %v13455_v52  ;;  %v17888_v53 = vmax.f32 %v17886_v28, %v17887_v51  ;;  %v14017_v5 = vpop.eup %7031  ;;  %v2445_v51 = vpop.permute.xlu0 %2444 }
 0x4e9   :  { %v3864_v63 = vmul.f32 %v14007_v43, %v17822_v19  ;;  %v3480_v7 = vadd.f32 %v3432_v61, %v3048_v30  ;;  %7051 = vpow2.f32 %v2906_v6  ;;  %v17891_v3 = vmax.f32 %v17889_v17, %v17890_v36  ;;  %v14025_v48 = vpop.eup %7033  ;;  %v17897_v36 = vld [vmem:[#allocation99_spill] sm:$0xff] }
 0x4ea   :  { %v4107_v59 = vsub.f32 %v17888_v53, %v12425_v12  ;;  %v3865_v52 = vmul.f32 %v14017_v5, %v17875_v58  ;;  %v3481_v21 = vadd.f32 %v3433_v29, %v3049_v11  ;;  %v3482_v28 = vadd.f32 %v13901_v42, %v3050_v16  ;;  %v14030_v53 = vpop.eup %7035 }
 0x4eb   :  { %v1901_v27 = vsub.f32 %v17891_v3, %v17856_v18  ;;  %7053 = vpow2.f32 %v2908_v55  ;;  %v3866_v19 = vmul.f32 %v14025_v48, %v17864_v14  ;;  %v14034_v6 = vadd.f32 %v3864_v63, %v3480_v7  ;;  %v14037_v30 = vpop.eup %7037 }
 0x4ec   :  { %7055 = vpow2.f32 %v13466_v38  ;;  %v4200_v18 = vmul.f32 1.442695, %v4107_v59  ;;  %v3913_v61 = vadd.f32 %v3865_v52, %v3481_v21  ;;  %v4297_v58 = vmul.f32 %v14030_v53, %v13937_v2  ;;  %v7040_v55 = vpop.eup %7039 }
 0x4ed   :  { %7057 = vpow2.f32 %v3340_v34  ;;  %v1996_v42 = vmul.f32 1.442695, %v1901_v27  ;;  %v3914_v11 = vadd.f32 %v3866_v19, %v3482_v28  ;;  %v4298_v16 = vmul.f32 %v14037_v30, %v13948_v50  ;;  %v7042_v38 = vpop.eup %7041  ;;  %v17894_v50 = vld [vmem:[#allocation434_spill] sm:$0xff] }
 0x4ee   :  { %7059 = vpow2.f32 %v3768_v1  ;;  %v14046_v14 = vsel %vm1277_vm2, %v2445_v51, %v13450_v15  ;;  %v5802_v29 = vadd.f32 -1.0, %v7040_v55  ;;  %v14048_v59 = vadd.f32 %v4297_v58, %v3913_v61  ;;  %v7044_v2 = vpop.eup %7043  ;;  %v17895_v1 = vld [vmem:[#allocation481_spill] sm:$0xff]  ;;  %v17902_v55 = vld [vmem:[#allocation404_spill] sm:$0xff] }
 0x4ef   :  { %7061 = vpow2.f32 %v3772_v26  ;;  %v2509_v21 = vsel %vm1277_vm2, %v13410_v4, %v2445_v51  ;;  %v5803_v34 = vadd.f32 -1.0, %v7042_v38  ;;  %v14053_v63 = vadd.f32 %v4298_v16, %v3914_v11  ;;  %v14059_v17 = vpop.eup %7045  ;;  %v17899_v4 = vld [vmem:[#allocation482_spill] sm:$0xff]  ;;  %v17901_v51 = vld [vmem:[#allocation68_spill] sm:$0xff]  ;;  %v17903_v11 = vld [vmem:[#allocation201_spill] sm:$0xff] }
 0x4f0   :  { %17892 = vst [vmem:[#allocation25_spill] sm:$0xff] %v14048_v59  ;;  %7063 = vpow2.f32 %v4200_v18  ;;  %v17896_v7 = vmax.f32 %v17894_v50, %v17895_v1  ;;  %v4666_v26 = vsel %vm4474_vm15, %v13943_v0, %v5802_v29  ;;  %v14065_v3 = vmul.f32 %v7044_v2, %v17897_v36  ;;  %v17908_v36 = vld [vmem:[#allocation583_spill] sm:$0xff] }
 0x4f1   :  { %17893 = vst [vmem:[#allocation69_spill] sm:$0xff] %v14053_v63  ;;  %7065 = vpow2.f32 %v13684_v13  ;;  %v17900_v27 = vmax.f32 %v17898_v24, %v17899_v4  ;;  %v14072_v28 = vpop.eup %7047  ;;  %4850 = vmatprep.mubr.f32.mxu1 %v4666_v26  ;;  %v2044_v0 = vmul.f32 %v14059_v17, %v17901_v51  ;;  %v2364_v16 = vadd.f32 %v13094_v44, %v13075_v25  ;;  %v17906_v25 = vld [vmem:[#allocation384_spill] sm:$0xff] }
 0x4f2   :  { %v2811_v15 = vsub.f32 %v17896_v7, %v12425_v12  ;;  %v4667_v12 = vsel %vm4475_vm0, %v13957_v60, %v5803_v34  ;;  %7067 = vpow2.f32 %v1996_v42  ;;  %v14079_v18 = vpop.eup %7049  ;;  %v4548_v13 = vmul.f32 1.442695, %v14065_v3  ;;  %v17909_v24 = vld [vmem:[#allocation8_spill] sm:$0xff] }
 0x4f3   :  { %v3676_v52 = vsub.f32 %v17900_v27, %v17844_v57  ;;  %7069 = vpow2.f32 %v13897_v35  ;;  %6060 = vmatmul.mubr.f32.gmra.mrb[104].mxu0 %v4667_v12  ;;  %v2572_v57 = vmul.f32 %v14072_v28, %v2509_v21  ;;  %v14084_v58 = vpop.eup %7051  ;;  %v2573_v60 = vmul.f32 %v14079_v18, %v14046_v14  ;;  %v17911_v4 = vld [vmem:[#allocation396_spill] sm:$0xff] }
 0x4f4   :  { %v2904_v19 = vmul.f32 1.442695, %v2811_v15  ;;  %v2365_v42 = vadd.f32 %v17903_v11, %v17902_v55  ;;  %v3004_v35 = vmul.f32 %v14084_v58, %v17681_v45  ;;  %v14098_v2 = vadd.f32 %v13702_v49, %v13172_v56  ;;  %v17910_v49 = vld [vmem:[#allocation474_spill] sm:$0xff] }
 0x4f5   :  { %v3770_v61 = vmul.f32 1.442695, %v3676_v52  ;;  %v14092_v38 = vpop.eup %7053  ;;  %v2620_v29 = vadd.f32 %v2572_v57, %v2044_v0  ;;  %v2940_v44 = vadd.f32 %v17906_v25, %v2364_v16  ;;  %v2366_v56 = vadd.f32 %v17909_v24, %v17908_v36  ;;  %v17913_v0 = vld [vmem:[#allocation286_spill] sm:$0xff]  ;;  %v17919_v25 = vld [vmem:[#allocation75_spill] sm:$0xff] }
 0x4f6   :  { %7071 = vpow2.f32 %v2904_v19  ;;  %17904 = vst [vmem:[#allocation230_spill] sm:$0xff] %v14092_v38  ;;  %v14100_v34 = vpop.eup %7055  ;;  %v3005_v50 = vmul.f32 %v14092_v38, %v17901_v51  ;;  %v2941_v1 = vadd.f32 %v13120_v40, %v2365_v42  ;;  %v2368_v27 = vadd.f32 %v17911_v4, %v17910_v49  ;;  %v17914_v19 = vld [vmem:[#allocation574_spill] sm:$0xff] }
 0x4f7   :  { %7073 = vpow2.f32 %v4548_v13  ;;  %17905 = vst [vmem:[#allocation74_spill] sm:$0xff] %v14100_v34  ;;  %v14106_v7 = vpop.eup %7057  ;;  %v3052_v15 = vadd.f32 %v3004_v35, %v2620_v29  ;;  %v3435_v26 = vmul.f32 %v14100_v34, %v14046_v14  ;;  %v3372_v13 = vadd.f32 %v17914_v19, %v2940_v44  ;;  %v17915_v57 = vld [vmem:[#allocation478_spill] sm:$0xff]  ;;  %v17918_v35 = vld [vmem:[#allocation584_spill] sm:$0xff]  ;;  %v17921_v44 = vld [vmem:[#allocation7_spill] sm:$0xff] }
 0x4f8   :  { %7075 = vpow2.f32 %v3770_v61  ;;  %17907 = vst [vmem:[#allocation96_spill] sm:$0xff] %v14106_v7  ;;  %v14114_v52 = vpop.eup %7059  ;;  %v3437_v12 = vmul.f32 %v14106_v7, %v2509_v21  ;;  %v3373_v40 = vadd.f32 %v17913_v0, %v2941_v1  ;;  %v17916_v61 = vld [vmem:[#allocation464_spill] sm:$0xff]  ;;  %vm4473_vm2 = vcmp.gt.f32.partialorder %v14065_v3, 0.0  ;;  %v17922_v4 = vld [vmem:[#allocation398_spill] sm:$0xff] }
 0x4f9   :  { %17912 = vst [vmem:[#allocation216_spill] sm:$0xff] %v14114_v52  ;;  %v2367_v55 = vadd.f32 %v17916_v61, %v17915_v57  ;;  %v14121_v11 = vpop.eup %7061  ;;  %v3867_v42 = vmul.f32 %v14114_v52, %v17901_v51  ;;  %v3484_v16 = vadd.f32 %v13879_v10, %v3052_v15  ;;  %v2942_v29 = vadd.f32 %v17918_v35, %v2366_v56  ;;  %v17923_v19 = vld [vmem:[#allocation188_spill] sm:$0xff]  ;;  %v17926_v56 = vld [vmem:[#allocation146_spill] sm:$0xff] }
 0x4fa   :  { %17917 = vst [vmem:[#allocation488_spill] sm:$0xff] %v14121_v11  ;;  %v2944_v36 = vadd.f32 %v17919_v25, %v2368_v27  ;;  %v14129_v24 = vpop.eup %7063  ;;  %v3869_v1 = vmul.f32 %v14121_v11, %v17681_v45  ;;  %v3805_v49 = vadd.f32 %v17921_v44, %v3373_v40  ;;  %v3804_v0 = vadd.f32 %v17922_v4, %v3372_v13  ;;  %v17925_v10 = vld [vmem:[#allocation540_spill] sm:$0xff]  ;;  %v17928_v25 = vld [vmem:[#allocation283_spill] sm:$0xff]  ;;  %v17930_v44 = vld [vmem:[#allocation78_spill] sm:$0xff] }
 0x4fb   :  { %17920 = vst [vmem:[#allocation493_spill] sm:$0xff] %v14129_v24  ;;  %v2943_v57 = vadd.f32 %v17923_v19, %v2367_v55  ;;  %v14136_v61 = vpop.eup %7065  ;;  %v4299_v51 = vmul.f32 %v14129_v24, %v2509_v21  ;;  %v3374_v15 = vadd.f32 %v17925_v10, %v2942_v29  ;;  %v17927_v27 = vld [vmem:[#allocation576_spill] sm:$0xff]  ;;  %v17929_v40 = vld [vmem:[#allocation383_spill] sm:$0xff] }
 0x4fc   :  { %17924 = vst [vmem:[#allocation93_spill] sm:$0xff] %v14136_v61  ;;  %v3376_v35 = vadd.f32 %v17926_v56, %v2944_v36  ;;  %v2369_v52 = vadd.f32 %v17928_v25, %v17927_v27  ;;  %v14143_v63 = vpop.eup %7067  ;;  %v4300_v45 = vmul.f32 %v14136_v61, %v14046_v14  ;;  %v4237_v13 = vadd.f32 %v17929_v40, %v3805_v49  ;;  %v17931_v21 = vld [vmem:[#allocation67_spill] sm:$0xff]  ;;  %v17932_v36 = vld [vmem:[#allocation102_spill] sm:$0xff]  ;;  %v17933_v56 = vld [vmem:[#allocation589_spill] sm:$0xff] }
 0x4fd   :  { %v4236_v55 = vadd.f32 %v17764_v9, %v3804_v0  ;;  %v3375_v4 = vadd.f32 %v17930_v44, %v2943_v57  ;;  %v14150_v19 = vpop.eup %7069  ;;  %v2045_v29 = vmul.f32 %v14143_v63, %v17931_v21  ;;  %v3806_v10 = vadd.f32 %v17932_v36, %v3374_v15  ;;  %v17934_v25 = vld [vmem:[#allocation473_spill] sm:$0xff]  ;;  %v17935_v14 = vld [vmem:[#allocation191_spill] sm:$0xff]  ;;  %v17939_v44 = vld [vmem:[#allocation202_spill] sm:$0xff] }
 0x4fe   :  { %v3808_v27 = vadd.f32 %v17933_v56, %v3376_v35  ;;  %v2945_v24 = vadd.f32 %v17934_v25, %v2369_v52  ;;  %7077 = vrcp.f32 %v4237_v13  ;;  %v17936_v40 = vld [vmem:[#allocation559_spill] sm:$0xff]  ;;  %v17937_v9 = vld [vmem:[#allocation65_spill] sm:$0xff]  ;;  %v17941_v56 = vld [vmem:[#allocation176_spill] sm:$0xff] }
 0x4ff   :  { %v3807_v49 = vadd.f32 %v17935_v14, %v3375_v4  ;;  %v14162_v0 = vadd.f32 %v17937_v9, %v17936_v40  ;;  %v17938_v57 = vld [vmem:[#allocation87_spill] sm:$0xff]  ;;  %v2621_v7 = vadd.f32 %v2573_v60, %v2045_v29  ;;  %7079 = vrcp.f32 %v4236_v55  ;;  %v17940_v35 = vld [vmem:[#allocation77_spill] sm:$0xff] }
 0x500   :  { %v14157_v34 = vpop.eup %7071  ;;  %v2371_v59 = vadd.f32 %v17939_v44, %v17938_v57  ;;  %v4238_v52 = vadd.f32 %v17940_v35, %v3806_v10  ;;  %v4240_v4 = vadd.f32 %v17941_v56, %v3808_v27  ;;  %v17942_v25 = vld [vmem:[#allocation229_spill] sm:$0xff]  ;;  %v17943_v40 = vld [vmem:[#allocation79_spill] sm:$0xff]  ;;  %v17946_v10 = vld [vmem:[#allocation82_spill] sm:$0xff] }
 0x501   :  { %v7074_v11 = vpop.eup %7073  ;;  %v3003_v15 = vmul.f32 %v14157_v34, %v17931_v21  ;;  %v4239_v14 = vadd.f32 %v17942_v25, %v3807_v49  ;;  %v3377_v9 = vadd.f32 %v17943_v40, %v2945_v24  ;;  %v17944_v61 = vld [vmem:[#allocation83_spill] sm:$0xff]  ;;  %v3053_v57 = vadd.f32 %v3005_v50, %v2621_v7  ;;  %v17945_v29 = vld [vmem:[#allocation225_spill] sm:$0xff] }
 0x502   :  { %v14169_v36 = vpop.eup %7075  ;;  %v5801_v13 = vadd.f32 -1.0, %v7074_v11  ;;  %7081 = vrcp.f32 %v4238_v52  ;;  %v2947_v27 = vadd.f32 %v17946_v10, %v2371_v59  ;;  %v5090_v50 = vld [vmem:[%s14668_s6] sm:$0xff]  ;;  %v5091_v7 = vld [vmem:[%s14668_s6 + $0x8] sm:$0xff] }
 0x503   :  { %v3051_v38 = vadd.f32 %v3003_v15, %v17944_v61  ;;  %v3868_v60 = vmul.f32 %v14169_v36, %v17931_v21  ;;  %7083 = vrcp.f32 %v4240_v4  ;;  %v3809_v11 = vadd.f32 %v17945_v29, %v3377_v9  ;;  %v17947_v61 = vld [vmem:[#allocation207_spill] sm:$0xff]  ;;  %v17948_v21 = vld [vmem:[#allocation302_spill] sm:$0xff]  ;;  %v17949_v35 = vld [vmem:[#allocation485_spill] sm:$0xff] }
 0x504   :  { %v4665_v55 = vsel %vm4473_vm2, %v14065_v3, %v5801_v13  ;;  %v3485_v44 = vadd.f32 %v3437_v12, %v3053_v57  ;;  %7085 = vrcp.f32 %v4239_v14  ;;  %v3379_v15 = vadd.f32 %v17948_v21, %v2947_v27  ;;  %v17950_v52 = vld [vmem:[#allocation186_spill] sm:$0xff]  ;;  %v17951_v13 = vld [vmem:[#allocation196_spill] sm:$0xff]  ;;  %v17952_v56 = vld [vmem:[#allocation409_spill] sm:$0xff] }
 0x505   :  { %4851 = vmatmul.mubr.f32.gmra.mrb[82].mxu1 %v4665_v55  ;;  %v3483_v49 = vadd.f32 %v3435_v26, %v3051_v38  ;;  %v3916_v24 = vadd.f32 %v3868_v60, %v3484_v16  ;;  %v4241_v3 = vadd.f32 %v17947_v61, %v3809_v11  ;;  %v2370_v59 = vadd.f32 %v17950_v52, %v17949_v35  ;;  %v17953_v14 = vld [vmem:[#allocation579_spill] sm:$0xff]  ;;  %v17954_v60 = vld [vmem:[#allocation192_spill] sm:$0xff]  ;;  %v17959_v27 = vld [vmem:[#allocation89_spill] sm:$0xff] }
 0x506   :  { %v14194_v38 = vadd.f32 %v13874_v54, %v13628_v33  ;;  %v14196_v12 = vadd.f32 %v3869_v1, %v3485_v44  ;;  %v2372_v4 = vadd.f32 %v17952_v56, %v17951_v13  ;;  %v3811_v25 = vadd.f32 %v13617_v41, %v3379_v15  ;;  %v17955_v33 = vld [vmem:[#allocation248_spill] sm:$0xff]  ;;  %v17957_v1 = vld [vmem:[#allocation6_spill] sm:$0xff]  ;;  %v17958_v11 = vld [vmem:[#allocation547_spill] sm:$0xff] }
 0x507   :  { %v3915_v26 = vadd.f32 %v3867_v42, %v3483_v49  ;;  %v14198_v16 = vadd.f32 %v4300_v45, %v3916_v24  ;;  %7087 = vrcp.f32 %v4241_v3  ;;  %v2946_v40 = vadd.f32 %v17953_v14, %v2370_v59  ;;  %v17956_v42 = vld [vmem:[#allocation200_spill] sm:$0xff]  ;;  %v17960_v44 = vld [vmem:[#allocation235_spill] sm:$0xff]  ;;  %v17965_v35 = vld [vmem:[#allocation581_spill] sm:$0xff] }
 0x508   :  { %v6207_v9 = vpack.c.bf16 %v5091_v7, %v5090_v50  ;;  %v2948_v55 = vadd.f32 %v17954_v60, %v2372_v4  ;;  %v2374_v54 = vadd.f32 %v17955_v33, %v13698_v46  ;;  %v2373_v45 = vadd.f32 %v17957_v1, %v17956_v42  ;;  %v7078_v29 = vpop.eup %7077  ;;  %v17961_v24 = vld [vmem:[#allocation11_spill] sm:$0xff]  ;;  %v14216_v7 = vpop.f32.mrb[68].mxu1  ;;  %v17966_v13 = vld [vmem:[#allocation292_spill] sm:$0xff]  ;;  %v17967_v4 = vld [vmem:[#allocation90_spill] sm:$0xff] }
 0x509   :  { %v14204_v57 = vadd.f32 %v4299_v51, %v3915_v26  ;;  %v4204_v10 = vmul.f32 1.442695, %v17958_v11  ;;  %v4243_v49 = vadd.f32 %v17959_v27, %v3811_v25  ;;  %v3378_v41 = vadd.f32 %v17960_v44, %v2946_v40  ;;  %v17962_v51 = vld [vmem:[#allocation451_spill] sm:$0xff]  ;;  %v7080_v61 = vpop.eup %7079  ;;  %v14223_v59 = vpop.f32.mrb[69].mxu1  ;;  %v17970_v1 = vld [vmem:[#allocation9_spill] sm:$0xff]  ;;  %v17971_v27 = vld [vmem:[#allocation580_spill] sm:$0xff] }
 0x50a   :  { %6208 = vmatprep.subr.bf16.mxu0 %v6207_v9  ;;  %6231 = vmatprep.subr.bf16.mxu1 %v6207_v9  ;;  %v2375_v50 = vadd.f32 %v17962_v51, %v17961_v24  ;;  %v17963_v3 = vld [vmem:[#allocation187_spill] sm:$0xff]  ;;  %v2950_v52 = vadd.f32 %v17965_v35, %v2374_v54  ;;  %v14226_v26 = vmul.f32 %v7080_v61, %v14098_v2  ;;  %v17974_v61 = vld [vmem:[#allocation210_spill] sm:$0xff] }
 0x50b   :  { %v14219_v46 = vmul.f32 %v7078_v29, %v17963_v3  ;;  %v17964_v21 = vld [vmem:[#allocation587_spill] sm:$0xff]  ;;  %6210 = vmatpush3.bf16.msra.mxu0 %v6207_v9  ;;  %6235 = vmatpush3.bf16.msra.mxu1 %v6207_v9  ;;  %7089 = vrcp.f32 %v4243_v49  ;;  %v3810_v56 = vadd.f32 %v17966_v13, %v3378_v41  ;;  %v2949_v25 = vadd.f32 %v17967_v4, %v2373_v45  ;;  %v17972_v49 = vld [vmem:[#allocation212_spill] sm:$0xff]  ;;  %v17975_v3 = vld [vmem:[#allocation226_spill] sm:$0xff] }
 0x50c   :  { %v3380_v15 = vadd.f32 %v17964_v21, %v2948_v55  ;;  %v7082_v14 = vpop.eup %7081  ;;  %v17968_v60 = vld [vmem:[#allocation407_spill] sm:$0xff]  ;;  %v17969_v55 = vld [vmem:[#allocation420_spill] sm:$0xff]  ;;  %7091 = vpow2.f32 %v4204_v10  ;;  %v4554_v9 = vmul.f32 1.442695, %v14226_v26  ;;  %v4295_v21 = vmul.f32 %v17975_v3, %v17974_v61 }
 0x50d   :  { %v4556_v40 = vmul.f32 1.442695, %v14219_v46  ;;  %v3382_v42 = vadd.f32 %v17969_v55, %v2950_v52  ;;  %v7084_v54 = vpop.eup %7083  ;;  %v14235_v29 = vmul.f32 %v7082_v14, %v17970_v1  ;;  %v4242_v2 = vadd.f32 %v13488_v22, %v3810_v56  ;;  %v17973_v10 = vld [vmem:[#allocation575_spill] sm:$0xff]  ;;  %v17978_v55 = vld [vmem:[#allocation486_spill] sm:$0xff] }
 0x50e   :  { %v3812_v33 = vadd.f32 %v17968_v60, %v3380_v15  ;;  %v7086_v11 = vpop.eup %7085  ;;  %v14239_v45 = vmul.f32 %v7084_v54, %v17971_v27  ;;  %v5092_v35 = vld [vmem:[%s14668_s6 + $0x10] sm:$0xff]  ;;  %v4296_v13 = vmul.f32 %v14150_v19, %v13790_v37  ;;  %vm4477_vm1 = vcmp.gt.f32.partialorder %v14219_v46, 0.0  ;;  %v17982_v27 = vld [vmem:[#allocation10_spill] sm:$0xff] }
 0x50f   :  { %7093 = vpow2.f32 %v4556_v40  ;;  %v3814_v41 = vadd.f32 %v13804_v62, %v3382_v42  ;;  %v4558_v24 = vmul.f32 1.442695, %v14235_v29  ;;  %v14245_v51 = vmul.f32 %v7086_v11, %v17973_v10  ;;  %v5093_v62 = vld [vmem:[%s14668_s6 + $0x18] sm:$0xff]  ;;  %v17976_v4 = vld [vmem:[#allocation203_spill] sm:$0xff] }
 0x510   :  { %v4244_v44 = vadd.f32 %v17972_v49, %v3812_v33  ;;  %7095 = vpow2.f32 %v4554_v9  ;;  %v4562_v22 = vmul.f32 1.442695, %v14239_v45  ;;  %v3381_v14 = vadd.f32 %v17976_v4, %v2949_v25  ;;  %v17977_v40 = vld [vmem:[#allocation88_spill] sm:$0xff]  ;;  %v17981_v11 = vld [vmem:[#allocation337_spill] sm:$0xff]  ;;  %v5095_v49 = vld [vmem:[%s14668_s6 + $0x28] sm:$0xff] }
 0x511   :  { %7097 = vrcp.f32 %v4242_v2  ;;  %v4246_v15 = vadd.f32 %v13835_v31, %v3814_v41  ;;  %v7088_v52 = vpop.eup %7087  ;;  %v4560_v56 = vmul.f32 1.442695, %v14245_v51  ;;  %v2951_v60 = vadd.f32 %v17977_v40, %v2375_v50  ;;  %v17979_v9 = vld [vmem:[#allocation84_spill] sm:$0xff] }
 0x512   :  { %7099 = vpow2.f32 %v4558_v24  ;;  %v14263_v31 = vmul.f32 %v7088_v52, %v14162_v0  ;;  %v14267_v33 = vadd.f32 %v4295_v21, %v13844_v47  ;;  %v3813_v42 = vadd.f32 %v17978_v55, %v3381_v14  ;;  %v17980_v47 = vld [vmem:[#allocation197_spill] sm:$0xff]  ;;  %v17984_v24 = vld [vmem:[#allocation86_spill] sm:$0xff] }
 0x513   :  { %7101 = vpow2.f32 %v4562_v22  ;;  %v6211_v37 = vpack.c.bf16 %v5093_v62, %v5092_v35  ;;  %v2377_v54 = vadd.f32 %v13852_v8, %v13842_v20  ;;  %vm4476_vm3 = vcmp.gt.f32.partialorder %v14226_v26, 0.0  ;;  %v5094_v8 = vld [vmem:[%s14668_s6 + $0x20] sm:$0xff] }
 0x514   :  { %7103 = vpow2.f32 %v4560_v56  ;;  %v4564_v25 = vmul.f32 1.442695, %v14263_v31  ;;  %v3383_v0 = vadd.f32 %v17979_v9, %v2951_v60  ;;  %vm4478_vm4 = vcmp.gt.f32.partialorder %v14235_v29, 0.0  ;;  %v17986_v35 = vld [vmem:[#allocation241_spill] sm:$0xff]  ;;  %v17987_v60 = vld [vmem:[#allocation50_spill] sm:$0xff] }
 0x515   :  { %7105 = vrcp.f32 %v4244_v44  ;;  %v7090_v1 = vpop.eup %7089  ;;  %v4245_v50 = vadd.f32 %v17980_v47, %v3813_v42  ;;  %6212 = vmatprep.subr.bf16.mxu0 %v6211_v37  ;;  %v2953_v2 = vadd.f32 %v13981_v32, %v2377_v54  ;;  %6232 = vmatprep.subr.bf16.mxu1 %v6211_v37  ;;  %v2376_v20 = vadd.f32 %v17982_v27, %v17981_v11  ;;  %v17983_v44 = vld [vmem:[#allocation13_spill] sm:$0xff] }
 0x516   :  { %7107 = vrcp.f32 %v4246_v15  ;;  %v14287_v41 = vmul.f32 %v7090_v1, %v17983_v44  ;;  %v3815_v10 = vadd.f32 %v17984_v24, %v3383_v0  ;;  %6214 = vmatpush3.bf16.msra.mxu0 %v6211_v37  ;;  %6236 = vmatpush3.bf16.msra.mxu1 %v6211_v37  ;;  %v14291_v32 = vadd.f32 %v4296_v13, %v14034_v6  ;;  %v14293_v61 = vpop.eup %7091  ;;  %v17985_v15 = vld [vmem:[#allocation585_spill] sm:$0xff] }
 0x517   :  { %7109 = vpow2.f32 %v4564_v25  ;;  %v3385_v21 = vadd.f32 %v14001_v23, %v2953_v2  ;;  %v2952_v22 = vadd.f32 %v13976_v39, %v2376_v20  ;;  %v2378_v62 = vadd.f32 %v17986_v35, %v17985_v15  ;;  %v17988_v23 = vld [vmem:[#allocation442_spill] sm:$0xff]  ;;  %v17993_v35 = vld [vmem:[#allocation80_spill] sm:$0xff] }
 0x518   :  { %7111 = vrcp.f32 %v4245_v50  ;;  %vm4480_vm5 = vcmp.gt.f32.partialorder %v14239_v45, 0.0  ;;  %v4568_v56 = vmul.f32 1.442695, %v14287_v41  ;;  %v4247_v4 = vadd.f32 %v17975_v3, %v3815_v10 }
 0x519   :  { %v7094_v52 = vpop.eup %7093  ;;  %v6215_v14 = vpack.c.bf16 %v5095_v49, %v5094_v8  ;;  %v3817_v40 = vadd.f32 %v14017_v5, %v3385_v21  ;;  %v3384_v55 = vadd.f32 %v17987_v60, %v2952_v22  ;;  %v2954_v42 = vadd.f32 %v17988_v23, %v2378_v62  ;;  %v17990_v8 = vld [vmem:[#allocation487_spill] sm:$0xff] }
 0x51a   :  { %v7096_v6 = vpop.eup %7095  ;;  %v5805_v13 = vadd.f32 -1.0, %v7094_v52  ;;  %7113 = vpow2.f32 %v4568_v56  ;;  %v2380_v54 = vadd.f32 %v14072_v28, %v14059_v17  ;;  %v2381_v3 = vadd.f32 %v14143_v63, %v14079_v18  ;;  %v17989_v18 = vld [vmem:[#allocation198_spill] sm:$0xff] }
 0x51b   :  { %v7098_v39 = vpop.eup %7097  ;;  %v5804_v37 = vadd.f32 -1.0, %v7096_v6  ;;  %6216 = vmatprep.subr.bf16.mxu0 %v6215_v14  ;;  %6233 = vmatprep.subr.bf16.mxu1 %v6215_v14  ;;  %7115 = vrcp.f32 %v4247_v4  ;;  %v4249_v0 = vadd.f32 %v14030_v53, %v3817_v40  ;;  %v3816_v28 = vadd.f32 %v14007_v43, %v3384_v55  ;;  %v17994_v52 = vld [vmem:[#allocation466_spill] sm:$0xff]  ;;  %v5097_v4 = vld [vmem:[%s14668_s6 + $0x38] sm:$0xff] }
 0x51c   :  { %v7100_v25 = vpop.eup %7099  ;;  %v4669_v5 = vsel %vm4477_vm1, %v14219_v46, %v5805_v13  ;;  %v14313_v9 = vmul.f32 %v7098_v39, %v14194_v38  ;;  %6218 = vmatpush3.bf16.msra.mxu0 %v6215_v14  ;;  %6237 = vmatpush3.bf16.msra.mxu1 %v6215_v14  ;;  %v3386_v47 = vadd.f32 %v17989_v18, %v2954_v42  ;;  %vm4479_vm6 = vcmp.gt.f32.partialorder %v14245_v51, 0.0  ;;  %v17995_v13 = vld [vmem:[#allocation230_spill] sm:$0xff] }
 0x51d   :  { %v7102_v1 = vpop.eup %7101  ;;  %4855 = vmatprep.mubr.f32.mxu1 %v4669_v5  ;;  %v4668_v17 = vsel %vm4476_vm3, %v14226_v26, %v5804_v37  ;;  %v5806_v63 = vadd.f32 -1.0, %v7100_v25  ;;  %7117 = vrcp.f32 %v4249_v0  ;;  %v4248_v26 = vadd.f32 %v14150_v19, %v3816_v28  ;;  %v17996_v37 = vld [vmem:[#allocation93_spill] sm:$0xff]  ;;  %v17999_v0 = vld [vmem:[#allocation452_spill] sm:$0xff]  ;;  %v5086_v18 = vld [vmem:[#allocation3] sm:$0xff] }
 0x51e   :  { %v7104_v46 = vpop.eup %7103  ;;  %4856 = vmatmul.mubr.f32.gmra.mrb[84].mxu1 %v4668_v17  ;;  %v5808_v38 = vadd.f32 -1.0, %v7102_v1  ;;  %v4566_v53 = vmul.f32 1.442695, %v14313_v9  ;;  %v3818_v43 = vadd.f32 %v14025_v48, %v3386_v47  ;;  %v2956_v44 = vadd.f32 %v14084_v58, %v2380_v54  ;;  %v18000_v17 = vld [vmem:[#allocation85_spill] sm:$0xff]  ;;  %v5087_v47 = vld [vmem:[#allocation3 + $0x8] sm:$0xff] }
 0x51f   :  { %v7106_v50 = vpop.eup %7105  ;;  %v4670_v2 = vsel %vm4478_vm4, %v14235_v29, %v5806_v63  ;;  %v5807_v11 = vadd.f32 -1.0, %v7104_v46  ;;  %v17991_v29 = vld [vmem:[#allocation12_spill] sm:$0xff]  ;;  %vm4481_vm7 = vcmp.gt.f32.partialorder %v14263_v31, 0.0  ;;  %v2957_v40 = vadd.f32 %v17995_v13, %v2381_v3  ;;  %v17998_v3 = vld [vmem:[#allocation278_spill] sm:$0xff] }
 0x520   :  { %v7108_v27 = vpop.eup %7107  ;;  %6062 = vmatprep.mubr.f32.mxu0 %v4670_v2  ;;  %v4672_v20 = vsel %vm4480_vm5, %v14239_v45, %v5808_v38  ;;  %7119 = vpow2.f32 %v4566_v53  ;;  %v14332_v49 = vmul.f32 %v7106_v50, %v17990_v8  ;;  %v4250_v10 = vadd.f32 %v14037_v30, %v3818_v43  ;;  %v17992_v45 = vld [vmem:[#allocation220_spill] sm:$0xff]  ;;  %v18001_v63 = vld [vmem:[#allocation234_spill] sm:$0xff]  ;;  %v18003_v50 = vld [vmem:[#allocation115_spill] sm:$0xff] }
 0x521   :  { %v7110_v24 = vpop.eup %7109  ;;  %4860 = vmatprep.mubr.f32.mxu1 %v4672_v20  ;;  %v4671_v19 = vsel %vm4479_vm6, %v14245_v51, %v5807_v11  ;;  %v14339_v48 = vmul.f32 %v7108_v27, %v17991_v29  ;;  %7121 = vrcp.f32 %v4248_v26  ;;  %v4301_v22 = vmul.f32 %v14293_v61, %v17992_v45  ;;  %v5096_v30 = vld [vmem:[%s14668_s6 + $0x30] sm:$0xff]  ;;  %v18005_v43 = vld [vmem:[#allocation25_spill] sm:$0xff]  ;;  %v18006_v45 = vld [vmem:[#allocation74_spill] sm:$0xff] }
 0x522   :  { %v7112_v21 = vpop.eup %7111  ;;  %4861 = vmatmul.mubr.f32.gmra.mrb[86].mxu1 %v4671_v19  ;;  %v5809_v15 = vadd.f32 -1.0, %v7110_v24  ;;  %v4570_v58 = vmul.f32 1.442695, %v14332_v49  ;;  %v3388_v62 = vadd.f32 %v17993_v35, %v2956_v44  ;;  %7123 = vrcp.f32 %v4250_v10  ;;  %v18004_v2 = vld [vmem:[#allocation428_spill] sm:$0xff] }
 0x523   :  { %v4574_v51 = vmul.f32 1.442695, %v14339_v48  ;;  %v14349_v56 = vmul.f32 %v7112_v21, %v17994_v52  ;;  %vm4483_vm8 = vcmp.gt.f32.partialorder %v14287_v41, 0.0  ;;  %v14363_v23 = vadd.f32 %v4301_v22, %v14196_v12  ;;  %v14377_v12 = vld [vmem:[%s14665_s3] ss:$0 sm:$0xff]  ;;  %v18007_v22 = vld [vmem:[#allocation111_spill] sm:$0xff] }
 0x524   :  { %v4673_v14 = vsel %vm4481_vm7, %v14263_v31, %v5809_v15  ;;  %7125 = vpow2.f32 %v4570_v58  ;;  %v3820_v6 = vadd.f32 %v14169_v36, %v3388_v62  ;;  %v7114_v60 = vpop.eup %7113  ;;  %v17997_v31 = vld [vmem:[#allocation96_spill] sm:$0xff]  ;;  %v6219_v5 = vpack.c.bf16 %v5097_v4, %v5096_v30  ;;  %v18008_v62 = vld [vmem:[#allocation403_spill] sm:$0xff]  ;;  %v18009_v4 = vld [vmem:[#allocation69_spill] sm:$0xff] }
 0x525   :  { %6063 = vmatmul.mubr.f32.gmra.mrb[106].mxu0 %v4673_v14  ;;  %7127 = vpow2.f32 %v4574_v51  ;;  %v4572_v55 = vmul.f32 1.442695, %v14349_v56  ;;  %v7116_v42 = vpop.eup %7115  ;;  %v5811_v39 = vadd.f32 -1.0, %v7114_v60  ;;  %v3389_v25 = vadd.f32 %v17997_v31, %v2957_v40 }
 0x526   :  { %v4252_v54 = vadd.f32 %v17996_v37, %v3820_v6  ;;  %v14368_v36 = vmul.f32 %v7116_v42, %v14267_v33  ;;  %v2379_v1 = vadd.f32 %v17999_v0, %v17998_v3  ;;  %v5893_v28 = vadd.f32 %v18001_v63, %v18000_v17  ;;  %v18002_v33 = vld [vmem:[#allocation488_spill] sm:$0xff]  ;;  %6220 = vmatprep.subr.bf16.mxu0 %v6219_v5  ;;  %v5900_v37 = vpop.f32.mrb[70].mxu1 }
 0x527   :  { %7129 = vpow2.f32 %v4572_v55  ;;  %v7118_v46 = vpop.eup %7117  ;;  %v4675_v38 = vsel %vm4483_vm8, %v14287_v41, %v5811_v39  ;;  %v3821_v53 = vadd.f32 %v18002_v33, %v3389_v25  ;;  %6234 = vmatprep.subr.bf16.mxu1 %v6219_v5  ;;  %v5896_v11 = vadd.f32 %v18004_v2, %v18003_v50  ;;  %6222 = vmatpush3.bf16.msra.mxu0 %v6219_v5  ;;  %v18010_v6 = vld [vmem:[#allocation216_spill] sm:$0xff]  ;;  %v6052_v33 = vpop.f32.mrb[98].mxu0 }
 0x528   :  { %7131 = vrcp.f32 %v4252_v54  ;;  %4865 = vmatprep.mubr.f32.mxu1 %v4675_v38  ;;  %v4576_v26 = vmul.f32 1.442695, %v14368_v36  ;;  %v14387_v27 = vmul.f32 %v7118_v46, %v18005_v43  ;;  %v2955_v20 = vadd.f32 %v14157_v34, %v2379_v1  ;;  %6238 = vmatpush3.bf16.msra.mxu1 %v6219_v5  ;;  %v5901_v5 = vpop.f32.mrb[71].mxu1  ;;  %v4962_v50 = vpop.f32.mrb[99].mxu0 }
 0x529   :  { %v4253_v41 = vadd.f32 %v14293_v61, %v3821_v53  ;;  %v4813_v44 = vadd.f32 %v5896_v11, %v14377_v12  ;;  %v4808_v24 = vadd.f32 %v5893_v28, %v14377_v12  ;;  %v14393_v19 = vpack.c.bf16 %v5087_v47, %v5086_v18 }
 0x52a   :  { %v7120_v8 = vpop.eup %7119  ;;  %vm4482_vm9 = vcmp.gt.f32.partialorder %v14313_v9, 0.0  ;;  %7133 = vpow2.f32 %v4576_v26  ;;  %v4580_v21 = vmul.f32 1.442695, %v14387_v27  ;;  %v3387_v61 = vadd.f32 %v18006_v45, %v2955_v20 }
 0x52b   :  { %v7122_v29 = vpop.eup %7121  ;;  %v5810_v10 = vadd.f32 -1.0, %v7120_v8  ;;  %7135 = vrcp.f32 %v4253_v41  ;;  %v14402_v15 = vadd.f32 %v18007_v22, %v4813_v44  ;;  %6224 = vmatprep.subr.bf16.mxu1 %v14393_v19  ;;  %v14407_v51 = vadd.f32 %v18008_v62, %v4808_v24  ;;  %v18014_v62 = vld [vmem:[#allocation281_spill] sm:$0xff] }
 0x52c   :  { %v14398_v34 = vmul.f32 %v7122_v29, %v14291_v32  ;;  %v7124_v58 = vpop.eup %7123  ;;  %7137 = vpow2.f32 %v4580_v21  ;;  %v5899_v52 = vadd.f32 %v14223_v59, %v14216_v7  ;;  %v3819_v13 = vadd.f32 %v18010_v6, %v3387_v61  ;;  %v18011_v7 = vld [vmem:[#allocation493_spill] sm:$0xff]  ;;  %v18012_v21 = vld [vmem:[#allocation255_spill] sm:$0xff] }
 0x52d   :  { %v4674_v35 = vsel %vm4482_vm9, %v14313_v9, %v5810_v10  ;;  %v4442_v14 = vmul.f32 %v7124_v58, %v18009_v4  ;;  %vm4484_vm10 = vcmp.gt.f32.partialorder %v14332_v49, 0.0  ;;  %vm4486_vm11 = vcmp.gt.f32.partialorder %v14339_v48, 0.0  ;;  %v14439_v29 = vld [vmem:[%s14666_s4] ss:$0 sm:$0xff]  ;;  %v18015_v4 = vld [vmem:[#allocation288_spill] sm:$0xff] }
 0x52e   :  { %v7126_v32 = vpop.eup %7125  ;;  %4866 = vmatmul.mubr.f32.gmra.mrb[88].mxu1 %v4674_v35  ;;  %v4578_v30 = vmul.f32 1.442695, %v14398_v34  ;;  %v4251_v59 = vadd.f32 %v18011_v7, %v3819_v13  ;;  %vm4485_vm12 = vcmp.gt.f32.partialorder %v14349_v56, 0.0  ;;  %v5902_v0 = vadd.f32 %v5901_v5, %v5900_v37  ;;  %v18016_v6 = vld [vmem:[#allocation353_spill] sm:$0xff]  ;;  %v18020_v5 = vld [vmem:[#allocation379_spill] sm:$0xff] }
 0x52f   :  { %v7128_v40 = vpop.eup %7127  ;;  %v5812_v60 = vadd.f32 -1.0, %v7126_v32  ;;  %v4582_v55 = vmul.f32 1.442695, %v4442_v14  ;;  %vm4487_vm13 = vcmp.gt.f32.partialorder %v14368_v36, 0.0  ;;  %vm4489_vm14 = vcmp.gt.f32.partialorder %v14387_v27, 0.0 }
 0x530   :  { %v5814_v9 = vadd.f32 -1.0, %v7128_v40  ;;  %7139 = vpow2.f32 %v4578_v30  ;;  %v4823_v63 = vadd.f32 %v5902_v0, %v14377_v12  ;;  %vm4488_vm15 = vcmp.gt.f32.partialorder %v14398_v34, 0.0 }
 0x531   :  { %v7130_v42 = vpop.eup %7129  ;;  %v4676_v39 = vsel %vm4484_vm10, %v14332_v49, %v5812_v60  ;;  %7141 = vpow2.f32 %v4582_v55  ;;  %vm4490_vm0 = vcmp.gt.f32.partialorder %v4442_v14, 0.0  ;;  %vm5098_vm3 = vcmask 523264  }
 0x532   :  { %v7132_v54 = vpop.eup %7131  ;;  %6065 = vmatprep.mubr.f32.mxu0 %v4676_v39  ;;  %v4678_v31 = vsel %vm4486_vm11, %v14339_v48, %v5814_v9  ;;  %v5813_v25 = vadd.f32 -1.0, %v7130_v42  ;;  %7143 = vrcp.f32 %v4251_v59  ;;  %v4818_v48 = vadd.f32 %v5899_v52, %v14377_v12  ;;  %v18017_v9 = vld [vmem:[#allocation307_spill] sm:$0xff]  ;;  %v18019_v59 = vld [vmem:[#allocation361_spill] sm:$0xff] }
 0x533   :  { %4870 = vmatprep.mubr.f32.mxu1 %v4678_v31  ;;  %v4444_v3 = vmul.f32 %v7132_v54, %v14198_v16  ;;  %v14428_v53 = vadd.f32 %v6052_v33, %v4823_v63  ;;  %v5056_v52 = vadd.f32 %v14439_v29, %v18014_v62  ;;  %v5062_v13 = vadd.f32 %v14439_v29, %v18016_v6  ;;  %v18018_v39 = vld [vmem:[#allocation315_spill] sm:$0xff]  ;;  %v18023_v33 = vld [vmem:[#allocation340_spill] sm:$0xff] }
 0x534   :  { %v4677_v49 = vsel %vm4485_vm12, %v14349_v56, %v5813_v25  ;;  %v7134_v1 = vpop.eup %7133  ;;  %v14431_v26 = vadd.f32 %v4962_v50, %v4818_v48  ;;  %v5058_v55 = vadd.f32 %v14439_v29, %v18017_v9  ;;  %v5059_v7 = vadd.f32 %v14439_v29, %v18018_v39 }
 0x535   :  { %4871 = vmatmul.mubr.f32.gmra.mrb[90].mxu1 %v4677_v49  ;;  %v4586_v17 = vmul.f32 1.442695, %v4444_v3  ;;  %v7136_v28 = vpop.eup %7135  ;;  %v5815_v18 = vadd.f32 -1.0, %v7134_v1  ;;  %vm4492_vm2 = vcmp.gt.f32.partialorder %v4444_v3, 0.0  ;;  %v5072_v60 = vmax.f32 %v5056_v52, 0.0 }
 0x536   :  { %v7138_v47 = vpop.eup %7137  ;;  %v4445_v46 = vmul.f32 %v7136_v28, %v14363_v23  ;;  %v5063_v37 = vadd.f32 %v14439_v29, %v18019_v59  ;;  %v5078_v25 = vmax.f32 %v5062_v13, 0.0  ;;  %v5074_v1 = vmax.f32 %v5058_v55, 0.0  ;;  %v5088_v28 = vld [vmem:[#allocation3 + $0x10] sm:$0xff] }
 0x537   :  { %7145 = vpow2.f32 %v4586_v17  ;;  %v4679_v16 = vsel %vm4487_vm13, %v14368_v36, %v5815_v18  ;;  %v5817_v38 = vadd.f32 -1.0, %v7138_v47  ;;  %v5903_v54 = vpop.f32.mrb[72].mxu1  ;;  %v18021_v17 = vld [vmem:[#allocation331_spill] sm:$0xff]  ;;  %v5089_v18 = vld [vmem:[#allocation3 + $0x18] sm:$0xff]  ;;  %v5075_v47 = vmax.f32 %v5059_v7, 0.0 }
 0x538   :  { %6066 = vmatmul.mubr.f32.gmra.mrb[108].mxu0 %v4679_v16  ;;  %v4588_v56 = vmul.f32 1.442695, %v4445_v46  ;;  %vm4493_vm1 = vcmp.gt.f32.partialorder %v4445_v46, 0.0  ;;  %v5904_v49 = vpop.f32.mrb[73].mxu1  ;;  %v5060_v63 = vadd.f32 %v14439_v29, %v18021_v17  ;;  %v18022_v16 = vld [vmem:[#allocation390_spill] sm:$0xff]  ;;  %vm5292_vm5 = vcmask 261120  }
 0x539   :  { %v4681_v11 = vsel %vm4489_vm14, %v14387_v27, %v5817_v38  ;;  %v5905_v48 = vadd.f32 %v5904_v49, %v5903_v54  ;;  %v5065_v38 = vadd.f32 %v14439_v29, %v18022_v16  ;;  %vm5619_vm6 = vcmask 7168  }
 0x53a   :  { %v7140_v2 = vpop.eup %7139  ;;  %4875 = vmatprep.mubr.f32.mxu1 %v4681_v11  ;;  %7147 = vpow2.f32 %v4588_v56  ;;  %v5061_v56 = vadd.f32 %v14439_v29, %v18023_v33 }
 0x53b   :  { %v5816_v43 = vadd.f32 -1.0, %v7140_v2  ;;  %v7142_v23 = vpop.eup %7141  ;;  %v18024_v2 = vld [vmem:[#allocation402_spill] sm:$0xff] }
 0x53c   :  { %v7144_v36 = vpop.eup %7143  ;;  %v5818_v8 = vadd.f32 -1.0, %v7142_v23  ;;  %v5066_v11 = vadd.f32 %v14439_v29, %v18024_v2  ;;  %v5076_v23 = vmax.f32 %v5060_v63, 0.0 }
 0x53d   :  { %v4680_v20 = vsel %vm4488_vm15, %v14398_v34, %v5816_v43  ;;  %v4443_v41 = vmul.f32 %v7144_v36, %v14204_v57  ;;  %v5054_v34 = vadd.f32 %v14439_v29, %v18012_v21  ;;  %v18013_v57 = vld [vmem:[#allocation262_spill] sm:$0xff]  ;;  %v6227_v43 = vpack.c.bf16 %v5089_v18, %v5088_v28  ;;  %v18027_v21 = vld [vmem:[#allocation437_spill] sm:$0xff] }
 0x53e   :  { %4876 = vmatmul.mubr.f32.gmra.mrb[92].mxu1 %v4680_v20  ;;  %v4682_v44 = vsel %vm4490_vm0, %v4442_v14, %v5818_v8  ;;  %v5055_v58 = vadd.f32 %v14439_v29, %v18013_v57  ;;  %v5057_v14 = vadd.f32 %v14439_v29, %v18015_v4  ;;  %v5081_v36 = vmax.f32 %v5065_v38, 0.0  ;;  %v18025_v20 = vld [vmem:[#allocation412_spill] sm:$0xff] }
 0x53f   :  { %6068 = vmatprep.mubr.f32.mxu0 %v4682_v44  ;;  %v4584_v24 = vmul.f32 1.442695, %v4443_v41  ;;  %v5070_v35 = vmax.f32 %v5054_v34, 0.0  ;;  %vm4491_vm4 = vcmp.gt.f32.partialorder %v4443_v41, 0.0  ;;  %v5067_v8 = vadd.f32 %v14439_v29, %v18025_v20 }
 0x540   :  { %v5071_v30 = vmax.f32 %v5055_v58, 0.0  ;;  %v5073_v31 = vmax.f32 %v5057_v14, 0.0  ;;  %v5082_v44 = vmax.f32 %v5066_v11, 0.0  ;;  %v5069_v34 = vadd.f32 %v14439_v29, %v18027_v21 }
 0x541   :  { %v7146_v27 = vpop.eup %7145  ;;  %7149 = vpow2.f32 %v4584_v24  ;;  %v18026_v24 = vld [vmem:[#allocation423_spill] sm:$0xff]  ;;  %v5033_v57 = vmax.f32 %v14431_v26, 0.0  ;;  %v4828_v58 = vadd.f32 %v5905_v48, %v14377_v12 }
 0x542   :  { %v5820_v10 = vadd.f32 -1.0, %v7146_v27  ;;  %v5068_v27 = vadd.f32 %v14439_v29, %v18026_v24 }
 0x544   :  { %v4684_v45 = vsel %vm4492_vm2, %v4444_v3, %v5820_v10  ;;  %v7148_v61 = vpop.eup %7147  ;;  %v5064_v3 = vadd.f32 %v14439_v29, %v18020_v5  ;;  %v5083_v10 = vmax.f32 %v5067_v8, 0.0  ;;  %v5034_v29 = vmax.f32 %v14428_v53, 0.0 }
 0x545   :  { %4880 = vmatprep.mubr.f32.mxu1 %v4684_v45  ;;  %v5821_v22 = vadd.f32 -1.0, %v7148_v61  ;;  %v5084_v45 = vmax.f32 %v5068_v27, 0.0  ;;  %v5085_v61 = vmax.f32 %v5069_v34, 0.0 }
 0x546   :  { %v5080_v50 = vmax.f32 %v5064_v3, 0.0 }
 0x547   :  { %v4685_v32 = vsel %vm4493_vm1, %v4445_v46, %v5821_v22  ;;  %v5079_v46 = vmax.f32 %v5063_v37, 0.0  ;;  %v5032_v22 = vmax.f32 %v14402_v15, 0.0 }
 0x548   :  { %6069 = vmatmul.mubr.f32.gmra.mrb[110].mxu0 %v4685_v32 }
 0x549   :  { %6087 = vmatprep.mubr.msk.f32.mxu0 %vm5098_vm3, %v5070_v35 }
 0x54b   :  { %v7150_v40 = vpop.eup %7149 }
 0x54c   :  { %v5819_v42 = vadd.f32 -1.0, %v7150_v40  ;;  %6088 = vmatmul.mubr.msk.f32.vlgmr.msra.gmra.mrb[112].mxu0 %vm5098_vm3, %v5071_v30 }
 0x54d   :  { %6090 = vmatprep.mubr.msk.f32.mxu0 %vm5098_vm3, %v5072_v60 }
 0x54e   :  { %v4683_v0 = vsel %vm4491_vm4, %v4443_v41, %v5819_v42  ;;  %v5077_v41 = vmax.f32 %v5061_v56, 0.0 }
 0x54f   :  { %4881 = vmatmul.mubr.f32.gmra.mrb[94].mxu1 %v4683_v0 }
 0x550   :  { %6099 = vmatprep.mubr.msk.f32.mxu1 %vm5098_vm3, %v5078_v25  ;;  %6091 = vmatmul.mubr.msk.f32.gmra.mrb[114].mxu0 %vm5098_vm3, %v5073_v31 }
 0x551   :  { %6093 = vmatprep.mubr.msk.f32.mxu0 %vm5098_vm3, %v5074_v1 }
 0x553   :  { %6100 = vmatmul.mubr.msk.f32.vlgmr.msra.gmra.mrb[96].mxu1 %vm5098_vm3, %v5079_v46  ;;  %v5906_v35 = vpop.f32.mrb[74].mxu1 }
 0x554   :  { %6102 = vmatprep.mubr.msk.f32.mxu1 %vm5098_vm3, %v5080_v50  ;;  %6094 = vmatmul.mubr.msk.f32.gmra.mrb[116].mxu0 %vm5098_vm3, %v5075_v47  ;;  %v5907_v62 = vpop.f32.mrb[75].mxu1 }
 0x555   :  { %6096 = vmatprep.mubr.msk.f32.mxu0 %vm5098_vm3, %v5076_v23  ;;  %6226 = vmatpush3.bf16.msra.mxu1 %v14393_v19  ;;  %v5031_v19 = vmax.f32 %v14407_v51, 0.0  ;;  %v6055_v51 = vpop.f32.mrb[100].mxu0  ;;  %v5908_v52 = vadd.f32 %v5907_v62, %v5906_v35 }
 0x556   :  { %6228 = vmatprep.subr.bf16.mxu1 %v6227_v43  ;;  %v4972_v32 = vpop.f32.mrb[101].mxu0 }
 0x557   :  { %6103 = vmatmul.mubr.msk.f32.gmra.mrb[98].mxu1 %vm5098_vm3, %v5081_v36  ;;  %v4973_v15 = vadd.f32 %v4972_v32, %v4828_v58  ;;  %v4833_v30 = vadd.f32 %v5908_v52, %v14377_v12 }
 0x558   :  { %6105 = vmatprep.mubr.msk.f32.mxu1 %vm5098_vm3, %v5082_v44  ;;  %6097 = vmatmul.mubr.msk.f32.gmra.mrb[118].mxu0 %vm5098_vm3, %v5077_v41 }
 0x559   :  { %6230 = vmatpush3.bf16.msra.mxu1 %v6227_v43  ;;  %v5035_v4 = vmax.f32 %v4973_v15, 0.0  ;;  %v4978_v26 = vadd.f32 %v6055_v51, %v4833_v30 }
 0x55b   :  { %6106 = vmatmul.mubr.msk.f32.gmra.mrb[100].mxu1 %vm5098_vm3, %v5083_v10  ;;  %v5036_v53 = vmax.f32 %v4978_v26, 0.0 }
 0x55c   :  { %6108 = vmatprep.mubr.msk.f32.mxu1 %vm5098_vm3, %v5084_v45 }
 0x55f   :  { %6109 = vmatmul.mubr.msk.f32.gmra.mrb[102].mxu1 %vm5098_vm3, %v5085_v61 }
 0x560   :  { %6119 = vmatprep.mubr.msk.f32.mxu1 %vm5292_vm5, %v5031_v19 }
 0x563   :  { %6120 = vmatmul.mubr.msk.f32.vlgmr.msra.gmra.mrb[104].mxu1 %vm5292_vm5, %v5032_v22 }
 0x564   :  { %6122 = vmatprep.mubr.msk.f32.mxu1 %vm5292_vm5, %v5033_v57 }
 0x567   :  { %6123 = vmatmul.mubr.msk.f32.gmra.mrb[106].mxu1 %vm5292_vm5, %v5034_v29 }
 0x568   :  { %6125 = vmatprep.mubr.msk.f32.mxu1 %vm5292_vm5, %v5035_v4 }
 0x56b   :  { %6126 = vmatmul.mubr.msk.f32.gmra.mrb[108].mxu1 %vm5292_vm5, %v5036_v53 }
 0x574   :  { %v5909_v14 = vpop.f32.mrb[76].mxu1 }
 0x575   :  { %v5910_v6 = vpop.f32.mrb[77].mxu1 }
 0x576   :  { %v5911_v13 = vadd.f32 %v5910_v6, %v5909_v14 }
 0x578   :  { %v4838_v9 = vadd.f32 %v5911_v13, %v14377_v12 }
 0x583   :  { %v5912_v40 = vpop.f32.mrb[78].mxu1 }
 0x584   :  { %v5913_v60 = vpop.f32.mrb[79].mxu1 }
 0x585   :  { %v5914_v55 = vadd.f32 %v5913_v60, %v5912_v40 }
 0x586   :  { %v6058_v42 = vpop.f32.mrb[102].mxu0 }
 0x587   :  { %v4843_v39 = vadd.f32 %v5914_v55, %v14377_v12  ;;  %v4982_v7 = vpop.f32.mrb[103].mxu0 }
 0x588   :  { %v4983_v59 = vadd.f32 %v4982_v7, %v4838_v9 }
 0x589   :  { %v4988_v37 = vadd.f32 %v6058_v42, %v4843_v39 }
 0x58a   :  { %v5037_v54 = vmax.f32 %v4983_v59, 0.0 }
 0x58b   :  { %v5038_v31 = vmax.f32 %v4988_v37, 0.0 }
 0x58c   :  { %6128 = vmatprep.mubr.msk.f32.mxu1 %vm5292_vm5, %v5037_v54 }
 0x58d   :  { %6129 = vmatmul.mubr.msk.f32.gmra.mrb[110].mxu1 %vm5292_vm5, %v5038_v31 }
 0x59d   :  { %v5915_v25 = vpop.f32.mrb[80].mxu1 }
 0x59e   :  { %v5916_v5 = vpop.f32.mrb[81].mxu1 }
 0x59f   :  { %v5917_v3 = vadd.f32 %v5916_v5, %v5915_v25 }
 0x5a1   :  { %v4848_v49 = vadd.f32 %v5917_v3, %v14377_v12  ;;  %v14525_v3 = vld [vmem:[%s14669_s7] ss:$0 sm:$0xff] }
 0x5c6   :  { %v6061_v0 = vpop.f32.mrb[104].mxu0 }
 0x5c7   :  { %v4992_v1 = vpop.f32.mrb[105].mxu0 }
 0x5c8   :  { %v4993_v17 = vadd.f32 %v4992_v1, %v4848_v49 }
 0x5ca   :  { %v5039_v63 = vmax.f32 %v4993_v17, 0.0 }
 0x5cc   :  { %6131 = vmatprep.mubr.msk.f32.mxu1 %vm5292_vm5, %v5039_v63 }
 0x5d8   :  { %v5918_v28 = vpop.f32.mrb[82].mxu1 }
 0x5d9   :  { %v5919_v18 = vpop.f32.mrb[83].mxu1 }
 0x5da   :  { %v5920_v48 = vadd.f32 %v5919_v18, %v5918_v28  ;;  %v14532_v28 = vld [vmem:[%s14670_s8] ss:$0 sm:$0xff] }
 0x5dc   :  { %v4853_v47 = vadd.f32 %v5920_v48, %v14377_v12 }
 0x5de   :  { %v4998_v46 = vadd.f32 %v6061_v0, %v4853_v47 }
 0x5e0   :  { %v5040_v16 = vmax.f32 %v4998_v46, 0.0 }
 0x5e2   :  { %6132 = vmatmul.mubr.msk.f32.gmra.mrb[96].mxu1 %vm5292_vm5, %v5040_v16 }
 0x5f1   :  { %v5921_v38 = vpop.f32.mrb[84].mxu1 }
 0x5f2   :  { %v5922_v33 = vpop.f32.mrb[85].mxu1 }
 0x5f3   :  { %v5923_v56 = vadd.f32 %v5922_v33, %v5921_v38 }
 0x5f5   :  { %v5924_v50 = vpop.f32.mrb[86].mxu1  ;;  %v4858_v11 = vadd.f32 %v5923_v56, %v14377_v12 }
 0x5f6   :  { %v5925_v2 = vpop.f32.mrb[87].mxu1 }
 0x5f7   :  { %v5926_v43 = vadd.f32 %v5925_v2, %v5924_v50 }
 0x5f8   :  { %v6064_v23 = vpop.f32.mrb[106].mxu0 }
 0x5f9   :  { %v4863_v36 = vadd.f32 %v5926_v43, %v14377_v12  ;;  %v5002_v20 = vpop.f32.mrb[107].mxu0 }
 0x5fa   :  { %v5003_v8 = vadd.f32 %v5002_v20, %v4858_v11 }
 0x5fb   :  { %v5008_v41 = vadd.f32 %v6064_v23, %v4863_v36 }
 0x5fc   :  { %v5041_v44 = vmax.f32 %v5003_v8, 0.0 }
 0x5fd   :  { %v5042_v24 = vmax.f32 %v5008_v41, 0.0 }
 0x5fe   :  { %6134 = vmatprep.mubr.msk.f32.mxu1 %vm5292_vm5, %v5041_v44 }
 0x5ff   :  { %6135 = vmatmul.mubr.msk.f32.gmra.mrb[98].mxu1 %vm5292_vm5, %v5042_v24 }
 0x601   :  { %v5927_v27 = vpop.f32.mrb[88].mxu1 }
 0x602   :  { %v5928_v10 = vpop.f32.mrb[89].mxu1 }
 0x603   :  { %v5929_v21 = vadd.f32 %v5928_v10, %v5927_v27 }
 0x605   :  { %v4868_v61 = vadd.f32 %v5929_v21, %v14377_v12 }
 0x608   :  { %v5930_v34 = vpop.f32.mrb[90].mxu1 }
 0x609   :  { %v5931_v45 = vpop.f32.mrb[91].mxu1 }
 0x60a   :  { %v5932_v19 = vadd.f32 %v5931_v45, %v5930_v34 }
 0x60b   :  { %v6067_v22 = vpop.f32.mrb[108].mxu0 }
 0x60c   :  { %v4873_v57 = vadd.f32 %v5932_v19, %v14377_v12  ;;  %v5012_v29 = vpop.f32.mrb[109].mxu0 }
 0x60d   :  { %v5013_v35 = vadd.f32 %v5012_v29, %v4868_v61 }
 0x60e   :  { %v5018_v58 = vadd.f32 %v6067_v22, %v4873_v57 }
 0x60f   :  { %v5043_v62 = vmax.f32 %v5013_v35, 0.0 }
 0x610   :  { %v5044_v51 = vmax.f32 %v5018_v58, 0.0 }
 0x611   :  { %v5933_v52 = vpop.f32.mrb[92].mxu1  ;;  %6137 = vmatprep.mubr.msk.f32.mxu1 %vm5292_vm5, %v5043_v62 }
 0x612   :  { %v5934_v32 = vpop.f32.mrb[93].mxu1  ;;  %6138 = vmatmul.mubr.msk.f32.gmra.mrb[100].mxu1 %vm5292_vm5, %v5044_v51 }
 0x613   :  { %v5935_v15 = vadd.f32 %v5934_v32, %v5933_v52 }
 0x615   :  { %v4878_v30 = vadd.f32 %v5935_v15, %v14377_v12 }
 0x61b   :  { %v6070_v4 = vpop.f32.mrb[110].mxu0 }
 0x61c   :  { %v5022_v26 = vpop.f32.mrb[111].mxu0 }
 0x61d   :  { %v5023_v53 = vadd.f32 %v5022_v26, %v4878_v30 }
 0x61f   :  { %v5045_v14 = vmax.f32 %v5023_v53, 0.0  ;;  %v6089_v6 = vpop.f32.mrb[112].mxu0 }
 0x620   :  { %v5213_v13 = vpop.f32.mrb[113].mxu0 }
 0x621   :  { %6140 = vmatprep.mubr.msk.f32.mxu1 %vm5292_vm5, %v5045_v14 }
 0x622   :  { %v5936_v40 = vpop.f32.mrb[94].mxu1 }
 0x623   :  { %v5937_v60 = vpop.f32.mrb[95].mxu1  ;;  %v6092_v9 = vpop.f32.mrb[114].mxu0 }
 0x624   :  { %v5938_v55 = vadd.f32 %v5937_v60, %v5936_v40  ;;  %v5223_v42 = vpop.f32.mrb[115].mxu0 }
 0x626   :  { %v4883_v39 = vadd.f32 %v5938_v55, %v14377_v12 }
 0x627   :  { %v6095_v7 = vpop.f32.mrb[116].mxu0 }
 0x628   :  { %v5028_v59 = vadd.f32 %v6070_v4, %v4883_v39  ;;  %v5233_v37 = vpop.f32.mrb[117].mxu0 }
 0x62a   :  { %v5046_v54 = vmax.f32 %v5028_v59, 0.0 }
 0x62b   :  { %v6098_v31 = vpop.f32.mrb[118].mxu0 }
 0x62c   :  { %6141 = vmatmul.mubr.msk.f32.gmra.mrb[102].mxu1 %vm5292_vm5, %v5046_v54  ;;  %v5243_v25 = vpop.f32.mrb[119].mxu0 }
 0x636   :  { %v6121_v5 = vpop.f32.mrb[104].mxu1 }
 0x637   :  { %v5413_v0 = vadd.f32 %v6121_v5, %v6089_v6  ;;  %v5407_v49 = vpop.f32.mrb[105].mxu1 }
 0x638   :  { %v5408_v1 = vadd.f32 %v5407_v49, %v5213_v13 }
 0x639   :  { %v5494_v17 = vadd.f32 %v14525_v3, %v5413_v0 }
 0x63a   :  { %v5493_v12 = vadd.f32 %v14525_v3, %v5408_v1  ;;  %v6124_v63 = vpop.f32.mrb[106].mxu1 }
 0x63b   :  { %v5510_v18 = vmax.f32 %v5494_v17, 0.0  ;;  %v5423_v48 = vadd.f32 %v6124_v63, %v6092_v9  ;;  %v5417_v47 = vpop.f32.mrb[107].mxu1 }
 0x63c   :  { %v5509_v46 = vmax.f32 %v5493_v12, 0.0  ;;  %v5418_v16 = vadd.f32 %v5417_v47, %v5223_v42 }
 0x63d   :  { %v5496_v38 = vadd.f32 %v14525_v3, %v5423_v48  ;;  %v5533_v33 = vmul.f32 %v14532_v28, %v5510_v18 }
 0x63e   :  { %v5495_v56 = vadd.f32 %v14525_v3, %v5418_v16  ;;  %v5532_v50 = vmul.f32 %v14532_v28, %v5509_v46  ;;  %v6127_v20 = vpop.f32.mrb[108].mxu1 }
 0x63f   :  { %v5512_v2 = vmax.f32 %v5496_v38, 0.0  ;;  %v5551_v11 = vsel %vm5292_vm5, %v5533_v33, 0.0  ;;  %v5433_v8 = vadd.f32 %v6127_v20, %v6095_v7  ;;  %v5427_v41 = vpop.f32.mrb[109].mxu1 }
 0x640   :  { %v5511_v43 = vmax.f32 %v5495_v56, 0.0  ;;  %5552 = vadd.xlane.f32.xlu1 %v5551_v11  ;;  %v5548_v23 = vsel %vm5292_vm5, %v5532_v50, 0.0  ;;  %v5428_v24 = vadd.f32 %v5427_v41, %v5233_v37  ;;  %v14562_v37 = vld [vmem:[#allocation2] ss:$0 sm:$0xff] }
 0x641   :  { %5549 = vadd.xlane.f32.xlu0 %v5548_v23  ;;  %v5535_v36 = vmul.f32 %v14532_v28, %v5512_v2  ;;  %v5498_v10 = vadd.f32 %v14525_v3, %v5433_v8 }
 0x642   :  { %v5534_v27 = vmul.f32 %v14532_v28, %v5511_v43  ;;  %v5497_v21 = vadd.f32 %v14525_v3, %v5428_v24 }
 0x643   :  { %v5557_v44 = vsel %vm5292_vm5, %v5535_v36, 0.0  ;;  %v5514_v34 = vmax.f32 %v5498_v10, 0.0 }
 0x644   :  { %v5513_v45 = vmax.f32 %v5497_v21, 0.0  ;;  %v5554_v19 = vsel %vm5292_vm5, %v5534_v27, 0.0 }
 0x645   :  { %5558 = vadd.xlane.f32.xlu0 %v5557_v44  ;;  %v5537_v61 = vmul.f32 %v14532_v28, %v5514_v34 }
 0x646   :  { %v5536_v22 = vmul.f32 %v14532_v28, %v5513_v45 }
 0x647   :  { %v5563_v57 = vsel %vm5292_vm5, %v5537_v61, 0.0 }
 0x648   :  { %v5560_v29 = vsel %vm5292_vm5, %v5536_v22, 0.0 }
 0x649   :  { %5555 = vadd.xlane.f32.xlu0 %v5554_v19  ;;  %5561 = vadd.xlane.f32.xlu1 %v5560_v29 }
 0x64d   :  { %5564 = vadd.xlane.f32.xlu0 %v5563_v57 }
 0x660   :  { %v6130_v58 = vpop.f32.mrb[110].mxu1 }
 0x661   :  { %v5443_v35 = vadd.f32 %v6130_v58, %v6098_v31  ;;  %v5437_v51 = vpop.f32.mrb[111].mxu1 }
 0x662   :  { %v5438_v62 = vadd.f32 %v5437_v51, %v5243_v25 }
 0x663   :  { %v5500_v52 = vadd.f32 %v14525_v3, %v5443_v35 }
 0x664   :  { %v5499_v32 = vadd.f32 %v14525_v3, %v5438_v62 }
 0x665   :  { %v5516_v15 = vmax.f32 %v5500_v52, 0.0 }
 0x666   :  { %v5515_v30 = vmax.f32 %v5499_v32, 0.0 }
 0x667   :  { %v5539_v4 = vmul.f32 %v14532_v28, %v5516_v15 }
 0x668   :  { %v5538_v26 = vmul.f32 %v14532_v28, %v5515_v30 }
 0x669   :  { %v5569_v53 = vsel %vm5292_vm5, %v5539_v4, 0.0 }
 0x66a   :  { %5570 = vadd.xlane.f32.xlu0 %v5569_v53  ;;  %v5566_v14 = vsel %vm5292_vm5, %v5538_v26, 0.0 }
 0x66b   :  { %5567 = vadd.xlane.f32.xlu1 %v5566_v14 }
 0x6b5   :  { %v6133_v6 = vpop.f32.mrb[96].mxu1 }
 0x6b6   :  { %v5502_v13 = vadd.f32 %v6133_v6, %v14525_v3  ;;  %v5447_v40 = vpop.f32.mrb[97].mxu1 }
 0x6b7   :  { %v5501_v60 = vadd.f32 %v14525_v3, %v5447_v40 }
 0x6b8   :  { %v5518_v9 = vmax.f32 %v5502_v13, 0.0 }
 0x6b9   :  { %v5517_v55 = vmax.f32 %v5501_v60, 0.0 }
 0x6ba   :  { %v5541_v42 = vmul.f32 %v14532_v28, %v5518_v9 }
 0x6bb   :  { %v5540_v39 = vmul.f32 %v14532_v28, %v5517_v55 }
 0x6bc   :  { %v5575_v7 = vsel %vm5292_vm5, %v5541_v42, 0.0 }
 0x6bd   :  { %5576 = vadd.xlane.f32.xlu0 %v5575_v7  ;;  %v5572_v59 = vsel %vm5292_vm5, %v5540_v39, 0.0 }
 0x6be   :  { %5573 = vadd.xlane.f32.xlu1 %v5572_v59 }
 0x6cd   :  { %v5553_v54 = vpop.xlane.xlu1 %5552 }
 0x6ce   :  { %v5604_v31 = vadd.f32 %v14562_v37, %v5553_v54  ;;  %v5550_v25 = vpop.xlane.xlu0 %5549 }
 0x6cf   :  { %v5603_v5 = vadd.f32 %v14562_v37, %v5550_v25 }
 0x6d0   :  { %5621 = vst.msk [vmem:[%s14672_s10 + $0x8] sm:$0xff] %vm5619_vm6, %v5604_v31 }
 0x6d1   :  { %5620 = vst.msk [vmem:[%s14672_s10] sm:$0xff] %vm5619_vm6, %v5603_v5 }
 0x6d2   :  { %v6136_v0 = vpop.f32.mrb[98].mxu1  ;;  %v5559_v17 = vpop.xlane.xlu0 %5558 }
 0x6d3   :  { %v5504_v49 = vadd.f32 %v6136_v0, %v14525_v3  ;;  %v5457_v1 = vpop.f32.mrb[99].mxu1  ;;  %v5606_v63 = vadd.f32 %v14562_v37, %v5559_v17 }
 0x6d4   :  { %v5503_v12 = vadd.f32 %v14525_v3, %v5457_v1 }
 0x6d5   :  { %v5520_v18 = vmax.f32 %v5504_v49, 0.0  ;;  %5623 = vst.msk [vmem:[%s14672_s10 + $0x18] sm:$0xff] %vm5619_vm6, %v5606_v63 }
 0x6d6   :  { %v5519_v48 = vmax.f32 %v5503_v12, 0.0  ;;  %v5556_v46 = vpop.xlane.xlu0 %5555  ;;  %v5562_v2 = vpop.xlane.xlu1 %5561 }
 0x6d7   :  { %v5543_v47 = vmul.f32 %v14532_v28, %v5520_v18  ;;  %v5605_v38 = vadd.f32 %v14562_v37, %v5556_v46  ;;  %v5607_v43 = vadd.f32 %v14562_v37, %v5562_v2 }
 0x6d8   :  { %v5542_v16 = vmul.f32 %v14532_v28, %v5519_v48 }
 0x6d9   :  { %v5581_v33 = vsel %vm5292_vm5, %v5543_v47, 0.0  ;;  %5622 = vst.msk [vmem:[%s14672_s10 + $0x10] sm:$0xff] %vm5619_vm6, %v5605_v38  ;;  %5624 = vst.msk [vmem:[%s14672_s10 + $0x20] sm:$0xff] %vm5619_vm6, %v5607_v43 }
 0x6da   :  { %5582 = vadd.xlane.f32.xlu0 %v5581_v33  ;;  %v5578_v56 = vsel %vm5292_vm5, %v5542_v16, 0.0  ;;  %v5565_v50 = vpop.xlane.xlu0 %5564 }
 0x6db   :  { %5579 = vadd.xlane.f32.xlu1 %v5578_v56  ;;  %v5608_v11 = vadd.f32 %v14562_v37, %v5565_v50 }
 0x6dd   :  { %5625 = vst.msk [vmem:[%s14672_s10 + $0x28] sm:$0xff] %vm5619_vm6, %v5608_v11 }
 0x6e5   :  { %v6139_v23 = vpop.f32.mrb[100].mxu1 }
 0x6e6   :  { %v5506_v36 = vadd.f32 %v6139_v23, %v14525_v3  ;;  %v5467_v20 = vpop.f32.mrb[101].mxu1 }
 0x6e7   :  { %v5505_v8 = vadd.f32 %v14525_v3, %v5467_v20 }
 0x6e8   :  { %v5522_v41 = vmax.f32 %v5506_v36, 0.0 }
 0x6e9   :  { %v5521_v44 = vmax.f32 %v5505_v8, 0.0 }
 0x6ea   :  { %v5545_v24 = vmul.f32 %v14532_v28, %v5522_v41 }
 0x6eb   :  { %v5544_v27 = vmul.f32 %v14532_v28, %v5521_v44 }
 0x6ec   :  { %v5587_v10 = vsel %vm5292_vm5, %v5545_v24, 0.0 }
 0x6ed   :  { %5588 = vadd.xlane.f32.xlu0 %v5587_v10  ;;  %v5584_v21 = vsel %vm5292_vm5, %v5544_v27, 0.0 }
 0x6ee   :  { %5585 = vadd.xlane.f32.xlu1 %v5584_v21 }
 0x6f7   :  { %v5571_v29 = vpop.xlane.xlu0 %5570 }
 0x6f8   :  { %v5610_v35 = vadd.f32 %v14562_v37, %v5571_v29  ;;  %v5568_v51 = vpop.xlane.xlu1 %5567 }
 0x6f9   :  { %v5609_v52 = vadd.f32 %v14562_v37, %v5568_v51 }
 0x6fa   :  { %5627 = vst.msk [vmem:[%s14672_s10 + $0x38] sm:$0xff] %vm5619_vm6, %v5610_v35 }
 0x6fb   :  { %5626 = vst.msk [vmem:[%s14672_s10 + $0x30] sm:$0xff] %vm5619_vm6, %v5609_v52 }
 0x6ff   :  { %v6142_v34 = vpop.f32.mrb[102].mxu1 }
 0x700   :  { %v5508_v45 = vadd.f32 %v6142_v34, %v14525_v3  ;;  %v5477_v19 = vpop.f32.mrb[103].mxu1 }
 0x701   :  { %v5507_v61 = vadd.f32 %v14525_v3, %v5477_v19 }
 0x702   :  { %v5524_v22 = vmax.f32 %v5508_v45, 0.0 }
 0x703   :  { %v5523_v57 = vmax.f32 %v5507_v61, 0.0 }
 0x704   :  { %v5547_v58 = vmul.f32 %v14532_v28, %v5524_v22 }
 0x705   :  { %v5546_v62 = vmul.f32 %v14532_v28, %v5523_v57 }
 0x706   :  { %v5593_v32 = vsel %vm5292_vm5, %v5547_v58, 0.0 }
 0x707   :  { %5594 = vadd.xlane.f32.xlu0 %v5593_v32  ;;  %v5590_v3 = vsel %vm5292_vm5, %v5546_v62, 0.0 }
 0x708   :  { %5591 = vadd.xlane.f32.xlu1 %v5590_v3 }
 0x74a   :  { %v5577_v15 = vpop.xlane.xlu0 %5576 }
 0x74b   :  { %v5612_v28 = vadd.f32 %v14562_v37, %v5577_v15  ;;  %v5574_v30 = vpop.xlane.xlu1 %5573 }
 0x74c   :  { %v5611_v4 = vadd.f32 %v14562_v37, %v5574_v30 }
 0x74d   :  { %5629 = vst.msk [vmem:[%s14672_s10 + $0x48] sm:$0xff] %vm5619_vm6, %v5612_v28 }
 0x74e   :  { %5628 = vst.msk [vmem:[%s14672_s10 + $0x40] sm:$0xff] %vm5619_vm6, %v5611_v4 }
 0x767   :  { %v5583_v26 = vpop.xlane.xlu0 %5582 }
 0x768   :  { %v5614_v53 = vadd.f32 %v14562_v37, %v5583_v26  ;;  %v5580_v14 = vpop.xlane.xlu1 %5579 }
 0x769   :  { %v5613_v6 = vadd.f32 %v14562_v37, %v5580_v14 }
 0x76a   :  { %5631 = vst.msk [vmem:[%s14672_s10 + $0x58] sm:$0xff] %vm5619_vm6, %v5614_v53 }
 0x76b   :  { %5630 = vst.msk [vmem:[%s14672_s10 + $0x50] sm:$0xff] %vm5619_vm6, %v5613_v6 }
 0x77a   :  { %v5589_v13 = vpop.xlane.xlu0 %5588 }
 0x77b   :  { %v5616_v40 = vadd.f32 %v14562_v37, %v5589_v13  ;;  %v5586_v60 = vpop.xlane.xlu1 %5585 }
 0x77c   :  { %v5615_v9 = vadd.f32 %v14562_v37, %v5586_v60 }
 0x77d   :  { %5633 = vst.msk [vmem:[%s14672_s10 + $0x68] sm:$0xff] %vm5619_vm6, %v5616_v40 }
 0x77e   :  { %5632 = vst.msk [vmem:[%s14672_s10 + $0x60] sm:$0xff] %vm5619_vm6, %v5615_v9 }
 0x794   :  { %v5595_v55 = vpop.xlane.xlu0 %5594 }
 0x795   :  { %v5618_v42 = vadd.f32 %v14562_v37, %v5595_v55  ;;  %v5592_v39 = vpop.xlane.xlu1 %5591 }
 0x796   :  { %v5617_v7 = vadd.f32 %v14562_v37, %v5592_v39 }
 0x797   :  { %5635 = vst.msk [vmem:[%s14672_s10 + $0x78] sm:$0xff] %vm5619_vm6, %v5618_v42 }
 0x798   :  { %5634 = vst.msk [vmem:[%s14672_s10 + $0x70] sm:$0xff] %vm5619_vm6, %v5617_v7 }
 0x799   :  { %5640 = vsyncpa [#allocation4], 1 }

</bundles_post_ra>
